<compile_context>
chip_gen: v7x
topology: tpu7x:2x2x1
jax: 0.10.0
libtpu: 0.0.40
codegen_flags: <defaults>
</compile_context>

<pallas_src>
import math

import jax
import jax.numpy as jnp
from jax.experimental import pallas as pl
from jax.experimental.pallas import tpu as pltpu

# ------------------------- model hyper-parameters ---------------------------
EMB_POS = 10            # embedding_dim_pos
EMB_DIR = 4             # embedding_dim_direction
HIDDEN = 128            # hidden_dim
DX = EMB_POS * 6 + 3    # 63  (positional-encoded o)
DD = EMB_DIR * 6 + 3    # 27  (positional-encoded d)
H2 = HIDDEN // 2        # 64

TN_MAX = 2048                       # rows per grid step (sweep 1024-4096)
VMEM_LIMIT_BYTES = 32 * 1024 * 1024 # explicit scoped-VMEM limit (safe all gens)

# FLOPs per row after fold + sigma-merge (9 matmuls) and HBM bytes per row.
FLOPS_PER_ROW = (2 * DX * HIDDEN            # layer 1
                 + 3 * 2 * HIDDEN * HIDDEN  # layers 2-4
                 + 2 * (HIDDEN + DX) * HIDDEN      # block2 layer 1 (K-concat)
                 + 2 * 2 * HIDDEN * HIDDEN         # block2 layers 2-3
                 + 2 * (HIDDEN + DD) * (H2 + 1)    # folded head (h3 pre + sigma)
                 + 2 * H2 * 3)                     # color head
BYTES_PER_ROW = (DX + DD) * 2 + 4 * 4   # bf16 embeddings in, f32 (c||sigma) out
WEIGHT_BYTES = 254_000                  # ~125k bf16 weight elems + f32 biases


# ------------------------------ Pallas kernel -------------------------------
def make_nerf_kernel(fuse_k):
    """fuse_k=True: K-concat form (256-deep MXU, v6e/v7x).
       fuse_k=False: split-matmul form (v5e and older)."""

    def nerf_kernel(embx_ref, embd_ref,
                    w11, b11, w12, b12, w13, b13, w14, b14,
                    w21, b21, w22, b22, w23, b23,
                    wh, bh, w4, b4,
                    out_ref):
        f32 = jnp.float32
        bf16 = jnp.bfloat16

        ex = embx_ref[...]          # (TN, 63) bf16
        ed = embd_ref[...]          # (TN, 27) bf16

        def lin(x_bf, w_ref, b_ref):
            # bf16 x bf16 matmul on the MXU with f32 accumulation, f32 bias add.
            return jnp.dot(x_bf, w_ref[...], preferred_element_type=f32) + b_ref[...]

        def relu_bf(x_f32):
            # relu in f32 (VPU), then down-cast for the next MXU pass.
            return jax.nn.relu(x_f32).astype(bf16)

        # ---- block1: 4x (Linear + ReLU) ----
        h = relu_bf(lin(ex, w11, b11))
        h = relu_bf(lin(h, w12, b12))
        h = relu_bf(lin(h, w13, b13))
        h = relu_bf(lin(h, w14, b14))

        # ---- block2 first layer: Linear(cat(h, emb_x)) ----
        if fuse_k:
            # 128-lane-aligned concat (free), single K=191 MXU pass.
            hx = jnp.concatenate([h, ex], axis=1)                      # (TN, 191)
            t = relu_bf(lin(hx, w21, b21))
        else:
            # v5e: split matmuls on the 128-deep MXU (same weight operand).
            t = relu_bf(
                jnp.dot(h, w21[:HIDDEN, :], preferred_element_type=f32)
                + jnp.dot(ex, w21[HIDDEN:HIDDEN + DX, :], preferred_element_type=f32)
                + b21[...])

        # ---- block2 layers 2-3 ----
        t = relu_bf(lin(t, w22, b22))
        t = relu_bf(lin(t, w23, b23))

        # ---- folded head: (block2 last Linear) o (block3 Linear) + sigma col ----
        # u[:, :64]  = t @ (w24h @ w3h) + emb_d @ w3e + (b24h @ w3h + b3)
        # u[:, 64:]  = t @ w24s + b24s
        if fuse_k:
            td = jnp.concatenate([t, ed], axis=1)                      # (TN, 155)
            u = lin(td, wh, bh)                                        # (TN, 65)
        else:
            u = (jnp.dot(t, wh[:HIDDEN, :], preferred_element_type=f32)
                 + jnp.dot(ed, wh[HIDDEN:HIDDEN + DD, :], preferred_element_type=f32)
                 + bh[...])

        sigma = jax.nn.relu(u[:, H2:H2 + 1])                           # (TN, 1) f32
        h3 = jax.nn.relu(u[:, 0:H2]).astype(bf16)                      # (TN, 64)

        # ---- block4: Linear + Sigmoid ----
        c = jax.nn.sigmoid(lin(h3, w4, b4))                            # (TN, 3) f32

        # Single merged (c || sigma) store -> one output DMA per step.
        out_ref[...] = jnp.concatenate([c, sigma], axis=1).astype(out_ref.dtype)

    return nerf_kernel


# ------------------------------ wrapper --------------------------------------
def positional_encoding(x, L):
    out = [x]
    for j in range(L):
        out.append(jnp.sin((2.0 ** j) * x))
        out.append(jnp.cos((2.0 ** j) * x))
    return jnp.concatenate(out, axis=1)


def _use_k_concat():
    # 256-deep MXU (v6e / v7x) rewards K-concatenated matmuls; v5-and-older
    # (128-deep) keep the split form.
    try:
        kind = jax.devices()[0].device_kind.lower()
    except Exception:
        return True
    for old in ("v2", "v3", "v4", "v5"):
        if old in kind:
            return False
    return True


def _pick_tile(n, tn_max=TN_MAX):
    # Keep >= 4 grid steps when possible (feeds both v7x TensorCores), never
    # below 128 rows per tile; prefer an even step count for balanced cores.
    tn = tn_max
    while tn > 128 and pl.cdiv(n, tn) < 4:
        tn //= 2
    steps = pl.cdiv(n, tn)
    if tn > 128 and steps % 2 == 1 and steps < 16:
        tn //= 2
    return tn


def prepare_weights(params):
    """Fold w24h into w3h, merge the sigma column, cast weights to bf16."""
    f32 = jnp.float32
    bf16 = jnp.bfloat16
    w24, b24 = params["w24"].astype(f32), params["b24"].astype(f32)   # (128,129)
    w3, b3 = params["w3"].astype(f32), params["b3"].astype(f32)       # (155,64)

    w24h, w24s = w24[:, :HIDDEN], w24[:, HIDDEN:]      # (128,128), (128,1)
    b24h, b24s = b24[:, :HIDDEN], b24[:, HIDDEN:]      # (1,128),   (1,1)
    w3h, w3e = w3[:HIDDEN, :], w3[HIDDEN:, :]          # (128,64),  (27,64)

    w_fold = w24h @ w3h                                # (128, 64) f32 fold
    b_fold = b24h @ w3h + b3                           # (1, 64)

    w_head = jnp.concatenate(
        [jnp.concatenate([w_fold, w24s], axis=1),                          # (128,65)
         jnp.concatenate([w3e, jnp.zeros((DD, 1), f32)], axis=1)],         # (27,65)
        axis=0)                                                            # (155,65)
    b_head = jnp.concatenate([b_fold, b24s], axis=1)                       # (1,65)

    return [
        params["w11"].astype(bf16), params["b11"],
        params["w12"].astype(bf16), params["b12"],
        params["w13"].astype(bf16), params["b13"],
        params["w14"].astype(bf16), params["b14"],
        params["w21"].astype(bf16), params["b21"],
        params["w22"].astype(bf16), params["b22"],
        params["w23"].astype(bf16), params["b23"],
        w_head.astype(bf16), b_head,
        params["w4"].astype(bf16), params["b4"],
    ]


def nerf_forward(o, d, params, tn_max=TN_MAX):
    n = o.shape[0]
    tn = _pick_tile(n, tn_max)
    n_pad = pl.cdiv(n, tn) * tn
    if n_pad != n:
        o = jnp.pad(o, ((0, n_pad - n), (0, 0)))
        d = jnp.pad(d, ((0, n_pad - n), (0, 0)))

    # Positional encoding in the wrapper; bf16 inputs halve HBM reads and feed
    # the MXU natively.
    emb_x = positional_encoding(o, EMB_POS).astype(jnp.bfloat16)   # (n_pad, 63)
    emb_d = positional_encoding(d, EMB_DIR).astype(jnp.bfloat16)   # (n_pad, 27)

    weight_list = prepare_weights(params)
    fuse_k = _use_k_concat()

    def row_spec(fdim):
        return pl.BlockSpec((tn, fdim), lambda i: (i, 0))

    def full_spec(arr):
        return pl.BlockSpec(arr.shape, lambda i: (0, 0))

    in_specs = [row_spec(DX), row_spec(DD)] + [full_spec(w) for w in weight_list]
    out_specs = row_spec(4)
    out_shape = jax.ShapeDtypeStruct((n_pad, 4), jnp.float32)

    cost = pl.CostEstimate(
        flops=FLOPS_PER_ROW * n_pad,
        transcendentals=3 * n_pad,                       # sigmoid on 3 cols/row
        bytes_accessed=BYTES_PER_ROW * n_pad + WEIGHT_BYTES,
    )

    out = pl.pallas_call(
        make_nerf_kernel(fuse_k),
        out_shape=out_shape,
        grid_spec=pltpu.PrefetchScalarGridSpec(
            num_scalar_prefetch=0,
            grid=(n_pad // tn,),
            in_specs=in_specs,
            out_specs=out_specs,
        ),
        compiler_params=pltpu.CompilerParams(
            dimension_semantics=("parallel",),
            vmem_limit_bytes=VMEM_LIMIT_BYTES,
        ),
        cost_estimate=cost,
    )(emb_x, emb_d, *weight_list)

    return out[:n, :3], out[:n, 3]


# ------------------------- deterministic parameter init ----------------------
def init_linear(key, fan_in, fan_out):
    k1, k2 = jax.random.split(key)
    bound = 1.0 / math.sqrt(fan_in)
    w = jax.random.uniform(k1, (fan_in, fan_out), jnp.float32, -bound, bound)
    b = jax.random.uniform(k2, (1, fan_out), jnp.float32, -bound, bound)
    return w, b


def init_params(key):
    keys = jax.random.split(key, 10)
    p = {}
    # block1
    p["w11"], p["b11"] = init_linear(keys[0], DX, HIDDEN)
    p["w12"], p["b12"] = init_linear(keys[1], HIDDEN, HIDDEN)
    p["w13"], p["b13"] = init_linear(keys[2], HIDDEN, HIDDEN)
    p["w14"], p["b14"] = init_linear(keys[3], HIDDEN, HIDDEN)
    # block2 (first layer input is cat(h, emb_x); last layer outputs HIDDEN+1)
    p["w21"], p["b21"] = init_linear(keys[4], HIDDEN + DX, HIDDEN)
    p["w22"], p["b22"] = init_linear(keys[5], HIDDEN, HIDDEN)
    p["w23"], p["b23"] = init_linear(keys[6], HIDDEN, HIDDEN)
    p["w24"], p["b24"] = init_linear(keys[7], HIDDEN, HIDDEN + 1)
    # block3 (input is cat(h, emb_d))
    p["w3"], p["b3"] = init_linear(keys[8], HIDDEN + DD, H2)
    # block4
    p["w4"], p["b4"] = init_linear(keys[9], H2, 3)
    return p


# ------------------------------ pure-JAX reference ---------------------------
def nerf_reference(o, d, p):
    emb_x = positional_encoding(o, EMB_POS)
    emb_d = positional_encoding(d, EMB_DIR)
    relu = jax.nn.relu
    h = relu(emb_x @ p["w11"] + p["b11"])
    h = relu(h @ p["w12"] + p["b12"])
    h = relu(h @ p["w13"] + p["b13"])
    h = relu(h @ p["w14"] + p["b14"])
    t = relu(jnp.concatenate([h, emb_x], axis=1) @ p["w21"] + p["b21"])
    t = relu(t @ p["w22"] + p["b22"])
    t = relu(t @ p["w23"] + p["b23"])
    tmp = t @ p["w24"] + p["b24"]
    h2, sigma = tmp[:, :-1], relu(tmp[:, -1])
    h3 = relu(jnp.concatenate([h2, emb_d], axis=1) @ p["w3"] + p["b3"])
    c = jax.nn.sigmoid(h3 @ p["w4"] + p["b4"])
    return c, sigma


# ----------------------------------- main ------------------------------------
if __name__ == "__main__":
    key = jax.random.PRNGKey(0)
    k_params, k_o, k_d = jax.random.split(key, 3)

    params = init_params(k_params)

    N = 4096  # number of (ray, sample) rows (small test; production N is millions)
    o = jax.random.normal(k_o, (N, 3), jnp.float32)
    d = jax.random.normal(k_d, (N, 3), jnp.float32)

    c, sigma = nerf_forward(o, d, params)
    jax.block_until_ready((c, sigma))

    c_ref, sigma_ref = nerf_reference(o, d, params)
    assert c.shape == (N, 3) and sigma.shape == (N,)
    # bf16 MXU operands (f32 accumulation, f32 fold) -> loose tolerance vs f32 ref.
    assert jnp.allclose(c, c_ref, atol=3e-2, rtol=3e-2)
    assert jnp.allclose(sigma, sigma_ref, atol=3e-2, rtol=3e-2)

    print("KERNEL_OK")
</pallas_src>

<mosaic_0001>
module attributes {stable_mosaic.version = 11 : i64} {
  func.func @nerf_kernel(%arg0: i32, %arg1: memref<1024x63xbf16, #tpu.memory_space<vmem>>, %arg2: memref<1024x27xbf16, #tpu.memory_space<vmem>>, %arg3: memref<63x128xbf16, #tpu.memory_space<vmem>>, %arg4: memref<1x128xf32, #tpu.memory_space<vmem>>, %arg5: memref<128x128xbf16, #tpu.memory_space<vmem>>, %arg6: memref<1x128xf32, #tpu.memory_space<vmem>>, %arg7: memref<128x128xbf16, #tpu.memory_space<vmem>>, %arg8: memref<1x128xf32, #tpu.memory_space<vmem>>, %arg9: memref<128x128xbf16, #tpu.memory_space<vmem>>, %arg10: memref<1x128xf32, #tpu.memory_space<vmem>>, %arg11: memref<191x128xbf16, #tpu.memory_space<vmem>>, %arg12: memref<1x128xf32, #tpu.memory_space<vmem>>, %arg13: memref<128x128xbf16, #tpu.memory_space<vmem>>, %arg14: memref<1x128xf32, #tpu.memory_space<vmem>>, %arg15: memref<128x128xbf16, #tpu.memory_space<vmem>>, %arg16: memref<1x128xf32, #tpu.memory_space<vmem>>, %arg17: memref<155x65xbf16, #tpu.memory_space<vmem>>, %arg18: memref<1x65xf32, #tpu.memory_space<vmem>>, %arg19: memref<64x3xbf16, #tpu.memory_space<vmem>>, %arg20: memref<1x3xf32, #tpu.memory_space<vmem>>, %arg21: memref<1024x4xf32, #tpu.memory_space<vmem>>) attributes {dimension_semantics = [#tpu.dimension_semantics<parallel>], iteration_bounds = array<i64: 4>, scalar_prefetch = 0 : i64, scratch_operands = 0 : i64, tpu.core_type = #tpu.core_type<tc>, window_params = [{transform_indices = @transform_0, window_bounds = array<i64: 1024, 63>}, {transform_indices = @transform_1, window_bounds = array<i64: 1024, 27>}, {pipeline_mode = #tpu.pipeline_mode<synchronous>, transform_indices = @transform_2, window_bounds = array<i64: 63, 128>}, {pipeline_mode = #tpu.pipeline_mode<synchronous>, transform_indices = @transform_3, window_bounds = array<i64: 1, 128>}, {pipeline_mode = #tpu.pipeline_mode<synchronous>, transform_indices = @transform_4, window_bounds = array<i64: 128, 128>}, {pipeline_mode = #tpu.pipeline_mode<synchronous>, transform_indices = @transform_5, window_bounds = array<i64: 1, 128>}, {pipeline_mode = #tpu.pipeline_mode<synchronous>, transform_indices = @transform_6, window_bounds = array<i64: 128, 128>}, {pipeline_mode = #tpu.pipeline_mode<synchronous>, transform_indices = @transform_7, window_bounds = array<i64: 1, 128>}, {pipeline_mode = #tpu.pipeline_mode<synchronous>, transform_indices = @transform_8, window_bounds = array<i64: 128, 128>}, {pipeline_mode = #tpu.pipeline_mode<synchronous>, transform_indices = @transform_9, window_bounds = array<i64: 1, 128>}, {pipeline_mode = #tpu.pipeline_mode<synchronous>, transform_indices = @transform_10, window_bounds = array<i64: 191, 128>}, {pipeline_mode = #tpu.pipeline_mode<synchronous>, transform_indices = @transform_11, window_bounds = array<i64: 1, 128>}, {pipeline_mode = #tpu.pipeline_mode<synchronous>, transform_indices = @transform_12, window_bounds = array<i64: 128, 128>}, {pipeline_mode = #tpu.pipeline_mode<synchronous>, transform_indices = @transform_13, window_bounds = array<i64: 1, 128>}, {pipeline_mode = #tpu.pipeline_mode<synchronous>, transform_indices = @transform_14, window_bounds = array<i64: 128, 128>}, {pipeline_mode = #tpu.pipeline_mode<synchronous>, transform_indices = @transform_15, window_bounds = array<i64: 1, 128>}, {pipeline_mode = #tpu.pipeline_mode<synchronous>, transform_indices = @transform_16, window_bounds = array<i64: 155, 65>}, {pipeline_mode = #tpu.pipeline_mode<synchronous>, transform_indices = @transform_17, window_bounds = array<i64: 1, 65>}, {pipeline_mode = #tpu.pipeline_mode<synchronous>, transform_indices = @transform_18, window_bounds = array<i64: 64, 3>}, {pipeline_mode = #tpu.pipeline_mode<synchronous>, transform_indices = @transform_19, window_bounds = array<i64: 1, 3>}, {transform_indices = @transform_20, window_bounds = array<i64: 1024, 4>}]} {
    %c0 = arith.constant 0 : index
    %c0_0 = arith.constant 0 : index
    %0 = vector.load %arg1[%c0, %c0_0] : memref<1024x63xbf16, #tpu.memory_space<vmem>>, vector<1024x63xbf16>
    %c0_1 = arith.constant 0 : index
    %c0_2 = arith.constant 0 : index
    %1 = vector.load %arg2[%c0_1, %c0_2] : memref<1024x27xbf16, #tpu.memory_space<vmem>>, vector<1024x27xbf16>
    %c0_3 = arith.constant 0 : index
    %c0_4 = arith.constant 0 : index
    %2 = vector.load %arg3[%c0_3, %c0_4] : memref<63x128xbf16, #tpu.memory_space<vmem>>, vector<63x128xbf16>
    %cst = arith.constant dense<0.000000e+00> : vector<1024x128xf32>
    %3 = tpu.matmul %0, %2, %cst {dimension_numbers = #tpu.dot_dimension_numbers<[1], [0], [0], [1], [0, 0, 1, 1], [], []>} : vector<1024x63xbf16>, vector<63x128xbf16>, vector<1024x128xf32> -> vector<1024x128xf32>
    %c0_5 = arith.constant 0 : index
    %c0_6 = arith.constant 0 : index
    %4 = vector.load %arg4[%c0_5, %c0_6] : memref<1x128xf32, #tpu.memory_space<vmem>>, vector<1x128xf32>
    %5 = vector.broadcast %4 : vector<1x128xf32> to vector<1024x128xf32>
    %6 = arith.addf %3, %5 : vector<1024x128xf32>
    %cst_7 = arith.constant 0.000000e+00 : f32
    %7 = vector.broadcast %cst_7 : f32 to vector<1024x128xf32>
    %8 = arith.maximumf %6, %7 : vector<1024x128xf32>
    %9 = arith.truncf %8 : vector<1024x128xf32> to vector<1024x128xbf16>
    %c0_8 = arith.constant 0 : index
    %c0_9 = arith.constant 0 : index
    %10 = vector.load %arg5[%c0_8, %c0_9] : memref<128x128xbf16, #tpu.memory_space<vmem>>, vector<128x128xbf16>
    %cst_10 = arith.constant dense<0.000000e+00> : vector<1024x128xf32>
    %11 = tpu.matmul %9, %10, %cst_10 {dimension_numbers = #tpu.dot_dimension_numbers<[1], [0], [0], [1], [0, 0, 1, 1], [], []>} : vector<1024x128xbf16>, vector<128x128xbf16>, vector<1024x128xf32> -> vector<1024x128xf32>
    %c0_11 = arith.constant 0 : index
    %c0_12 = arith.constant 0 : index
    %12 = vector.load %arg6[%c0_11, %c0_12] : memref<1x128xf32, #tpu.memory_space<vmem>>, vector<1x128xf32>
    %13 = vector.broadcast %12 : vector<1x128xf32> to vector<1024x128xf32>
    %14 = arith.addf %11, %13 : vector<1024x128xf32>
    %cst_13 = arith.constant 0.000000e+00 : f32
    %15 = vector.broadcast %cst_13 : f32 to vector<1024x128xf32>
    %16 = arith.maximumf %14, %15 : vector<1024x128xf32>
    %17 = arith.truncf %16 : vector<1024x128xf32> to vector<1024x128xbf16>
    %c0_14 = arith.constant 0 : index
    %c0_15 = arith.constant 0 : index
    %18 = vector.load %arg7[%c0_14, %c0_15] : memref<128x128xbf16, #tpu.memory_space<vmem>>, vector<128x128xbf16>
    %cst_16 = arith.constant dense<0.000000e+00> : vector<1024x128xf32>
    %19 = tpu.matmul %17, %18, %cst_16 {dimension_numbers = #tpu.dot_dimension_numbers<[1], [0], [0], [1], [0, 0, 1, 1], [], []>} : vector<1024x128xbf16>, vector<128x128xbf16>, vector<1024x128xf32> -> vector<1024x128xf32>
    %c0_17 = arith.constant 0 : index
    %c0_18 = arith.constant 0 : index
    %20 = vector.load %arg8[%c0_17, %c0_18] : memref<1x128xf32, #tpu.memory_space<vmem>>, vector<1x128xf32>
    %21 = vector.broadcast %20 : vector<1x128xf32> to vector<1024x128xf32>
    %22 = arith.addf %19, %21 : vector<1024x128xf32>
    %cst_19 = arith.constant 0.000000e+00 : f32
    %23 = vector.broadcast %cst_19 : f32 to vector<1024x128xf32>
    %24 = arith.maximumf %22, %23 : vector<1024x128xf32>
    %25 = arith.truncf %24 : vector<1024x128xf32> to vector<1024x128xbf16>
    %c0_20 = arith.constant 0 : index
    %c0_21 = arith.constant 0 : index
    %26 = vector.load %arg9[%c0_20, %c0_21] : memref<128x128xbf16, #tpu.memory_space<vmem>>, vector<128x128xbf16>
    %cst_22 = arith.constant dense<0.000000e+00> : vector<1024x128xf32>
    %27 = tpu.matmul %25, %26, %cst_22 {dimension_numbers = #tpu.dot_dimension_numbers<[1], [0], [0], [1], [0, 0, 1, 1], [], []>} : vector<1024x128xbf16>, vector<128x128xbf16>, vector<1024x128xf32> -> vector<1024x128xf32>
    %c0_23 = arith.constant 0 : index
    %c0_24 = arith.constant 0 : index
    %28 = vector.load %arg10[%c0_23, %c0_24] : memref<1x128xf32, #tpu.memory_space<vmem>>, vector<1x128xf32>
    %29 = vector.broadcast %28 : vector<1x128xf32> to vector<1024x128xf32>
    %30 = arith.addf %27, %29 : vector<1024x128xf32>
    %cst_25 = arith.constant 0.000000e+00 : f32
    %31 = vector.broadcast %cst_25 : f32 to vector<1024x128xf32>
    %32 = arith.maximumf %30, %31 : vector<1024x128xf32>
    %33 = arith.truncf %32 : vector<1024x128xf32> to vector<1024x128xbf16>
    %34 = tpu.concatenate %33, %0 in 1 : vector<1024x128xbf16>, vector<1024x63xbf16> -> vector<1024x191xbf16>
    %c0_26 = arith.constant 0 : index
    %c0_27 = arith.constant 0 : index
    %35 = vector.load %arg11[%c0_26, %c0_27] : memref<191x128xbf16, #tpu.memory_space<vmem>>, vector<191x128xbf16>
    %cst_28 = arith.constant dense<0.000000e+00> : vector<1024x128xf32>
    %36 = tpu.matmul %34, %35, %cst_28 {dimension_numbers = #tpu.dot_dimension_numbers<[1], [0], [0], [1], [0, 0, 1, 1], [], []>} : vector<1024x191xbf16>, vector<191x128xbf16>, vector<1024x128xf32> -> vector<1024x128xf32>
    %c0_29 = arith.constant 0 : index
    %c0_30 = arith.constant 0 : index
    %37 = vector.load %arg12[%c0_29, %c0_30] : memref<1x128xf32, #tpu.memory_space<vmem>>, vector<1x128xf32>
    %38 = vector.broadcast %37 : vector<1x128xf32> to vector<1024x128xf32>
    %39 = arith.addf %36, %38 : vector<1024x128xf32>
    %cst_31 = arith.constant 0.000000e+00 : f32
    %40 = vector.broadcast %cst_31 : f32 to vector<1024x128xf32>
    %41 = arith.maximumf %39, %40 : vector<1024x128xf32>
    %42 = arith.truncf %41 : vector<1024x128xf32> to vector<1024x128xbf16>
    %c0_32 = arith.constant 0 : index
    %c0_33 = arith.constant 0 : index
    %43 = vector.load %arg13[%c0_32, %c0_33] : memref<128x128xbf16, #tpu.memory_space<vmem>>, vector<128x128xbf16>
    %cst_34 = arith.constant dense<0.000000e+00> : vector<1024x128xf32>
    %44 = tpu.matmul %42, %43, %cst_34 {dimension_numbers = #tpu.dot_dimension_numbers<[1], [0], [0], [1], [0, 0, 1, 1], [], []>} : vector<1024x128xbf16>, vector<128x128xbf16>, vector<1024x128xf32> -> vector<1024x128xf32>
    %c0_35 = arith.constant 0 : index
    %c0_36 = arith.constant 0 : index
    %45 = vector.load %arg14[%c0_35, %c0_36] : memref<1x128xf32, #tpu.memory_space<vmem>>, vector<1x128xf32>
    %46 = vector.broadcast %45 : vector<1x128xf32> to vector<1024x128xf32>
    %47 = arith.addf %44, %46 : vector<1024x128xf32>
    %cst_37 = arith.constant 0.000000e+00 : f32
    %48 = vector.broadcast %cst_37 : f32 to vector<1024x128xf32>
    %49 = arith.maximumf %47, %48 : vector<1024x128xf32>
    %50 = arith.truncf %49 : vector<1024x128xf32> to vector<1024x128xbf16>
    %c0_38 = arith.constant 0 : index
    %c0_39 = arith.constant 0 : index
    %51 = vector.load %arg15[%c0_38, %c0_39] : memref<128x128xbf16, #tpu.memory_space<vmem>>, vector<128x128xbf16>
    %cst_40 = arith.constant dense<0.000000e+00> : vector<1024x128xf32>
    %52 = tpu.matmul %50, %51, %cst_40 {dimension_numbers = #tpu.dot_dimension_numbers<[1], [0], [0], [1], [0, 0, 1, 1], [], []>} : vector<1024x128xbf16>, vector<128x128xbf16>, vector<1024x128xf32> -> vector<1024x128xf32>
    %c0_41 = arith.constant 0 : index
    %c0_42 = arith.constant 0 : index
    %53 = vector.load %arg16[%c0_41, %c0_42] : memref<1x128xf32, #tpu.memory_space<vmem>>, vector<1x128xf32>
    %54 = vector.broadcast %53 : vector<1x128xf32> to vector<1024x128xf32>
    %55 = arith.addf %52, %54 : vector<1024x128xf32>
    %cst_43 = arith.constant 0.000000e+00 : f32
    %56 = vector.broadcast %cst_43 : f32 to vector<1024x128xf32>
    %57 = arith.maximumf %55, %56 : vector<1024x128xf32>
    %58 = arith.truncf %57 : vector<1024x128xf32> to vector<1024x128xbf16>
    %59 = tpu.concatenate %58, %1 in 1 : vector<1024x128xbf16>, vector<1024x27xbf16> -> vector<1024x155xbf16>
    %c0_44 = arith.constant 0 : index
    %c0_45 = arith.constant 0 : index
    %60 = vector.load %arg17[%c0_44, %c0_45] : memref<155x65xbf16, #tpu.memory_space<vmem>>, vector<155x65xbf16>
    %cst_46 = arith.constant dense<0.000000e+00> : vector<1024x65xf32>
    %61 = tpu.matmul %59, %60, %cst_46 {dimension_numbers = #tpu.dot_dimension_numbers<[1], [0], [0], [1], [0, 0, 1, 1], [], []>} : vector<1024x155xbf16>, vector<155x65xbf16>, vector<1024x65xf32> -> vector<1024x65xf32>
    %c0_47 = arith.constant 0 : index
    %c0_48 = arith.constant 0 : index
    %62 = vector.load %arg18[%c0_47, %c0_48] : memref<1x65xf32, #tpu.memory_space<vmem>>, vector<1x65xf32>
    %63 = vector.broadcast %62 : vector<1x65xf32> to vector<1024x65xf32>
    %64 = arith.addf %61, %63 : vector<1024x65xf32>
    %65 = vector.extract_strided_slice %64 {offsets = [0, 64], sizes = [1024, 1], strides = [1, 1]} : vector<1024x65xf32> to vector<1024x1xf32>
    %cst_49 = arith.constant 0.000000e+00 : f32
    %66 = vector.broadcast %cst_49 : f32 to vector<1024x1xf32>
    %67 = arith.maximumf %65, %66 : vector<1024x1xf32>
    %68 = vector.extract_strided_slice %64 {offsets = [0, 0], sizes = [1024, 64], strides = [1, 1]} : vector<1024x65xf32> to vector<1024x64xf32>
    %cst_50 = arith.constant 0.000000e+00 : f32
    %69 = vector.broadcast %cst_50 : f32 to vector<1024x64xf32>
    %70 = arith.maximumf %68, %69 : vector<1024x64xf32>
    %71 = arith.truncf %70 : vector<1024x64xf32> to vector<1024x64xbf16>
    %c0_51 = arith.constant 0 : index
    %c0_52 = arith.constant 0 : index
    %72 = vector.load %arg19[%c0_51, %c0_52] : memref<64x3xbf16, #tpu.memory_space<vmem>>, vector<64x3xbf16>
    %cst_53 = arith.constant dense<0.000000e+00> : vector<1024x3xf32>
    %73 = tpu.matmul %71, %72, %cst_53 {dimension_numbers = #tpu.dot_dimension_numbers<[1], [0], [0], [1], [0, 0, 1, 1], [], []>} : vector<1024x64xbf16>, vector<64x3xbf16>, vector<1024x3xf32> -> vector<1024x3xf32>
    %c0_54 = arith.constant 0 : index
    %c0_55 = arith.constant 0 : index
    %74 = vector.load %arg20[%c0_54, %c0_55] : memref<1x3xf32, #tpu.memory_space<vmem>>, vector<1x3xf32>
    %75 = vector.broadcast %74 : vector<1x3xf32> to vector<1024x3xf32>
    %76 = arith.addf %73, %75 : vector<1024x3xf32>
    %77 = arith.negf %76 : vector<1024x3xf32>
    %78 = math.exp %77 : vector<1024x3xf32>
    %cst_56 = arith.constant 1.000000e+00 : f32
    %79 = vector.broadcast %cst_56 : f32 to vector<1024x3xf32>
    %80 = arith.addf %79, %78 : vector<1024x3xf32>
    %81 = arith.divf %79, %80 : vector<1024x3xf32>
    %82 = tpu.concatenate %81, %67 in 1 : vector<1024x3xf32>, vector<1024x1xf32> -> vector<1024x4xf32>
    %c0_57 = arith.constant 0 : index
    %c0_58 = arith.constant 0 : index
    %83 = vector.load %arg21[%c0_57, %c0_58] : memref<1024x4xf32, #tpu.memory_space<vmem>>, vector<1024x4xf32>
    tpu.vector_store %arg21[%c0_57, %c0_58], %82 {strides = array<i32>} : memref<1024x4xf32, #tpu.memory_space<vmem>>, vector<1024x4xf32>,
    return
  }
  func.func @transform_0(%arg0: i32) -> (i32, i32) {
    %c0_i32 = arith.constant 0 : i32
    %c0_i32_0 = arith.constant 0 : i32
    return %arg0, %c0_i32 : i32, i32
  }
  func.func @transform_1(%arg0: i32) -> (i32, i32) {
    %c0_i32 = arith.constant 0 : i32
    %c0_i32_0 = arith.constant 0 : i32
    return %arg0, %c0_i32 : i32, i32
  }
  func.func @transform_2(%arg0: i32) -> (i32, i32) {
    %c0_i32 = arith.constant 0 : i32
    %c0_i32_0 = arith.constant 0 : i32
    %c0_i32_1 = arith.constant 0 : i32
    return %c0_i32, %c0_i32_0 : i32, i32
  }
  func.func @transform_3(%arg0: i32) -> (i32, i32) {
    %c0_i32 = arith.constant 0 : i32
    %c0_i32_0 = arith.constant 0 : i32
    %c0_i32_1 = arith.constant 0 : i32
    return %c0_i32, %c0_i32_0 : i32, i32
  }
  func.func @transform_4(%arg0: i32) -> (i32, i32) {
    %c0_i32 = arith.constant 0 : i32
    %c0_i32_0 = arith.constant 0 : i32
    %c0_i32_1 = arith.constant 0 : i32
    return %c0_i32, %c0_i32_0 : i32, i32
  }
  func.func @transform_5(%arg0: i32) -> (i32, i32) {
    %c0_i32 = arith.constant 0 : i32
    %c0_i32_0 = arith.constant 0 : i32
    %c0_i32_1 = arith.constant 0 : i32
    return %c0_i32, %c0_i32_0 : i32, i32
  }
  func.func @transform_6(%arg0: i32) -> (i32, i32) {
    %c0_i32 = arith.constant 0 : i32
    %c0_i32_0 = arith.constant 0 : i32
    %c0_i32_1 = arith.constant 0 : i32
    return %c0_i32, %c0_i32_0 : i32, i32
  }
  func.func @transform_7(%arg0: i32) -> (i32, i32) {
    %c0_i32 = arith.constant 0 : i32
    %c0_i32_0 = arith.constant 0 : i32
    %c0_i32_1 = arith.constant 0 : i32
    return %c0_i32, %c0_i32_0 : i32, i32
  }
  func.func @transform_8(%arg0: i32) -> (i32, i32) {
    %c0_i32 = arith.constant 0 : i32
    %c0_i32_0 = arith.constant 0 : i32
    %c0_i32_1 = arith.constant 0 : i32
    return %c0_i32, %c0_i32_0 : i32, i32
  }
  func.func @transform_9(%arg0: i32) -> (i32, i32) {
    %c0_i32 = arith.constant 0 : i32
    %c0_i32_0 = arith.constant 0 : i32
    %c0_i32_1 = arith.constant 0 : i32
    return %c0_i32, %c0_i32_0 : i32, i32
  }
  func.func @transform_10(%arg0: i32) -> (i32, i32) {
    %c0_i32 = arith.constant 0 : i32
    %c0_i32_0 = arith.constant 0 : i32
    %c0_i32_1 = arith.constant 0 : i32
    return %c0_i32, %c0_i32_0 : i32, i32
  }
  func.func @transform_11(%arg0: i32) -> (i32, i32) {
    %c0_i32 = arith.constant 0 : i32
    %c0_i32_0 = arith.constant 0 : i32
    %c0_i32_1 = arith.constant 0 : i32
    return %c0_i32, %c0_i32_0 : i32, i32
  }
  func.func @transform_12(%arg0: i32) -> (i32, i32) {
    %c0_i32 = arith.constant 0 : i32
    %c0_i32_0 = arith.constant 0 : i32
    %c0_i32_1 = arith.constant 0 : i32
    return %c0_i32, %c0_i32_0 : i32, i32
  }
  func.func @transform_13(%arg0: i32) -> (i32, i32) {
    %c0_i32 = arith.constant 0 : i32
    %c0_i32_0 = arith.constant 0 : i32
    %c0_i32_1 = arith.constant 0 : i32
    return %c0_i32, %c0_i32_0 : i32, i32
  }
  func.func @transform_14(%arg0: i32) -> (i32, i32) {
    %c0_i32 = arith.constant 0 : i32
    %c0_i32_0 = arith.constant 0 : i32
    %c0_i32_1 = arith.constant 0 : i32
    return %c0_i32, %c0_i32_0 : i32, i32
  }
  func.func @transform_15(%arg0: i32) -> (i32, i32) {
    %c0_i32 = arith.constant 0 : i32
    %c0_i32_0 = arith.constant 0 : i32
    %c0_i32_1 = arith.constant 0 : i32
    return %c0_i32, %c0_i32_0 : i32, i32
  }
  func.func @transform_16(%arg0: i32) -> (i32, i32) {
    %c0_i32 = arith.constant 0 : i32
    %c0_i32_0 = arith.constant 0 : i32
    %c0_i32_1 = arith.constant 0 : i32
    return %c0_i32, %c0_i32_0 : i32, i32
  }
  func.func @transform_17(%arg0: i32) -> (i32, i32) {
    %c0_i32 = arith.constant 0 : i32
    %c0_i32_0 = arith.constant 0 : i32
    %c0_i32_1 = arith.constant 0 : i32
    return %c0_i32, %c0_i32_0 : i32, i32
  }
  func.func @transform_18(%arg0: i32) -> (i32, i32) {
    %c0_i32 = arith.constant 0 : i32
    %c0_i32_0 = arith.constant 0 : i32
    %c0_i32_1 = arith.constant 0 : i32
    return %c0_i32, %c0_i32_0 : i32, i32
  }
  func.func @transform_19(%arg0: i32) -> (i32, i32) {
    %c0_i32 = arith.constant 0 : i32
    %c0_i32_0 = arith.constant 0 : i32
    %c0_i32_1 = arith.constant 0 : i32
    return %c0_i32, %c0_i32_0 : i32, i32
  }
  func.func @transform_20(%arg0: i32) -> (i32, i32) {
    %c0_i32 = arith.constant 0 : i32
    %c0_i32_0 = arith.constant 0 : i32
    return %arg0, %c0_i32 : i32, i32
  }
}

</mosaic_0001>

<bundles_post_ra>
// kernel: tpu_custom_call.1
= control target key start
LH: loop header
LB: loop body
LE: loop exit
PB: predicated region body
PF: predicated region fallthrough
CT: control target
= control target key end

     0   :  { %s16952_s0 = inlined_call_operand.vmem [shape: bf16[4096,63], index: 0, kind: input, shape index: {}]   ;;  %s16953_s1 = inlined_call_operand.vmem [shape: bf16[4096,27], index: 1, kind: input, shape index: {}]   ;;  %s16954_s2 = inlined_call_operand.vmem [shape: bf16[63,128], index: 2, kind: input, shape index: {}]   ;;  %s16955_s3 = inlined_call_operand.vmem [shape: f32[1,128], index: 3, kind: input, shape index: {}]   ;;  %s16956_s4 = inlined_call_operand.vmem [shape: bf16[128,128], index: 4, kind: input, shape index: {}]   ;;  %s16957_s5 = inlined_call_operand.vmem [shape: f32[1,128], index: 5, kind: input, shape index: {}]   ;;  %s16958_s6 = inlined_call_operand.vmem [shape: bf16[128,128], index: 6, kind: input, shape index: {}]   ;;  %s16959_s7 = inlined_call_operand.vmem [shape: f32[1,128], index: 7, kind: input, shape index: {}]   ;;  %s16960_s8 = inlined_call_operand.vmem [shape: bf16[128,128], index: 8, kind: input, shape index: {}]   ;;  %s16961_s9 = inlined_call_operand.vmem [shape: f32[1,128], index: 9, kind: input, shape index: {}]   ;;  %s16962_s10 = inlined_call_operand.vmem [shape: bf16[191,128], index: 10, kind: input, shape index: {}]   ;;  %s16963_s11 = inlined_call_operand.vmem [shape: f32[1,128], index: 11, kind: input, shape index: {}]   ;;  %s16964_s12 = inlined_call_operand.vmem [shape: bf16[128,128], index: 12, kind: input, shape index: {}]   ;;  %s16965_s13 = inlined_call_operand.vmem [shape: f32[1,128], index: 13, kind: input, shape index: {}]   ;;  %s16966_s14 = inlined_call_operand.vmem [shape: bf16[128,128], index: 14, kind: input, shape index: {}]   ;;  %s16967_s15 = inlined_call_operand.vmem [shape: f32[1,128], index: 15, kind: input, shape index: {}]   ;;  %s16968_s16 = inlined_call_operand.vmem [shape: bf16[155,65], index: 16, kind: input, shape index: {}]   ;;  %s16969_s17 = inlined_call_operand.vmem [shape: f32[1,65], index: 17, kind: input, shape index: {}]   ;;  %s16970_s18 = inlined_call_operand.vmem [shape: bf16[64,3], index: 18, kind: input, shape index: {}]   ;;  %s16971_s19 = inlined_call_operand.vmem [shape: f32[1,3], index: 19, kind: input, shape index: {}]   ;;  %s16972_s20 = inlined_call_operand.vmem [shape: f32[4096,4], index: 20, kind: output, shape index: {}]  }
   0x1   :  { %16975 = sst [smem:[#allocation2_spill]] %s16952_s0 }
   0x2   :  { %16976 = sst [smem:[#allocation3_spill]] %s16953_s1  ;;  %s13829_s1 = smov 0  }
   0x3   :  { %16977 = sst [smem:[#allocation4_spill]] %s16954_s2 }
   0x4   :  { %16978 = sst [smem:[#allocation5_spill]] %s16955_s3 }
   0x5   :  { %16979 = sst [smem:[#allocation6_spill]] %s16956_s4 }
   0x6 LB: > { %s10815_s22 = sadd.s32 4294967295, %s13719_s1   ;;  %p10819_p0 = scmp.ge.s32.totalorder %s13719_s1, 1  ;;  %s13719_s1 = sphi %s13829_s1, %s30_s1  }
   0x7   : > { %p574_p1 = scmp.lt.s32.totalorder %s13719_s1, 5 }
   0x9   : > { %p575_p2 = pnand %p10819_p0, %p574_p1 }
   0xa   : > { %s16980_s2 = sld [smem:[#allocation4_spill]] (!%p575_p2)  ;;  %vm1463_vm0 = vcmask (!%p575_p2), 1046528   ;;  %vm1464_vm1 = vcmask (!%p575_p2), 1047552   ;;  %v13721_v2 = vmov (!%p575_p2), 65535   ;;  %s10820_s29 = sshll.u32 (!%p575_p2), %s10815_s22, 7  ;;  %vm1270_vm2 = vcmask (!%p575_p2), 515072  }
   0xb   : > { %578 = sbr.rel (%p575_p2) target bundleno = 2844 (0xb1c), region = 100  ;;  %v1465_v3 = vsel (!%p575_p2), %vm1463_vm0, 4294967295, %v13721_v2  ;;  %p638_p3 = scmp.lt.s32.totalorder (!%p575_p2), %s10820_s29, 511  ;;  %vm7688_vm3 = vcmask (!%p575_p2), 1044480   ;;  %vm7689_vm4 = vcmask (!%p575_p2), 1045504   ;;  %vm7495_vm5 = vcmask (!%p575_p2), 220160  }
   0xc   : > { %v13850_v6 = vsel (!%p575_p2), %vm1464_vm1, %v1465_v3, 0  ;;  %s16981_s23 = sld [smem:[#allocation2_spill]] (!%p575_p2)  ;;  %s16982_s3 = sld [smem:[#allocation6_spill]] (!%p575_p2)  ;;  %vm8471_vm6 = vcmask (!%p575_p2), 523264   ;;  %vm10489_vm7 = vcmask (!%p575_p2), 23552   ;;  %vm10618_vm8 = vcmask (!%p575_p2), 31744  }
   0xd   : > { %s16983_s24 = sld [smem:[#allocation3_spill]] (!%p575_p2)  ;;  %s16984_s21 = sld [smem:[#allocation5_spill]] (!%p575_p2) }
  0x10   : > { %v12926_v0 = vld [vmem:[%s16980_s2] sm:$0xff] (!%p575_p2)   ;;  %v12927_v1 = vld [vmem:[%s16980_s2 + $0x8] sm:$0xff] (!%p575_p2)   ;;  %v12928_v4 = vld [vmem:[%s16980_s2 + $0x10] sm:$0xff] (!%p575_p2)  }
  0x11   : > { %11915 = vmatprep.subr.bf16.mxu0 (!%p575_p2), %v12926_v0  ;;  %12907 = vmatprep.subr.bf16.mxu1 (!%p575_p2), %v12926_v0  ;;  %v12929_v5 = vld [vmem:[%s16980_s2 + $0x18] sm:$0xff] (!%p575_p2)  }
  0x12   : > { %11916 = vmatpush3.bf16.msra.mxu0 %v12926_v0  ;;  %12911 = vmatpush3.bf16.msra.mxu1 %v12926_v0  ;;  %s16986_s29 = smov (!%p638_p3, %s10820_s29), 511  ;;  %v1468_v7 = vand.u32 %v12929_v5, %v13850_v6  ;;  %v12956_v9 = vld [vmem:[%s16982_s3] sm:$0xff]   ;;  %v12965_v16 = vld [vmem:[%s16982_s3 + $0x8] sm:$0xff]   ;;  %v12974_v22 = vld [vmem:[%s16982_s3 + $0x10] sm:$0xff]  }
  0x13   : > { %11917 = vmatprep.subr.bf16.mxu0 %v12927_v1  ;;  %12908 = vmatprep.subr.bf16.mxu1 %v12927_v1  ;;  %s10821_s30 = sshll.u32 %s16986_s29, 2  ;;  %v12979_v25 = vld [vmem:[%s16982_s3 + $0x18] sm:$0xff]   ;;  %v12984_v28 = vld [vmem:[%s16982_s3 + $0x20] sm:$0xff]   ;;  %v12989_v37 = vld [vmem:[%s16982_s3 + $0x28] sm:$0xff]   ;;  %s10825_s28 = sshll.u32 %s16986_s29, 3 }
  0x14   : > { %s13861_s22 = scalar_lea.vmem %s16981_s23, %s10821_s30  ;;  %v12994_v40 = vld [vmem:[%s16982_s3 + $0x30] sm:$0xff]   ;;  %v12999_v44 = vld [vmem:[%s16982_s3 + $0x38] sm:$0xff]   ;;  %s13986_s25 = scalar_lea.vmem %s16983_s24, %s10821_s30 }
  0x15   : > { %v12930_v8 = vld [vmem:[%s13861_s22] sm:$0xff]   ;;  %v12931_v10 = vld [vmem:[%s13861_s22 + $0x8] sm:$0xff]   ;;  %v12932_v11 = vld [vmem:[%s13861_s22 + $0x10] sm:$0xff]   ;;  %s16243_s23 = scalar_lea.vmem %s16972_s20, %s10825_s28 }
  0x16   : > { %11918 = vmatpush3.bf16.msra.mxu0 %v12927_v1  ;;  %12912 = vmatpush3.bf16.msra.mxu1 %v12927_v1  ;;  %v12933_v12 = vld [vmem:[%s13861_s22 + $0x18] sm:$0xff]   ;;  %v12934_v13 = vld [vmem:[%s13861_s22 + $0x20] sm:$0xff]   ;;  %v12935_v14 = vld [vmem:[%s13861_s22 + $0x28] sm:$0xff]  }
  0x17   : > { %11919 = vmatprep.subr.bf16.mxu0 %v12928_v4  ;;  %12909 = vmatprep.subr.bf16.mxu1 %v12928_v4  ;;  %v12936_v15 = vld [vmem:[%s13861_s22 + $0x30] sm:$0xff]   ;;  %v12954_v17 = vld [vmem:[%s13861_s22 + $0x100] sm:$0xff]   ;;  %v12955_v18 = vld [vmem:[%s13861_s22 + $0x108] sm:$0xff]  }
  0x18   : > { %11923 = vmatprep.mubr.msk.bf16.mxu0 %vm1270_vm2, %v12930_v8  ;;  %v12937_v19 = vld [vmem:[%s13861_s22 + $0x38] sm:$0xff]   ;;  %11987 = vmatprep.mubr.msk.bf16.mxu1 %vm1270_vm2, %v12954_v17  ;;  %v12938_v20 = vld [vmem:[%s13861_s22 + $0x40] sm:$0xff]   ;;  %v12959_v21 = vld [vmem:[%s13861_s22 + $0x110] sm:$0xff]  }
  0x19   : > { %v12960_v23 = vld [vmem:[%s13861_s22 + $0x118] sm:$0xff]   ;;  %v12963_v24 = vld [vmem:[%s13861_s22 + $0x120] sm:$0xff]   ;;  %v12939_v26 = vld [vmem:[%s13861_s22 + $0x48] sm:$0xff]  }
  0x1a   : > { %11920 = vmatpush3.bf16.msra.mxu0 %v12928_v4  ;;  %12913 = vmatpush3.bf16.msra.mxu1 %v12928_v4  ;;  %v12940_v27 = vld [vmem:[%s13861_s22 + $0x50] sm:$0xff]   ;;  %v12964_v29 = vld [vmem:[%s13861_s22 + $0x128] sm:$0xff]   ;;  %v12941_v31 = vld [vmem:[%s13861_s22 + $0x58] sm:$0xff]  }
  0x1b   : > { %11921 = vmatprep.subr.bf16.mxu0 %v1468_v7  ;;  %12910 = vmatprep.subr.bf16.mxu1 %v1468_v7  ;;  %v12968_v30 = vld [vmem:[%s13861_s22 + $0x130] sm:$0xff]   ;;  %v12942_v32 = vld [vmem:[%s13861_s22 + $0x60] sm:$0xff]   ;;  %v12969_v33 = vld [vmem:[%s13861_s22 + $0x138] sm:$0xff]  }
  0x1c   : > { %v12972_v34 = vld [vmem:[%s13861_s22 + $0x140] sm:$0xff]   ;;  %v12943_v35 = vld [vmem:[%s13861_s22 + $0x68] sm:$0xff]   ;;  %v12944_v36 = vld [vmem:[%s13861_s22 + $0x70] sm:$0xff]  }
  0x1d   : > { %v12973_v38 = vld [vmem:[%s13861_s22 + $0x148] sm:$0xff]   ;;  %v12975_v39 = vld [vmem:[%s13861_s22 + $0x150] sm:$0xff]   ;;  %v12945_v41 = vld [vmem:[%s13861_s22 + $0x78] sm:$0xff]  }
  0x1e   : > { %11922 = vmatpush3.bf16.msra.mxu0 %v1468_v7  ;;  %12914 = vmatpush3.bf16.msra.mxu1 %v1468_v7  ;;  %v12946_v42 = vld [vmem:[%s13861_s22 + $0x80] sm:$0xff]   ;;  %v12976_v43 = vld [vmem:[%s13861_s22 + $0x158] sm:$0xff]   ;;  %v12947_v46 = vld [vmem:[%s13861_s22 + $0x88] sm:$0xff]  }
  0x1f   : > { %12051 = vmatprep.subr.bf16.mxu1 %v12956_v9  ;;  %v12977_v45 = vld [vmem:[%s13861_s22 + $0x160] sm:$0xff]   ;;  %v12948_v47 = vld [vmem:[%s13861_s22 + $0x90] sm:$0xff]   ;;  %v12978_v48 = vld [vmem:[%s13861_s22 + $0x168] sm:$0xff]  }
  0x20   : > { %v12980_v49 = vld [vmem:[%s13861_s22 + $0x170] sm:$0xff]   ;;  %v12949_v50 = vld [vmem:[%s13861_s22 + $0x98] sm:$0xff]   ;;  %v12950_v51 = vld [vmem:[%s13861_s22 + $0xa0] sm:$0xff]  }
  0x21   : > { %11924 = vmatmul.mubr.msk.bf16.vlgmr.msra.gmra.mrb[0].mxu0 %vm1270_vm2, %v12931_v10  ;;  %11988 = vmatmul.mubr.msk.bf16.vlgmr.msra.gmra.mrb[0].mxu1 %vm1270_vm2, %v12955_v18  ;;  %v12981_v52 = vld [vmem:[%s13861_s22 + $0x178] sm:$0xff]   ;;  %v12982_v53 = vld [vmem:[%s13861_s22 + $0x180] sm:$0xff]   ;;  %v12951_v54 = vld [vmem:[%s13861_s22 + $0xa8] sm:$0xff]  }
  0x22   : > { %11927 = vmatprep.mubr.msk.bf16.mxu0 %vm1270_vm2, %v12932_v11  ;;  %12052 = vmatpush3.bf16.msra.mxu1 %v12956_v9  ;;  %v12952_v55 = vld [vmem:[%s13861_s22 + $0xb0] sm:$0xff]   ;;  %v12983_v56 = vld [vmem:[%s13861_s22 + $0x188] sm:$0xff]   ;;  %v12953_v58 = vld [vmem:[%s13861_s22 + $0xb8] sm:$0xff]  }
  0x23   : > { %12053 = vmatprep.subr.bf16.mxu1 %v12965_v16  ;;  %11991 = vmatprep.mubr.msk.bf16.mxu1 %vm1270_vm2, %v12959_v21  ;;  %v12985_v57 = vld [vmem:[%s13861_s22 + $0x190] sm:$0xff]   ;;  %v12957_v59 = vld [vmem:[%s13861_s22 + $0xc0] sm:$0xff]   ;;  %v12986_v60 = vld [vmem:[%s13861_s22 + $0x198] sm:$0xff]  }
  0x24   : > { %v12987_v61 = vld [vmem:[%s13861_s22 + $0x1a0] sm:$0xff]   ;;  %v12958_v62 = vld [vmem:[%s13861_s22 + $0xc8] sm:$0xff]   ;;  %v12961_v63 = vld [vmem:[%s13861_s22 + $0xd0] sm:$0xff]  }
  0x25   : > { %v12988_v0 = vld [vmem:[%s13861_s22 + $0x1a8] sm:$0xff]   ;;  %v12990_v1 = vld [vmem:[%s13861_s22 + $0x1b0] sm:$0xff]   ;;  %v12962_v3 = vld [vmem:[%s13861_s22 + $0xd8] sm:$0xff]  }
  0x26   : > { %12054 = vmatpush3.bf16.msra.mxu1 %v12965_v16  ;;  %v12966_v4 = vld [vmem:[%s13861_s22 + $0xe0] sm:$0xff]   ;;  %v12991_v5 = vld [vmem:[%s13861_s22 + $0x1b8] sm:$0xff]   ;;  %v12967_v8 = vld [vmem:[%s13861_s22 + $0xe8] sm:$0xff]  }
  0x27   : > { %12055 = vmatprep.subr.bf16.mxu1 %v12974_v22  ;;  %v12992_v7 = vld [vmem:[%s13861_s22 + $0x1c0] sm:$0xff]   ;;  %v12970_v9 = vld [vmem:[%s13861_s22 + $0xf0] sm:$0xff]   ;;  %v12993_v10 = vld [vmem:[%s13861_s22 + $0x1c8] sm:$0xff]  }
  0x28   : > { %v12995_v11 = vld [vmem:[%s13861_s22 + $0x1d0] sm:$0xff]   ;;  %v13001_v17 = vld [vmem:[%s13861_s22 + $0x1f8] sm:$0xff]   ;;  %v13002_v18 = vld [vmem:[%s16958_s6] sm:$0xff]  }
  0x29   : > { %11928 = vmatmul.mubr.msk.bf16.gmra.mrb[4].mxu0 %vm1270_vm2, %v12933_v12  ;;  %11992 = vmatmul.mubr.msk.bf16.gmra.mrb[4].mxu1 %vm1270_vm2, %v12960_v23  ;;  %v12971_v12 = vld [vmem:[%s13861_s22 + $0xf8] sm:$0xff]   ;;  %v13000_v16 = vld [vmem:[%s13861_s22 + $0x1f0] sm:$0xff]  }
  0x2a   : > { %11931 = vmatprep.mubr.msk.bf16.mxu0 %vm1270_vm2, %v12934_v13  ;;  %11995 = vmatprep.mubr.msk.bf16.mxu1 %vm1270_vm2, %v12963_v24  ;;  %v12996_v13 = vld [vmem:[%s13861_s22 + $0x1d8] sm:$0xff]  }
  0x2b   : > { %12056 = vmatpush3.bf16.msra.mxu1 %v12974_v22  ;;  %12195 = vmatprep.subr.bf16.mxu0 %v13002_v18 }
  0x2c   : > { %12057 = vmatprep.subr.bf16.mxu1 %v12979_v25  ;;  %12196 = vmatpush3.bf16.msra.mxu0 %v13002_v18 }
  0x2f   : > { %12058 = vmatpush3.bf16.msra.mxu1 %v12979_v25 }
  0x30   : > { %12059 = vmatprep.subr.bf16.mxu1 %v12984_v28 }
  0x31   : > { %11932 = vmatmul.mubr.msk.bf16.gmra.mrb[8].mxu0 %vm1270_vm2, %v12935_v14  ;;  %11996 = vmatmul.mubr.msk.bf16.gmra.mrb[8].mxu1 %vm1270_vm2, %v12964_v29  ;;  %v12997_v14 = vld [vmem:[%s13861_s22 + $0x1e0] sm:$0xff]   ;;  %v13004_v29 = vld [vmem:[%s16958_s6 + $0x10] sm:$0xff]  }
  0x32   : > { %11935 = vmatprep.mubr.msk.bf16.mxu0 %vm1270_vm2, %v12936_v15  ;;  %11999 = vmatprep.mubr.msk.bf16.mxu1 %vm1270_vm2, %v12968_v30  ;;  %v12998_v15 = vld [vmem:[%s13861_s22 + $0x1e8] sm:$0xff]  }
  0x33   : > { %12060 = vmatpush3.bf16.msra.mxu1 %v12984_v28 }
  0x34   : > { %12061 = vmatprep.subr.bf16.mxu1 %v12989_v37 }
  0x37   : > { %12062 = vmatpush3.bf16.msra.mxu1 %v12989_v37 }
  0x38   : > { %12063 = vmatprep.subr.bf16.mxu1 %v12994_v40 }
  0x39   : > { %11936 = vmatmul.mubr.msk.bf16.gmra.mrb[12].mxu0 %vm1270_vm2, %v12937_v19  ;;  %12000 = vmatmul.mubr.msk.bf16.gmra.mrb[12].mxu1 %vm1270_vm2, %v12969_v33  ;;  %v13003_v19 = vld [vmem:[%s16958_s6 + $0x8] sm:$0xff]  }
  0x3a   : > { %11939 = vmatprep.mubr.msk.bf16.mxu0 %vm1270_vm2, %v12938_v20  ;;  %12003 = vmatprep.mubr.msk.bf16.mxu1 %vm1270_vm2, %v12972_v34  ;;  %v14031_v20 = vld [vmem:[%s16984_s21] ss:$0 sm:$0xff]  ;;  %s13723_s21 = smov 67  }
  0x3b   : > { %12064 = vmatpush3.bf16.msra.mxu1 %v12994_v40  ;;  %12197 = vmatprep.subr.bf16.mxu0 %v13003_v19 }
  0x3c   : > { %12065 = vmatprep.subr.bf16.mxu1 %v12999_v44  ;;  %12198 = vmatpush3.bf16.msra.mxu0 %v13003_v19 }
  0x3d   : > { %12199 = vmatprep.subr.bf16.mxu0 %v13004_v29 }
  0x3f   : > { %12066 = vmatpush3.bf16.msra.mxu1 %v12999_v44 }
  0x40   : > { %12200 = vmatpush3.bf16.msra.mxu0 %v13004_v29 }
  0x41   : > { %11940 = vmatmul.mubr.msk.bf16.gmra.mrb[16].mxu0 %vm1270_vm2, %v12939_v26  ;;  %12004 = vmatmul.mubr.msk.bf16.gmra.mrb[16].mxu1 %vm1270_vm2, %v12973_v38 }
  0x42   : > { %11943 = vmatprep.mubr.msk.bf16.mxu0 %vm1270_vm2, %v12940_v27  ;;  %12007 = vmatprep.mubr.msk.bf16.mxu1 %vm1270_vm2, %v12975_v39 }
  0x49   : > { %11944 = vmatmul.mubr.msk.bf16.gmra.mrb[20].mxu0 %vm1270_vm2, %v12941_v31  ;;  %12008 = vmatmul.mubr.msk.bf16.gmra.mrb[20].mxu1 %vm1270_vm2, %v12976_v43 }
  0x4a   : > { %11947 = vmatprep.mubr.msk.bf16.mxu0 %vm1270_vm2, %v12942_v32  ;;  %12011 = vmatprep.mubr.msk.bf16.mxu1 %vm1270_vm2, %v12977_v45 }
  0x51   : > { %11948 = vmatmul.mubr.msk.bf16.gmra.mrb[24].mxu0 %vm1270_vm2, %v12943_v35  ;;  %12012 = vmatmul.mubr.msk.bf16.gmra.mrb[24].mxu1 %vm1270_vm2, %v12978_v48 }
  0x52   : > { %11951 = vmatprep.mubr.msk.bf16.mxu0 %vm1270_vm2, %v12944_v36  ;;  %12015 = vmatprep.mubr.msk.bf16.mxu1 %vm1270_vm2, %v12980_v49 }
  0x59   : > { %11952 = vmatmul.mubr.msk.bf16.gmra.mrb[28].mxu0 %vm1270_vm2, %v12945_v41  ;;  %12016 = vmatmul.mubr.msk.bf16.gmra.mrb[28].mxu1 %vm1270_vm2, %v12981_v52 }
  0x5a   : > { %11955 = vmatprep.mubr.msk.bf16.mxu0 %vm1270_vm2, %v12946_v42  ;;  %12019 = vmatprep.mubr.msk.bf16.mxu1 %vm1270_vm2, %v12982_v53 }
  0x61   : > { %11956 = vmatmul.mubr.msk.bf16.gmra.mrb[32].mxu0 %vm1270_vm2, %v12947_v46  ;;  %12020 = vmatmul.mubr.msk.bf16.gmra.mrb[32].mxu1 %vm1270_vm2, %v12983_v56 }
  0x62   : > { %11959 = vmatprep.mubr.msk.bf16.mxu0 %vm1270_vm2, %v12948_v47  ;;  %12023 = vmatprep.mubr.msk.bf16.mxu1 %vm1270_vm2, %v12985_v57 }
  0x69   : > { %11960 = vmatmul.mubr.msk.bf16.gmra.mrb[36].mxu0 %vm1270_vm2, %v12949_v50  ;;  %12024 = vmatmul.mubr.msk.bf16.gmra.mrb[36].mxu1 %vm1270_vm2, %v12986_v60 }
  0x6a   : > { %11963 = vmatprep.mubr.msk.bf16.mxu0 %vm1270_vm2, %v12950_v51  ;;  %12027 = vmatprep.mubr.msk.bf16.mxu1 %vm1270_vm2, %v12987_v61  ;;  %v13005_v61 = vld [vmem:[%s16958_s6 + $0x18] sm:$0xff]  }
  0x6b   : > { %12201 = vmatprep.subr.bf16.mxu0 %v13005_v61 }
  0x6c   : > { %12202 = vmatpush3.bf16.msra.mxu0 %v13005_v61 }
  0x71   : > { %11964 = vmatmul.mubr.msk.bf16.gmra.mrb[40].mxu0 %vm1270_vm2, %v12951_v54  ;;  %12028 = vmatmul.mubr.msk.bf16.gmra.mrb[40].mxu1 %vm1270_vm2, %v12988_v0 }
  0x72   : > { %11967 = vmatprep.mubr.msk.bf16.mxu0 %vm1270_vm2, %v12952_v55  ;;  %12031 = vmatprep.mubr.msk.bf16.mxu1 %vm1270_vm2, %v12990_v1 }
  0x79   : > { %11968 = vmatmul.mubr.msk.bf16.gmra.mrb[44].mxu0 %vm1270_vm2, %v12953_v58  ;;  %12032 = vmatmul.mubr.msk.bf16.gmra.mrb[44].mxu1 %vm1270_vm2, %v12991_v5 }
  0x7a   : > { %11971 = vmatprep.mubr.msk.bf16.mxu0 %vm1270_vm2, %v12957_v59  ;;  %12035 = vmatprep.mubr.msk.bf16.mxu1 %vm1270_vm2, %v12992_v7 }
  0x81   : > { %11972 = vmatmul.mubr.msk.bf16.gmra.mrb[48].mxu0 %vm1270_vm2, %v12958_v62  ;;  %12036 = vmatmul.mubr.msk.bf16.gmra.mrb[48].mxu1 %vm1270_vm2, %v12993_v10 }
  0x82   : > { %11975 = vmatprep.mubr.msk.bf16.mxu0 %vm1270_vm2, %v12961_v63  ;;  %12039 = vmatprep.mubr.msk.bf16.mxu1 %vm1270_vm2, %v12995_v11 }
  0x89   : > { %11976 = vmatmul.mubr.msk.bf16.gmra.mrb[52].mxu0 %vm1270_vm2, %v12962_v3  ;;  %12040 = vmatmul.mubr.msk.bf16.gmra.mrb[52].mxu1 %vm1270_vm2, %v12996_v13 }
  0x8a   : > { %11979 = vmatprep.mubr.msk.bf16.mxu0 %vm1270_vm2, %v12966_v4  ;;  %12043 = vmatprep.mubr.msk.bf16.mxu1 %vm1270_vm2, %v12997_v14 }
  0x91   : > { %11980 = vmatmul.mubr.msk.bf16.gmra.mrb[56].mxu0 %vm1270_vm2, %v12967_v8  ;;  %12044 = vmatmul.mubr.msk.bf16.gmra.mrb[56].mxu1 %vm1270_vm2, %v12998_v15 }
  0x92   : > { %11983 = vmatprep.mubr.msk.bf16.mxu0 %vm1270_vm2, %v12970_v9  ;;  %12047 = vmatprep.mubr.msk.bf16.mxu1 %vm1270_vm2, %v13000_v16 }
  0x99   : > { %11984 = vmatmul.mubr.msk.bf16.gmra.mrb[60].mxu0 %vm1270_vm2, %v12971_v12  ;;  %12048 = vmatmul.mubr.msk.bf16.gmra.mrb[60].mxu1 %vm1270_vm2, %v13001_v17 }
  0xf4   : > { %v11925_v21 = vpop.f32.mrb[0].mxu0  ;;  %v11989_v60 = vpop.f32.mrb[0].mxu1 }
  0xf5   : > { %v1513_v22 = vadd.f32 %v11925_v21, %v14031_v20  ;;  %v1504_v23 = vpop.f32.mrb[1].mxu0  ;;  %v1769_v63 = vadd.f32 %v11989_v60, %v14031_v20  ;;  %v1760_v0 = vpop.f32.mrb[1].mxu1 }
  0xf6   : > { %v1505_v24 = vadd.f32 %v14031_v20, %v1504_v23  ;;  %v11926_v25 = vpop.f32.mrb[2].mxu0  ;;  %v1761_v3 = vadd.f32 %v14031_v20, %v1760_v0  ;;  %v11990_v4 = vpop.f32.mrb[2].mxu1 }
  0xf7   : > { %v1516_v26 = vadd.f32 %v11926_v25, %v14031_v20  ;;  %v1507_v27 = vpop.f32.mrb[3].mxu0  ;;  %v2017_v30 = vmax.f32 %v1513_v22, 0.0  ;;  %v2081_v7 = vmax.f32 %v1769_v63, 0.0  ;;  %v1772_v8 = vadd.f32 %v11990_v4, %v14031_v20  ;;  %v1763_v9 = vpop.f32.mrb[3].mxu1 }
  0xf8   : > { %v1508_v28 = vadd.f32 %v14031_v20, %v1507_v27  ;;  %v2015_v32 = vmax.f32 %v1505_v24, 0.0  ;;  %v2079_v12 = vmax.f32 %v1761_v3, 0.0  ;;  %v1764_v13 = vadd.f32 %v14031_v20, %v1763_v9 }
  0xf9   : > { %v2018_v31 = vmax.f32 %v1516_v26, 0.0  ;;  %v2082_v16 = vmax.f32 %v1772_v8, 0.0 }
  0xfa   : > { %v2016_v33 = vmax.f32 %v1508_v28, 0.0  ;;  %v2080_v19 = vmax.f32 %v1764_v13, 0.0 }
  0xfb   : > { %v2144_v34 = vpack.c.bf16 %v2018_v31, %v2017_v30  ;;  %v14058_v24 = vpack.c.bf16 %v2082_v16, %v2081_v7 }
  0xfc   : > { %v11929_v35 = vpop.f32.mrb[4].mxu0  ;;  %v2143_v36 = vpack.c.bf16 %v2016_v33, %v2015_v32  ;;  %v11993_v27 = vpop.f32.mrb[4].mxu1  ;;  %v14061_v28 = vpack.c.bf16 %v2080_v19, %v2079_v12 }
  0xfd   : > { %v1529_v37 = vadd.f32 %v11929_v35, %v14031_v20  ;;  %v1520_v38 = vpop.f32.mrb[5].mxu0  ;;  %v1785_v30 = vadd.f32 %v11993_v27, %v14031_v20  ;;  %v1776_v31 = vpop.f32.mrb[5].mxu1 }
  0xfe   : > { %v1521_v39 = vadd.f32 %v14031_v20, %v1520_v38  ;;  %v11930_v40 = vpop.f32.mrb[6].mxu0  ;;  %12067 = vmatprep.mubr.bf16.mxu1 %v2143_v36  ;;  %v1777_v33 = vadd.f32 %v14031_v20, %v1776_v31 }
  0xff   : > { %v2021_v41 = vmax.f32 %v1529_v37, 0.0  ;;  %v1532_v42 = vadd.f32 %v11930_v40, %v14031_v20  ;;  %v1523_v43 = vpop.f32.mrb[7].mxu0  ;;  %12068 = vmatmul.mubr.bf16.vlgmr.msra.gmra.mrb[64].mxu1 %v2144_v34  ;;  %v11994_v34 = vpop.f32.mrb[6].mxu1  ;;  %v2085_v36 = vmax.f32 %v1785_v30, 0.0 }
 0x100   : > { %v2019_v44 = vmax.f32 %v1521_v39, 0.0  ;;  %v1524_v45 = vadd.f32 %v14031_v20, %v1523_v43  ;;  %v1788_v37 = vadd.f32 %v11994_v34, %v14031_v20  ;;  %v1779_v38 = vpop.f32.mrb[7].mxu1 }
 0x101   : > { %v2022_v46 = vmax.f32 %v1532_v42, 0.0  ;;  %v1780_v42 = vadd.f32 %v14031_v20, %v1779_v38 }
 0x102   : > { %v2020_v47 = vmax.f32 %v1524_v45, 0.0  ;;  %v2086_v45 = vmax.f32 %v1788_v37, 0.0 }
 0x103   : > { %v2146_v48 = vpack.c.bf16 %v2022_v46, %v2021_v41  ;;  %v2083_v41 = vmax.f32 %v1777_v33, 0.0 }
 0x104   : > { %v11933_v49 = vpop.f32.mrb[8].mxu0  ;;  %v2145_v50 = vpack.c.bf16 %v2020_v47, %v2019_v44 }
 0x105   : > { %v1545_v51 = vadd.f32 %v11933_v49, %v14031_v20  ;;  %v1536_v52 = vpop.f32.mrb[9].mxu0 }
 0x106   : > { %v1537_v53 = vadd.f32 %v14031_v20, %v1536_v52  ;;  %v11934_v54 = vpop.f32.mrb[10].mxu0  ;;  %12071 = vmatprep.mubr.bf16.mxu1 %v2145_v50  ;;  %v14070_v52 = vpack.c.bf16 %v2086_v45, %v2085_v36 }
 0x107   : > { %v2025_v55 = vmax.f32 %v1545_v51, 0.0  ;;  %v1548_v56 = vadd.f32 %v11934_v54, %v14031_v20  ;;  %v1539_v57 = vpop.f32.mrb[11].mxu0  ;;  %12072 = vmatmul.mubr.bf16.gmra.mrb[68].mxu1 %v2146_v48  ;;  %v2084_v48 = vmax.f32 %v1780_v42, 0.0 }
 0x108   : > { %v2023_v58 = vmax.f32 %v1537_v53, 0.0  ;;  %v1540_v59 = vadd.f32 %v14031_v20, %v1539_v57  ;;  %v13006_v57 = vld [vmem:[%s16958_s6 + $0x20] sm:$0xff]  }
 0x109   : > { %v2026_v62 = vmax.f32 %v1548_v56, 0.0  ;;  %v14073_v56 = vpack.c.bf16 %v2084_v48, %v2083_v41  ;;  %12203 = vmatprep.subr.bf16.mxu0 %v13006_v57 }
 0x10a   : > { %v2024_v1 = vmax.f32 %v1540_v59, 0.0  ;;  %12204 = vmatpush3.bf16.msra.mxu0 %v13006_v57  ;;  %v13007_v57 = vld [vmem:[%s16958_s6 + $0x28] sm:$0xff]  }
 0x10b   : > { %v2148_v5 = vpack.c.bf16 %v2026_v62, %v2025_v55  ;;  %v11997_v55 = vpop.f32.mrb[8].mxu1  ;;  %12205 = vmatprep.subr.bf16.mxu0 %v13007_v57 }
 0x10c   : > { %v11937_v10 = vpop.f32.mrb[12].mxu0  ;;  %v2147_v11 = vpack.c.bf16 %v2024_v1, %v2023_v58  ;;  %v1801_v59 = vadd.f32 %v11997_v55, %v14031_v20  ;;  %v1792_v60 = vpop.f32.mrb[9].mxu1 }
 0x10d   : > { %v1561_v14 = vadd.f32 %v11937_v10, %v14031_v20  ;;  %v1552_v15 = vpop.f32.mrb[13].mxu0  ;;  %v1793_v62 = vadd.f32 %v14031_v20, %v1792_v60  ;;  %v11998_v63 = vpop.f32.mrb[10].mxu1 }
 0x10e   : > { %v1553_v17 = vadd.f32 %v14031_v20, %v1552_v15  ;;  %v11938_v18 = vpop.f32.mrb[14].mxu0  ;;  %12075 = vmatprep.mubr.bf16.mxu1 %v2147_v11  ;;  %v2089_v1 = vmax.f32 %v1801_v59, 0.0  ;;  %v1804_v3 = vadd.f32 %v11998_v63, %v14031_v20  ;;  %v1795_v4 = vpop.f32.mrb[11].mxu1  ;;  %12206 = vmatpush3.bf16.msra.mxu0 %v13007_v57 }
 0x10f   : > { %v2029_v21 = vmax.f32 %v1561_v14, 0.0  ;;  %v1564_v22 = vadd.f32 %v11938_v18, %v14031_v20  ;;  %v1555_v23 = vpop.f32.mrb[15].mxu0  ;;  %12076 = vmatmul.mubr.bf16.gmra.mrb[72].mxu1 %v2148_v5  ;;  %v2087_v8 = vmax.f32 %v1793_v62, 0.0  ;;  %v1796_v9 = vadd.f32 %v14031_v20, %v1795_v4 }
 0x110   : > { %v2027_v25 = vmax.f32 %v1553_v17, 0.0  ;;  %v1556_v26 = vadd.f32 %v14031_v20, %v1555_v23  ;;  %v2090_v12 = vmax.f32 %v1804_v3, 0.0  ;;  %v12001_v23 = vpop.f32.mrb[12].mxu1 }
 0x111   : > { %v2030_v29 = vmax.f32 %v1564_v22, 0.0  ;;  %v2088_v15 = vmax.f32 %v1796_v9, 0.0  ;;  %v1817_v27 = vadd.f32 %v12001_v23, %v14031_v20 }
 0x112   : > { %v2028_v32 = vmax.f32 %v1556_v26, 0.0  ;;  %v14085_v19 = vpack.c.bf16 %v2090_v12, %v2089_v1 }
 0x113   : > { %v2150_v35 = vpack.c.bf16 %v2030_v29, %v2029_v21  ;;  %v1808_v29 = vpop.f32.mrb[13].mxu1  ;;  %v2093_v34 = vmax.f32 %v1817_v27, 0.0 }
 0x114   : > { %v11941_v39 = vpop.f32.mrb[16].mxu0  ;;  %v2149_v40 = vpack.c.bf16 %v2028_v32, %v2027_v25  ;;  %v14088_v25 = vpack.c.bf16 %v2088_v15, %v2087_v8  ;;  %v1809_v31 = vadd.f32 %v14031_v20, %v1808_v29  ;;  %v12002_v32 = vpop.f32.mrb[14].mxu1 }
 0x115   : > { %v1577_v43 = vadd.f32 %v11941_v39, %v14031_v20  ;;  %v1568_v44 = vpop.f32.mrb[17].mxu0  ;;  %v1811_v36 = vpop.f32.mrb[15].mxu1 }
 0x116   : > { %v1569_v46 = vadd.f32 %v14031_v20, %v1568_v44  ;;  %v11942_v47 = vpop.f32.mrb[18].mxu0  ;;  %12079 = vmatprep.mubr.bf16.mxu1 %v2149_v40  ;;  %v2091_v39 = vmax.f32 %v1809_v31, 0.0  ;;  %v1812_v40 = vadd.f32 %v14031_v20, %v1811_v36 }
 0x117   : > { %v2033_v49 = vmax.f32 %v1577_v43, 0.0  ;;  %v1580_v50 = vadd.f32 %v11942_v47, %v14031_v20  ;;  %v1571_v51 = vpop.f32.mrb[19].mxu0  ;;  %12080 = vmatmul.mubr.bf16.gmra.mrb[76].mxu1 %v2150_v35  ;;  %v1820_v35 = vadd.f32 %v12002_v32, %v14031_v20 }
 0x118   : > { %v2031_v53 = vmax.f32 %v1569_v46, 0.0  ;;  %v1572_v54 = vadd.f32 %v14031_v20, %v1571_v51  ;;  %v2092_v46 = vmax.f32 %v1812_v40, 0.0 }
 0x119   : > { %v2034_v58 = vmax.f32 %v1580_v50, 0.0  ;;  %v2094_v43 = vmax.f32 %v1820_v35, 0.0 }
 0x11a   : > { %v2032_v61 = vmax.f32 %v1572_v54, 0.0  ;;  %v12005_v54 = vpop.f32.mrb[16].mxu1  ;;  %v14100_v55 = vpack.c.bf16 %v2092_v46, %v2091_v39 }
 0x11b   : > { %v2152_v0 = vpack.c.bf16 %v2034_v58, %v2033_v49  ;;  %v14097_v50 = vpack.c.bf16 %v2094_v43, %v2093_v34  ;;  %v1833_v59 = vadd.f32 %v12005_v54, %v14031_v20  ;;  %v1824_v60 = vpop.f32.mrb[17].mxu1 }
 0x11c   : > { %v11945_v5 = vpop.f32.mrb[20].mxu0  ;;  %v2151_v7 = vpack.c.bf16 %v2032_v61, %v2031_v53  ;;  %v1825_v62 = vadd.f32 %v14031_v20, %v1824_v60  ;;  %v12006_v63 = vpop.f32.mrb[18].mxu1 }
 0x11d   : > { %v1593_v10 = vadd.f32 %v11945_v5, %v14031_v20  ;;  %v1584_v11 = vpop.f32.mrb[21].mxu0  ;;  %v2097_v1 = vmax.f32 %v1833_v59, 0.0  ;;  %v1836_v3 = vadd.f32 %v12006_v63, %v14031_v20  ;;  %v1827_v4 = vpop.f32.mrb[19].mxu1 }
 0x11e   : > { %v1585_v13 = vadd.f32 %v14031_v20, %v1584_v11  ;;  %v11946_v14 = vpop.f32.mrb[22].mxu0  ;;  %12083 = vmatprep.mubr.bf16.mxu1 %v2151_v7  ;;  %v2095_v8 = vmax.f32 %v1825_v62, 0.0  ;;  %v1828_v9 = vadd.f32 %v14031_v20, %v1827_v4  ;;  %v13009_v62 = vld [vmem:[%s16958_s6 + $0x30] sm:$0xff]  }
 0x11f   : > { %v2037_v16 = vmax.f32 %v1593_v10, 0.0  ;;  %v1596_v17 = vadd.f32 %v11946_v14, %v14031_v20  ;;  %v1587_v18 = vpop.f32.mrb[23].mxu0  ;;  %12084 = vmatmul.mubr.bf16.gmra.mrb[80].mxu1 %v2152_v0  ;;  %v2098_v12 = vmax.f32 %v1836_v3, 0.0  ;;  %12207 = vmatprep.subr.bf16.mxu0 %v13009_v62 }
 0x120   : > { %v2035_v21 = vmax.f32 %v1585_v13, 0.0  ;;  %v1588_v22 = vadd.f32 %v14031_v20, %v1587_v18  ;;  %v2096_v15 = vmax.f32 %v1828_v9, 0.0  ;;  %12208 = vmatpush3.bf16.msra.mxu0 %v13009_v62 }
 0x121   : > { %v2038_v26 = vmax.f32 %v1596_v17, 0.0 }
 0x122   : > { %v2036_v30 = vmax.f32 %v1588_v22, 0.0  ;;  %v14115_v27 = vpack.c.bf16 %v2096_v15, %v2095_v8 }
 0x123   : > { %v2154_v33 = vpack.c.bf16 %v2038_v26, %v2037_v16  ;;  %v12009_v26 = vpop.f32.mrb[20].mxu1 }
 0x124   : > { %v11949_v37 = vpop.f32.mrb[24].mxu0  ;;  %v2153_v38 = vpack.c.bf16 %v2036_v30, %v2035_v21  ;;  %v14112_v21 = vpack.c.bf16 %v2098_v12, %v2097_v1  ;;  %v1849_v30 = vadd.f32 %v12009_v26, %v14031_v20  ;;  %v1840_v31 = vpop.f32.mrb[21].mxu1 }
 0x125   : > { %v1609_v41 = vadd.f32 %v11949_v37, %v14031_v20  ;;  %v1600_v42 = vpop.f32.mrb[25].mxu0  ;;  %v12010_v34 = vpop.f32.mrb[22].mxu1 }
 0x126   : > { %v1601_v44 = vadd.f32 %v14031_v20, %v1600_v42  ;;  %v11950_v45 = vpop.f32.mrb[26].mxu0  ;;  %12087 = vmatprep.mubr.bf16.mxu1 %v2153_v38  ;;  %v2101_v36 = vmax.f32 %v1849_v30, 0.0  ;;  %v1852_v37 = vadd.f32 %v12010_v34, %v14031_v20  ;;  %v1843_v38 = vpop.f32.mrb[23].mxu1 }
 0x127   : > { %v2041_v47 = vmax.f32 %v1609_v41, 0.0  ;;  %v1612_v48 = vadd.f32 %v11950_v45, %v14031_v20  ;;  %v1603_v49 = vpop.f32.mrb[27].mxu0  ;;  %12088 = vmatmul.mubr.bf16.gmra.mrb[84].mxu1 %v2154_v33  ;;  %v1841_v33 = vadd.f32 %v14031_v20, %v1840_v31  ;;  %v1844_v42 = vadd.f32 %v14031_v20, %v1843_v38  ;;  %v12013_v59 = vpop.f32.mrb[24].mxu1 }
 0x128   : > { %v2039_v51 = vmax.f32 %v1601_v44, 0.0  ;;  %v1604_v53 = vadd.f32 %v14031_v20, %v1603_v49  ;;  %v2102_v45 = vmax.f32 %v1852_v37, 0.0  ;;  %v1856_v1 = vpop.f32.mrb[25].mxu1 }
 0x129   : > { %v2042_v58 = vmax.f32 %v1612_v48, 0.0  ;;  %v2099_v41 = vmax.f32 %v1841_v33, 0.0  ;;  %v2100_v48 = vmax.f32 %v1844_v42, 0.0  ;;  %v1857_v4 = vadd.f32 %v14031_v20, %v1856_v1 }
 0x12a   : > { %v2040_v61 = vmax.f32 %v1604_v53, 0.0  ;;  %v14124_v54 = vpack.c.bf16 %v2102_v45, %v2101_v36 }
 0x12b   : > { %v2156_v0 = vpack.c.bf16 %v2042_v58, %v2041_v47  ;;  %v14127_v60 = vpack.c.bf16 %v2100_v48, %v2099_v41 }
 0x12c   : > { %v11953_v5 = vpop.f32.mrb[28].mxu0  ;;  %v2155_v7 = vpack.c.bf16 %v2040_v61, %v2039_v51  ;;  %v13008_v61 = vld [vmem:[%s16960_s8] sm:$0xff]  }
 0x12d   : > { %v1625_v10 = vadd.f32 %v11953_v5, %v14031_v20  ;;  %v1616_v11 = vpop.f32.mrb[29].mxu0  ;;  %v12014_v5 = vpop.f32.mrb[26].mxu1  ;;  %12339 = vmatprep.subr.bf16.mxu1 %v13008_v61 }
 0x12e   : > { %v1617_v13 = vadd.f32 %v14031_v20, %v1616_v11  ;;  %v11954_v14 = vpop.f32.mrb[30].mxu0  ;;  %12091 = vmatprep.mubr.bf16.mxu1 %v2155_v7  ;;  %v1868_v9 = vadd.f32 %v12014_v5, %v14031_v20  ;;  %12340 = vmatpush3.bf16.msra.mxu1 %v13008_v61 }
 0x12f   : > { %v2045_v16 = vmax.f32 %v1625_v10, 0.0  ;;  %v1628_v17 = vadd.f32 %v11954_v14, %v14031_v20  ;;  %v1619_v18 = vpop.f32.mrb[31].mxu0  ;;  %12092 = vmatmul.mubr.bf16.gmra.mrb[88].mxu1 %v2156_v0  ;;  %v1865_v0 = vadd.f32 %v12013_v59, %v14031_v20  ;;  %v1859_v10 = vpop.f32.mrb[27].mxu1 }
 0x130   : > { %v2043_v22 = vmax.f32 %v1617_v13, 0.0  ;;  %v1620_v23 = vadd.f32 %v14031_v20, %v1619_v18  ;;  %v2103_v13 = vmax.f32 %v1857_v4, 0.0  ;;  %v1860_v14 = vadd.f32 %v14031_v20, %v1859_v10  ;;  %v12017_v34 = vpop.f32.mrb[28].mxu1 }
 0x131   : > { %v2046_v29 = vmax.f32 %v1628_v17, 0.0  ;;  %v2105_v8 = vmax.f32 %v1865_v0, 0.0  ;;  %v2106_v17 = vmax.f32 %v1868_v9, 0.0  ;;  %v1881_v37 = vadd.f32 %v12017_v34, %v14031_v20  ;;  %v1872_v38 = vpop.f32.mrb[29].mxu1 }
 0x132   : > { %v2044_v32 = vmax.f32 %v1620_v23, 0.0  ;;  %v2104_v23 = vmax.f32 %v1860_v14, 0.0  ;;  %v12018_v41 = vpop.f32.mrb[30].mxu1 }
 0x133   : > { %v2158_v35 = vpack.c.bf16 %v2046_v29, %v2045_v16  ;;  %v14142_v31 = vpack.c.bf16 %v2106_v17, %v2105_v8  ;;  %v1875_v45 = vpop.f32.mrb[31].mxu1  ;;  %v13010_v8 = vld [vmem:[%s16958_s6 + $0x38] sm:$0xff]  }
 0x134   : > { %v11957_v39 = vpop.f32.mrb[32].mxu0  ;;  %v2157_v40 = vpack.c.bf16 %v2044_v32, %v2043_v22  ;;  %v12021_v5 = vpop.f32.mrb[32].mxu1  ;;  %12209 = vmatprep.subr.bf16.mxu0 %v13010_v8 }
 0x135   : > { %v1641_v43 = vadd.f32 %v11957_v39, %v14031_v20  ;;  %v1632_v44 = vpop.f32.mrb[33].mxu0  ;;  %v1897_v10 = vadd.f32 %v12021_v5, %v14031_v20  ;;  %12210 = vmatpush3.bf16.msra.mxu0 %v13010_v8 }
 0x136   : > { %v1633_v46 = vadd.f32 %v14031_v20, %v1632_v44  ;;  %v11958_v47 = vpop.f32.mrb[34].mxu0  ;;  %12095 = vmatprep.mubr.bf16.mxu1 %v2157_v40  ;;  %v1873_v40 = vadd.f32 %v14031_v20, %v1872_v38  ;;  %v1884_v44 = vadd.f32 %v12018_v41, %v14031_v20 }
 0x137   : > { %v2049_v49 = vmax.f32 %v1641_v43, 0.0  ;;  %v1644_v51 = vadd.f32 %v11958_v47, %v14031_v20  ;;  %v1635_v53 = vpop.f32.mrb[35].mxu0  ;;  %12096 = vmatmul.mubr.bf16.gmra.mrb[92].mxu1 %v2158_v35  ;;  %v14145_v35 = vpack.c.bf16 %v2104_v23, %v2103_v13  ;;  %v2109_v43 = vmax.f32 %v1881_v37, 0.0 }
 0x138   : > { %v2047_v57 = vmax.f32 %v1633_v46, 0.0  ;;  %v1636_v58 = vadd.f32 %v14031_v20, %v1635_v53  ;;  %v2107_v48 = vmax.f32 %v1873_v40, 0.0 }
 0x139   : > { %v2050_v63 = vmax.f32 %v1644_v51, 0.0 }
 0x13a   : > { %v2048_v3 = vmax.f32 %v1636_v58, 0.0 }
 0x13b   : > { %v2160_v7 = vpack.c.bf16 %v2050_v63, %v2049_v49  ;;  %v1876_v49 = vadd.f32 %v14031_v20, %v1875_v45 }
 0x13c   : > { %v11961_v11 = vpop.f32.mrb[36].mxu0  ;;  %v2159_v12 = vpack.c.bf16 %v2048_v3, %v2047_v57  ;;  %v2110_v57 = vmax.f32 %v1884_v44, 0.0 }
 0x13d   : > { %v1657_v15 = vadd.f32 %v11961_v11, %v14031_v20  ;;  %v1648_v16 = vpop.f32.mrb[37].mxu0  ;;  %v2108_v61 = vmax.f32 %v1876_v49, 0.0  ;;  %v1888_v11 = vpop.f32.mrb[33].mxu1 }
 0x13e   : > { %v1649_v18 = vadd.f32 %v14031_v20, %v1648_v16  ;;  %v11962_v22 = vpop.f32.mrb[38].mxu0  ;;  %12099 = vmatprep.mubr.bf16.mxu1 %v2159_v12  ;;  %v14154_v1 = vpack.c.bf16 %v2110_v57, %v2109_v43  ;;  %v1889_v13 = vadd.f32 %v14031_v20, %v1888_v11  ;;  %v12022_v14 = vpop.f32.mrb[34].mxu1  ;;  %v2113_v16 = vmax.f32 %v1897_v10, 0.0 }
 0x13f   : > { %v2053_v26 = vmax.f32 %v1657_v15, 0.0  ;;  %v1660_v29 = vadd.f32 %v11962_v22, %v14031_v20  ;;  %v1651_v30 = vpop.f32.mrb[39].mxu0  ;;  %12100 = vmatmul.mubr.bf16.gmra.mrb[96].mxu1 %v2160_v7  ;;  %v14157_v7 = vpack.c.bf16 %v2108_v61, %v2107_v48  ;;  %v1900_v17 = vadd.f32 %v12022_v14, %v14031_v20 }
 0x140   : > { %v2051_v32 = vmax.f32 %v1649_v18, 0.0  ;;  %v1652_v33 = vadd.f32 %v14031_v20, %v1651_v30  ;;  %v1891_v18 = vpop.f32.mrb[35].mxu1 }
 0x141   : > { %v2054_v36 = vmax.f32 %v1660_v29, 0.0  ;;  %v1892_v29 = vadd.f32 %v14031_v20, %v1891_v18  ;;  %v12025_v44 = vpop.f32.mrb[36].mxu1 }
 0x142   : > { %v2052_v39 = vmax.f32 %v1652_v33, 0.0  ;;  %v2114_v33 = vmax.f32 %v1900_v17, 0.0  ;;  %v1904_v48 = vpop.f32.mrb[37].mxu1 }
 0x143   : > { %v2162_v42 = vpack.c.bf16 %v2054_v36, %v2053_v26  ;;  %v2111_v26 = vmax.f32 %v1889_v13, 0.0  ;;  %v2112_v37 = vmax.f32 %v1892_v29, 0.0 }
 0x144   : > { %v11965_v46 = vpop.f32.mrb[40].mxu0  ;;  %v2161_v47 = vpack.c.bf16 %v2052_v39, %v2051_v32  ;;  %v14169_v41 = vpack.c.bf16 %v2114_v33, %v2113_v16 }
 0x145   : > { %v1673_v51 = vadd.f32 %v11965_v46, %v14031_v20  ;;  %v1664_v53 = vpop.f32.mrb[41].mxu0  ;;  %v14172_v45 = vpack.c.bf16 %v2112_v37, %v2111_v26 }
 0x146   : > { %v1665_v58 = vadd.f32 %v14031_v20, %v1664_v53  ;;  %v11966_v59 = vpop.f32.mrb[42].mxu0  ;;  %12103 = vmatprep.mubr.bf16.mxu1 %v2161_v47  ;;  %v1913_v47 = vadd.f32 %v12025_v44, %v14031_v20  ;;  %v12026_v53 = vpop.f32.mrb[38].mxu1 }
 0x147   : > { %v2057_v62 = vmax.f32 %v1673_v51, 0.0  ;;  %v1676_v63 = vadd.f32 %v11966_v59, %v14031_v20  ;;  %v1667_v0 = vpop.f32.mrb[43].mxu0  ;;  %12104 = vmatmul.mubr.bf16.gmra.mrb[100].mxu1 %v2162_v42  ;;  %v1905_v51 = vadd.f32 %v14031_v20, %v1904_v48  ;;  %v1916_v59 = vadd.f32 %v12026_v53, %v14031_v20  ;;  %v1907_v61 = vpop.f32.mrb[39].mxu1  ;;  %v13011_v48 = vld [vmem:[%s16960_s8 + $0x8] sm:$0xff]  }
 0x148   : > { %v2055_v3 = vmax.f32 %v1665_v58, 0.0  ;;  %v1668_v4 = vadd.f32 %v14031_v20, %v1667_v0  ;;  %v2117_v58 = vmax.f32 %v1913_v47, 0.0  ;;  %v12029_v18 = vpop.f32.mrb[40].mxu1  ;;  %12341 = vmatprep.subr.bf16.mxu1 %v13011_v48 }
 0x149   : > { %v2058_v9 = vmax.f32 %v1676_v63, 0.0  ;;  %v2115_v0 = vmax.f32 %v1905_v51, 0.0  ;;  %v2118_v8 = vmax.f32 %v1916_v59, 0.0  ;;  %v1929_v26 = vadd.f32 %v12029_v18, %v14031_v20  ;;  %v1920_v29 = vpop.f32.mrb[41].mxu1  ;;  %12342 = vmatpush3.bf16.msra.mxu1 %v13011_v48 }
 0x14a   : > { %v2056_v12 = vmax.f32 %v1668_v4, 0.0  ;;  %v12030_v33 = vpop.f32.mrb[42].mxu1 }
 0x14b   : > { %v2164_v15 = vpack.c.bf16 %v2058_v9, %v2057_v62  ;;  %v1932_v37 = vadd.f32 %v12030_v33, %v14031_v20 }
 0x14c   : > { %v11969_v22 = vpop.f32.mrb[44].mxu0  ;;  %v2163_v23 = vpack.c.bf16 %v2056_v12, %v2055_v3  ;;  %v1908_v3 = vadd.f32 %v14031_v20, %v1907_v61 }
 0x14d   : > { %v1689_v30 = vadd.f32 %v11969_v22, %v14031_v20  ;;  %v1680_v32 = vpop.f32.mrb[45].mxu0  ;;  %v2122_v47 = vmax.f32 %v1932_v37, 0.0 }
 0x14e   : > { %v1681_v34 = vadd.f32 %v14031_v20, %v1680_v32  ;;  %v11970_v36 = vpop.f32.mrb[46].mxu0  ;;  %12107 = vmatprep.mubr.bf16.mxu1 %v2163_v23  ;;  %v2116_v11 = vmax.f32 %v1908_v3, 0.0  ;;  %v1921_v32 = vadd.f32 %v14031_v20, %v1920_v29 }
 0x14f   : > { %v2061_v38 = vmax.f32 %v1689_v30, 0.0  ;;  %v1692_v39 = vadd.f32 %v11970_v36, %v14031_v20  ;;  %v1683_v40 = vpop.f32.mrb[47].mxu0  ;;  %12108 = vmatmul.mubr.bf16.gmra.mrb[104].mxu1 %v2164_v15  ;;  %v14181_v15 = vpack.c.bf16 %v2118_v8, %v2117_v58  ;;  %v2121_v36 = vmax.f32 %v1929_v26, 0.0 }
 0x150   : > { %v2059_v42 = vmax.f32 %v1681_v34, 0.0  ;;  %v1684_v43 = vadd.f32 %v14031_v20, %v1683_v40  ;;  %v14184_v22 = vpack.c.bf16 %v2116_v11, %v2115_v0 }
 0x151   : > { %v2062_v46 = vmax.f32 %v1692_v39, 0.0  ;;  %v14196_v61 = vpack.c.bf16 %v2122_v47, %v2121_v36 }
 0x152   : > { %v2060_v49 = vmax.f32 %v1684_v43, 0.0 }
 0x153   : > { %v2166_v57 = vpack.c.bf16 %v2062_v46, %v2061_v38  ;;  %v1923_v38 = vpop.f32.mrb[43].mxu1 }
 0x154   : > { %v11973_v62 = vpop.f32.mrb[48].mxu0  ;;  %v2165_v63 = vpack.c.bf16 %v2060_v49, %v2059_v42  ;;  %v2119_v42 = vmax.f32 %v1921_v32, 0.0  ;;  %v1924_v43 = vadd.f32 %v14031_v20, %v1923_v38  ;;  %v12033_v0 = vpop.f32.mrb[44].mxu1 }
 0x155   : > { %v1705_v4 = vadd.f32 %v11973_v62, %v14031_v20  ;;  %v1696_v5 = vpop.f32.mrb[49].mxu0  ;;  %v1936_v8 = vpop.f32.mrb[45].mxu1 }
 0x156   : > { %v1697_v9 = vadd.f32 %v14031_v20, %v1696_v5  ;;  %v11974_v10 = vpop.f32.mrb[50].mxu0  ;;  %12111 = vmatprep.mubr.bf16.mxu1 %v2165_v63  ;;  %v2120_v53 = vmax.f32 %v1924_v43, 0.0  ;;  %v1945_v5 = vadd.f32 %v12033_v0, %v14031_v20  ;;  %v12034_v11 = vpop.f32.mrb[46].mxu1 }
 0x157   : > { %v2065_v12 = vmax.f32 %v1705_v4, 0.0  ;;  %v1708_v13 = vadd.f32 %v11974_v10, %v14031_v20  ;;  %v1699_v14 = vpop.f32.mrb[51].mxu0  ;;  %12112 = vmatmul.mubr.bf16.gmra.mrb[108].mxu1 %v2166_v57  ;;  %v1937_v10 = vadd.f32 %v14031_v20, %v1936_v8 }
 0x158   : > { %v2063_v16 = vmax.f32 %v1697_v9, 0.0  ;;  %v1700_v17 = vadd.f32 %v14031_v20, %v1699_v14  ;;  %v14199_v3 = vpack.c.bf16 %v2120_v53, %v2119_v42  ;;  %v1948_v14 = vadd.f32 %v12034_v11, %v14031_v20 }
 0x159   : > { %v2066_v23 = vmax.f32 %v1708_v13, 0.0  ;;  %v2125_v13 = vmax.f32 %v1945_v5, 0.0 }
 0x15a   : > { %v2064_v30 = vmax.f32 %v1700_v17, 0.0  ;;  %v2126_v32 = vmax.f32 %v1948_v14, 0.0 }
 0x15b   : > { %v2168_v34 = vpack.c.bf16 %v2066_v23, %v2065_v12  ;;  %v2123_v23 = vmax.f32 %v1937_v10, 0.0 }
 0x15c   : > { %v11977_v39 = vpop.f32.mrb[52].mxu0  ;;  %v2167_v40 = vpack.c.bf16 %v2064_v30, %v2063_v16  ;;  %v1939_v16 = vpop.f32.mrb[47].mxu1 }
 0x15d   : > { %v1721_v44 = vadd.f32 %v11977_v39, %v14031_v20  ;;  %v1712_v46 = vpop.f32.mrb[53].mxu0  ;;  %v1940_v26 = vadd.f32 %v14031_v20, %v1939_v16 }
 0x15e   : > { %v1713_v49 = vadd.f32 %v14031_v20, %v1712_v46  ;;  %v11978_v51 = vpop.f32.mrb[54].mxu0  ;;  %12115 = vmatprep.mubr.bf16.mxu1 %v2167_v40  ;;  %v14208_v40 = vpack.c.bf16 %v2126_v32, %v2125_v13 }
 0x15f   : > { %v2069_v57 = vmax.f32 %v1721_v44, 0.0  ;;  %v1724_v58 = vadd.f32 %v11978_v51, %v14031_v20  ;;  %v1715_v59 = vpop.f32.mrb[55].mxu0  ;;  %12116 = vmatmul.mubr.bf16.gmra.mrb[112].mxu1 %v2168_v34  ;;  %v2124_v36 = vmax.f32 %v1940_v26, 0.0  ;;  %v12037_v44 = vpop.f32.mrb[48].mxu1 }
 0x160   : > { %v2067_v62 = vmax.f32 %v1713_v49, 0.0  ;;  %v1716_v63 = vadd.f32 %v14031_v20, %v1715_v59  ;;  %v1961_v48 = vadd.f32 %v12037_v44, %v14031_v20  ;;  %v1952_v49 = vpop.f32.mrb[49].mxu1 }
 0x161   : > { %v2070_v4 = vmax.f32 %v1724_v58, 0.0  ;;  %v14211_v46 = vpack.c.bf16 %v2124_v36, %v2123_v23  ;;  %v1953_v53 = vadd.f32 %v14031_v20, %v1952_v49 }
 0x162   : > { %v2068_v9 = vmax.f32 %v1716_v63, 0.0  ;;  %v2129_v59 = vmax.f32 %v1961_v48, 0.0 }
 0x163   : > { %v2170_v12 = vpack.c.bf16 %v2070_v4, %v2069_v57  ;;  %v12038_v57 = vpop.f32.mrb[50].mxu1  ;;  %v2127_v5 = vmax.f32 %v1953_v53, 0.0 }
 0x164   : > { %v11981_v17 = vpop.f32.mrb[56].mxu0  ;;  %v2169_v18 = vpack.c.bf16 %v2068_v9, %v2067_v62  ;;  %v1964_v62 = vadd.f32 %v12038_v57, %v14031_v20  ;;  %v1955_v63 = vpop.f32.mrb[51].mxu1 }
 0x165   : > { %v1737_v29 = vadd.f32 %v11981_v17, %v14031_v20  ;;  %v1728_v30 = vpop.f32.mrb[57].mxu0  ;;  %v1956_v8 = vadd.f32 %v14031_v20, %v1955_v63 }
 0x166   : > { %v1729_v33 = vadd.f32 %v14031_v20, %v1728_v30  ;;  %v11982_v34 = vpop.f32.mrb[58].mxu0  ;;  %12119 = vmatprep.mubr.bf16.mxu1 %v2169_v18  ;;  %v2130_v11 = vmax.f32 %v1964_v62, 0.0  ;;  %v12041_v30 = vpop.f32.mrb[52].mxu1 }
 0x167   : > { %v2073_v37 = vmax.f32 %v1737_v29, 0.0  ;;  %v1740_v38 = vadd.f32 %v11982_v34, %v14031_v20  ;;  %v1731_v39 = vpop.f32.mrb[59].mxu0  ;;  %12120 = vmatmul.mubr.bf16.gmra.mrb[116].mxu1 %v2170_v12  ;;  %v2128_v14 = vmax.f32 %v1956_v8, 0.0  ;;  %v1977_v34 = vadd.f32 %v12041_v30, %v14031_v20  ;;  %v1968_v36 = vpop.f32.mrb[53].mxu1 }
 0x168   : > { %v2071_v42 = vmax.f32 %v1729_v33, 0.0  ;;  %v1732_v43 = vadd.f32 %v14031_v20, %v1731_v39  ;;  %v14220_v23 = vpack.c.bf16 %v2130_v11, %v2129_v59  ;;  %v12042_v39 = vpop.f32.mrb[54].mxu1 }
 0x169   : > { %v2074_v47 = vmax.f32 %v1740_v38, 0.0  ;;  %v14223_v32 = vpack.c.bf16 %v2128_v14, %v2127_v5  ;;  %v1969_v38 = vadd.f32 %v14031_v20, %v1968_v36  ;;  %v1980_v44 = vadd.f32 %v12042_v39, %v14031_v20 }
 0x16a   : > { %v2072_v51 = vmax.f32 %v1732_v43, 0.0  ;;  %v2133_v43 = vmax.f32 %v1977_v34, 0.0 }
 0x16b   : > { %v2172_v58 = vpack.c.bf16 %v2074_v47, %v2073_v37  ;;  %v1971_v47 = vpop.f32.mrb[55].mxu1  ;;  %v2131_v49 = vmax.f32 %v1969_v38, 0.0  ;;  %v2134_v53 = vmax.f32 %v1980_v44, 0.0 }
 0x16c   : > { %v11985_v0 = vpop.f32.mrb[60].mxu0  ;;  %v2171_v4 = vpack.c.bf16 %v2072_v51, %v2071_v42  ;;  %v1972_v51 = vadd.f32 %v14031_v20, %v1971_v47  ;;  %v12045_v59 = vpop.f32.mrb[56].mxu1 }
 0x16d   : > { %v1753_v9 = vadd.f32 %v11985_v0, %v14031_v20  ;;  %v1744_v10 = vpop.f32.mrb[61].mxu0  ;;  %v1993_v63 = vadd.f32 %v12045_v59, %v14031_v20  ;;  %v1984_v0 = vpop.f32.mrb[57].mxu1 }
 0x16e   : > { %v1745_v12 = vadd.f32 %v14031_v20, %v1744_v10  ;;  %v11986_v13 = vpop.f32.mrb[62].mxu0  ;;  %12123 = vmatprep.mubr.bf16.mxu1 %v2171_v4  ;;  %v2132_v57 = vmax.f32 %v1972_v51, 0.0  ;;  %v1985_v4 = vadd.f32 %v14031_v20, %v1984_v0  ;;  %v12046_v5 = vpop.f32.mrb[58].mxu1 }
 0x16f   : > { %v2077_v16 = vmax.f32 %v1753_v9, 0.0  ;;  %v1756_v17 = vadd.f32 %v11986_v13, %v14031_v20  ;;  %v1747_v18 = vpop.f32.mrb[63].mxu0  ;;  %12124 = vmatmul.mubr.bf16.gmra.mrb[120].mxu1 %v2172_v58  ;;  %v14229_v58 = vpack.c.bf16 %v2134_v53, %v2133_v43  ;;  %v2137_v8 = vmax.f32 %v1993_v63, 0.0  ;;  %v1987_v10 = vpop.f32.mrb[59].mxu1 }
 0x170   : > { %v2075_v26 = vmax.f32 %v1745_v12, 0.0  ;;  %v1748_v29 = vadd.f32 %v14031_v20, %v1747_v18  ;;  %v14232_v62 = vpack.c.bf16 %v2132_v57, %v2131_v49  ;;  %v1996_v9 = vadd.f32 %v12046_v5, %v14031_v20 }
 0x171   : > { %v2078_v33 = vmax.f32 %v1756_v17, 0.0  ;;  %v2135_v11 = vmax.f32 %v1985_v4, 0.0  ;;  %v1988_v12 = vadd.f32 %v14031_v20, %v1987_v10  ;;  %v12049_v17 = vpop.f32.mrb[60].mxu1 }
 0x172   : > { %v2076_v37 = vmax.f32 %v1748_v29, 0.0  ;;  %v2138_v13 = vmax.f32 %v1996_v9, 0.0  ;;  %v2000_v29 = vpop.f32.mrb[61].mxu1 }
 0x173   : > { %v2174_v42 = vpack.c.bf16 %v2078_v33, %v2077_v16  ;;  %v2136_v14 = vmax.f32 %v1988_v12, 0.0  ;;  %v2001_v30 = vadd.f32 %v14031_v20, %v2000_v29  ;;  %v12050_v33 = vpop.f32.mrb[62].mxu1 }
 0x174   : > { %v2173_v48 = vpack.c.bf16 %v2076_v37, %v2075_v26  ;;  %v14242_v16 = vpack.c.bf16 %v2138_v13, %v2137_v8  ;;  %v2009_v26 = vadd.f32 %v12049_v17, %v14031_v20  ;;  %v2012_v36 = vadd.f32 %v12050_v33, %v14031_v20  ;;  %v2003_v37 = vpop.f32.mrb[63].mxu1 }
 0x175   : > { %v14245_v18 = vpack.c.bf16 %v2136_v14, %v2135_v11  ;;  %v2004_v38 = vadd.f32 %v14031_v20, %v2003_v37  ;;  %v13013_v20 = vld [vmem:[%s16960_s8 + $0x18] sm:$0xff]  }
 0x176   : > { %12127 = vmatprep.mubr.bf16.mxu1 %v2173_v48  ;;  %v2141_v34 = vmax.f32 %v2009_v26, 0.0  ;;  %v2142_v39 = vmax.f32 %v2012_v36, 0.0 }
 0x177   : > { %12128 = vmatmul.mubr.bf16.gmra.mrb[124].mxu1 %v2174_v42  ;;  %v2140_v42 = vmax.f32 %v2004_v38, 0.0 }
 0x178   : > { %12131 = vmatprep.mubr.bf16.mxu1 %v14061_v28  ;;  %v13012_v28 = vld [vmem:[%s16960_s8 + $0x10] sm:$0xff]  }
 0x179   : > { %12343 = vmatprep.subr.bf16.mxu1 %v13012_v28 }
 0x17a   : > { %12344 = vmatpush3.bf16.msra.mxu1 %v13012_v28 }
 0x17b   : > { %12345 = vmatprep.subr.bf16.mxu1 %v13013_v20 }
 0x17e   : > { %12346 = vmatpush3.bf16.msra.mxu1 %v13013_v20 }
 0x17f   : > { %12132 = vmatmul.mubr.bf16.gmra.mrb[128].mxu1 %v14058_v24  ;;  %v2139_v24 = vmax.f32 %v2001_v30, 0.0 }
 0x180   : > { %12135 = vmatprep.mubr.bf16.mxu1 %v14073_v56  ;;  %v14252_v56 = vpack.c.bf16 %v2142_v39, %v2141_v34 }
 0x181   : > { %v14255_v43 = vpack.c.bf16 %v2140_v42, %v2139_v24 }
 0x187   : > { %12136 = vmatmul.mubr.bf16.gmra.mrb[132].mxu1 %v14070_v52  ;;  %v13014_v52 = vld [vmem:[%s16960_s8 + $0x20] sm:$0xff]  }
 0x188   : > { %12139 = vmatprep.mubr.bf16.mxu1 %v14088_v25  ;;  %12347 = vmatprep.subr.bf16.mxu1 %v13014_v52 }
 0x189   : > { %12348 = vmatpush3.bf16.msra.mxu1 %v13014_v52 }
 0x18f   : > { %12140 = vmatmul.mubr.bf16.gmra.mrb[136].mxu1 %v14085_v19  ;;  %v14284_v19 = vld [vmem:[%s16957_s5] ss:$0 sm:$0xff] }
 0x190   : > { %12143 = vmatprep.mubr.bf16.mxu1 %v14100_v55 }
 0x197   : > { %12144 = vmatmul.mubr.bf16.gmra.mrb[140].mxu1 %v14097_v50 }
 0x198   : > { %12147 = vmatprep.mubr.bf16.mxu1 %v14115_v27 }
 0x19f   : > { %12148 = vmatmul.mubr.bf16.gmra.mrb[144].mxu1 %v14112_v21 }
 0x1a0   : > { %12151 = vmatprep.mubr.bf16.mxu1 %v14127_v60 }
 0x1a7   : > { %12152 = vmatmul.mubr.bf16.gmra.mrb[148].mxu1 %v14124_v54 }
 0x1a8   : > { %12155 = vmatprep.mubr.bf16.mxu1 %v14145_v35 }
 0x1af   : > { %12156 = vmatmul.mubr.bf16.gmra.mrb[152].mxu1 %v14142_v31 }
 0x1b0   : > { %12159 = vmatprep.mubr.bf16.mxu1 %v14157_v7 }
 0x1b7   : > { %12160 = vmatmul.mubr.bf16.gmra.mrb[156].mxu1 %v14154_v1 }
 0x1b8   : > { %12163 = vmatprep.mubr.bf16.mxu1 %v14172_v45 }
 0x1bf   : > { %12164 = vmatmul.mubr.bf16.gmra.mrb[160].mxu1 %v14169_v41 }
 0x1c0   : > { %12167 = vmatprep.mubr.bf16.mxu1 %v14184_v22 }
 0x1c7   : > { %12168 = vmatmul.mubr.bf16.gmra.mrb[164].mxu1 %v14181_v15 }
 0x1c8   : > { %12171 = vmatprep.mubr.bf16.mxu1 %v14199_v3 }
 0x1cf   : > { %12172 = vmatmul.mubr.bf16.gmra.mrb[168].mxu1 %v14196_v61 }
 0x1d0   : > { %12175 = vmatprep.mubr.bf16.mxu1 %v14211_v46 }
 0x1d2   : > { %v12069_v25 = vpop.f32.mrb[64].mxu1 }
 0x1d3   : > { %v2321_v50 = vadd.f32 %v12069_v25, %v14284_v19  ;;  %v2312_v55 = vpop.f32.mrb[65].mxu1 }
 0x1d4   : > { %v2313_v21 = vadd.f32 %v14284_v19, %v2312_v55  ;;  %v12070_v27 = vpop.f32.mrb[66].mxu1 }
 0x1d5   : > { %v2324_v54 = vadd.f32 %v12070_v27, %v14284_v19  ;;  %v2315_v60 = vpop.f32.mrb[67].mxu1  ;;  %v2825_v35 = vmax.f32 %v2321_v50, 0.0 }
 0x1d6   : > { %v2316_v31 = vadd.f32 %v14284_v19, %v2315_v60  ;;  %v2823_v7 = vmax.f32 %v2313_v21, 0.0 }
 0x1d7   : > { %v2826_v1 = vmax.f32 %v2324_v54, 0.0  ;;  %12176 = vmatmul.mubr.bf16.gmra.mrb[172].mxu1 %v14208_v40  ;;  %v13015_v40 = vld [vmem:[%s16960_s8 + $0x28] sm:$0xff]  }
 0x1d8   : > { %v2824_v41 = vmax.f32 %v2316_v31, 0.0  ;;  %12179 = vmatprep.mubr.bf16.mxu1 %v14223_v32  ;;  %12349 = vmatprep.subr.bf16.mxu1 %v13015_v40 }
 0x1d9   : > { %v2952_v45 = vpack.c.bf16 %v2826_v1, %v2825_v35  ;;  %12350 = vmatpush3.bf16.msra.mxu1 %v13015_v40 }
 0x1da   : > { %v12073_v15 = vpop.f32.mrb[68].mxu1  ;;  %v2951_v22 = vpack.c.bf16 %v2824_v41, %v2823_v7 }
 0x1db   : > { %v2337_v61 = vadd.f32 %v12073_v15, %v14284_v19  ;;  %v2328_v3 = vpop.f32.mrb[69].mxu1 }
 0x1dc   : > { %v2329_v46 = vadd.f32 %v14284_v19, %v2328_v3  ;;  %v12074_v44 = vpop.f32.mrb[70].mxu1  ;;  %12211 = vmatprep.mubr.bf16.mxu0 %v2951_v22 }
 0x1dd   : > { %v2829_v47 = vmax.f32 %v2337_v61, 0.0  ;;  %v2340_v48 = vadd.f32 %v12074_v44, %v14284_v19  ;;  %v2331_v49 = vpop.f32.mrb[71].mxu1  ;;  %12212 = vmatmul.mubr.bf16.vlgmr.msra.gmra.mrb[64].mxu0 %v2952_v45 }
 0x1de   : > { %v2827_v32 = vmax.f32 %v2329_v46, 0.0  ;;  %v2332_v51 = vadd.f32 %v14284_v19, %v2331_v49 }
 0x1df   : > { %v2830_v53 = vmax.f32 %v2340_v48, 0.0  ;;  %12180 = vmatmul.mubr.bf16.gmra.mrb[176].mxu1 %v14220_v23 }
 0x1e0   : > { %v2828_v57 = vmax.f32 %v2332_v51, 0.0  ;;  %12183 = vmatprep.mubr.bf16.mxu1 %v14232_v62 }
 0x1e1   : > { %v2954_v59 = vpack.c.bf16 %v2830_v53, %v2829_v47 }
 0x1e2   : > { %v12077_v63 = vpop.f32.mrb[72].mxu1  ;;  %v2953_v0 = vpack.c.bf16 %v2828_v57, %v2827_v32 }
 0x1e3   : > { %v2353_v4 = vadd.f32 %v12077_v63, %v14284_v19  ;;  %v2344_v5 = vpop.f32.mrb[73].mxu1 }
 0x1e4   : > { %v2345_v8 = vadd.f32 %v14284_v19, %v2344_v5  ;;  %v12078_v9 = vpop.f32.mrb[74].mxu1  ;;  %12215 = vmatprep.mubr.bf16.mxu0 %v2953_v0 }
 0x1e5   : > { %v2833_v10 = vmax.f32 %v2353_v4, 0.0  ;;  %v2356_v11 = vadd.f32 %v12078_v9, %v14284_v19  ;;  %v2347_v12 = vpop.f32.mrb[75].mxu1  ;;  %12216 = vmatmul.mubr.bf16.gmra.mrb[68].mxu0 %v2954_v59 }
 0x1e6   : > { %v2831_v23 = vmax.f32 %v2345_v8, 0.0  ;;  %v2348_v13 = vadd.f32 %v14284_v19, %v2347_v12 }
 0x1e7   : > { %v2834_v62 = vmax.f32 %v2356_v11, 0.0  ;;  %12184 = vmatmul.mubr.bf16.gmra.mrb[180].mxu1 %v14229_v58 }
 0x1e8   : > { %v2832_v28 = vmax.f32 %v2348_v13, 0.0  ;;  %12187 = vmatprep.mubr.bf16.mxu1 %v14245_v18 }
 0x1e9   : > { %v2956_v14 = vpack.c.bf16 %v2834_v62, %v2833_v10 }
 0x1ea   : > { %v12081_v17 = vpop.f32.mrb[76].mxu1  ;;  %v2955_v26 = vpack.c.bf16 %v2832_v28, %v2831_v23 }
 0x1eb   : > { %v2369_v29 = vadd.f32 %v12081_v17, %v14284_v19  ;;  %v2360_v30 = vpop.f32.mrb[77].mxu1 }
 0x1ec   : > { %v2361_v33 = vadd.f32 %v14284_v19, %v2360_v30  ;;  %v12082_v34 = vpop.f32.mrb[78].mxu1  ;;  %12219 = vmatprep.mubr.bf16.mxu0 %v2955_v26 }
 0x1ed   : > { %v2837_v36 = vmax.f32 %v2369_v29, 0.0  ;;  %v2372_v37 = vadd.f32 %v12082_v34, %v14284_v19  ;;  %v2363_v24 = vpop.f32.mrb[79].mxu1  ;;  %12220 = vmatmul.mubr.bf16.gmra.mrb[72].mxu0 %v2956_v14 }
 0x1ee   : > { %v2835_v38 = vmax.f32 %v2361_v33, 0.0  ;;  %v2364_v58 = vadd.f32 %v14284_v19, %v2363_v24 }
 0x1ef   : > { %v2838_v39 = vmax.f32 %v2372_v37, 0.0  ;;  %12188 = vmatmul.mubr.bf16.gmra.mrb[184].mxu1 %v14242_v16 }
 0x1f0   : > { %v2836_v18 = vmax.f32 %v2364_v58, 0.0  ;;  %12191 = vmatprep.mubr.bf16.mxu1 %v14255_v43 }
 0x1f1   : > { %v2958_v42 = vpack.c.bf16 %v2838_v39, %v2837_v36 }
 0x1f2   : > { %v12085_v20 = vpop.f32.mrb[80].mxu1  ;;  %v2957_v52 = vpack.c.bf16 %v2836_v18, %v2835_v38 }
 0x1f3   : > { %v2385_v25 = vadd.f32 %v12085_v20, %v14284_v19  ;;  %v2376_v50 = vpop.f32.mrb[81].mxu1 }
 0x1f4   : > { %v2377_v55 = vadd.f32 %v14284_v19, %v2376_v50  ;;  %v12086_v21 = vpop.f32.mrb[82].mxu1  ;;  %12223 = vmatprep.mubr.bf16.mxu0 %v2957_v52 }
 0x1f5   : > { %v2841_v27 = vmax.f32 %v2385_v25, 0.0  ;;  %v2388_v54 = vadd.f32 %v12086_v21, %v14284_v19  ;;  %v2379_v60 = vpop.f32.mrb[83].mxu1  ;;  %12224 = vmatmul.mubr.bf16.gmra.mrb[76].mxu0 %v2958_v42 }
 0x1f6   : > { %v2839_v31 = vmax.f32 %v2377_v55, 0.0  ;;  %v2380_v16 = vadd.f32 %v14284_v19, %v2379_v60 }
 0x1f7   : > { %v2842_v35 = vmax.f32 %v2388_v54, 0.0  ;;  %12192 = vmatmul.mubr.bf16.gmra.mrb[188].mxu1 %v14252_v56  ;;  %v13016_v56 = vld [vmem:[%s16960_s8 + $0x30] sm:$0xff]  }
 0x1f8   : > { %v2840_v43 = vmax.f32 %v2380_v16, 0.0  ;;  %12351 = vmatprep.subr.bf16.mxu1 %v13016_v56 }
 0x1f9   : > { %v2960_v1 = vpack.c.bf16 %v2842_v35, %v2841_v27  ;;  %12352 = vmatpush3.bf16.msra.mxu1 %v13016_v56  ;;  %v13722_v35 = vmov 0  }
 0x1fa   : > { %v12089_v7 = vpop.f32.mrb[84].mxu1  ;;  %v2959_v41 = vpack.c.bf16 %v2840_v43, %v2839_v31  ;;  %v13017_v31 = vld [vmem:[%s16962_s10] sm:$0xff]   ;;  %4736 = vmatprep.subr.bf16.mxu0 %v13722_v35 }
 0x1fb   : > { %v2401_v45 = vadd.f32 %v12089_v7, %v14284_v19  ;;  %v2392_v15 = vpop.f32.mrb[85].mxu1  ;;  %4737 = vmatpush1.bf16.msra.mxu0 %v13017_v31 }
 0x1fc   : > { %v2393_v22 = vadd.f32 %v14284_v19, %v2392_v15  ;;  %v12090_v61 = vpop.f32.mrb[86].mxu1  ;;  %12227 = vmatprep.mubr.bf16.mxu0 %v2959_v41  ;;  %4738 = vmatprep.subr.bf16.mxu0 %v13722_v35 }
 0x1fd   : > { %v2845_v3 = vmax.f32 %v2401_v45, 0.0  ;;  %v2404_v46 = vadd.f32 %v12090_v61, %v14284_v19  ;;  %v2395_v44 = vpop.f32.mrb[87].mxu1  ;;  %12228 = vmatmul.mubr.bf16.gmra.mrb[80].mxu0 %v2960_v1 }
 0x1fe   : > { %v2843_v47 = vmax.f32 %v2393_v22, 0.0  ;;  %v2396_v48 = vadd.f32 %v14284_v19, %v2395_v44 }
 0x1ff   : > { %v2846_v49 = vmax.f32 %v2404_v46, 0.0  ;;  %v13018_v46 = vld [vmem:[%s16960_s8 + $0x38] sm:$0xff]  }
 0x200   : > { %v2844_v40 = vmax.f32 %v2396_v48, 0.0  ;;  %12353 = vmatprep.subr.bf16.mxu1 %v13018_v46 }
 0x201   : > { %v2962_v32 = vpack.c.bf16 %v2846_v49, %v2845_v3  ;;  %12354 = vmatpush3.bf16.msra.mxu1 %v13018_v46 }
 0x202   : > { %v12093_v51 = vpop.f32.mrb[88].mxu1  ;;  %v2961_v53 = vpack.c.bf16 %v2844_v40, %v2843_v47 }
 0x203   : > { %v2417_v57 = vadd.f32 %v12093_v51, %v14284_v19  ;;  %v2408_v59 = vpop.f32.mrb[89].mxu1 }
 0x204   : > { %v2409_v63 = vadd.f32 %v14284_v19, %v2408_v59  ;;  %v12094_v0 = vpop.f32.mrb[90].mxu1  ;;  %12231 = vmatprep.mubr.bf16.mxu0 %v2961_v53 }
 0x205   : > { %v2849_v4 = vmax.f32 %v2417_v57, 0.0  ;;  %v2420_v5 = vadd.f32 %v12094_v0, %v14284_v19  ;;  %v2411_v8 = vpop.f32.mrb[91].mxu1  ;;  %12232 = vmatmul.mubr.bf16.gmra.mrb[84].mxu0 %v2962_v32 }
 0x206   : > { %v2847_v9 = vmax.f32 %v2409_v63, 0.0  ;;  %v2412_v10 = vadd.f32 %v14284_v19, %v2411_v8 }
 0x207   : > { %v2850_v11 = vmax.f32 %v2420_v5, 0.0 }
 0x208   : > { %v2848_v12 = vmax.f32 %v2412_v10, 0.0 }
 0x209   : > { %v2964_v23 = vpack.c.bf16 %v2850_v11, %v2849_v4 }
 0x20a   : > { %v12097_v13 = vpop.f32.mrb[92].mxu1  ;;  %v2963_v62 = vpack.c.bf16 %v2848_v12, %v2847_v9 }
 0x20b   : > { %v2433_v28 = vadd.f32 %v12097_v13, %v14284_v19  ;;  %v2424_v14 = vpop.f32.mrb[93].mxu1 }
 0x20c   : > { %v2425_v17 = vadd.f32 %v14284_v19, %v2424_v14  ;;  %v12098_v26 = vpop.f32.mrb[94].mxu1  ;;  %12235 = vmatprep.mubr.bf16.mxu0 %v2963_v62 }
 0x20d   : > { %v2853_v29 = vmax.f32 %v2433_v28, 0.0  ;;  %v2436_v30 = vadd.f32 %v12098_v26, %v14284_v19  ;;  %v2427_v33 = vpop.f32.mrb[95].mxu1  ;;  %12236 = vmatmul.mubr.bf16.gmra.mrb[88].mxu0 %v2964_v23 }
 0x20e   : > { %v2851_v34 = vmax.f32 %v2425_v17, 0.0  ;;  %v2428_v36 = vadd.f32 %v14284_v19, %v2427_v33 }
 0x20f   : > { %v2854_v37 = vmax.f32 %v2436_v30, 0.0 }
 0x210   : > { %v2852_v24 = vmax.f32 %v2428_v36, 0.0 }
 0x211   : > { %v2966_v38 = vpack.c.bf16 %v2854_v37, %v2853_v29  ;;  %v13019_v37 = vld [vmem:[%s16962_s10 + $0x8] sm:$0xff]  }
 0x212   : > { %v12101_v58 = vpop.f32.mrb[96].mxu1  ;;  %v2965_v39 = vpack.c.bf16 %v2852_v24, %v2851_v34  ;;  %4739 = vmatpush1.bf16.msra.mxu0 %v13019_v37 }
 0x213   : > { %v2449_v18 = vadd.f32 %v12101_v58, %v14284_v19  ;;  %v2440_v42 = vpop.f32.mrb[97].mxu1  ;;  %4740 = vmatprep.subr.bf16.mxu0 %v13722_v35 }
 0x214   : > { %v2441_v20 = vadd.f32 %v14284_v19, %v2440_v42  ;;  %v12102_v52 = vpop.f32.mrb[98].mxu1  ;;  %12239 = vmatprep.mubr.bf16.mxu0 %v2965_v39 }
 0x215   : > { %v2857_v25 = vmax.f32 %v2449_v18, 0.0  ;;  %v2452_v50 = vadd.f32 %v12102_v52, %v14284_v19  ;;  %v2443_v55 = vpop.f32.mrb[99].mxu1  ;;  %12240 = vmatmul.mubr.bf16.gmra.mrb[92].mxu0 %v2966_v38 }
 0x216   : > { %v2855_v21 = vmax.f32 %v2441_v20, 0.0  ;;  %v2444_v27 = vadd.f32 %v14284_v19, %v2443_v55 }
 0x217   : > { %v2858_v54 = vmax.f32 %v2452_v50, 0.0 }
 0x218   : > { %v2856_v60 = vmax.f32 %v2444_v27, 0.0 }
 0x219   : > { %v2968_v16 = vpack.c.bf16 %v2858_v54, %v2857_v25 }
 0x21a   : > { %v12105_v43 = vpop.f32.mrb[100].mxu1  ;;  %v2967_v1 = vpack.c.bf16 %v2856_v60, %v2855_v21 }
 0x21b   : > { %v2465_v7 = vadd.f32 %v12105_v43, %v14284_v19  ;;  %v2456_v41 = vpop.f32.mrb[101].mxu1 }
 0x21c   : > { %v2457_v45 = vadd.f32 %v14284_v19, %v2456_v41  ;;  %v12106_v15 = vpop.f32.mrb[102].mxu1  ;;  %12243 = vmatprep.mubr.bf16.mxu0 %v2967_v1 }
 0x21d   : > { %v2861_v22 = vmax.f32 %v2465_v7, 0.0  ;;  %v2468_v61 = vadd.f32 %v12106_v15, %v14284_v19  ;;  %v2459_v3 = vpop.f32.mrb[103].mxu1  ;;  %12244 = vmatmul.mubr.bf16.gmra.mrb[96].mxu0 %v2968_v16 }
 0x21e   : > { %v2859_v44 = vmax.f32 %v2457_v45, 0.0  ;;  %v2460_v56 = vadd.f32 %v14284_v19, %v2459_v3 }
 0x21f   : > { %v2862_v47 = vmax.f32 %v2468_v61, 0.0 }
 0x220   : > { %v2860_v48 = vmax.f32 %v2460_v56, 0.0 }
 0x221   : > { %v2970_v49 = vpack.c.bf16 %v2862_v47, %v2861_v22 }
 0x222   : > { %v12109_v40 = vpop.f32.mrb[104].mxu1  ;;  %v2969_v32 = vpack.c.bf16 %v2860_v48, %v2859_v44 }
 0x223   : > { %v2481_v51 = vadd.f32 %v12109_v40, %v14284_v19  ;;  %v2472_v53 = vpop.f32.mrb[105].mxu1 }
 0x224   : > { %v2473_v57 = vadd.f32 %v14284_v19, %v2472_v53  ;;  %v12110_v59 = vpop.f32.mrb[106].mxu1  ;;  %12247 = vmatprep.mubr.bf16.mxu0 %v2969_v32 }
 0x225   : > { %v2865_v63 = vmax.f32 %v2481_v51, 0.0  ;;  %v2484_v0 = vadd.f32 %v12110_v59, %v14284_v19  ;;  %v2475_v4 = vpop.f32.mrb[107].mxu1  ;;  %12248 = vmatmul.mubr.bf16.gmra.mrb[100].mxu0 %v2970_v49 }
 0x226   : > { %v2863_v5 = vmax.f32 %v2473_v57, 0.0  ;;  %v2476_v8 = vadd.f32 %v14284_v19, %v2475_v4  ;;  %v13020_v4 = vld [vmem:[%s16962_s10 + $0x10] sm:$0xff]  }
 0x227   : > { %v2866_v9 = vmax.f32 %v2484_v0, 0.0  ;;  %4741 = vmatpush1.bf16.msra.mxu0 %v13020_v4 }
 0x228   : > { %v2864_v10 = vmax.f32 %v2476_v8, 0.0  ;;  %4742 = vmatprep.subr.bf16.mxu0 %v13722_v35 }
 0x229   : > { %v2972_v11 = vpack.c.bf16 %v2866_v9, %v2865_v63 }
 0x22a   : > { %v12113_v12 = vpop.f32.mrb[108].mxu1  ;;  %v2971_v23 = vpack.c.bf16 %v2864_v10, %v2863_v5 }
 0x22b   : > { %v2497_v13 = vadd.f32 %v12113_v12, %v14284_v19  ;;  %v2488_v62 = vpop.f32.mrb[109].mxu1 }
 0x22c   : > { %v2489_v28 = vadd.f32 %v14284_v19, %v2488_v62  ;;  %v12114_v14 = vpop.f32.mrb[110].mxu1  ;;  %12251 = vmatprep.mubr.bf16.mxu0 %v2971_v23 }
 0x22d   : > { %v2869_v17 = vmax.f32 %v2497_v13, 0.0  ;;  %v2500_v26 = vadd.f32 %v12114_v14, %v14284_v19  ;;  %v2491_v29 = vpop.f32.mrb[111].mxu1  ;;  %12252 = vmatmul.mubr.bf16.gmra.mrb[104].mxu0 %v2972_v11 }
 0x22e   : > { %v2867_v30 = vmax.f32 %v2489_v28, 0.0  ;;  %v2492_v33 = vadd.f32 %v14284_v19, %v2491_v29 }
 0x22f   : > { %v2870_v34 = vmax.f32 %v2500_v26, 0.0 }
 0x230   : > { %v2868_v36 = vmax.f32 %v2492_v33, 0.0 }
 0x231   : > { %v2974_v24 = vpack.c.bf16 %v2870_v34, %v2869_v17 }
 0x232   : > { %v12117_v38 = vpop.f32.mrb[112].mxu1  ;;  %v2973_v58 = vpack.c.bf16 %v2868_v36, %v2867_v30 }
 0x233   : > { %v2513_v39 = vadd.f32 %v12117_v38, %v14284_v19  ;;  %v2504_v18 = vpop.f32.mrb[113].mxu1 }
 0x234   : > { %v2505_v42 = vadd.f32 %v14284_v19, %v2504_v18  ;;  %v12118_v20 = vpop.f32.mrb[114].mxu1  ;;  %12255 = vmatprep.mubr.bf16.mxu0 %v2973_v58 }
 0x235   : > { %v2873_v52 = vmax.f32 %v2513_v39, 0.0  ;;  %v2516_v25 = vadd.f32 %v12118_v20, %v14284_v19  ;;  %v2507_v50 = vpop.f32.mrb[115].mxu1  ;;  %12256 = vmatmul.mubr.bf16.gmra.mrb[108].mxu0 %v2974_v24 }
 0x236   : > { %v2871_v55 = vmax.f32 %v2505_v42, 0.0  ;;  %v2508_v21 = vadd.f32 %v14284_v19, %v2507_v50 }
 0x237   : > { %v2874_v27 = vmax.f32 %v2516_v25, 0.0 }
 0x238   : > { %v2872_v54 = vmax.f32 %v2508_v21, 0.0 }
 0x239   : > { %v2976_v60 = vpack.c.bf16 %v2874_v27, %v2873_v52 }
 0x23a   : > { %v12121_v31 = vpop.f32.mrb[116].mxu1  ;;  %v2975_v16 = vpack.c.bf16 %v2872_v54, %v2871_v55 }
 0x23b   : > { %v2529_v43 = vadd.f32 %v12121_v31, %v14284_v19  ;;  %v2520_v1 = vpop.f32.mrb[117].mxu1 }
 0x23c   : > { %v2521_v7 = vadd.f32 %v14284_v19, %v2520_v1  ;;  %v12122_v41 = vpop.f32.mrb[118].mxu1  ;;  %12259 = vmatprep.mubr.bf16.mxu0 %v2975_v16  ;;  %v13021_v16 = vld [vmem:[%s16962_s10 + $0x18] sm:$0xff]  }
 0x23d   : > { %v2877_v45 = vmax.f32 %v2529_v43, 0.0  ;;  %v2532_v15 = vadd.f32 %v12122_v41, %v14284_v19  ;;  %v2523_v22 = vpop.f32.mrb[119].mxu1  ;;  %12260 = vmatmul.mubr.bf16.gmra.mrb[112].mxu0 %v2976_v60 }
 0x23e   : > { %v2875_v61 = vmax.f32 %v2521_v7, 0.0  ;;  %v2524_v3 = vadd.f32 %v14284_v19, %v2523_v22  ;;  %4743 = vmatpush1.bf16.msra.mxu0 %v13021_v16 }
 0x23f   : > { %v2878_v46 = vmax.f32 %v2532_v15, 0.0  ;;  %4744 = vmatprep.subr.bf16.mxu0 %v13722_v35 }
 0x240   : > { %v2876_v44 = vmax.f32 %v2524_v3, 0.0 }
 0x241   : > { %v2978_v56 = vpack.c.bf16 %v2878_v46, %v2877_v45 }
 0x242   : > { %v12125_v47 = vpop.f32.mrb[120].mxu1  ;;  %v2977_v48 = vpack.c.bf16 %v2876_v44, %v2875_v61 }
 0x243   : > { %v2545_v49 = vadd.f32 %v12125_v47, %v14284_v19  ;;  %v2536_v40 = vpop.f32.mrb[121].mxu1 }
 0x244   : > { %v2537_v32 = vadd.f32 %v14284_v19, %v2536_v40  ;;  %v12126_v51 = vpop.f32.mrb[122].mxu1  ;;  %12263 = vmatprep.mubr.bf16.mxu0 %v2977_v48 }
 0x245   : > { %v2881_v53 = vmax.f32 %v2545_v49, 0.0  ;;  %v2548_v57 = vadd.f32 %v12126_v51, %v14284_v19  ;;  %v2539_v59 = vpop.f32.mrb[123].mxu1  ;;  %12264 = vmatmul.mubr.bf16.gmra.mrb[116].mxu0 %v2978_v56 }
 0x246   : > { %v2879_v63 = vmax.f32 %v2537_v32, 0.0  ;;  %v2540_v0 = vadd.f32 %v14284_v19, %v2539_v59 }
 0x247   : > { %v2882_v5 = vmax.f32 %v2548_v57, 0.0 }
 0x248   : > { %v2880_v8 = vmax.f32 %v2540_v0, 0.0 }
 0x249   : > { %v2980_v9 = vpack.c.bf16 %v2882_v5, %v2881_v53 }
 0x24a   : > { %v12129_v10 = vpop.f32.mrb[124].mxu1  ;;  %v2979_v11 = vpack.c.bf16 %v2880_v8, %v2879_v63 }
 0x24b   : > { %v2561_v12 = vadd.f32 %v12129_v10, %v14284_v19  ;;  %v2552_v23 = vpop.f32.mrb[125].mxu1 }
 0x24c   : > { %v2553_v13 = vadd.f32 %v14284_v19, %v2552_v23  ;;  %v12130_v62 = vpop.f32.mrb[126].mxu1  ;;  %12267 = vmatprep.mubr.bf16.mxu0 %v2979_v11 }
 0x24d   : > { %v2885_v28 = vmax.f32 %v2561_v12, 0.0  ;;  %v2564_v14 = vadd.f32 %v12130_v62, %v14284_v19  ;;  %v2555_v17 = vpop.f32.mrb[127].mxu1  ;;  %12268 = vmatmul.mubr.bf16.gmra.mrb[120].mxu0 %v2980_v9 }
 0x24e   : > { %v2883_v26 = vmax.f32 %v2553_v13, 0.0  ;;  %v2556_v29 = vadd.f32 %v14284_v19, %v2555_v17 }
 0x24f   : > { %v2886_v30 = vmax.f32 %v2564_v14, 0.0 }
 0x250   : > { %v2884_v33 = vmax.f32 %v2556_v29, 0.0 }
 0x251   : > { %v2982_v34 = vpack.c.bf16 %v2886_v30, %v2885_v28  ;;  %v13022_v28 = vld [vmem:[%s16962_s10 + $0x20] sm:$0xff]  }
 0x252   : > { %v12133_v36 = vpop.f32.mrb[128].mxu1  ;;  %v2981_v37 = vpack.c.bf16 %v2884_v33, %v2883_v26  ;;  %4745 = vmatpush1.bf16.msra.mxu0 %v13022_v28 }
 0x253   : > { %v2577_v24 = vadd.f32 %v12133_v36, %v14284_v19  ;;  %v2568_v38 = vpop.f32.mrb[129].mxu1  ;;  %4746 = vmatprep.subr.bf16.mxu0 %v13722_v35 }
 0x254   : > { %v2569_v58 = vadd.f32 %v14284_v19, %v2568_v38  ;;  %v12134_v39 = vpop.f32.mrb[130].mxu1  ;;  %12271 = vmatprep.mubr.bf16.mxu0 %v2981_v37 }
 0x255   : > { %v2580_v18 = vadd.f32 %v12134_v39, %v14284_v19  ;;  %v2571_v42 = vpop.f32.mrb[131].mxu1  ;;  %12272 = vmatmul.mubr.bf16.gmra.mrb[124].mxu0 %v2982_v34  ;;  %v2889_v52 = vmax.f32 %v2577_v24, 0.0 }
 0x256   : > { %v2572_v20 = vadd.f32 %v14284_v19, %v2571_v42  ;;  %v2887_v50 = vmax.f32 %v2569_v58, 0.0 }
 0x257   : > { %v2890_v25 = vmax.f32 %v2580_v18, 0.0 }
 0x258   : > { %v2888_v55 = vmax.f32 %v2572_v20, 0.0 }
 0x259   : > { %v2984_v21 = vpack.c.bf16 %v2890_v25, %v2889_v52 }
 0x25a   : > { %v12137_v27 = vpop.f32.mrb[132].mxu1  ;;  %v2983_v54 = vpack.c.bf16 %v2888_v55, %v2887_v50 }
 0x25b   : > { %v2593_v60 = vadd.f32 %v12137_v27, %v14284_v19  ;;  %v2584_v31 = vpop.f32.mrb[133].mxu1 }
 0x25c   : > { %v2585_v43 = vadd.f32 %v14284_v19, %v2584_v31  ;;  %v12138_v1 = vpop.f32.mrb[134].mxu1  ;;  %12275 = vmatprep.mubr.bf16.mxu0 %v2983_v54 }
 0x25d   : > { %v2596_v7 = vadd.f32 %v12138_v1, %v14284_v19  ;;  %v2587_v41 = vpop.f32.mrb[135].mxu1  ;;  %12276 = vmatmul.mubr.bf16.gmra.mrb[128].mxu0 %v2984_v21  ;;  %v2893_v15 = vmax.f32 %v2593_v60, 0.0 }
 0x25e   : > { %v2588_v45 = vadd.f32 %v14284_v19, %v2587_v41  ;;  %v2891_v61 = vmax.f32 %v2585_v43, 0.0 }
 0x25f   : > { %v2894_v22 = vmax.f32 %v2596_v7, 0.0 }
 0x260   : > { %v2892_v3 = vmax.f32 %v2588_v45, 0.0 }
 0x261   : > { %v2986_v46 = vpack.c.bf16 %v2894_v22, %v2893_v15 }
 0x262   : > { %v12141_v44 = vpop.f32.mrb[136].mxu1  ;;  %v2985_v56 = vpack.c.bf16 %v2892_v3, %v2891_v61 }
 0x263   : > { %v2609_v47 = vadd.f32 %v12141_v44, %v14284_v19  ;;  %v2600_v48 = vpop.f32.mrb[137].mxu1 }
 0x264   : > { %v2601_v49 = vadd.f32 %v14284_v19, %v2600_v48  ;;  %v12142_v40 = vpop.f32.mrb[138].mxu1  ;;  %12279 = vmatprep.mubr.bf16.mxu0 %v2985_v56 }
 0x265   : > { %v2612_v32 = vadd.f32 %v12142_v40, %v14284_v19  ;;  %v2603_v51 = vpop.f32.mrb[139].mxu1  ;;  %12280 = vmatmul.mubr.bf16.gmra.mrb[132].mxu0 %v2986_v46  ;;  %v2897_v57 = vmax.f32 %v2609_v47, 0.0 }
 0x266   : > { %v2604_v53 = vadd.f32 %v14284_v19, %v2603_v51  ;;  %v2895_v63 = vmax.f32 %v2601_v49, 0.0 }
 0x267   : > { %v2898_v59 = vmax.f32 %v2612_v32, 0.0  ;;  %v13023_v32 = vld [vmem:[%s16962_s10 + $0x28] sm:$0xff]  }
 0x268   : > { %v2896_v0 = vmax.f32 %v2604_v53, 0.0  ;;  %4747 = vmatpush1.bf16.msra.mxu0 %v13023_v32 }
 0x269   : > { %v2988_v4 = vpack.c.bf16 %v2898_v59, %v2897_v57  ;;  %4748 = vmatprep.subr.bf16.mxu0 %v13722_v35 }
 0x26a   : > { %v12145_v5 = vpop.f32.mrb[140].mxu1  ;;  %v2987_v8 = vpack.c.bf16 %v2896_v0, %v2895_v63 }
 0x26b   : > { %v2625_v9 = vadd.f32 %v12145_v5, %v14284_v19  ;;  %v2616_v10 = vpop.f32.mrb[141].mxu1 }
 0x26c   : > { %v2617_v11 = vadd.f32 %v14284_v19, %v2616_v10  ;;  %v12146_v12 = vpop.f32.mrb[142].mxu1  ;;  %12283 = vmatprep.mubr.bf16.mxu0 %v2987_v8 }
 0x26d   : > { %v2628_v23 = vadd.f32 %v12146_v12, %v14284_v19  ;;  %v2619_v13 = vpop.f32.mrb[143].mxu1  ;;  %12284 = vmatmul.mubr.bf16.gmra.mrb[136].mxu0 %v2988_v4  ;;  %v2901_v14 = vmax.f32 %v2625_v9, 0.0 }
 0x26e   : > { %v2620_v62 = vadd.f32 %v14284_v19, %v2619_v13  ;;  %v2899_v26 = vmax.f32 %v2617_v11, 0.0 }
 0x26f   : > { %v2902_v17 = vmax.f32 %v2628_v23, 0.0 }
 0x270   : > { %v2900_v29 = vmax.f32 %v2620_v62, 0.0 }
 0x271   : > { %v2990_v30 = vpack.c.bf16 %v2902_v17, %v2901_v14 }
 0x272   : > { %v12149_v33 = vpop.f32.mrb[144].mxu1  ;;  %v2989_v34 = vpack.c.bf16 %v2900_v29, %v2899_v26 }
 0x273   : > { %v2641_v36 = vadd.f32 %v12149_v33, %v14284_v19  ;;  %v2632_v37 = vpop.f32.mrb[145].mxu1 }
 0x274   : > { %v2633_v24 = vadd.f32 %v14284_v19, %v2632_v37  ;;  %v12150_v38 = vpop.f32.mrb[146].mxu1  ;;  %12287 = vmatprep.mubr.bf16.mxu0 %v2989_v34 }
 0x275   : > { %v2644_v58 = vadd.f32 %v12150_v38, %v14284_v19  ;;  %v2635_v39 = vpop.f32.mrb[147].mxu1  ;;  %12288 = vmatmul.mubr.bf16.gmra.mrb[140].mxu0 %v2990_v30  ;;  %v2905_v42 = vmax.f32 %v2641_v36, 0.0 }
 0x276   : > { %v2636_v18 = vadd.f32 %v14284_v19, %v2635_v39  ;;  %v2903_v52 = vmax.f32 %v2633_v24, 0.0 }
 0x277   : > { %v2906_v20 = vmax.f32 %v2644_v58, 0.0 }
 0x278   : > { %v2904_v25 = vmax.f32 %v2636_v18, 0.0 }
 0x279   : > { %v2992_v50 = vpack.c.bf16 %v2906_v20, %v2905_v42 }
 0x27a   : > { %v12153_v55 = vpop.f32.mrb[148].mxu1  ;;  %v2991_v21 = vpack.c.bf16 %v2904_v25, %v2903_v52 }
 0x27b   : > { %v2657_v27 = vadd.f32 %v12153_v55, %v14284_v19  ;;  %v2648_v54 = vpop.f32.mrb[149].mxu1 }
 0x27c   : > { %v2649_v60 = vadd.f32 %v14284_v19, %v2648_v54  ;;  %v12154_v31 = vpop.f32.mrb[150].mxu1  ;;  %12291 = vmatprep.mubr.bf16.mxu0 %v2991_v21  ;;  %v13024_v21 = vld [vmem:[%s16962_s10 + $0x30] sm:$0xff]  }
 0x27d   : > { %v2660_v16 = vadd.f32 %v12154_v31, %v14284_v19  ;;  %v2651_v43 = vpop.f32.mrb[151].mxu1  ;;  %12292 = vmatmul.mubr.bf16.gmra.mrb[144].mxu0 %v2992_v50  ;;  %v2909_v7 = vmax.f32 %v2657_v27, 0.0 }
 0x27e   : > { %v2652_v1 = vadd.f32 %v14284_v19, %v2651_v43  ;;  %v2907_v45 = vmax.f32 %v2649_v60, 0.0  ;;  %4749 = vmatpush1.bf16.msra.mxu0 %v13024_v21 }
 0x27f   : > { %v2910_v41 = vmax.f32 %v2660_v16, 0.0  ;;  %4750 = vmatprep.subr.bf16.mxu0 %v13722_v35 }
 0x280   : > { %v2908_v15 = vmax.f32 %v2652_v1, 0.0 }
 0x281   : > { %v2994_v22 = vpack.c.bf16 %v2910_v41, %v2909_v7 }
 0x282   : > { %v12157_v61 = vpop.f32.mrb[152].mxu1  ;;  %v2993_v3 = vpack.c.bf16 %v2908_v15, %v2907_v45 }
 0x283   : > { %v2673_v46 = vadd.f32 %v12157_v61, %v14284_v19  ;;  %v2664_v44 = vpop.f32.mrb[153].mxu1 }
 0x284   : > { %v2665_v56 = vadd.f32 %v14284_v19, %v2664_v44  ;;  %v12158_v47 = vpop.f32.mrb[154].mxu1  ;;  %12295 = vmatprep.mubr.bf16.mxu0 %v2993_v3 }
 0x285   : > { %v2676_v48 = vadd.f32 %v12158_v47, %v14284_v19  ;;  %v2667_v49 = vpop.f32.mrb[155].mxu1  ;;  %12296 = vmatmul.mubr.bf16.gmra.mrb[148].mxu0 %v2994_v22  ;;  %v2913_v51 = vmax.f32 %v2673_v46, 0.0 }
 0x286   : > { %v2668_v40 = vadd.f32 %v14284_v19, %v2667_v49  ;;  %v2911_v57 = vmax.f32 %v2665_v56, 0.0 }
 0x287   : > { %v2914_v53 = vmax.f32 %v2676_v48, 0.0 }
 0x288   : > { %v2912_v59 = vmax.f32 %v2668_v40, 0.0 }
 0x289   : > { %v2996_v63 = vpack.c.bf16 %v2914_v53, %v2913_v51 }
 0x28a   : > { %v12161_v0 = vpop.f32.mrb[156].mxu1  ;;  %v2995_v4 = vpack.c.bf16 %v2912_v59, %v2911_v57 }
 0x28b   : > { %v2689_v5 = vadd.f32 %v12161_v0, %v14284_v19  ;;  %v2680_v8 = vpop.f32.mrb[157].mxu1 }
 0x28c   : > { %v2681_v9 = vadd.f32 %v14284_v19, %v2680_v8  ;;  %v12162_v10 = vpop.f32.mrb[158].mxu1  ;;  %12299 = vmatprep.mubr.bf16.mxu0 %v2995_v4 }
 0x28d   : > { %v2692_v11 = vadd.f32 %v12162_v10, %v14284_v19  ;;  %v2683_v12 = vpop.f32.mrb[159].mxu1  ;;  %12300 = vmatmul.mubr.bf16.gmra.mrb[152].mxu0 %v2996_v63  ;;  %v2917_v13 = vmax.f32 %v2689_v5, 0.0 }
 0x28e   : > { %v2684_v23 = vadd.f32 %v14284_v19, %v2683_v12  ;;  %v2915_v28 = vmax.f32 %v2681_v9, 0.0  ;;  %v13025_v12 = vld [vmem:[%s16962_s10 + $0x38] sm:$0xff]  }
 0x28f   : > { %v2918_v62 = vmax.f32 %v2692_v11, 0.0  ;;  %v14448_v11 = vld [vmem:[%s16959_s7] ss:$0 sm:$0xff]  ;;  %4751 = vmatpush1.bf16.msra.mxu0 %v13025_v12 }
 0x290   : > { %v2916_v14 = vmax.f32 %v2684_v23, 0.0  ;;  %4752 = vmatprep.subr.bf16.mxu0 %v13722_v35 }
 0x291   : > { %v2998_v17 = vpack.c.bf16 %v2918_v62, %v2917_v13 }
 0x292   : > { %v12165_v26 = vpop.f32.mrb[160].mxu1  ;;  %v2997_v29 = vpack.c.bf16 %v2916_v14, %v2915_v28 }
 0x293   : > { %v2705_v30 = vadd.f32 %v12165_v26, %v14284_v19  ;;  %v2696_v33 = vpop.f32.mrb[161].mxu1 }
 0x294   : > { %v2697_v34 = vadd.f32 %v14284_v19, %v2696_v33  ;;  %v12166_v36 = vpop.f32.mrb[162].mxu1  ;;  %12303 = vmatprep.mubr.bf16.mxu0 %v2997_v29 }
 0x295   : > { %v2708_v37 = vadd.f32 %v12166_v36, %v14284_v19  ;;  %v2699_v24 = vpop.f32.mrb[163].mxu1  ;;  %12304 = vmatmul.mubr.bf16.gmra.mrb[156].mxu0 %v2998_v17  ;;  %v2921_v58 = vmax.f32 %v2705_v30, 0.0 }
 0x296   : > { %v2700_v38 = vadd.f32 %v14284_v19, %v2699_v24  ;;  %v2919_v18 = vmax.f32 %v2697_v34, 0.0 }
 0x297   : > { %v2922_v39 = vmax.f32 %v2708_v37, 0.0 }
 0x298   : > { %v2920_v42 = vmax.f32 %v2700_v38, 0.0 }
 0x299   : > { %v3000_v20 = vpack.c.bf16 %v2922_v39, %v2921_v58 }
 0x29a   : > { %v12169_v52 = vpop.f32.mrb[164].mxu1  ;;  %v2999_v25 = vpack.c.bf16 %v2920_v42, %v2919_v18 }
 0x29b   : > { %v2721_v50 = vadd.f32 %v12169_v52, %v14284_v19  ;;  %v2712_v55 = vpop.f32.mrb[165].mxu1 }
 0x29c   : > { %v2713_v27 = vadd.f32 %v14284_v19, %v2712_v55  ;;  %v12170_v54 = vpop.f32.mrb[166].mxu1  ;;  %12307 = vmatprep.mubr.bf16.mxu0 %v2999_v25 }
 0x29d   : > { %v2724_v60 = vadd.f32 %v12170_v54, %v14284_v19  ;;  %v2715_v31 = vpop.f32.mrb[167].mxu1  ;;  %12308 = vmatmul.mubr.bf16.gmra.mrb[160].mxu0 %v3000_v20  ;;  %v2925_v43 = vmax.f32 %v2721_v50, 0.0 }
 0x29e   : > { %v2716_v16 = vadd.f32 %v14284_v19, %v2715_v31  ;;  %v2923_v7 = vmax.f32 %v2713_v27, 0.0  ;;  %v14464_v27 = vld [vmem:[%s16957_s5] ss:$0 sm:$0xff] }
 0x29f   : > { %v2926_v1 = vmax.f32 %v2724_v60, 0.0 }
 0x2a0   : > { %v2924_v41 = vmax.f32 %v2716_v16, 0.0 }
 0x2a1   : > { %v3002_v45 = vpack.c.bf16 %v2926_v1, %v2925_v43 }
 0x2a2   : > { %v12173_v15 = vpop.f32.mrb[168].mxu1  ;;  %v3001_v22 = vpack.c.bf16 %v2924_v41, %v2923_v7 }
 0x2a3   : > { %v2737_v61 = vadd.f32 %v12173_v15, %v14284_v19  ;;  %v2728_v3 = vpop.f32.mrb[169].mxu1 }
 0x2a4   : > { %v2729_v46 = vadd.f32 %v14284_v19, %v2728_v3  ;;  %v12174_v44 = vpop.f32.mrb[170].mxu1  ;;  %12311 = vmatprep.mubr.bf16.mxu0 %v3001_v22 }
 0x2a5   : > { %v2740_v56 = vadd.f32 %v12174_v44, %v14284_v19  ;;  %v2731_v47 = vpop.f32.mrb[171].mxu1  ;;  %12312 = vmatmul.mubr.bf16.gmra.mrb[164].mxu0 %v3002_v45  ;;  %v2929_v49 = vmax.f32 %v2737_v61, 0.0 }
 0x2a6   : > { %v2732_v48 = vadd.f32 %v14284_v19, %v2731_v47  ;;  %v2927_v32 = vmax.f32 %v2729_v46, 0.0 }
 0x2a7   : > { %v2930_v40 = vmax.f32 %v2740_v56, 0.0 }
 0x2a8   : > { %v2928_v51 = vmax.f32 %v2732_v48, 0.0 }
 0x2a9   : > { %v3004_v53 = vpack.c.bf16 %v2930_v40, %v2929_v49 }
 0x2aa   : > { %v12177_v57 = vpop.f32.mrb[172].mxu1  ;;  %v3003_v59 = vpack.c.bf16 %v2928_v51, %v2927_v32 }
 0x2ab   : > { %v2753_v63 = vadd.f32 %v12177_v57, %v14284_v19  ;;  %v2744_v0 = vpop.f32.mrb[173].mxu1 }
 0x2ac   : > { %v2745_v4 = vadd.f32 %v14284_v19, %v2744_v0  ;;  %v12178_v5 = vpop.f32.mrb[174].mxu1  ;;  %12315 = vmatprep.mubr.bf16.mxu0 %v3003_v59 }
 0x2ad   : > { %v2756_v8 = vadd.f32 %v12178_v5, %v14284_v19  ;;  %v2747_v9 = vpop.f32.mrb[175].mxu1  ;;  %12316 = vmatmul.mubr.bf16.gmra.mrb[168].mxu0 %v3004_v53  ;;  %v2933_v23 = vmax.f32 %v2753_v63, 0.0 }
 0x2ae   : > { %v2748_v10 = vadd.f32 %v14284_v19, %v2747_v9  ;;  %v2931_v62 = vmax.f32 %v2745_v4, 0.0 }
 0x2af   : > { %v2934_v13 = vmax.f32 %v2756_v8, 0.0 }
 0x2b0   : > { %v2932_v28 = vmax.f32 %v2748_v10, 0.0  ;;  %v12213_v14 = vpop.f32.mrb[64].mxu0 }
 0x2b1   : > { %v3129_v17 = vadd.f32 %v12213_v14, %v14448_v11  ;;  %v3120_v26 = vpop.f32.mrb[65].mxu0  ;;  %v3006_v29 = vpack.c.bf16 %v2934_v13, %v2933_v23 }
 0x2b2   : > { %v3121_v30 = vadd.f32 %v14448_v11, %v3120_v26  ;;  %v12181_v33 = vpop.f32.mrb[176].mxu1  ;;  %v12214_v34 = vpop.f32.mrb[66].mxu0  ;;  %v3005_v36 = vpack.c.bf16 %v2932_v28, %v2931_v62 }
 0x2b3   : > { %v2769_v37 = vadd.f32 %v12181_v33, %v14284_v19  ;;  %v3132_v24 = vadd.f32 %v12214_v34, %v14448_v11  ;;  %v2760_v38 = vpop.f32.mrb[177].mxu1  ;;  %v3123_v58 = vpop.f32.mrb[67].mxu0  ;;  %v3633_v20 = vmax.f32 %v3129_v17, 0.0 }
 0x2b4   : > { %v2761_v39 = vadd.f32 %v14284_v19, %v2760_v38  ;;  %v3124_v18 = vadd.f32 %v14448_v11, %v3123_v58  ;;  %v12182_v42 = vpop.f32.mrb[178].mxu1  ;;  %12319 = vmatprep.mubr.bf16.mxu0 %v3005_v36  ;;  %v3631_v55 = vmax.f32 %v3121_v30, 0.0 }
 0x2b5   : > { %v3634_v52 = vmax.f32 %v3132_v24, 0.0  ;;  %v2772_v25 = vadd.f32 %v12182_v42, %v14284_v19  ;;  %v2763_v50 = vpop.f32.mrb[179].mxu1  ;;  %12320 = vmatmul.mubr.bf16.gmra.mrb[172].mxu0 %v3006_v29  ;;  %v2937_v60 = vmax.f32 %v2769_v37, 0.0 }
 0x2b6   : > { %v3632_v21 = vmax.f32 %v3124_v18, 0.0  ;;  %v2764_v54 = vadd.f32 %v14464_v27, %v2763_v50  ;;  %v2935_v43 = vmax.f32 %v2761_v39, 0.0 }
 0x2b7   : > { %v3760_v31 = vpack.c.bf16 %v3634_v52, %v3633_v20  ;;  %v2938_v16 = vmax.f32 %v2772_v25, 0.0 }
 0x2b8   : > { %v2936_v1 = vmax.f32 %v2764_v54, 0.0  ;;  %v12217_v7 = vpop.f32.mrb[68].mxu0  ;;  %v3759_v41 = vpack.c.bf16 %v3632_v21, %v3631_v55 }
 0x2b9   : > { %v3145_v19 = vadd.f32 %v12217_v7, %v14448_v11  ;;  %v3136_v45 = vpop.f32.mrb[69].mxu0  ;;  %v3008_v15 = vpack.c.bf16 %v2938_v16, %v2937_v60  ;;  %v13026_v60 = vld [vmem:[%s16962_s10 + $0x40] sm:$0xff]  }
 0x2ba   : > { %v3137_v22 = vadd.f32 %v14448_v11, %v3136_v45  ;;  %v12185_v61 = vpop.f32.mrb[180].mxu1  ;;  %v12218_v3 = vpop.f32.mrb[70].mxu0  ;;  %12355 = vmatprep.mubr.bf16.mxu1 %v3759_v41  ;;  %v3007_v46 = vpack.c.bf16 %v2936_v1, %v2935_v43  ;;  %4753 = vmatpush1.bf16.msra.mxu0 %v13026_v60 }
 0x2bb   : > { %v2785_v44 = vadd.f32 %v14464_v27, %v12185_v61  ;;  %v3148_v56 = vadd.f32 %v12218_v3, %v14448_v11  ;;  %v2776_v47 = vpop.f32.mrb[181].mxu1  ;;  %v3139_v48 = vpop.f32.mrb[71].mxu0  ;;  %12356 = vmatmul.mubr.bf16.vlgmr.msra.gmra.mrb[192].mxu1 %v3760_v31  ;;  %v3637_v51 = vmax.f32 %v3145_v19, 0.0  ;;  %4754 = vmatprep.subr.bf16.mxu0 %v13722_v35 }
 0x2bc   : > { %v2777_v49 = vadd.f32 %v14464_v27, %v2776_v47  ;;  %v3140_v40 = vadd.f32 %v14448_v11, %v3139_v48  ;;  %v12186_v32 = vpop.f32.mrb[182].mxu1  ;;  %12323 = vmatprep.mubr.bf16.mxu0 %v3007_v46  ;;  %v3635_v63 = vmax.f32 %v3137_v22, 0.0 }
 0x2bd   : > { %v3638_v53 = vmax.f32 %v3148_v56, 0.0  ;;  %v2788_v57 = vadd.f32 %v14464_v27, %v12186_v32  ;;  %v2779_v59 = vpop.f32.mrb[183].mxu1  ;;  %12324 = vmatmul.mubr.bf16.gmra.mrb[176].mxu0 %v3008_v15  ;;  %v2941_v5 = vmax.f32 %v2785_v44, 0.0 }
 0x2be   : > { %v3636_v0 = vmax.f32 %v3140_v40, 0.0  ;;  %v2780_v4 = vadd.f32 %v14464_v27, %v2779_v59  ;;  %v2939_v10 = vmax.f32 %v2777_v49, 0.0 }
 0x2bf   : > { %v2942_v8 = vmax.f32 %v2788_v57, 0.0  ;;  %v3762_v9 = vpack.c.bf16 %v3638_v53, %v3637_v51 }
 0x2c0   : > { %v2940_v12 = vmax.f32 %v2780_v4, 0.0  ;;  %v12221_v23 = vpop.f32.mrb[72].mxu0  ;;  %v3761_v13 = vpack.c.bf16 %v3636_v0, %v3635_v63 }
 0x2c1   : > { %v3161_v62 = vadd.f32 %v12221_v23, %v14448_v11  ;;  %v3152_v28 = vpop.f32.mrb[73].mxu0  ;;  %v3010_v14 = vpack.c.bf16 %v2942_v8, %v2941_v5 }
 0x2c2   : > { %v3153_v17 = vadd.f32 %v14448_v11, %v3152_v28  ;;  %v12189_v26 = vpop.f32.mrb[184].mxu1  ;;  %v12222_v29 = vpop.f32.mrb[74].mxu0  ;;  %12359 = vmatprep.mubr.bf16.mxu1 %v3761_v13  ;;  %v3009_v30 = vpack.c.bf16 %v2940_v12, %v2939_v10 }
 0x2c3   : > { %v3641_v33 = vmax.f32 %v3161_v62, 0.0  ;;  %v2801_v34 = vadd.f32 %v14464_v27, %v12189_v26  ;;  %v3164_v36 = vadd.f32 %v12222_v29, %v14448_v11  ;;  %v2792_v37 = vpop.f32.mrb[185].mxu1  ;;  %v3155_v24 = vpop.f32.mrb[75].mxu0  ;;  %12360 = vmatmul.mubr.bf16.gmra.mrb[196].mxu1 %v3762_v9 }
 0x2c4   : > { %v3639_v38 = vmax.f32 %v3153_v17, 0.0  ;;  %v2793_v58 = vadd.f32 %v14464_v27, %v2792_v37  ;;  %v3156_v39 = vadd.f32 %v14448_v11, %v3155_v24  ;;  %v12190_v18 = vpop.f32.mrb[186].mxu1  ;;  %12327 = vmatprep.mubr.bf16.mxu0 %v3009_v30  ;;  %v13637_v37 = vld [vmem:[%s13861_s22] sm:$0xff]  }
 0x2c5   : > { %v3642_v42 = vmax.f32 %v3164_v36, 0.0  ;;  %v2804_v20 = vadd.f32 %v14464_v27, %v12190_v18  ;;  %v2795_v52 = vpop.f32.mrb[187].mxu1  ;;  %12328 = vmatmul.mubr.bf16.gmra.mrb[180].mxu0 %v3010_v14  ;;  %v2945_v55 = vmax.f32 %v2801_v34, 0.0 }
 0x2c6   : > { %v3640_v25 = vmax.f32 %v3156_v39, 0.0  ;;  %v2796_v50 = vadd.f32 %v14464_v27, %v2795_v52  ;;  %v2943_v31 = vmax.f32 %v2793_v58, 0.0 }
 0x2c7   : > { %v2946_v21 = vmax.f32 %v2804_v20, 0.0  ;;  %v3764_v54 = vpack.c.bf16 %v3642_v42, %v3641_v33 }
 0x2c8   : > { %v2944_v16 = vmax.f32 %v2796_v50, 0.0  ;;  %v12225_v43 = vpop.f32.mrb[76].mxu0  ;;  %v3763_v1 = vpack.c.bf16 %v3640_v25, %v3639_v38 }
 0x2c9   : > { %v3177_v7 = vadd.f32 %v12225_v43, %v14448_v11  ;;  %v3168_v41 = vpop.f32.mrb[77].mxu0  ;;  %v3012_v19 = vpack.c.bf16 %v2946_v21, %v2945_v55  ;;  %v13027_v55 = vld [vmem:[%s16962_s10 + $0x48] sm:$0xff]  }
 0x2ca   : > { %v3169_v45 = vadd.f32 %v14448_v11, %v3168_v41  ;;  %v12193_v15 = vpop.f32.mrb[188].mxu1  ;;  %v12226_v22 = vpop.f32.mrb[78].mxu0  ;;  %12363 = vmatprep.mubr.bf16.mxu1 %v3763_v1  ;;  %v3011_v61 = vpack.c.bf16 %v2944_v16, %v2943_v31  ;;  %4755 = vmatpush1.bf16.msra.mxu0 %v13027_v55 }
 0x2cb   : > { %v3645_v3 = vmax.f32 %v3177_v7, 0.0  ;;  %v2817_v46 = vadd.f32 %v14464_v27, %v12193_v15  ;;  %v3180_v44 = vadd.f32 %v12226_v22, %v14448_v11  ;;  %v2808_v56 = vpop.f32.mrb[189].mxu1  ;;  %v3171_v47 = vpop.f32.mrb[79].mxu0  ;;  %12364 = vmatmul.mubr.bf16.gmra.mrb[200].mxu1 %v3764_v54  ;;  %4756 = vmatprep.subr.bf16.mxu0 %v13722_v35 }
 0x2cc   : > { %v3643_v48 = vmax.f32 %v3169_v45, 0.0  ;;  %v2809_v49 = vadd.f32 %v14464_v27, %v2808_v56  ;;  %v3172_v40 = vadd.f32 %v14448_v11, %v3171_v47  ;;  %v12194_v32 = vpop.f32.mrb[190].mxu1  ;;  %12331 = vmatprep.mubr.bf16.mxu0 %v3011_v61 }
 0x2cd   : > { %v3646_v51 = vmax.f32 %v3180_v44, 0.0  ;;  %v2820_v53 = vadd.f32 %v14464_v27, %v12194_v32  ;;  %v2811_v57 = vpop.f32.mrb[191].mxu1  ;;  %12332 = vmatmul.mubr.bf16.gmra.mrb[184].mxu0 %v3012_v19  ;;  %v2949_v0 = vmax.f32 %v2817_v46, 0.0 }
 0x2ce   : > { %v3644_v59 = vmax.f32 %v3172_v40, 0.0  ;;  %v2812_v63 = vadd.f32 %v14464_v27, %v2811_v57  ;;  %v2947_v8 = vmax.f32 %v2809_v49, 0.0 }
 0x2cf   : > { %v2950_v4 = vmax.f32 %v2820_v53, 0.0  ;;  %v3766_v5 = vpack.c.bf16 %v3646_v51, %v3645_v3 }
 0x2d0   : > { %v2948_v9 = vmax.f32 %v2812_v63, 0.0  ;;  %v12229_v10 = vpop.f32.mrb[80].mxu0  ;;  %v3765_v12 = vpack.c.bf16 %v3644_v59, %v3643_v48 }
 0x2d1   : > { %v3193_v23 = vadd.f32 %v12229_v10, %v14448_v11  ;;  %v3184_v13 = vpop.f32.mrb[81].mxu0  ;;  %v3014_v62 = vpack.c.bf16 %v2950_v4, %v2949_v0  ;;  %v13028_v10 = vld [vmem:[%s16962_s10 + $0x50] sm:$0xff]  }
 0x2d2   : > { %v3185_v28 = vadd.f32 %v14448_v11, %v3184_v13  ;;  %v12230_v14 = vpop.f32.mrb[82].mxu0  ;;  %12367 = vmatprep.mubr.bf16.mxu1 %v3765_v12  ;;  %v3013_v17 = vpack.c.bf16 %v2948_v9, %v2947_v8  ;;  %4757 = vmatpush1.bf16.msra.mxu0 %v13028_v10 }
 0x2d3   : > { %v3649_v26 = vmax.f32 %v3193_v23, 0.0  ;;  %v3196_v27 = vadd.f32 %v12230_v14, %v14448_v11  ;;  %v3187_v29 = vpop.f32.mrb[83].mxu0  ;;  %12368 = vmatmul.mubr.bf16.gmra.mrb[204].mxu1 %v3766_v5  ;;  %4758 = vmatprep.subr.bf16.mxu0 %v13722_v35 }
 0x2d4   : > { %v3647_v30 = vmax.f32 %v3185_v28, 0.0  ;;  %v3188_v33 = vadd.f32 %v14448_v11, %v3187_v29  ;;  %12335 = vmatprep.mubr.bf16.mxu0 %v3013_v17 }
 0x2d5   : > { %v3650_v34 = vmax.f32 %v3196_v27, 0.0  ;;  %12336 = vmatmul.mubr.bf16.gmra.mrb[188].mxu0 %v3014_v62 }
 0x2d6   : > { %v3648_v36 = vmax.f32 %v3188_v33, 0.0  ;;  %10999 = vmatprep.mubr.msk.bf16.mxu0 %vm1270_vm2, %v13637_v37 }
 0x2d7   : > { %v3768_v24 = vpack.c.bf16 %v3650_v34, %v3649_v26 }
 0x2d8   : > { %v12233_v38 = vpop.f32.mrb[84].mxu0  ;;  %v3767_v58 = vpack.c.bf16 %v3648_v36, %v3647_v30 }
 0x2d9   : > { %v3209_v39 = vadd.f32 %v12233_v38, %v14448_v11  ;;  %v3200_v18 = vpop.f32.mrb[85].mxu0 }
 0x2da   : > { %v3201_v42 = vadd.f32 %v14448_v11, %v3200_v18  ;;  %v12234_v20 = vpop.f32.mrb[86].mxu0  ;;  %12371 = vmatprep.mubr.bf16.mxu1 %v3767_v58 }
 0x2db   : > { %v3653_v52 = vmax.f32 %v3209_v39, 0.0  ;;  %v3212_v25 = vadd.f32 %v12234_v20, %v14448_v11  ;;  %v3203_v50 = vpop.f32.mrb[87].mxu0  ;;  %12372 = vmatmul.mubr.bf16.gmra.mrb[208].mxu1 %v3768_v24 }
 0x2dc   : > { %v3651_v21 = vmax.f32 %v3201_v42, 0.0  ;;  %v3204_v54 = vadd.f32 %v14448_v11, %v3203_v50 }
 0x2dd   : > { %v3654_v60 = vmax.f32 %v3212_v25, 0.0 }
 0x2de   : > { %v3652_v31 = vmax.f32 %v3204_v54, 0.0 }
 0x2df   : > { %v3770_v16 = vpack.c.bf16 %v3654_v60, %v3653_v52 }
 0x2e0   : > { %v12237_v43 = vpop.f32.mrb[88].mxu0  ;;  %v3769_v1 = vpack.c.bf16 %v3652_v31, %v3651_v21 }
 0x2e1   : > { %v3225_v7 = vadd.f32 %v12237_v43, %v14448_v11  ;;  %v3216_v41 = vpop.f32.mrb[89].mxu0 }
 0x2e2   : > { %v3217_v19 = vadd.f32 %v14448_v11, %v3216_v41  ;;  %v12238_v45 = vpop.f32.mrb[90].mxu0  ;;  %12375 = vmatprep.mubr.bf16.mxu1 %v3769_v1 }
 0x2e3   : > { %v3657_v15 = vmax.f32 %v3225_v7, 0.0  ;;  %v3228_v22 = vadd.f32 %v12238_v45, %v14448_v11  ;;  %v3219_v61 = vpop.f32.mrb[91].mxu0  ;;  %12376 = vmatmul.mubr.bf16.gmra.mrb[212].mxu1 %v3770_v16 }
 0x2e4   : > { %v3655_v3 = vmax.f32 %v3217_v19, 0.0  ;;  %v3220_v46 = vadd.f32 %v14448_v11, %v3219_v61 }
 0x2e5   : > { %v3658_v44 = vmax.f32 %v3228_v22, 0.0 }
 0x2e6   : > { %v3656_v56 = vmax.f32 %v3220_v46, 0.0 }
 0x2e7   : > { %v3772_v47 = vpack.c.bf16 %v3658_v44, %v3657_v15  ;;  %v13029_v44 = vld [vmem:[%s16962_s10 + $0x58] sm:$0xff]  }
 0x2e8   : > { %v12241_v48 = vpop.f32.mrb[92].mxu0  ;;  %v3771_v49 = vpack.c.bf16 %v3656_v56, %v3655_v3 }
 0x2e9   : > { %v3241_v40 = vadd.f32 %v12241_v48, %v14448_v11  ;;  %v3232_v32 = vpop.f32.mrb[93].mxu0 }
 0x2ea   : > { %v3233_v51 = vadd.f32 %v14448_v11, %v3232_v32  ;;  %v12242_v53 = vpop.f32.mrb[94].mxu0  ;;  %12379 = vmatprep.mubr.bf16.mxu1 %v3771_v49 }
 0x2eb   : > { %v3661_v57 = vmax.f32 %v3241_v40, 0.0  ;;  %v3244_v59 = vadd.f32 %v12242_v53, %v14448_v11  ;;  %v3235_v63 = vpop.f32.mrb[95].mxu0  ;;  %12380 = vmatmul.mubr.bf16.gmra.mrb[216].mxu1 %v3772_v47  ;;  %v4734_v40 = vand.u32 %v13029_v44, %v13850_v6 }
 0x2ec   : > { %v3659_v0 = vmax.f32 %v3233_v51, 0.0  ;;  %v3236_v4 = vadd.f32 %v14448_v11, %v3235_v63 }
 0x2ed   : > { %v3662_v5 = vmax.f32 %v3244_v59, 0.0  ;;  %4759 = vmatpush1.bf16.msra.mxu0 %v4734_v40 }
 0x2ee   : > { %v3660_v8 = vmax.f32 %v3236_v4, 0.0  ;;  %7695 = vmatprep.subr.bf16.mxu0 %v13722_v35 }
 0x2ef   : > { %v3774_v9 = vpack.c.bf16 %v3662_v5, %v3661_v57 }
 0x2f0   : > { %v12245_v12 = vpop.f32.mrb[96].mxu0  ;;  %v3773_v23 = vpack.c.bf16 %v3660_v8, %v3659_v0 }
 0x2f1   : > { %v3257_v13 = vadd.f32 %v12245_v12, %v14448_v11  ;;  %v3248_v62 = vpop.f32.mrb[97].mxu0 }
 0x2f2   : > { %v3249_v28 = vadd.f32 %v14448_v11, %v3248_v62  ;;  %v12246_v14 = vpop.f32.mrb[98].mxu0  ;;  %12383 = vmatprep.mubr.bf16.mxu1 %v3773_v23 }
 0x2f3   : > { %v3665_v17 = vmax.f32 %v3257_v13, 0.0  ;;  %v3260_v26 = vadd.f32 %v12246_v14, %v14448_v11  ;;  %v3251_v27 = vpop.f32.mrb[99].mxu0  ;;  %12384 = vmatmul.mubr.bf16.gmra.mrb[220].mxu1 %v3774_v9 }
 0x2f4   : > { %v3663_v29 = vmax.f32 %v3249_v28, 0.0  ;;  %v3252_v30 = vadd.f32 %v14448_v11, %v3251_v27 }
 0x2f5   : > { %v3666_v33 = vmax.f32 %v3260_v26, 0.0 }
 0x2f6   : > { %v3664_v34 = vmax.f32 %v3252_v30, 0.0 }
 0x2f7   : > { %v3776_v36 = vpack.c.bf16 %v3666_v33, %v3665_v17 }
 0x2f8   : > { %v12249_v37 = vpop.f32.mrb[100].mxu0  ;;  %v3775_v24 = vpack.c.bf16 %v3664_v34, %v3663_v29 }
 0x2f9   : > { %v3273_v38 = vadd.f32 %v12249_v37, %v14448_v11  ;;  %v3264_v58 = vpop.f32.mrb[101].mxu0 }
 0x2fa   : > { %v3265_v39 = vadd.f32 %v14448_v11, %v3264_v58  ;;  %v12250_v18 = vpop.f32.mrb[102].mxu0  ;;  %12387 = vmatprep.mubr.bf16.mxu1 %v3775_v24 }
 0x2fb   : > { %v3669_v42 = vmax.f32 %v3273_v38, 0.0  ;;  %v3276_v20 = vadd.f32 %v12250_v18, %v14448_v11  ;;  %v3267_v52 = vpop.f32.mrb[103].mxu0  ;;  %12388 = vmatmul.mubr.bf16.gmra.mrb[224].mxu1 %v3776_v36 }
 0x2fc   : > { %v3667_v25 = vmax.f32 %v3265_v39, 0.0  ;;  %v3268_v50 = vadd.f32 %v14448_v11, %v3267_v52 }
 0x2fd   : > { %v3670_v55 = vmax.f32 %v3276_v20, 0.0 }
 0x2fe   : > { %v3668_v21 = vmax.f32 %v3268_v50, 0.0 }
 0x2ff   : > { %v3778_v54 = vpack.c.bf16 %v3670_v55, %v3669_v42 }
 0x300   : > { %v12253_v60 = vpop.f32.mrb[104].mxu0  ;;  %v3777_v31 = vpack.c.bf16 %v3668_v21, %v3667_v25 }
 0x301   : > { %v3289_v16 = vadd.f32 %v12253_v60, %v14448_v11  ;;  %v3280_v43 = vpop.f32.mrb[105].mxu0 }
 0x302   : > { %v3281_v1 = vadd.f32 %v14448_v11, %v3280_v43  ;;  %v12254_v7 = vpop.f32.mrb[106].mxu0  ;;  %12391 = vmatprep.mubr.bf16.mxu1 %v3777_v31 }
 0x303   : > { %v3673_v41 = vmax.f32 %v3289_v16, 0.0  ;;  %v3292_v19 = vadd.f32 %v12254_v7, %v14448_v11  ;;  %v3283_v45 = vpop.f32.mrb[107].mxu0  ;;  %12392 = vmatmul.mubr.bf16.gmra.mrb[228].mxu1 %v3778_v54 }
 0x304   : > { %v3671_v15 = vmax.f32 %v3281_v1, 0.0  ;;  %v3284_v22 = vadd.f32 %v14448_v11, %v3283_v45 }
 0x305   : > { %v3674_v61 = vmax.f32 %v3292_v19, 0.0 }
 0x306   : > { %v3672_v3 = vmax.f32 %v3284_v22, 0.0 }
 0x307   : > { %v3780_v46 = vpack.c.bf16 %v3674_v61, %v3673_v41 }
 0x308   : > { %v12257_v56 = vpop.f32.mrb[108].mxu0  ;;  %v3779_v47 = vpack.c.bf16 %v3672_v3, %v3671_v15 }
 0x309   : > { %v3305_v48 = vadd.f32 %v12257_v56, %v14448_v11  ;;  %v3296_v49 = vpop.f32.mrb[109].mxu0 }
 0x30a   : > { %v3297_v32 = vadd.f32 %v14448_v11, %v3296_v49  ;;  %v12258_v51 = vpop.f32.mrb[110].mxu0  ;;  %12395 = vmatprep.mubr.bf16.mxu1 %v3779_v47 }
 0x30b   : > { %v3677_v53 = vmax.f32 %v3305_v48, 0.0  ;;  %v3308_v57 = vadd.f32 %v12258_v51, %v14448_v11  ;;  %v3299_v59 = vpop.f32.mrb[111].mxu0  ;;  %12396 = vmatmul.mubr.bf16.gmra.mrb[232].mxu1 %v3780_v46 }
 0x30c   : > { %v3675_v63 = vmax.f32 %v3297_v32, 0.0  ;;  %v3300_v0 = vadd.f32 %v14448_v11, %v3299_v59 }
 0x30d   : > { %v3678_v4 = vmax.f32 %v3308_v57, 0.0 }
 0x30e   : > { %v3676_v5 = vmax.f32 %v3300_v0, 0.0 }
 0x30f   : > { %v3782_v8 = vpack.c.bf16 %v3678_v4, %v3677_v53 }
 0x310   : > { %v12261_v9 = vpop.f32.mrb[112].mxu0  ;;  %v3781_v6 = vpack.c.bf16 %v3676_v5, %v3675_v63 }
 0x311   : > { %v3321_v10 = vadd.f32 %v12261_v9, %v14448_v11  ;;  %v3312_v12 = vpop.f32.mrb[113].mxu0 }
 0x312   : > { %v3313_v23 = vadd.f32 %v14448_v11, %v3312_v12  ;;  %v12262_v13 = vpop.f32.mrb[114].mxu0  ;;  %12399 = vmatprep.mubr.bf16.mxu1 %v3781_v6 }
 0x313   : > { %v3681_v62 = vmax.f32 %v3321_v10, 0.0  ;;  %v3324_v28 = vadd.f32 %v12262_v13, %v14448_v11  ;;  %v3315_v14 = vpop.f32.mrb[115].mxu0  ;;  %12400 = vmatmul.mubr.bf16.gmra.mrb[236].mxu1 %v3782_v8 }
 0x314   : > { %v3679_v17 = vmax.f32 %v3313_v23, 0.0  ;;  %v3316_v26 = vadd.f32 %v14448_v11, %v3315_v14 }
 0x315   : > { %v3682_v27 = vmax.f32 %v3324_v28, 0.0 }
 0x316   : > { %v3680_v29 = vmax.f32 %v3316_v26, 0.0 }
 0x317   : > { %v3784_v30 = vpack.c.bf16 %v3682_v27, %v3681_v62 }
 0x318   : > { %v12265_v33 = vpop.f32.mrb[116].mxu0  ;;  %v3783_v34 = vpack.c.bf16 %v3680_v29, %v3679_v17 }
 0x319   : > { %v3337_v36 = vadd.f32 %v12265_v33, %v14448_v11  ;;  %v3328_v37 = vpop.f32.mrb[117].mxu0 }
 0x31a   : > { %v3329_v24 = vadd.f32 %v14448_v11, %v3328_v37  ;;  %v12266_v38 = vpop.f32.mrb[118].mxu0  ;;  %12403 = vmatprep.mubr.bf16.mxu1 %v3783_v34 }
 0x31b   : > { %v3685_v58 = vmax.f32 %v3337_v36, 0.0  ;;  %v3340_v39 = vadd.f32 %v12266_v38, %v14448_v11  ;;  %v3331_v18 = vpop.f32.mrb[119].mxu0  ;;  %12404 = vmatmul.mubr.bf16.gmra.mrb[240].mxu1 %v3784_v30 }
 0x31c   : > { %v3683_v42 = vmax.f32 %v3329_v24, 0.0  ;;  %v3332_v20 = vadd.f32 %v14448_v11, %v3331_v18 }
 0x31d   : > { %v3686_v52 = vmax.f32 %v3340_v39, 0.0 }
 0x31e   : > { %v3684_v25 = vmax.f32 %v3332_v20, 0.0 }
 0x31f   : > { %v3786_v50 = vpack.c.bf16 %v3686_v52, %v3685_v58 }
 0x320   : > { %v12269_v55 = vpop.f32.mrb[120].mxu0  ;;  %v3785_v21 = vpack.c.bf16 %v3684_v25, %v3683_v42 }
 0x321   : > { %v3353_v54 = vadd.f32 %v12269_v55, %v14448_v11  ;;  %v3344_v60 = vpop.f32.mrb[121].mxu0 }
 0x322   : > { %v3345_v31 = vadd.f32 %v14448_v11, %v3344_v60  ;;  %v12270_v16 = vpop.f32.mrb[122].mxu0  ;;  %12407 = vmatprep.mubr.bf16.mxu1 %v3785_v21 }
 0x323   : > { %v3689_v43 = vmax.f32 %v3353_v54, 0.0  ;;  %v3356_v1 = vadd.f32 %v12270_v16, %v14448_v11  ;;  %v3347_v7 = vpop.f32.mrb[123].mxu0  ;;  %12408 = vmatmul.mubr.bf16.gmra.mrb[244].mxu1 %v3786_v50 }
 0x324   : > { %v3687_v41 = vmax.f32 %v3345_v31, 0.0  ;;  %v3348_v19 = vadd.f32 %v14448_v11, %v3347_v7 }
 0x325   : > { %v3690_v45 = vmax.f32 %v3356_v1, 0.0 }
 0x326   : > { %v3688_v15 = vmax.f32 %v3348_v19, 0.0 }
 0x327   : > { %v3788_v22 = vpack.c.bf16 %v3690_v45, %v3689_v43 }
 0x328   : > { %v12273_v61 = vpop.f32.mrb[124].mxu0  ;;  %v3787_v3 = vpack.c.bf16 %v3688_v15, %v3687_v41 }
 0x329   : > { %v3369_v46 = vadd.f32 %v12273_v61, %v14448_v11  ;;  %v3360_v44 = vpop.f32.mrb[125].mxu0 }
 0x32a   : > { %v3361_v56 = vadd.f32 %v14448_v11, %v3360_v44  ;;  %v12274_v47 = vpop.f32.mrb[126].mxu0  ;;  %12411 = vmatprep.mubr.bf16.mxu1 %v3787_v3 }
 0x32b   : > { %v3693_v48 = vmax.f32 %v3369_v46, 0.0  ;;  %v3372_v49 = vadd.f32 %v12274_v47, %v14448_v11  ;;  %v3363_v40 = vpop.f32.mrb[127].mxu0  ;;  %12412 = vmatmul.mubr.bf16.gmra.mrb[248].mxu1 %v3788_v22 }
 0x32c   : > { %v3691_v32 = vmax.f32 %v3361_v56, 0.0  ;;  %v3364_v51 = vadd.f32 %v14448_v11, %v3363_v40 }
 0x32d   : > { %v3694_v53 = vmax.f32 %v3372_v49, 0.0 }
 0x32e   : > { %v3692_v57 = vmax.f32 %v3364_v51, 0.0 }
 0x32f   : > { %v3790_v59 = vpack.c.bf16 %v3694_v53, %v3693_v48 }
 0x330   : > { %v12277_v63 = vpop.f32.mrb[128].mxu0  ;;  %v3789_v0 = vpack.c.bf16 %v3692_v57, %v3691_v32 }
 0x331   : > { %v3385_v4 = vadd.f32 %v12277_v63, %v14448_v11  ;;  %v3376_v5 = vpop.f32.mrb[129].mxu0 }
 0x332   : > { %v3377_v8 = vadd.f32 %v14448_v11, %v3376_v5  ;;  %v12278_v9 = vpop.f32.mrb[130].mxu0  ;;  %12415 = vmatprep.mubr.bf16.mxu1 %v3789_v0 }
 0x333   : > { %v3388_v6 = vadd.f32 %v12278_v9, %v14448_v11  ;;  %v3379_v10 = vpop.f32.mrb[131].mxu0  ;;  %12416 = vmatmul.mubr.bf16.gmra.mrb[252].mxu1 %v3790_v59  ;;  %v3697_v23 = vmax.f32 %v3385_v4, 0.0 }
 0x334   : > { %v3380_v12 = vadd.f32 %v14448_v11, %v3379_v10  ;;  %v3695_v62 = vmax.f32 %v3377_v8, 0.0 }
 0x335   : > { %v3698_v13 = vmax.f32 %v3388_v6, 0.0 }
 0x336   : > { %v3696_v28 = vmax.f32 %v3380_v12, 0.0 }
 0x337   : > { %v3792_v14 = vpack.c.bf16 %v3698_v13, %v3697_v23 }
 0x338   : > { %v12281_v17 = vpop.f32.mrb[132].mxu0  ;;  %v3791_v26 = vpack.c.bf16 %v3696_v28, %v3695_v62 }
 0x339   : > { %v3401_v27 = vadd.f32 %v12281_v17, %v14448_v11  ;;  %v3392_v29 = vpop.f32.mrb[133].mxu0 }
 0x33a   : > { %v3393_v30 = vadd.f32 %v14448_v11, %v3392_v29  ;;  %v12282_v33 = vpop.f32.mrb[134].mxu0  ;;  %12419 = vmatprep.mubr.bf16.mxu1 %v3791_v26 }
 0x33b   : > { %v3404_v34 = vadd.f32 %v12282_v33, %v14448_v11  ;;  %v3395_v36 = vpop.f32.mrb[135].mxu0  ;;  %12420 = vmatmul.mubr.bf16.gmra.mrb[0].mxu1 %v3792_v14  ;;  %v3701_v24 = vmax.f32 %v3401_v27, 0.0 }
 0x33c   : > { %v3396_v37 = vadd.f32 %v14448_v11, %v3395_v36  ;;  %v3699_v58 = vmax.f32 %v3393_v30, 0.0 }
 0x33d   : > { %v3702_v38 = vmax.f32 %v3404_v34, 0.0 }
 0x33e   : > { %v3700_v39 = vmax.f32 %v3396_v37, 0.0 }
 0x33f   : > { %v3794_v18 = vpack.c.bf16 %v3702_v38, %v3701_v24 }
 0x340   : > { %v12285_v42 = vpop.f32.mrb[136].mxu0  ;;  %v3793_v20 = vpack.c.bf16 %v3700_v39, %v3699_v58 }
 0x341   : > { %v3417_v52 = vadd.f32 %v12285_v42, %v14448_v11  ;;  %v3408_v25 = vpop.f32.mrb[137].mxu0 }
 0x342   : > { %v3409_v50 = vadd.f32 %v14448_v11, %v3408_v25  ;;  %v12286_v55 = vpop.f32.mrb[138].mxu0  ;;  %12423 = vmatprep.mubr.bf16.mxu1 %v3793_v20 }
 0x343   : > { %v3420_v21 = vadd.f32 %v12286_v55, %v14448_v11  ;;  %v3411_v54 = vpop.f32.mrb[139].mxu0  ;;  %12424 = vmatmul.mubr.bf16.gmra.mrb[4].mxu1 %v3794_v18  ;;  %v3705_v31 = vmax.f32 %v3417_v52, 0.0 }
 0x344   : > { %v3412_v60 = vadd.f32 %v14448_v11, %v3411_v54  ;;  %v3703_v43 = vmax.f32 %v3409_v50, 0.0 }
 0x345   : > { %v3706_v16 = vmax.f32 %v3420_v21, 0.0 }
 0x346   : > { %v3704_v1 = vmax.f32 %v3412_v60, 0.0 }
 0x347   : > { %v3796_v7 = vpack.c.bf16 %v3706_v16, %v3705_v31 }
 0x348   : > { %v12289_v41 = vpop.f32.mrb[140].mxu0  ;;  %v3795_v19 = vpack.c.bf16 %v3704_v1, %v3703_v43 }
 0x349   : > { %v3433_v45 = vadd.f32 %v12289_v41, %v14448_v11  ;;  %v3424_v15 = vpop.f32.mrb[141].mxu0 }
 0x34a   : > { %v3425_v22 = vadd.f32 %v14448_v11, %v3424_v15  ;;  %v12290_v61 = vpop.f32.mrb[142].mxu0  ;;  %12427 = vmatprep.mubr.bf16.mxu1 %v3795_v19 }
 0x34b   : > { %v3436_v3 = vadd.f32 %v12290_v61, %v14448_v11  ;;  %v3427_v46 = vpop.f32.mrb[143].mxu0  ;;  %12428 = vmatmul.mubr.bf16.gmra.mrb[8].mxu1 %v3796_v7  ;;  %v3709_v56 = vmax.f32 %v3433_v45, 0.0 }
 0x34c   : > { %v3428_v44 = vadd.f32 %v14448_v11, %v3427_v46  ;;  %v3707_v48 = vmax.f32 %v3425_v22, 0.0 }
 0x34d   : > { %v3710_v47 = vmax.f32 %v3436_v3, 0.0 }
 0x34e   : > { %v3708_v49 = vmax.f32 %v3428_v44, 0.0 }
 0x34f   : > { %v3798_v40 = vpack.c.bf16 %v3710_v47, %v3709_v56 }
 0x350   : > { %v12293_v32 = vpop.f32.mrb[144].mxu0  ;;  %v3797_v51 = vpack.c.bf16 %v3708_v49, %v3707_v48 }
 0x351   : > { %v3449_v53 = vadd.f32 %v12293_v32, %v14448_v11  ;;  %v3440_v57 = vpop.f32.mrb[145].mxu0 }
 0x352   : > { %v3441_v59 = vadd.f32 %v14448_v11, %v3440_v57  ;;  %v12294_v63 = vpop.f32.mrb[146].mxu0  ;;  %12431 = vmatprep.mubr.bf16.mxu1 %v3797_v51 }
 0x353   : > { %v3452_v0 = vadd.f32 %v12294_v63, %v14448_v11  ;;  %v3443_v4 = vpop.f32.mrb[147].mxu0  ;;  %12432 = vmatmul.mubr.bf16.gmra.mrb[12].mxu1 %v3798_v40  ;;  %v3713_v8 = vmax.f32 %v3449_v53, 0.0 }
 0x354   : > { %v3444_v5 = vadd.f32 %v14448_v11, %v3443_v4  ;;  %v3711_v6 = vmax.f32 %v3441_v59, 0.0 }
 0x355   : > { %v3714_v9 = vmax.f32 %v3452_v0, 0.0 }
 0x356   : > { %v3712_v10 = vmax.f32 %v3444_v5, 0.0 }
 0x357   : > { %v3800_v12 = vpack.c.bf16 %v3714_v9, %v3713_v8 }
 0x358   : > { %v12297_v23 = vpop.f32.mrb[148].mxu0  ;;  %v3799_v13 = vpack.c.bf16 %v3712_v10, %v3711_v6 }
 0x359   : > { %v3465_v62 = vadd.f32 %v12297_v23, %v14448_v11  ;;  %v3456_v28 = vpop.f32.mrb[149].mxu0 }
 0x35a   : > { %v3457_v14 = vadd.f32 %v14448_v11, %v3456_v28  ;;  %v12298_v17 = vpop.f32.mrb[150].mxu0  ;;  %12435 = vmatprep.mubr.bf16.mxu1 %v3799_v13 }
 0x35b   : > { %v3468_v26 = vadd.f32 %v12298_v17, %v14448_v11  ;;  %v3459_v27 = vpop.f32.mrb[151].mxu0  ;;  %12436 = vmatmul.mubr.bf16.gmra.mrb[16].mxu1 %v3800_v12  ;;  %v3717_v30 = vmax.f32 %v3465_v62, 0.0 }
 0x35c   : > { %v3460_v29 = vadd.f32 %v14448_v11, %v3459_v27  ;;  %v3715_v34 = vmax.f32 %v3457_v14, 0.0 }
 0x35d   : > { %v3718_v33 = vmax.f32 %v3468_v26, 0.0 }
 0x35e   : > { %v3716_v36 = vmax.f32 %v3460_v29, 0.0 }
 0x35f   : > { %v3802_v37 = vpack.c.bf16 %v3718_v33, %v3717_v30 }
 0x360   : > { %v12301_v24 = vpop.f32.mrb[152].mxu0  ;;  %v3801_v38 = vpack.c.bf16 %v3716_v36, %v3715_v34 }
 0x361   : > { %v3481_v58 = vadd.f32 %v12301_v24, %v14448_v11  ;;  %v3472_v39 = vpop.f32.mrb[153].mxu0 }
 0x362   : > { %v3473_v18 = vadd.f32 %v14448_v11, %v3472_v39  ;;  %v12302_v42 = vpop.f32.mrb[154].mxu0  ;;  %12439 = vmatprep.mubr.bf16.mxu1 %v3801_v38  ;;  %v14604_v39 = vld [vmem:[%s16959_s7] ss:$0 sm:$0xff] }
 0x363   : > { %v3484_v20 = vadd.f32 %v12302_v42, %v14448_v11  ;;  %v3475_v52 = vpop.f32.mrb[155].mxu0  ;;  %12440 = vmatmul.mubr.bf16.gmra.mrb[20].mxu1 %v3802_v37  ;;  %v3721_v50 = vmax.f32 %v3481_v58, 0.0 }
 0x364   : > { %v3476_v25 = vadd.f32 %v14448_v11, %v3475_v52  ;;  %v3719_v21 = vmax.f32 %v3473_v18, 0.0 }
 0x365   : > { %v3722_v55 = vmax.f32 %v3484_v20, 0.0 }
 0x366   : > { %v3720_v54 = vmax.f32 %v3476_v25, 0.0 }
 0x367   : > { %v3804_v60 = vpack.c.bf16 %v3722_v55, %v3721_v50 }
 0x368   : > { %v12305_v31 = vpop.f32.mrb[156].mxu0  ;;  %v3803_v16 = vpack.c.bf16 %v3720_v54, %v3719_v21 }
 0x369   : > { %v3497_v43 = vadd.f32 %v12305_v31, %v14448_v11  ;;  %v3488_v1 = vpop.f32.mrb[157].mxu0 }
 0x36a   : > { %v3489_v7 = vadd.f32 %v14448_v11, %v3488_v1  ;;  %v12306_v41 = vpop.f32.mrb[158].mxu0  ;;  %12443 = vmatprep.mubr.bf16.mxu1 %v3803_v16 }
 0x36b   : > { %v3500_v19 = vadd.f32 %v12306_v41, %v14448_v11  ;;  %v3491_v45 = vpop.f32.mrb[159].mxu0  ;;  %12444 = vmatmul.mubr.bf16.gmra.mrb[24].mxu1 %v3804_v60  ;;  %v3725_v22 = vmax.f32 %v3497_v43, 0.0 }
 0x36c   : > { %v3492_v15 = vadd.f32 %v14448_v11, %v3491_v45  ;;  %v3723_v3 = vmax.f32 %v3489_v7, 0.0  ;;  %v14614_v7 = vld [vmem:[%s16961_s9] ss:$0 sm:$0xff] }
 0x36d   : > { %v3726_v61 = vmax.f32 %v3500_v19, 0.0 }
 0x36e   : > { %v3724_v46 = vmax.f32 %v3492_v15, 0.0 }
 0x36f   : > { %v3806_v44 = vpack.c.bf16 %v3726_v61, %v3725_v22 }
 0x370   : > { %v12309_v56 = vpop.f32.mrb[160].mxu0  ;;  %v3805_v47 = vpack.c.bf16 %v3724_v46, %v3723_v3 }
 0x371   : > { %v3513_v48 = vadd.f32 %v12309_v56, %v14448_v11  ;;  %v3504_v49 = vpop.f32.mrb[161].mxu0 }
 0x372   : > { %v3505_v40 = vadd.f32 %v14448_v11, %v3504_v49  ;;  %v12310_v32 = vpop.f32.mrb[162].mxu0  ;;  %12447 = vmatprep.mubr.bf16.mxu1 %v3805_v47 }
 0x373   : > { %v3516_v51 = vadd.f32 %v12310_v32, %v14448_v11  ;;  %v3507_v53 = vpop.f32.mrb[163].mxu0  ;;  %12448 = vmatmul.mubr.bf16.gmra.mrb[28].mxu1 %v3806_v44  ;;  %v3729_v59 = vmax.f32 %v3513_v48, 0.0 }
 0x374   : > { %v3508_v57 = vadd.f32 %v14448_v11, %v3507_v53  ;;  %v3727_v0 = vmax.f32 %v3505_v40, 0.0 }
 0x375   : > { %v3730_v63 = vmax.f32 %v3516_v51, 0.0 }
 0x376   : > { %v3728_v4 = vmax.f32 %v3508_v57, 0.0 }
 0x377   : > { %v3808_v5 = vpack.c.bf16 %v3730_v63, %v3729_v59 }
 0x378   : > { %v12313_v8 = vpop.f32.mrb[164].mxu0  ;;  %v3807_v9 = vpack.c.bf16 %v3728_v4, %v3727_v0 }
 0x379   : > { %v3529_v6 = vadd.f32 %v12313_v8, %v14448_v11  ;;  %v3520_v10 = vpop.f32.mrb[165].mxu0 }
 0x37a   : > { %v3521_v12 = vadd.f32 %v14448_v11, %v3520_v10  ;;  %v12314_v23 = vpop.f32.mrb[166].mxu0  ;;  %12451 = vmatprep.mubr.bf16.mxu1 %v3807_v9 }
 0x37b   : > { %v3532_v13 = vadd.f32 %v12314_v23, %v14448_v11  ;;  %v3523_v62 = vpop.f32.mrb[167].mxu0  ;;  %12452 = vmatmul.mubr.bf16.gmra.mrb[32].mxu1 %v3808_v5  ;;  %v3733_v14 = vmax.f32 %v3529_v6, 0.0 }
 0x37c   : > { %v3524_v28 = vadd.f32 %v14448_v11, %v3523_v62  ;;  %v3731_v26 = vmax.f32 %v3521_v12, 0.0 }
 0x37d   : > { %v3734_v17 = vmax.f32 %v3532_v13, 0.0 }
 0x37e   : > { %v3732_v27 = vmax.f32 %v3524_v28, 0.0 }
 0x37f   : > { %v3810_v29 = vpack.c.bf16 %v3734_v17, %v3733_v14 }
 0x380   : > { %v12317_v30 = vpop.f32.mrb[168].mxu0  ;;  %v3809_v33 = vpack.c.bf16 %v3732_v27, %v3731_v26 }
 0x381   : > { %v3545_v34 = vadd.f32 %v12317_v30, %v14448_v11  ;;  %v3536_v36 = vpop.f32.mrb[169].mxu0 }
 0x382   : > { %v3537_v37 = vadd.f32 %v14448_v11, %v3536_v36  ;;  %v12318_v24 = vpop.f32.mrb[170].mxu0  ;;  %12455 = vmatprep.mubr.bf16.mxu1 %v3809_v33 }
 0x383   : > { %v3548_v38 = vadd.f32 %v12318_v24, %v14448_v11  ;;  %v3539_v58 = vpop.f32.mrb[171].mxu0  ;;  %12456 = vmatmul.mubr.bf16.gmra.mrb[36].mxu1 %v3810_v29  ;;  %v3737_v42 = vmax.f32 %v3545_v34, 0.0 }
 0x384   : > { %v3540_v18 = vadd.f32 %v14604_v39, %v3539_v58  ;;  %v3735_v52 = vmax.f32 %v3537_v37, 0.0  ;;  %v13639_v58 = vld [vmem:[%s13861_s22 + $0x8] sm:$0xff]  }
 0x385   : > { %v3738_v20 = vmax.f32 %v3548_v38, 0.0 }
 0x386   : > { %v3736_v25 = vmax.f32 %v3540_v18, 0.0 }
 0x387   : > { %v3812_v50 = vpack.c.bf16 %v3738_v20, %v3737_v42 }
 0x388   : > { %v12321_v55 = vpop.f32.mrb[172].mxu0  ;;  %v3811_v21 = vpack.c.bf16 %v3736_v25, %v3735_v52 }
 0x389   : > { %v3561_v54 = vadd.f32 %v14604_v39, %v12321_v55  ;;  %v3552_v60 = vpop.f32.mrb[173].mxu0 }
 0x38a   : > { %v3553_v11 = vadd.f32 %v14604_v39, %v3552_v60  ;;  %v12322_v31 = vpop.f32.mrb[174].mxu0  ;;  %12459 = vmatprep.mubr.bf16.mxu1 %v3811_v21 }
 0x38b   : > { %v3564_v16 = vadd.f32 %v14604_v39, %v12322_v31  ;;  %v3555_v43 = vpop.f32.mrb[175].mxu0  ;;  %12460 = vmatmul.mubr.bf16.gmra.mrb[40].mxu1 %v3812_v50  ;;  %v3741_v41 = vmax.f32 %v3561_v54, 0.0 }
 0x38c   : > { %v3556_v1 = vadd.f32 %v14604_v39, %v3555_v43  ;;  %v3739_v45 = vmax.f32 %v3553_v11, 0.0 }
 0x38d   : > { %v3742_v19 = vmax.f32 %v3564_v16, 0.0 }
 0x38e   : > { %v3740_v15 = vmax.f32 %v3556_v1, 0.0  ;;  %v12357_v22 = vpop.f32.mrb[192].mxu1 }
 0x38f   : > { %v3814_v61 = vpack.c.bf16 %v3742_v19, %v3741_v41  ;;  %v3937_v3 = vadd.f32 %v12357_v22, %v14614_v7  ;;  %v3928_v46 = vpop.f32.mrb[193].mxu1 }
 0x390   : > { %v3929_v44 = vadd.f32 %v14614_v7, %v3928_v46  ;;  %v12325_v56 = vpop.f32.mrb[176].mxu0  ;;  %v12358_v47 = vpop.f32.mrb[194].mxu1  ;;  %v3813_v48 = vpack.c.bf16 %v3740_v15, %v3739_v45 }
 0x391   : > { %v3577_v49 = vadd.f32 %v14604_v39, %v12325_v56  ;;  %v3940_v40 = vadd.f32 %v12358_v47, %v14614_v7  ;;  %v3568_v32 = vpop.f32.mrb[177].mxu0  ;;  %v3931_v51 = vpop.f32.mrb[195].mxu1  ;;  %v4441_v63 = vmax.f32 %v3937_v3, 0.0 }
 0x392   : > { %v3569_v53 = vadd.f32 %v14604_v39, %v3568_v32  ;;  %v3932_v57 = vadd.f32 %v14614_v7, %v3931_v51  ;;  %v12326_v59 = vpop.f32.mrb[178].mxu0  ;;  %12463 = vmatprep.mubr.bf16.mxu1 %v3813_v48  ;;  %v4439_v8 = vmax.f32 %v3929_v44, 0.0  ;;  %v13640_v32 = vld [vmem:[%s13861_s22 + $0x10] sm:$0xff]  }
 0x393   : > { %v4442_v0 = vmax.f32 %v3940_v40, 0.0  ;;  %v3580_v4 = vadd.f32 %v14604_v39, %v12326_v59  ;;  %v3571_v5 = vpop.f32.mrb[179].mxu0  ;;  %12464 = vmatmul.mubr.bf16.gmra.mrb[44].mxu1 %v3814_v61  ;;  %v3745_v10 = vmax.f32 %v3577_v49, 0.0 }
 0x394   : > { %v4440_v9 = vmax.f32 %v3932_v57, 0.0  ;;  %v3572_v6 = vadd.f32 %v14604_v39, %v3571_v5  ;;  %v3743_v13 = vmax.f32 %v3569_v53, 0.0 }
 0x395   : > { %v3746_v12 = vmax.f32 %v3580_v4, 0.0  ;;  %v4568_v23 = vpack.c.bf16 %v4442_v0, %v4441_v63 }
 0x396   : > { %v4567_v62 = vpack.c.bf16 %v4440_v9, %v4439_v8  ;;  %v3744_v28 = vmax.f32 %v3572_v6, 0.0  ;;  %v12361_v14 = vpop.f32.mrb[196].mxu1 }
 0x397   : > { %v3816_v17 = vpack.c.bf16 %v3746_v12, %v3745_v10  ;;  %v3953_v26 = vadd.f32 %v12361_v14, %v14614_v7  ;;  %v3944_v27 = vpop.f32.mrb[197].mxu1 }
 0x398   : > { %v3945_v29 = vadd.f32 %v14614_v7, %v3944_v27  ;;  %v12329_v30 = vpop.f32.mrb[180].mxu0  ;;  %v12362_v33 = vpop.f32.mrb[198].mxu1  ;;  %4769 = vmatmul.mubr.bf16.vlgmr.msra.gmra.mrb[192].mxu0 %v4567_v62  ;;  %v3815_v34 = vpack.c.bf16 %v3744_v28, %v3743_v13 }
 0x399   : > { %v3593_v36 = vadd.f32 %v14604_v39, %v12329_v30  ;;  %v3956_v37 = vadd.f32 %v12362_v33, %v14614_v7  ;;  %v3584_v24 = vpop.f32.mrb[181].mxu0  ;;  %v3947_v38 = vpop.f32.mrb[199].mxu1  ;;  %11000 = vmatprep.mubr.msk.bf16.mxu0 %vm1270_vm2, %v13639_v58  ;;  %v4445_v52 = vmax.f32 %v3953_v26, 0.0 }
 0x39a   : > { %v3585_v18 = vadd.f32 %v14604_v39, %v3584_v24  ;;  %v3948_v42 = vadd.f32 %v14614_v7, %v3947_v38  ;;  %v12330_v20 = vpop.f32.mrb[182].mxu0  ;;  %12467 = vmatprep.mubr.bf16.mxu1 %v3815_v34  ;;  %v4443_v21 = vmax.f32 %v3945_v29, 0.0 }
 0x39b   : > { %v4446_v25 = vmax.f32 %v3956_v37, 0.0  ;;  %v3596_v50 = vadd.f32 %v14604_v39, %v12330_v20  ;;  %v3587_v55 = vpop.f32.mrb[183].mxu0  ;;  %12468 = vmatmul.mubr.bf16.gmra.mrb[48].mxu1 %v3816_v17  ;;  %v3749_v11 = vmax.f32 %v3593_v36, 0.0  ;;  %v13641_v37 = vld [vmem:[%s13861_s22 + $0x18] sm:$0xff]  }
 0x39c   : > { %v4444_v54 = vmax.f32 %v3948_v42, 0.0  ;;  %v3588_v60 = vadd.f32 %v14604_v39, %v3587_v55  ;;  %v3747_v43 = vmax.f32 %v3585_v18, 0.0 }
 0x39d   : > { %v3750_v31 = vmax.f32 %v3596_v50, 0.0  ;;  %v14634_v16 = vpack.c.bf16 %v4446_v25, %v4445_v52 }
 0x39e   : > { %v3748_v1 = vmax.f32 %v3588_v60, 0.0  ;;  %v12365_v41 = vpop.f32.mrb[200].mxu1  ;;  %v4569_v19 = vpack.c.bf16 %v4444_v54, %v4443_v21 }
 0x39f   : > { %v3818_v45 = vpack.c.bf16 %v3750_v31, %v3749_v11  ;;  %v3969_v15 = vadd.f32 %v12365_v41, %v14614_v7  ;;  %v3960_v22 = vpop.f32.mrb[201].mxu1 }
 0x3a0   : > { %v12333_v61 = vpop.f32.mrb[184].mxu0  ;;  %v3961_v3 = vadd.f32 %v14614_v7, %v3960_v22  ;;  %4777 = vmatmul.mubr.bf16.gmra.mrb[196].mxu0 %v4568_v23  ;;  %v12366_v46 = vpop.f32.mrb[202].mxu1  ;;  %v3817_v44 = vpack.c.bf16 %v3748_v1, %v3747_v43 }
 0x3a1   : > { %v4449_v56 = vmax.f32 %v3969_v15, 0.0  ;;  %v3609_v47 = vadd.f32 %v14604_v39, %v12333_v61  ;;  %v3600_v48 = vpop.f32.mrb[185].mxu0  ;;  %v3972_v49 = vadd.f32 %v12366_v46, %v14614_v7  ;;  %v3963_v40 = vpop.f32.mrb[203].mxu1  ;;  %11001 = vmatprep.mubr.msk.bf16.mxu0 %vm1270_vm2, %v13640_v32 }
 0x3a2   : > { %v4447_v51 = vmax.f32 %v3961_v3, 0.0  ;;  %v3601_v53 = vadd.f32 %v14604_v39, %v3600_v48  ;;  %v12334_v57 = vpop.f32.mrb[186].mxu0  ;;  %v3964_v59 = vadd.f32 %v14614_v7, %v3963_v40  ;;  %12471 = vmatprep.mubr.bf16.mxu1 %v3817_v44  ;;  %v13642_v3 = vld [vmem:[%s13861_s22 + $0x20] sm:$0xff]  }
 0x3a3   : > { %v4450_v63 = vmax.f32 %v3972_v49, 0.0  ;;  %v3612_v0 = vadd.f32 %v14604_v39, %v12334_v57  ;;  %v3603_v4 = vpop.f32.mrb[187].mxu0  ;;  %12472 = vmatmul.mubr.bf16.gmra.mrb[52].mxu1 %v3818_v45  ;;  %v3753_v9 = vmax.f32 %v3609_v47, 0.0 }
 0x3a4   : > { %v4448_v5 = vmax.f32 %v3964_v59, 0.0  ;;  %v3604_v8 = vadd.f32 %v14604_v39, %v3603_v4  ;;  %v3751_v12 = vmax.f32 %v3601_v53, 0.0 }
 0x3a5   : > { %v3754_v6 = vmax.f32 %v3612_v0, 0.0  ;;  %v14646_v10 = vpack.c.bf16 %v4450_v63, %v4449_v56  ;;  %v13643_v0 = vld [vmem:[%s13861_s22 + $0x28] sm:$0xff]  }
 0x3a6   : > { %v3752_v23 = vmax.f32 %v3604_v8, 0.0  ;;  %v12369_v13 = vpop.f32.mrb[204].mxu1  ;;  %v4571_v62 = vpack.c.bf16 %v4448_v5, %v4447_v51 }
 0x3a7   : > { %v3820_v28 = vpack.c.bf16 %v3754_v6, %v3753_v9  ;;  %v3985_v14 = vadd.f32 %v12369_v13, %v14614_v7  ;;  %v3976_v17 = vpop.f32.mrb[205].mxu1 }
 0x3a8   : > { %v12337_v26 = vpop.f32.mrb[188].mxu0  ;;  %4785 = vmatmul.mubr.bf16.gmra.mrb[200].mxu0 %v4569_v19  ;;  %v3819_v27 = vpack.c.bf16 %v3752_v23, %v3751_v12  ;;  %v3977_v29 = vadd.f32 %v14614_v7, %v3976_v17  ;;  %v12370_v30 = vpop.f32.mrb[206].mxu1 }
 0x3a9   : > { %v3625_v33 = vadd.f32 %v14604_v39, %v12337_v26  ;;  %v3616_v34 = vpop.f32.mrb[189].mxu0  ;;  %v4453_v36 = vmax.f32 %v3985_v14, 0.0  ;;  %11002 = vmatprep.mubr.msk.bf16.mxu0 %vm1270_vm2, %v13641_v37  ;;  %v3988_v24 = vadd.f32 %v12370_v30, %v14614_v7  ;;  %v3979_v38 = vpop.f32.mrb[207].mxu1 }
 0x3aa   : > { %v3617_v58 = vadd.f32 %v14604_v39, %v3616_v34  ;;  %v12338_v18 = vpop.f32.mrb[190].mxu0  ;;  %12475 = vmatprep.mubr.bf16.mxu1 %v3819_v27  ;;  %v4451_v42 = vmax.f32 %v3977_v29, 0.0  ;;  %v3980_v20 = vadd.f32 %v14614_v7, %v3979_v38  ;;  %v13644_v29 = vld [vmem:[%s13861_s22 + $0x30] sm:$0xff]  }
 0x3ab   : > { %v3628_v52 = vadd.f32 %v14604_v39, %v12338_v18  ;;  %v3619_v25 = vpop.f32.mrb[191].mxu0  ;;  %12476 = vmatmul.mubr.bf16.gmra.mrb[56].mxu1 %v3820_v28  ;;  %v4454_v50 = vmax.f32 %v3988_v24, 0.0  ;;  %v3757_v54 = vmax.f32 %v3625_v33, 0.0 }
 0x3ac   : > { %v3620_v55 = vadd.f32 %v14604_v39, %v3619_v25  ;;  %v4452_v21 = vmax.f32 %v3980_v20, 0.0  ;;  %v3755_v31 = vmax.f32 %v3617_v58, 0.0 }
 0x3ad   : > { %v3758_v60 = vmax.f32 %v3628_v52, 0.0  ;;  %v14658_v11 = vpack.c.bf16 %v4454_v50, %v4453_v36  ;;  %v13645_v50 = vld [vmem:[%s13861_s22 + $0x38] sm:$0xff]  }
 0x3ae   : > { %v3756_v43 = vmax.f32 %v3620_v55, 0.0  ;;  %v12373_v1 = vpop.f32.mrb[208].mxu1  ;;  %v4573_v41 = vpack.c.bf16 %v4452_v21, %v4451_v42 }
 0x3af   : > { %v3822_v19 = vpack.c.bf16 %v3758_v60, %v3757_v54  ;;  %v4001_v45 = vadd.f32 %v12373_v1, %v14614_v7  ;;  %v3992_v15 = vpop.f32.mrb[209].mxu1 }
 0x3b0   : > { %4793 = vmatmul.mubr.bf16.gmra.mrb[204].mxu0 %v14634_v16  ;;  %v3821_v22 = vpack.c.bf16 %v3756_v43, %v3755_v31  ;;  %v3993_v61 = vadd.f32 %v14614_v7, %v3992_v15  ;;  %v12374_v39 = vpop.f32.mrb[210].mxu1 }
 0x3b1   : > { %11003 = vmatprep.mubr.msk.bf16.mxu0 %vm1270_vm2, %v13642_v3  ;;  %v4457_v46 = vmax.f32 %v4001_v45, 0.0  ;;  %v4004_v44 = vadd.f32 %v12374_v39, %v14614_v7  ;;  %v3995_v56 = vpop.f32.mrb[211].mxu1  ;;  %v13646_v3 = vld [vmem:[%s13861_s22 + $0x40] sm:$0xff]  }
 0x3b2   : > { %12479 = vmatprep.mubr.bf16.mxu1 %v3821_v22  ;;  %v4455_v47 = vmax.f32 %v3993_v61, 0.0  ;;  %v3996_v48 = vadd.f32 %v14614_v7, %v3995_v56 }
 0x3b3   : > { %12480 = vmatmul.mubr.bf16.gmra.mrb[60].mxu1 %v3822_v19  ;;  %v4458_v49 = vmax.f32 %v4004_v44, 0.0 }
 0x3b4   : > { %v4456_v40 = vmax.f32 %v3996_v48, 0.0 }
 0x3b5   : > { %v14667_v16 = vpack.c.bf16 %v4458_v49, %v4457_v46 }
 0x3b6   : > { %v12377_v32 = vpop.f32.mrb[212].mxu1  ;;  %v14669_v51 = vpack.c.bf16 %v4456_v40, %v4455_v47 }
 0x3b7   : > { %v4017_v53 = vadd.f32 %v12377_v32, %v14614_v7  ;;  %v4008_v57 = vpop.f32.mrb[213].mxu1 }
 0x3b8   : > { %4801 = vmatmul.mubr.bf16.gmra.mrb[208].mxu0 %v4571_v62  ;;  %v4009_v59 = vadd.f32 %v14614_v7, %v4008_v57  ;;  %v12378_v63 = vpop.f32.mrb[214].mxu1 }
 0x3b9   : > { %11004 = vmatprep.mubr.msk.bf16.mxu0 %vm1270_vm2, %v13643_v0  ;;  %v4461_v4 = vmax.f32 %v4017_v53, 0.0  ;;  %v4020_v5 = vadd.f32 %v12378_v63, %v14614_v7  ;;  %v4011_v8 = vpop.f32.mrb[215].mxu1 }
 0x3ba   : > { %v4459_v9 = vmax.f32 %v4009_v59, 0.0  ;;  %v4012_v6 = vadd.f32 %v14614_v7, %v4011_v8 }
 0x3bb   : > { %v4462_v12 = vmax.f32 %v4020_v5, 0.0 }
 0x3bc   : > { %v4460_v23 = vmax.f32 %v4012_v6, 0.0 }
 0x3bd   : > { %v14677_v13 = vpack.c.bf16 %v4462_v12, %v4461_v4  ;;  %v13647_v4 = vld [vmem:[%s13861_s22 + $0x48] sm:$0xff]  }
 0x3be   : > { %v12381_v28 = vpop.f32.mrb[216].mxu1  ;;  %v14679_v62 = vpack.c.bf16 %v4460_v23, %v4459_v9  ;;  %v13030_v23 = vld [vmem:[%s16964_s12] sm:$0xff]  }
 0x3bf   : > { %v4033_v14 = vadd.f32 %v12381_v28, %v14614_v7  ;;  %v4024_v17 = vpop.f32.mrb[217].mxu1  ;;  %12483 = vmatprep.subr.bf16.mxu1 %v13030_v23 }
 0x3c0   : > { %4809 = vmatmul.mubr.bf16.gmra.mrb[212].mxu0 %v14646_v10  ;;  %v4025_v26 = vadd.f32 %v14614_v7, %v4024_v17  ;;  %v12382_v27 = vpop.f32.mrb[218].mxu1  ;;  %12484 = vmatpush3.bf16.msra.mxu1 %v13030_v23 }
 0x3c1   : > { %11005 = vmatprep.mubr.msk.bf16.mxu0 %vm1270_vm2, %v13644_v29  ;;  %v4465_v30 = vmax.f32 %v4033_v14, 0.0  ;;  %v4036_v33 = vadd.f32 %v12382_v27, %v14614_v7  ;;  %v4027_v34 = vpop.f32.mrb[219].mxu1  ;;  %v13031_v27 = vld [vmem:[%s16964_s12 + $0x8] sm:$0xff]  }
 0x3c2   : > { %v4463_v36 = vmax.f32 %v4025_v26, 0.0  ;;  %v4028_v37 = vadd.f32 %v14614_v7, %v4027_v34  ;;  %12485 = vmatprep.subr.bf16.mxu1 %v13031_v27 }
 0x3c3   : > { %v4466_v24 = vmax.f32 %v4036_v33, 0.0 }
 0x3c4   : > { %v4464_v38 = vmax.f32 %v4028_v37, 0.0  ;;  %12486 = vmatpush3.bf16.msra.mxu1 %v13031_v27 }
 0x3c5   : > { %v14688_v58 = vpack.c.bf16 %v4466_v24, %v4465_v30 }
 0x3c6   : > { %v12385_v18 = vpop.f32.mrb[220].mxu1  ;;  %v14690_v10 = vpack.c.bf16 %v4464_v38, %v4463_v36  ;;  %v13648_v36 = vld [vmem:[%s13861_s22 + $0x50] sm:$0xff]  }
 0x3c7   : > { %v4049_v42 = vadd.f32 %v12385_v18, %v14614_v7  ;;  %v4040_v20 = vpop.f32.mrb[221].mxu1 }
 0x3c8   : > { %4817 = vmatmul.mubr.bf16.gmra.mrb[216].mxu0 %v4573_v41  ;;  %v4041_v52 = vadd.f32 %v14614_v7, %v4040_v20  ;;  %v12386_v25 = vpop.f32.mrb[222].mxu1 }
 0x3c9   : > { %11006 = vmatprep.mubr.msk.bf16.mxu0 %vm1270_vm2, %v13645_v50  ;;  %v4469_v55 = vmax.f32 %v4049_v42, 0.0  ;;  %v4052_v21 = vadd.f32 %v12386_v25, %v14614_v7  ;;  %v4043_v54 = vpop.f32.mrb[223].mxu1 }
 0x3ca   : > { %v4467_v60 = vmax.f32 %v4041_v52, 0.0  ;;  %v4044_v31 = vadd.f32 %v14614_v7, %v4043_v54 }
 0x3cb   : > { %v4470_v43 = vmax.f32 %v4052_v21, 0.0  ;;  %v13033_v21 = vld [vmem:[%s16964_s12 + $0x18] sm:$0xff]  }
 0x3cc   : > { %v4468_v1 = vmax.f32 %v4044_v31, 0.0 }
 0x3cd   : > { %v14698_v19 = vpack.c.bf16 %v4470_v43, %v4469_v55 }
 0x3ce   : > { %v12389_v45 = vpop.f32.mrb[224].mxu1  ;;  %v14700_v41 = vpack.c.bf16 %v4468_v1, %v4467_v60  ;;  %v13649_v1 = vld [vmem:[%s13861_s22 + $0x58] sm:$0xff]  }
 0x3cf   : > { %v4065_v15 = vadd.f32 %v12389_v45, %v14614_v7  ;;  %v4056_v22 = vpop.f32.mrb[225].mxu1 }
 0x3d0   : > { %4825 = vmatmul.mubr.bf16.gmra.mrb[220].mxu0 %v14658_v11  ;;  %v4057_v61 = vadd.f32 %v14614_v7, %v4056_v22  ;;  %v12390_v39 = vpop.f32.mrb[226].mxu1 }
 0x3d1   : > { %11007 = vmatprep.mubr.msk.bf16.mxu0 %vm1270_vm2, %v13646_v3  ;;  %v4473_v46 = vmax.f32 %v4065_v15, 0.0  ;;  %v4068_v44 = vadd.f32 %v12390_v39, %v14614_v7  ;;  %v4059_v56 = vpop.f32.mrb[227].mxu1 }
 0x3d2   : > { %v4471_v47 = vmax.f32 %v4057_v61, 0.0  ;;  %v4060_v48 = vadd.f32 %v14614_v7, %v4059_v56 }
 0x3d3   : > { %v4474_v49 = vmax.f32 %v4068_v44, 0.0 }
 0x3d4   : > { %v4472_v40 = vmax.f32 %v4060_v48, 0.0  ;;  %v13035_v48 = vld [vmem:[%s16964_s12 + $0x28] sm:$0xff]  }
 0x3d5   : > { %v14709_v32 = vpack.c.bf16 %v4474_v49, %v4473_v46 }
 0x3d6   : > { %v14711_v53 = vpack.c.bf16 %v4472_v40, %v4471_v47  ;;  %v12393_v11 = vpop.f32.mrb[228].mxu1 }
 0x3d7   : > { %v4081_v57 = vadd.f32 %v12393_v11, %v14614_v7  ;;  %v4072_v59 = vpop.f32.mrb[229].mxu1 }
 0x3d8   : > { %4833 = vmatmul.mubr.bf16.gmra.mrb[224].mxu0 %v14669_v51  ;;  %v4073_v63 = vadd.f32 %v14614_v7, %v4072_v59  ;;  %v12394_v0 = vpop.f32.mrb[230].mxu1  ;;  %v13650_v59 = vld [vmem:[%s13861_s22 + $0x60] sm:$0xff]  }
 0x3d9   : > { %11008 = vmatprep.mubr.msk.bf16.mxu0 %vm1270_vm2, %v13647_v4  ;;  %v4477_v5 = vmax.f32 %v4081_v57, 0.0  ;;  %v4084_v8 = vadd.f32 %v12394_v0, %v14614_v7  ;;  %v4075_v9 = vpop.f32.mrb[231].mxu1 }
 0x3da   : > { %v4475_v6 = vmax.f32 %v4073_v63, 0.0  ;;  %v4076_v12 = vadd.f32 %v14614_v7, %v4075_v9 }
 0x3db   : > { %v4478_v28 = vmax.f32 %v4084_v8, 0.0 }
 0x3dc   : > { %v4476_v51 = vmax.f32 %v4076_v12, 0.0 }
 0x3dd   : > { %v14723_v14 = vpack.c.bf16 %v4478_v28, %v4477_v5 }
 0x3de   : > { %v14725_v17 = vpack.c.bf16 %v4476_v51, %v4475_v6  ;;  %v12397_v26 = vpop.f32.mrb[232].mxu1  ;;  %v13037_v51 = vld [vmem:[%s16964_s12 + $0x38] sm:$0xff]  }
 0x3df   : > { %v4097_v29 = vadd.f32 %v12397_v26, %v14614_v7  ;;  %v4088_v30 = vpop.f32.mrb[233].mxu1 }
 0x3e0   : > { %4841 = vmatmul.mubr.bf16.gmra.mrb[228].mxu0 %v14667_v16  ;;  %v4089_v33 = vadd.f32 %v14614_v7, %v4088_v30  ;;  %v12398_v34 = vpop.f32.mrb[234].mxu1  ;;  %v13032_v16 = vld [vmem:[%s16964_s12 + $0x10] sm:$0xff]  }
 0x3e1   : > { %11009 = vmatprep.mubr.msk.bf16.mxu0 %vm1270_vm2, %v13648_v36  ;;  %v4481_v37 = vmax.f32 %v4097_v29, 0.0  ;;  %v4100_v24 = vadd.f32 %v12398_v34, %v14614_v7  ;;  %v4091_v38 = vpop.f32.mrb[235].mxu1  ;;  %12487 = vmatprep.subr.bf16.mxu1 %v13032_v16 }
 0x3e2   : > { %v4479_v18 = vmax.f32 %v4089_v33, 0.0  ;;  %v4092_v42 = vadd.f32 %v14614_v7, %v4091_v38  ;;  %12488 = vmatpush3.bf16.msra.mxu1 %v13032_v16  ;;  %v13651_v33 = vld [vmem:[%s13861_s22 + $0x68] sm:$0xff]  }
 0x3e3   : > { %v4482_v20 = vmax.f32 %v4100_v24, 0.0  ;;  %12489 = vmatprep.subr.bf16.mxu1 %v13033_v21 }
 0x3e4   : > { %v4480_v52 = vmax.f32 %v4092_v42, 0.0 }
 0x3e5   : > { %v14740_v25 = vpack.c.bf16 %v4482_v20, %v4481_v37 }
 0x3e6   : > { %v14742_v50 = vpack.c.bf16 %v4480_v52, %v4479_v18  ;;  %v12401_v55 = vpop.f32.mrb[236].mxu1  ;;  %12490 = vmatpush3.bf16.msra.mxu1 %v13033_v21 }
 0x3e7   : > { %v4113_v54 = vadd.f32 %v12401_v55, %v14614_v7  ;;  %v4104_v60 = vpop.f32.mrb[237].mxu1 }
 0x3e8   : > { %4849 = vmatmul.mubr.bf16.gmra.mrb[232].mxu0 %v14679_v62  ;;  %v4105_v31 = vadd.f32 %v14614_v7, %v4104_v60  ;;  %v12402_v43 = vpop.f32.mrb[238].mxu1  ;;  %v13034_v62 = vld [vmem:[%s16964_s12 + $0x20] sm:$0xff]  }
 0x3e9   : > { %11010 = vmatprep.mubr.msk.bf16.mxu0 %vm1270_vm2, %v13649_v1  ;;  %v4485_v45 = vmax.f32 %v4113_v54, 0.0  ;;  %v4116_v15 = vadd.f32 %v12402_v43, %v14614_v7  ;;  %v4107_v22 = vpop.f32.mrb[239].mxu1  ;;  %12491 = vmatprep.subr.bf16.mxu1 %v13034_v62 }
 0x3ea   : > { %v4483_v61 = vmax.f32 %v4105_v31, 0.0  ;;  %v4108_v39 = vadd.f32 %v14614_v7, %v4107_v22  ;;  %12492 = vmatpush3.bf16.msra.mxu1 %v13034_v62  ;;  %v13652_v31 = vld [vmem:[%s13861_s22 + $0x70] sm:$0xff]  }
 0x3eb   : > { %v4486_v3 = vmax.f32 %v4116_v15, 0.0  ;;  %12493 = vmatprep.subr.bf16.mxu1 %v13035_v48 }
 0x3ec   : > { %v4484_v46 = vmax.f32 %v4108_v39, 0.0 }
 0x3ed   : > { %v14757_v44 = vpack.c.bf16 %v4486_v3, %v4485_v45 }
 0x3ee   : > { %v14759_v56 = vpack.c.bf16 %v4484_v46, %v4483_v61  ;;  %v12405_v47 = vpop.f32.mrb[240].mxu1  ;;  %12494 = vmatpush3.bf16.msra.mxu1 %v13035_v48 }
 0x3ef   : > { %v4129_v49 = vadd.f32 %v12405_v47, %v14614_v7  ;;  %v4120_v40 = vpop.f32.mrb[241].mxu1 }
 0x3f0   : > { %4857 = vmatmul.mubr.bf16.gmra.mrb[236].mxu0 %v14677_v13  ;;  %v4121_v11 = vadd.f32 %v14614_v7, %v4120_v40  ;;  %v12406_v57 = vpop.f32.mrb[242].mxu1  ;;  %v13036_v13 = vld [vmem:[%s16964_s12 + $0x30] sm:$0xff]  }
 0x3f1   : > { %11011 = vmatprep.mubr.msk.bf16.mxu0 %vm1270_vm2, %v13650_v59  ;;  %v4489_v63 = vmax.f32 %v4129_v49, 0.0  ;;  %v4132_v0 = vadd.f32 %v12406_v57, %v14614_v7  ;;  %v4123_v4 = vpop.f32.mrb[243].mxu1  ;;  %12495 = vmatprep.subr.bf16.mxu1 %v13036_v13  ;;  %v13653_v57 = vld [vmem:[%s13861_s22 + $0x78] sm:$0xff]  }
 0x3f2   : > { %v4487_v5 = vmax.f32 %v4121_v11, 0.0  ;;  %v4124_v8 = vadd.f32 %v14614_v7, %v4123_v4  ;;  %12496 = vmatpush3.bf16.msra.mxu1 %v13036_v13 }
 0x3f3   : > { %v4490_v9 = vmax.f32 %v4132_v0, 0.0  ;;  %12497 = vmatprep.subr.bf16.mxu1 %v13037_v51 }
 0x3f4   : > { %v4488_v6 = vmax.f32 %v4124_v8, 0.0 }
 0x3f5   : > { %v14774_v12 = vpack.c.bf16 %v4490_v9, %v4489_v63 }
 0x3f6   : > { %v14776_v23 = vpack.c.bf16 %v4488_v6, %v4487_v5  ;;  %v12409_v28 = vpop.f32.mrb[244].mxu1  ;;  %12498 = vmatpush3.bf16.msra.mxu1 %v13037_v51 }
 0x3f7   : > { %v4145_v26 = vadd.f32 %v12409_v28, %v14614_v7  ;;  %v4136_v27 = vpop.f32.mrb[245].mxu1 }
 0x3f8   : > { %4865 = vmatmul.mubr.bf16.gmra.mrb[240].mxu0 %v14690_v10  ;;  %v4137_v29 = vadd.f32 %v14614_v7, %v4136_v27  ;;  %v12410_v30 = vpop.f32.mrb[246].mxu1  ;;  %v13654_v27 = vld [vmem:[%s13861_s22 + $0x80] sm:$0xff]  }
 0x3f9   : > { %11012 = vmatprep.mubr.msk.bf16.mxu0 %vm1270_vm2, %v13651_v33  ;;  %v4493_v34 = vmax.f32 %v4145_v26, 0.0  ;;  %v4148_v36 = vadd.f32 %v12410_v30, %v14614_v7  ;;  %v4139_v37 = vpop.f32.mrb[247].mxu1 }
 0x3fa   : > { %v4491_v24 = vmax.f32 %v4137_v29, 0.0  ;;  %v4140_v38 = vadd.f32 %v14614_v7, %v4139_v37 }
 0x3fb   : > { %v4494_v18 = vmax.f32 %v4148_v36, 0.0 }
 0x3fc   : > { %v4492_v42 = vmax.f32 %v4140_v38, 0.0 }
 0x3fd   : > { %v14788_v16 = vpack.c.bf16 %v4494_v18, %v4493_v34 }
 0x3fe   : > { %v14790_v10 = vpack.c.bf16 %v4492_v42, %v4491_v24  ;;  %v12413_v20 = vpop.f32.mrb[248].mxu1 }
 0x3ff   : > { %v4161_v52 = vadd.f32 %v12413_v20, %v14614_v7  ;;  %v4152_v55 = vpop.f32.mrb[249].mxu1 }
 0x400   : > { %4873 = vmatmul.mubr.bf16.gmra.mrb[244].mxu0 %v14688_v58  ;;  %v4153_v21 = vadd.f32 %v14614_v7, %v4152_v55  ;;  %v12414_v54 = vpop.f32.mrb[250].mxu1 }
 0x401   : > { %v4497_v60 = vmax.f32 %v4161_v52, 0.0  ;;  %11013 = vmatprep.mubr.msk.bf16.mxu0 %vm1270_vm2, %v13652_v31  ;;  %v4164_v43 = vadd.f32 %v12414_v54, %v14614_v7  ;;  %v4155_v1 = vpop.f32.mrb[251].mxu1 }
 0x402   : > { %v4495_v45 = vmax.f32 %v4153_v21, 0.0  ;;  %v4156_v15 = vadd.f32 %v14614_v7, %v4155_v1  ;;  %v13655_v21 = vld [vmem:[%s13861_s22 + $0x88] sm:$0xff]  }
 0x403   : > { %v4498_v22 = vmax.f32 %v4164_v43, 0.0 }
 0x404   : > { %v4496_v61 = vmax.f32 %v4156_v15, 0.0 }
 0x405   : > { %v14799_v39 = vpack.c.bf16 %v4498_v22, %v4497_v60 }
 0x406   : > { %v14801_v62 = vpack.c.bf16 %v4496_v61, %v4495_v45  ;;  %v12417_v58 = vpop.f32.mrb[252].mxu1 }
 0x407   : > { %v4177_v3 = vadd.f32 %v12417_v58, %v14614_v7  ;;  %v4168_v46 = vpop.f32.mrb[253].mxu1 }
 0x408   : > { %4881 = vmatmul.mubr.bf16.gmra.mrb[248].mxu0 %v14700_v41  ;;  %v4169_v47 = vadd.f32 %v14614_v7, %v4168_v46  ;;  %v12418_v48 = vpop.f32.mrb[254].mxu1 }
 0x409   : > { %v4501_v49 = vmax.f32 %v4177_v3, 0.0  ;;  %v4180_v40 = vadd.f32 %v12418_v48, %v14614_v7  ;;  %v4171_v11 = vpop.f32.mrb[255].mxu1  ;;  %11014 = vmatprep.mubr.msk.bf16.mxu0 %vm1270_vm2, %v13653_v57  ;;  %v13656_v48 = vld [vmem:[%s13861_s22 + $0x90] sm:$0xff]  }
 0x40a   : > { %v4499_v59 = vmax.f32 %v4169_v47, 0.0  ;;  %v4172_v63 = vadd.f32 %v14614_v7, %v4171_v11 }
 0x40b   : > { %v4502_v0 = vmax.f32 %v4180_v40, 0.0 }
 0x40c   : > { %v4500_v4 = vmax.f32 %v4172_v63, 0.0 }
 0x40d   : > { %v14810_v5 = vpack.c.bf16 %v4502_v0, %v4501_v49 }
 0x40e   : > { %v14812_v8 = vpack.c.bf16 %v4500_v4, %v4499_v59  ;;  %v12421_v41 = vpop.f32.mrb[0].mxu1 }
 0x40f   : > { %v4193_v13 = vadd.f32 %v12421_v41, %v14614_v7  ;;  %v4184_v9 = vpop.f32.mrb[1].mxu1 }
 0x410   : > { %v4185_v6 = vadd.f32 %v14614_v7, %v4184_v9  ;;  %v12422_v28 = vpop.f32.mrb[2].mxu1  ;;  %4889 = vmatmul.mubr.bf16.gmra.mrb[252].mxu0 %v14698_v19 }
 0x411   : > { %v4196_v51 = vadd.f32 %v12422_v28, %v14614_v7  ;;  %v4187_v26 = vpop.f32.mrb[3].mxu1  ;;  %11015 = vmatprep.mubr.msk.bf16.mxu0 %vm1270_vm2, %v13654_v27  ;;  %v4505_v30 = vmax.f32 %v4193_v13, 0.0 }
 0x412   : > { %v4188_v29 = vadd.f32 %v14614_v7, %v4187_v26  ;;  %v4503_v34 = vmax.f32 %v4185_v6, 0.0 }
 0x413   : > { %v4506_v33 = vmax.f32 %v4196_v51, 0.0  ;;  %v13657_v51 = vld [vmem:[%s13861_s22 + $0x98] sm:$0xff]  }
 0x414   : > { %v4504_v36 = vmax.f32 %v4188_v29, 0.0 }
 0x415   : > { %v14821_v37 = vpack.c.bf16 %v4506_v33, %v4505_v30 }
 0x416   : > { %v14823_v24 = vpack.c.bf16 %v4504_v36, %v4503_v34  ;;  %v12425_v38 = vpop.f32.mrb[4].mxu1 }
 0x417   : > { %v4209_v19 = vadd.f32 %v12425_v38, %v14614_v7  ;;  %v4200_v18 = vpop.f32.mrb[5].mxu1 }
 0x418   : > { %v4201_v42 = vadd.f32 %v14614_v7, %v4200_v18  ;;  %v12426_v20 = vpop.f32.mrb[6].mxu1  ;;  %4897 = vmatmul.mubr.bf16.gmra.mrb[0].mxu0 %v14711_v53 }
 0x419   : > { %v4212_v52 = vadd.f32 %v12426_v20, %v14614_v7  ;;  %v4203_v55 = vpop.f32.mrb[7].mxu1  ;;  %11016 = vmatprep.mubr.msk.bf16.mxu0 %vm1270_vm2, %v13655_v21  ;;  %v4509_v60 = vmax.f32 %v4209_v19, 0.0 }
 0x41a   : > { %v4204_v54 = vadd.f32 %v14614_v7, %v4203_v55  ;;  %v4507_v43 = vmax.f32 %v4201_v42, 0.0  ;;  %v13658_v55 = vld [vmem:[%s13861_s22 + $0xa0] sm:$0xff]  }
 0x41b   : > { %v4510_v31 = vmax.f32 %v4212_v52, 0.0 }
 0x41c   : > { %v4508_v1 = vmax.f32 %v4204_v54, 0.0 }
 0x41d   : > { %v14832_v45 = vpack.c.bf16 %v4510_v31, %v4509_v60 }
 0x41e   : > { %v14834_v15 = vpack.c.bf16 %v4508_v1, %v4507_v43  ;;  %v12429_v22 = vpop.f32.mrb[8].mxu1 }
 0x41f   : > { %v4225_v53 = vadd.f32 %v12429_v22, %v14614_v7  ;;  %v4216_v61 = vpop.f32.mrb[9].mxu1 }
 0x420   : > { %v4217_v58 = vadd.f32 %v14614_v7, %v4216_v61  ;;  %v12430_v3 = vpop.f32.mrb[10].mxu1  ;;  %4905 = vmatmul.mubr.bf16.gmra.mrb[4].mxu0 %v14709_v32 }
 0x421   : > { %v4228_v46 = vadd.f32 %v12430_v3, %v14614_v7  ;;  %v4219_v47 = vpop.f32.mrb[11].mxu1  ;;  %11017 = vmatprep.mubr.msk.bf16.mxu0 %vm1270_vm2, %v13656_v48  ;;  %v4513_v40 = vmax.f32 %v4225_v53, 0.0  ;;  %v13659_v48 = vld [vmem:[%s13861_s22 + $0xa8] sm:$0xff]  }
 0x422   : > { %v4220_v49 = vadd.f32 %v14614_v7, %v4219_v47  ;;  %v4511_v57 = vmax.f32 %v4217_v58, 0.0 }
 0x423   : > { %v4514_v11 = vmax.f32 %v4228_v46, 0.0 }
 0x424   : > { %v4512_v59 = vmax.f32 %v4220_v49, 0.0 }
 0x425   : > { %v14843_v63 = vpack.c.bf16 %v4514_v11, %v4513_v40 }
 0x426   : > { %v14845_v0 = vpack.c.bf16 %v4512_v59, %v4511_v57  ;;  %v12433_v4 = vpop.f32.mrb[12].mxu1 }
 0x427   : > { %v4241_v32 = vadd.f32 %v12433_v4, %v14614_v7  ;;  %v4232_v41 = vpop.f32.mrb[13].mxu1 }
 0x428   : > { %v4233_v13 = vadd.f32 %v14614_v7, %v4232_v41  ;;  %v12434_v9 = vpop.f32.mrb[14].mxu1  ;;  %4913 = vmatmul.mubr.bf16.gmra.mrb[8].mxu0 %v14725_v17 }
 0x429   : > { %v4244_v6 = vadd.f32 %v12434_v9, %v14614_v7  ;;  %v4235_v28 = vpop.f32.mrb[15].mxu1  ;;  %11018 = vmatprep.mubr.msk.bf16.mxu0 %vm1270_vm2, %v13657_v51  ;;  %v4517_v27 = vmax.f32 %v4241_v32, 0.0 }
 0x42a   : > { %v4236_v26 = vadd.f32 %v14614_v7, %v4235_v28  ;;  %v4515_v30 = vmax.f32 %v4233_v13, 0.0 }
 0x42b   : > { %v4518_v29 = vmax.f32 %v4244_v6, 0.0 }
 0x42c   : > { %v4516_v33 = vmax.f32 %v4236_v26, 0.0  ;;  %v13660_v26 = vld [vmem:[%s13861_s22 + $0xb0] sm:$0xff]  }
 0x42d   : > { %v14854_v34 = vpack.c.bf16 %v4518_v29, %v4517_v27 }
 0x42e   : > { %v14856_v36 = vpack.c.bf16 %v4516_v33, %v4515_v30  ;;  %v12437_v38 = vpop.f32.mrb[16].mxu1 }
 0x42f   : > { %v4257_v17 = vadd.f32 %v12437_v38, %v14614_v7  ;;  %v4248_v19 = vpop.f32.mrb[17].mxu1 }
 0x430   : > { %v4249_v18 = vadd.f32 %v14614_v7, %v4248_v19  ;;  %v12438_v42 = vpop.f32.mrb[18].mxu1  ;;  %4921 = vmatmul.mubr.bf16.gmra.mrb[12].mxu0 %v14723_v14 }
 0x431   : > { %v4260_v20 = vadd.f32 %v12438_v42, %v14614_v7  ;;  %v4251_v52 = vpop.f32.mrb[19].mxu1  ;;  %11019 = vmatprep.mubr.msk.bf16.mxu0 %vm1270_vm2, %v13658_v55  ;;  %v4521_v54 = vmax.f32 %v4257_v17, 0.0 }
 0x432   : > { %v4252_v21 = vadd.f32 %v14614_v7, %v4251_v52  ;;  %v4519_v31 = vmax.f32 %v4249_v18, 0.0 }
 0x433   : > { %v4522_v60 = vmax.f32 %v4260_v20, 0.0 }
 0x434   : > { %v4520_v43 = vmax.f32 %v4252_v21, 0.0 }
 0x435   : > { %v14865_v1 = vpack.c.bf16 %v4522_v60, %v4521_v54  ;;  %v13661_v54 = vld [vmem:[%s13861_s22 + $0xb8] sm:$0xff]  }
 0x436   : > { %v14867_v22 = vpack.c.bf16 %v4520_v43, %v4519_v31  ;;  %v12441_v53 = vpop.f32.mrb[20].mxu1 }
 0x437   : > { %v4273_v14 = vadd.f32 %v12441_v53, %v14614_v7  ;;  %v4264_v61 = vpop.f32.mrb[21].mxu1 }
 0x438   : > { %v4265_v58 = vadd.f32 %v14614_v7, %v4264_v61  ;;  %v12442_v3 = vpop.f32.mrb[22].mxu1  ;;  %4929 = vmatmul.mubr.bf16.gmra.mrb[16].mxu0 %v14742_v50 }
 0x439   : > { %v4276_v46 = vadd.f32 %v12442_v3, %v14614_v7  ;;  %v4267_v47 = vpop.f32.mrb[23].mxu1  ;;  %11020 = vmatprep.mubr.msk.bf16.mxu0 %vm1270_vm2, %v13659_v48  ;;  %v4525_v40 = vmax.f32 %v4273_v14, 0.0 }
 0x43a   : > { %v4268_v49 = vadd.f32 %v14614_v7, %v4267_v47  ;;  %v4523_v57 = vmax.f32 %v4265_v58, 0.0 }
 0x43b   : > { %v4526_v11 = vmax.f32 %v4276_v46, 0.0 }
 0x43c   : > { %v4524_v59 = vmax.f32 %v4268_v49, 0.0 }
 0x43d   : > { %v14876_v4 = vpack.c.bf16 %v4526_v11, %v4525_v40  ;;  %v13662_v11 = vld [vmem:[%s13861_s22 + $0xc0] sm:$0xff]  }
 0x43e   : > { %v14878_v32 = vpack.c.bf16 %v4524_v59, %v4523_v57  ;;  %v12445_v41 = vpop.f32.mrb[24].mxu1 }
 0x43f   : > { %v4289_v50 = vadd.f32 %v12445_v41, %v14614_v7  ;;  %v4280_v13 = vpop.f32.mrb[25].mxu1 }
 0x440   : > { %v4281_v9 = vadd.f32 %v14614_v7, %v4280_v13  ;;  %v12446_v6 = vpop.f32.mrb[26].mxu1  ;;  %4937 = vmatmul.mubr.bf16.gmra.mrb[20].mxu0 %v14740_v25 }
 0x441   : > { %v4292_v28 = vadd.f32 %v12446_v6, %v14614_v7  ;;  %v4283_v51 = vpop.f32.mrb[27].mxu1  ;;  %11021 = vmatprep.mubr.msk.bf16.mxu0 %vm1270_vm2, %v13660_v26  ;;  %v4529_v29 = vmax.f32 %v4289_v50, 0.0 }
 0x442   : > { %v4284_v27 = vadd.f32 %v14614_v7, %v4283_v51  ;;  %v4527_v33 = vmax.f32 %v4281_v9, 0.0 }
 0x443   : > { %v4530_v30 = vmax.f32 %v4292_v28, 0.0 }
 0x444   : > { %v4528_v38 = vmax.f32 %v4284_v27, 0.0 }
 0x445   : > { %v14887_v17 = vpack.c.bf16 %v4530_v30, %v4529_v29 }
 0x446   : > { %v14889_v19 = vpack.c.bf16 %v4528_v38, %v4527_v33  ;;  %v12449_v18 = vpop.f32.mrb[28].mxu1  ;;  %v13663_v33 = vld [vmem:[%s13861_s22 + $0xc8] sm:$0xff]  }
 0x447   : > { %v4305_v25 = vadd.f32 %v12449_v18, %v14614_v7  ;;  %v4296_v42 = vpop.f32.mrb[29].mxu1 }
 0x448   : > { %v4297_v20 = vadd.f32 %v14614_v7, %v4296_v42  ;;  %v12450_v52 = vpop.f32.mrb[30].mxu1  ;;  %4945 = vmatmul.mubr.bf16.gmra.mrb[24].mxu0 %v14759_v56 }
 0x449   : > { %v4308_v55 = vadd.f32 %v12450_v52, %v14614_v7  ;;  %v4299_v21 = vpop.f32.mrb[31].mxu1  ;;  %11022 = vmatprep.mubr.msk.bf16.mxu0 %vm1270_vm2, %v13661_v54  ;;  %v4533_v31 = vmax.f32 %v4305_v25, 0.0 }
 0x44a   : > { %v4300_v60 = vadd.f32 %v14614_v7, %v4299_v21  ;;  %v4531_v53 = vmax.f32 %v4297_v20, 0.0 }
 0x44b   : > { %v4534_v43 = vmax.f32 %v4308_v55, 0.0 }
 0x44c   : > { %v4532_v14 = vmax.f32 %v4300_v60, 0.0 }
 0x44d   : > { %v14898_v61 = vpack.c.bf16 %v4534_v43, %v4533_v31 }
 0x44e   : > { %v14900_v58 = vpack.c.bf16 %v4532_v14, %v4531_v53  ;;  %v12453_v3 = vpop.f32.mrb[32].mxu1  ;;  %v13665_v14 = vld [vmem:[%s13861_s22 + $0xd0] sm:$0xff]  }
 0x44f   : > { %v4321_v56 = vadd.f32 %v12453_v3, %v14614_v7  ;;  %v4312_v46 = vpop.f32.mrb[33].mxu1 }
 0x450   : > { %v4313_v47 = vadd.f32 %v14614_v7, %v4312_v46  ;;  %v12454_v48 = vpop.f32.mrb[34].mxu1  ;;  %4953 = vmatmul.mubr.bf16.gmra.mrb[28].mxu0 %v14757_v44 }
 0x451   : > { %v4324_v49 = vadd.f32 %v12454_v48, %v14614_v7  ;;  %v4315_v40 = vpop.f32.mrb[35].mxu1  ;;  %11023 = vmatprep.mubr.msk.bf16.mxu0 %vm1270_vm2, %v13662_v11  ;;  %v4537_v59 = vmax.f32 %v4321_v56, 0.0 }
 0x452   : > { %v4316_v57 = vadd.f32 %v14614_v7, %v4315_v40  ;;  %v4535_v50 = vmax.f32 %v4313_v47, 0.0 }
 0x453   : > { %v4538_v41 = vmax.f32 %v4324_v49, 0.0 }
 0x454   : > { %v4536_v13 = vmax.f32 %v4316_v57, 0.0 }
 0x455   : > { %v14909_v9 = vpack.c.bf16 %v4538_v41, %v4537_v59 }
 0x456   : > { %v14911_v6 = vpack.c.bf16 %v4536_v13, %v4535_v50  ;;  %v12457_v28 = vpop.f32.mrb[36].mxu1 }
 0x457   : > { %v4337_v44 = vadd.f32 %v12457_v28, %v14614_v7  ;;  %v4328_v51 = vpop.f32.mrb[37].mxu1  ;;  %v14947_v28 = vld [vmem:[%s16963_s11] ss:$0 sm:$0xff] }
 0x458   : > { %v4329_v26 = vadd.f32 %v14614_v7, %v4328_v51  ;;  %v12458_v27 = vpop.f32.mrb[38].mxu1  ;;  %4961 = vmatmul.mubr.bf16.gmra.mrb[32].mxu0 %v14776_v23  ;;  %v14927_v23 = vld [vmem:[%s16961_s9] ss:$0 sm:$0xff] }
 0x459   : > { %v4340_v29 = vadd.f32 %v12458_v27, %v14614_v7  ;;  %v4331_v30 = vpop.f32.mrb[39].mxu1  ;;  %11024 = vmatprep.mubr.msk.bf16.mxu0 %vm1270_vm2, %v13663_v33  ;;  %v4541_v18 = vmax.f32 %v4337_v44, 0.0  ;;  %v13666_v44 = vld [vmem:[%s13861_s22 + $0xd8] sm:$0xff]  }
 0x45a   : > { %v4332_v38 = vadd.f32 %v14614_v7, %v4331_v30  ;;  %v4539_v42 = vmax.f32 %v4329_v26, 0.0 }
 0x45b   : > { %v4542_v25 = vmax.f32 %v4340_v29, 0.0 }
 0x45c   : > { %v4540_v20 = vmax.f32 %v4332_v38, 0.0 }
 0x45d   : > { %v14920_v52 = vpack.c.bf16 %v4542_v25, %v4541_v18 }
 0x45e   : > { %v14922_v55 = vpack.c.bf16 %v4540_v20, %v4539_v42  ;;  %v12461_v21 = vpop.f32.mrb[40].mxu1 }
 0x45f   : > { %v4353_v54 = vadd.f32 %v14927_v23, %v12461_v21  ;;  %v4344_v60 = vpop.f32.mrb[41].mxu1 }
 0x460   : > { %v4345_v7 = vadd.f32 %v14927_v23, %v4344_v60  ;;  %v12462_v31 = vpop.f32.mrb[42].mxu1  ;;  %4969 = vmatmul.mubr.bf16.gmra.mrb[36].mxu0 %v14774_v12 }
 0x461   : > { %v4356_v43 = vadd.f32 %v14927_v23, %v12462_v31  ;;  %v4347_v53 = vpop.f32.mrb[43].mxu1  ;;  %11025 = vmatprep.mubr.msk.bf16.mxu0 %vm1270_vm2, %v13665_v14  ;;  %v4545_v56 = vmax.f32 %v4353_v54, 0.0 }
 0x462   : > { %v4348_v3 = vadd.f32 %v14927_v23, %v4347_v53  ;;  %v4543_v47 = vmax.f32 %v4345_v7, 0.0 }
 0x463   : > { %v4546_v46 = vmax.f32 %v4356_v43, 0.0 }
 0x464   : > { %v4544_v48 = vmax.f32 %v4348_v3, 0.0 }
 0x465   : > { %v14936_v49 = vpack.c.bf16 %v4546_v46, %v4545_v56  ;;  %v13667_v46 = vld [vmem:[%s13861_s22 + $0xe0] sm:$0xff]  }
 0x466   : > { %v14938_v40 = vpack.c.bf16 %v4544_v48, %v4543_v47  ;;  %v12465_v11 = vpop.f32.mrb[44].mxu1 }
 0x467   : > { %v4369_v12 = vadd.f32 %v14927_v23, %v12465_v11  ;;  %v4360_v57 = vpop.f32.mrb[45].mxu1 }
 0x468   : > { %v4361_v59 = vadd.f32 %v14927_v23, %v4360_v57  ;;  %v12466_v41 = vpop.f32.mrb[46].mxu1  ;;  %4977 = vmatmul.mubr.bf16.gmra.mrb[40].mxu0 %v14790_v10 }
 0x469   : > { %v4372_v50 = vadd.f32 %v14927_v23, %v12466_v41  ;;  %v4363_v13 = vpop.f32.mrb[47].mxu1  ;;  %11026 = vmatprep.mubr.msk.bf16.mxu0 %vm1270_vm2, %v13666_v44  ;;  %v4549_v26 = vmax.f32 %v4369_v12, 0.0 }
 0x46a   : > { %v4364_v51 = vadd.f32 %v14927_v23, %v4363_v13  ;;  %v4547_v30 = vmax.f32 %v4361_v59, 0.0 }
 0x46b   : > { %v4550_v27 = vmax.f32 %v4372_v50, 0.0  ;;  %v4770_v29 = vpop.f32.mrb[192].mxu0 }
 0x46c   : > { %v4548_v33 = vmax.f32 %v4364_v51, 0.0  ;;  %v4771_v10 = vadd.f32 %v14947_v28, %v4770_v29  ;;  %v4772_v38 = vpop.f32.mrb[193].mxu0 }
 0x46d   : > { %v14953_v18 = vpack.c.bf16 %v4550_v27, %v4549_v26  ;;  %v4773_v25 = vpop.f32.mrb[194].mxu0 }
 0x46e   : > { %v14955_v42 = vpack.c.bf16 %v4548_v33, %v4547_v30  ;;  %v4774_v20 = vadd.f32 %v14947_v28, %v4773_v25  ;;  %v12469_v21 = vpop.f32.mrb[48].mxu1  ;;  %v4775_v54 = vpop.f32.mrb[195].mxu0  ;;  %v5281_v31 = vmax.f32 %v4771_v10, 0.0 }
 0x46f   : > { %v4385_v60 = vadd.f32 %v14927_v23, %v12469_v21  ;;  %v4376_v7 = vpop.f32.mrb[49].mxu1 }
 0x470   : > { %v5282_v43 = vmax.f32 %v4774_v20, 0.0  ;;  %v4377_v53 = vadd.f32 %v14927_v23, %v4376_v7  ;;  %v12470_v14 = vpop.f32.mrb[50].mxu1  ;;  %4985 = vmatmul.mubr.bf16.gmra.mrb[44].mxu0 %v14788_v16 }
 0x471   : > { %v4388_v3 = vadd.f32 %v14927_v23, %v12470_v14  ;;  %v4379_v56 = vpop.f32.mrb[51].mxu1  ;;  %11027 = vmatprep.mubr.msk.bf16.mxu0 %vm1270_vm2, %v13667_v46  ;;  %v4553_v11 = vmax.f32 %v4385_v60, 0.0  ;;  %v13668_v60 = vld [vmem:[%s13861_s22 + $0xe8] sm:$0xff]  }
 0x472   : > { %v4380_v47 = vadd.f32 %v14927_v23, %v4379_v56  ;;  %v5409_v48 = vpack.c.bf16 %v5282_v43, %v5281_v31  ;;  %v4551_v59 = vmax.f32 %v4377_v53, 0.0 }
 0x473   : > { %v4554_v12 = vmax.f32 %v4388_v3, 0.0  ;;  %v4778_v57 = vpop.f32.mrb[196].mxu0 }
 0x474   : > { %v4552_v41 = vmax.f32 %v4380_v47, 0.0  ;;  %v4779_v50 = vadd.f32 %v14947_v28, %v4778_v57  ;;  %v4780_v13 = vpop.f32.mrb[197].mxu0  ;;  %12499 = vmatprep.mubr.bf16.mxu1 %v5409_v48 }
 0x475   : > { %v14966_v16 = vpack.c.bf16 %v4554_v12, %v4553_v11  ;;  %v4781_v44 = vpop.f32.mrb[198].mxu0 }
 0x476   : > { %v14968_v51 = vpack.c.bf16 %v4552_v41, %v4551_v59  ;;  %v4782_v26 = vadd.f32 %v14947_v28, %v4781_v44  ;;  %v12473_v27 = vpop.f32.mrb[52].mxu1  ;;  %v4783_v29 = vpop.f32.mrb[199].mxu0  ;;  %v5283_v10 = vmax.f32 %v4779_v50, 0.0 }
 0x477   : > { %v4401_v30 = vadd.f32 %v14927_v23, %v12473_v27  ;;  %v4392_v33 = vpop.f32.mrb[53].mxu1 }
 0x478   : > { %v5284_v38 = vmax.f32 %v4782_v26, 0.0  ;;  %v4393_v25 = vadd.f32 %v14927_v23, %v4392_v33  ;;  %v12474_v20 = vpop.f32.mrb[54].mxu1  ;;  %4993 = vmatmul.mubr.bf16.gmra.mrb[48].mxu0 %v14801_v62  ;;  %v13669_v33 = vld [vmem:[%s13861_s22 + $0xf0] sm:$0xff]  }
 0x479   : > { %v4404_v21 = vadd.f32 %v14927_v23, %v12474_v20  ;;  %v4395_v54 = vpop.f32.mrb[55].mxu1  ;;  %11028 = vmatprep.mubr.msk.bf16.mxu0 %vm1270_vm2, %v13668_v60  ;;  %v4557_v43 = vmax.f32 %v4401_v30, 0.0 }
 0x47a   : > { %v5410_v7 = vpack.c.bf16 %v5284_v38, %v5283_v10  ;;  %v4396_v31 = vadd.f32 %v14927_v23, %v4395_v54  ;;  %v4555_v3 = vmax.f32 %v4393_v25, 0.0 }
 0x47b   : > { %v4558_v53 = vmax.f32 %v4404_v21, 0.0  ;;  %v4786_v14 = vpop.f32.mrb[200].mxu0 }
 0x47c   : > { %v4556_v56 = vmax.f32 %v4396_v31, 0.0  ;;  %v4787_v46 = vadd.f32 %v14947_v28, %v4786_v14  ;;  %v4788_v47 = vpop.f32.mrb[201].mxu0  ;;  %12500 = vmatmul.mubr.bf16.vlgmr.msra.gmra.mrb[64].mxu1 %v5410_v7 }
 0x47d   : > { %v14979_v62 = vpack.c.bf16 %v4558_v53, %v4557_v43  ;;  %v4789_v48 = vpop.f32.mrb[202].mxu0 }
 0x47e   : > { %v14981_v11 = vpack.c.bf16 %v4556_v56, %v4555_v3  ;;  %v4790_v12 = vadd.f32 %v14947_v28, %v4789_v48  ;;  %v12477_v57 = vpop.f32.mrb[56].mxu1  ;;  %v4791_v59 = vpop.f32.mrb[203].mxu0  ;;  %v5285_v13 = vmax.f32 %v4787_v46, 0.0 }
 0x47f   : > { %v4417_v41 = vadd.f32 %v14927_v23, %v12477_v57  ;;  %v4408_v50 = vpop.f32.mrb[57].mxu1 }
 0x480   : > { %v5286_v44 = vmax.f32 %v4790_v12, 0.0  ;;  %v4409_v26 = vadd.f32 %v14927_v23, %v4408_v50  ;;  %v12478_v27 = vpop.f32.mrb[58].mxu1  ;;  %5001 = vmatmul.mubr.bf16.gmra.mrb[52].mxu0 %v14799_v39 }
 0x481   : > { %v4420_v29 = vadd.f32 %v14927_v23, %v12478_v27  ;;  %v4411_v30 = vpop.f32.mrb[59].mxu1  ;;  %11029 = vmatprep.mubr.msk.bf16.mxu0 %vm1270_vm2, %v13669_v33  ;;  %v4561_v25 = vmax.f32 %v4417_v41, 0.0 }
 0x482   : > { %v4412_v10 = vadd.f32 %v14927_v23, %v4411_v30  ;;  %v5411_v38 = vpack.c.bf16 %v5286_v44, %v5285_v13  ;;  %v4559_v54 = vmax.f32 %v4409_v26, 0.0  ;;  %v13670_v13 = vld [vmem:[%s13861_s22 + $0xf8] sm:$0xff]  }
 0x483   : > { %v4562_v20 = vmax.f32 %v4420_v29, 0.0  ;;  %v4794_v21 = vpop.f32.mrb[204].mxu0 }
 0x484   : > { %v4560_v60 = vmax.f32 %v4412_v10, 0.0  ;;  %v4795_v7 = vadd.f32 %v14947_v28, %v4794_v21  ;;  %v4796_v31 = vpop.f32.mrb[205].mxu0  ;;  %12503 = vmatprep.mubr.bf16.mxu1 %v5411_v38 }
 0x485   : > { %v14992_v39 = vpack.c.bf16 %v4562_v20, %v4561_v25  ;;  %v4797_v43 = vpop.f32.mrb[206].mxu0  ;;  %v13671_v31 = vld [vmem:[%s13861_s22 + $0x100] sm:$0xff]  }
 0x486   : > { %v14994_v53 = vpack.c.bf16 %v4560_v60, %v4559_v54  ;;  %v4798_v14 = vadd.f32 %v14947_v28, %v4797_v43  ;;  %v12481_v3 = vpop.f32.mrb[60].mxu1  ;;  %v4799_v56 = vpop.f32.mrb[207].mxu0  ;;  %v5287_v48 = vmax.f32 %v4795_v7, 0.0 }
 0x487   : > { %v4433_v46 = vadd.f32 %v14927_v23, %v12481_v3  ;;  %v4424_v47 = vpop.f32.mrb[61].mxu1 }
 0x488   : > { %v5288_v12 = vmax.f32 %v4798_v14, 0.0  ;;  %v4425_v57 = vadd.f32 %v14927_v23, %v4424_v47  ;;  %v12482_v59 = vpop.f32.mrb[62].mxu1  ;;  %5009 = vmatmul.mubr.bf16.gmra.mrb[56].mxu0 %v14812_v8 }
 0x489   : > { %v4436_v41 = vadd.f32 %v14927_v23, %v12482_v59  ;;  %v4427_v50 = vpop.f32.mrb[63].mxu1  ;;  %11030 = vmatprep.mubr.msk.bf16.mxu0 %vm1270_vm2, %v13670_v13  ;;  %v4565_v27 = vmax.f32 %v4433_v46, 0.0  ;;  %v13672_v59 = vld [vmem:[%s13861_s22 + $0x108] sm:$0xff]  }
 0x48a   : > { %v5412_v44 = vpack.c.bf16 %v5288_v12, %v5287_v48  ;;  %v4428_v26 = vadd.f32 %v14927_v23, %v4427_v50  ;;  %v4563_v33 = vmax.f32 %v4425_v57, 0.0 }
 0x48b   : > { %v4566_v29 = vmax.f32 %v4436_v41, 0.0  ;;  %v4802_v30 = vpop.f32.mrb[208].mxu0 }
 0x48c   : > { %v4564_v10 = vmax.f32 %v4428_v26, 0.0  ;;  %v4803_v38 = vadd.f32 %v14947_v28, %v4802_v30  ;;  %v4804_v25 = vpop.f32.mrb[209].mxu0  ;;  %12504 = vmatmul.mubr.bf16.gmra.mrb[68].mxu1 %v5412_v44 }
 0x48d   : > { %v15005_v8 = vpack.c.bf16 %v4566_v29, %v4565_v27  ;;  %v4805_v20 = vpop.f32.mrb[210].mxu0 }
 0x48e   : > { %v15007_v21 = vpack.c.bf16 %v4564_v10, %v4563_v33  ;;  %v4806_v54 = vadd.f32 %v14947_v28, %v4805_v20  ;;  %v4807_v60 = vpop.f32.mrb[211].mxu0  ;;  %v5289_v7 = vmax.f32 %v4803_v38, 0.0  ;;  %v13673_v33 = vld [vmem:[%s13861_s22 + $0x110] sm:$0xff]  }
 0x490   : > { %v5290_v23 = vmax.f32 %v4806_v54, 0.0  ;;  %5017 = vmatmul.mubr.bf16.gmra.mrb[60].mxu0 %v14810_v5 }
 0x491   : > { %11031 = vmatprep.mubr.msk.bf16.mxu0 %vm1270_vm2, %v13671_v31  ;;  %v13674_v31 = vld [vmem:[%s13861_s22 + $0x118] sm:$0xff]  }
 0x492   : > { %v5413_v43 = vpack.c.bf16 %v5290_v23, %v5289_v7 }
 0x493   : > { %v4810_v14 = vpop.f32.mrb[212].mxu0 }
 0x494   : > { %v4811_v3 = vadd.f32 %v14947_v28, %v4810_v14  ;;  %v4812_v56 = vpop.f32.mrb[213].mxu0  ;;  %12507 = vmatprep.mubr.bf16.mxu1 %v5413_v43 }
 0x495   : > { %v4813_v46 = vpop.f32.mrb[214].mxu0 }
 0x496   : > { %v4814_v47 = vadd.f32 %v14947_v28, %v4813_v46  ;;  %v4815_v48 = vpop.f32.mrb[215].mxu0  ;;  %v5291_v12 = vmax.f32 %v4811_v3, 0.0 }
 0x498   : > { %v5292_v57 = vmax.f32 %v4814_v47, 0.0  ;;  %5025 = vmatmul.mubr.bf16.gmra.mrb[64].mxu0 %v14823_v24 }
 0x499   : > { %11032 = vmatprep.mubr.msk.bf16.mxu0 %vm1270_vm2, %v13672_v59 }
 0x49a   : > { %v5414_v5 = vpack.c.bf16 %v5292_v57, %v5291_v12  ;;  %v13675_v57 = vld [vmem:[%s13861_s22 + $0x120] sm:$0xff]  }
 0x49b   : > { %v4818_v41 = vpop.f32.mrb[216].mxu0 }
 0x49c   : > { %v4819_v50 = vadd.f32 %v14947_v28, %v4818_v41  ;;  %v4820_v13 = vpop.f32.mrb[217].mxu0  ;;  %12508 = vmatmul.mubr.bf16.gmra.mrb[72].mxu1 %v5414_v5 }
 0x49d   : > { %v4821_v44 = vpop.f32.mrb[218].mxu0 }
 0x49e   : > { %v4822_v26 = vadd.f32 %v14947_v28, %v4821_v44  ;;  %v4823_v27 = vpop.f32.mrb[219].mxu0  ;;  %v5293_v29 = vmax.f32 %v4819_v50, 0.0 }
 0x4a0   : > { %v5294_v30 = vmax.f32 %v4822_v26, 0.0  ;;  %5033 = vmatmul.mubr.bf16.gmra.mrb[68].mxu0 %v14821_v37 }
 0x4a1   : > { %11033 = vmatprep.mubr.msk.bf16.mxu0 %vm1270_vm2, %v13673_v33 }
 0x4a2   : > { %v5415_v24 = vpack.c.bf16 %v5294_v30, %v5293_v29  ;;  %v13676_v29 = vld [vmem:[%s13861_s22 + $0x128] sm:$0xff]  }
 0x4a3   : > { %v4826_v10 = vpop.f32.mrb[220].mxu0 }
 0x4a4   : > { %v4827_v38 = vadd.f32 %v14947_v28, %v4826_v10  ;;  %v4828_v25 = vpop.f32.mrb[221].mxu0  ;;  %12511 = vmatprep.mubr.bf16.mxu1 %v5415_v24 }
 0x4a5   : > { %v4829_v20 = vpop.f32.mrb[222].mxu0 }
 0x4a6   : > { %v4830_v54 = vadd.f32 %v14947_v28, %v4829_v20  ;;  %v4831_v60 = vpop.f32.mrb[223].mxu0  ;;  %v5295_v7 = vmax.f32 %v4827_v38, 0.0 }
 0x4a7   : > { %v13677_v60 = vld [vmem:[%s13861_s22 + $0x130] sm:$0xff]  }
 0x4a8   : > { %v5296_v23 = vmax.f32 %v4830_v54, 0.0  ;;  %5041 = vmatmul.mubr.bf16.gmra.mrb[72].mxu0 %v14834_v15 }
 0x4a9   : > { %11034 = vmatprep.mubr.msk.bf16.mxu0 %vm1270_vm2, %v13674_v31 }
 0x4aa   : > { %v5416_v37 = vpack.c.bf16 %v5296_v23, %v5295_v7 }
 0x4ab   : > { %v4834_v43 = vpop.f32.mrb[224].mxu0 }
 0x4ac   : > { %v4835_v14 = vadd.f32 %v14947_v28, %v4834_v43  ;;  %v4836_v3 = vpop.f32.mrb[225].mxu0  ;;  %12512 = vmatmul.mubr.bf16.gmra.mrb[76].mxu1 %v5416_v37 }
 0x4ad   : > { %v4837_v56 = vpop.f32.mrb[226].mxu0 }
 0x4ae   : > { %v4838_v46 = vadd.f32 %v14947_v28, %v4837_v56  ;;  %v4839_v47 = vpop.f32.mrb[227].mxu0  ;;  %v5297_v48 = vmax.f32 %v4835_v14, 0.0 }
 0x4b0   : > { %v5298_v12 = vmax.f32 %v4838_v46, 0.0  ;;  %5049 = vmatmul.mubr.bf16.gmra.mrb[76].mxu0 %v14832_v45  ;;  %v13678_v46 = vld [vmem:[%s13861_s22 + $0x138] sm:$0xff]  }
 0x4b1   : > { %11035 = vmatprep.mubr.msk.bf16.mxu0 %vm1270_vm2, %v13675_v57 }
 0x4b2   : > { %v5417_v15 = vpack.c.bf16 %v5298_v12, %v5297_v48 }
 0x4b3   : > { %v4842_v59 = vpop.f32.mrb[228].mxu0 }
 0x4b4   : > { %v4843_v5 = vadd.f32 %v14947_v28, %v4842_v59  ;;  %v4844_v41 = vpop.f32.mrb[229].mxu0  ;;  %12515 = vmatprep.mubr.bf16.mxu1 %v5417_v15 }
 0x4b5   : > { %v4845_v50 = vpop.f32.mrb[230].mxu0 }
 0x4b6   : > { %v4846_v13 = vadd.f32 %v14947_v28, %v4845_v50  ;;  %v4847_v44 = vpop.f32.mrb[231].mxu0  ;;  %v5299_v26 = vmax.f32 %v4843_v5, 0.0  ;;  %v13679_v50 = vld [vmem:[%s13861_s22 + $0x140] sm:$0xff]  }
 0x4b8   : > { %v5300_v27 = vmax.f32 %v4846_v13, 0.0  ;;  %5057 = vmatmul.mubr.bf16.gmra.mrb[80].mxu0 %v14845_v0 }
 0x4b9   : > { %11036 = vmatprep.mubr.msk.bf16.mxu0 %vm1270_vm2, %v13676_v29 }
 0x4ba   : > { %v5418_v45 = vpack.c.bf16 %v5300_v27, %v5299_v26 }
 0x4bb   : > { %v4850_v30 = vpop.f32.mrb[232].mxu0 }
 0x4bc   : > { %v4851_v33 = vadd.f32 %v14947_v28, %v4850_v30  ;;  %v4852_v24 = vpop.f32.mrb[233].mxu0  ;;  %12516 = vmatmul.mubr.bf16.gmra.mrb[80].mxu1 %v5418_v45  ;;  %v13038_v30 = vld [vmem:[%s16968_s16] sm:$0xff]  }
 0x4bd   : > { %v4853_v10 = vpop.f32.mrb[234].mxu0  ;;  %7696 = vmatpush1.bf16.msra.mxu0 %v13038_v30 }
 0x4be   : > { %v4854_v38 = vadd.f32 %v14947_v28, %v4853_v10  ;;  %v4855_v25 = vpop.f32.mrb[235].mxu0  ;;  %v5301_v20 = vmax.f32 %v4851_v33, 0.0  ;;  %7697 = vmatprep.subr.bf16.mxu0 %v13722_v35 }
 0x4c0   : > { %v5302_v54 = vmax.f32 %v4854_v38, 0.0  ;;  %5065 = vmatmul.mubr.bf16.gmra.mrb[84].mxu0 %v14843_v63 }
 0x4c1   : > { %11037 = vmatprep.mubr.msk.bf16.mxu0 %vm1270_vm2, %v13677_v60 }
 0x4c2   : > { %v5419_v0 = vpack.c.bf16 %v5302_v54, %v5301_v20 }
 0x4c3   : > { %v4858_v7 = vpop.f32.mrb[236].mxu0 }
 0x4c4   : > { %v4859_v23 = vadd.f32 %v14947_v28, %v4858_v7  ;;  %v4860_v31 = vpop.f32.mrb[237].mxu0  ;;  %12519 = vmatprep.mubr.bf16.mxu1 %v5419_v0 }
 0x4c5   : > { %v4861_v37 = vpop.f32.mrb[238].mxu0 }
 0x4c6   : > { %v4862_v43 = vadd.f32 %v14947_v28, %v4861_v37  ;;  %v4863_v14 = vpop.f32.mrb[239].mxu0  ;;  %v5303_v3 = vmax.f32 %v4859_v23, 0.0  ;;  %v13681_v23 = vld [vmem:[%s13861_s22 + $0x150] sm:$0xff]  }
 0x4c8   : > { %v5304_v56 = vmax.f32 %v4862_v43, 0.0  ;;  %5073 = vmatmul.mubr.bf16.gmra.mrb[88].mxu0 %v14856_v36 }
 0x4c9   : > { %11038 = vmatprep.mubr.msk.bf16.mxu0 %vm1270_vm2, %v13678_v46 }
 0x4ca   : > { %v5420_v63 = vpack.c.bf16 %v5304_v56, %v5303_v3 }
 0x4cb   : > { %v4866_v47 = vpop.f32.mrb[240].mxu0 }
 0x4cc   : > { %v4867_v48 = vadd.f32 %v14947_v28, %v4866_v47  ;;  %v4868_v12 = vpop.f32.mrb[241].mxu0  ;;  %12520 = vmatmul.mubr.bf16.gmra.mrb[84].mxu1 %v5420_v63 }
 0x4cd   : > { %v4869_v57 = vpop.f32.mrb[242].mxu0 }
 0x4ce   : > { %v4870_v15 = vadd.f32 %v14947_v28, %v4869_v57  ;;  %v4871_v59 = vpop.f32.mrb[243].mxu0  ;;  %v5305_v5 = vmax.f32 %v4867_v48, 0.0  ;;  %v13682_v48 = vld [vmem:[%s13861_s22 + $0x158] sm:$0xff]  }
 0x4d0   : > { %v5306_v41 = vmax.f32 %v4870_v15, 0.0  ;;  %5081 = vmatmul.mubr.bf16.gmra.mrb[92].mxu0 %v14854_v34  ;;  %v13680_v34 = vld [vmem:[%s13861_s22 + $0x148] sm:$0xff]  }
 0x4d1   : > { %11039 = vmatprep.mubr.msk.bf16.mxu0 %vm1270_vm2, %v13679_v50 }
 0x4d2   : > { %v5421_v36 = vpack.c.bf16 %v5306_v41, %v5305_v5 }
 0x4d3   : > { %v4874_v13 = vpop.f32.mrb[244].mxu0 }
 0x4d4   : > { %v4875_v44 = vadd.f32 %v14947_v28, %v4874_v13  ;;  %v4876_v26 = vpop.f32.mrb[245].mxu0  ;;  %12523 = vmatprep.mubr.bf16.mxu1 %v5421_v36  ;;  %v13683_v13 = vld [vmem:[%s13861_s22 + $0x160] sm:$0xff]  }
 0x4d5   : > { %v4877_v27 = vpop.f32.mrb[246].mxu0 }
 0x4d6   : > { %v4878_v29 = vadd.f32 %v14947_v28, %v4877_v27  ;;  %v4879_v45 = vpop.f32.mrb[247].mxu0  ;;  %v5307_v33 = vmax.f32 %v4875_v44, 0.0 }
 0x4d8   : > { %v5308_v24 = vmax.f32 %v4878_v29, 0.0  ;;  %5089 = vmatmul.mubr.bf16.gmra.mrb[96].mxu0 %v14867_v22 }
 0x4d9   : > { %11040 = vmatprep.mubr.msk.bf16.mxu0 %vm1270_vm2, %v13680_v34  ;;  %v13684_v34 = vld [vmem:[%s13861_s22 + $0x168] sm:$0xff]  }
 0x4da   : > { %v5422_v10 = vpack.c.bf16 %v5308_v24, %v5307_v33  ;;  %v13039_v33 = vld [vmem:[%s16966_s14] sm:$0xff]  }
 0x4db   : > { %v4882_v38 = vpop.f32.mrb[248].mxu0  ;;  %12627 = vmatprep.subr.bf16.mxu1 %v13039_v33 }
 0x4dc   : > { %v4883_v25 = vadd.f32 %v14947_v28, %v4882_v38  ;;  %v4884_v20 = vpop.f32.mrb[249].mxu0  ;;  %12524 = vmatmul.mubr.bf16.gmra.mrb[88].mxu1 %v5422_v10 }
 0x4dd   : > { %v4885_v54 = vpop.f32.mrb[250].mxu0  ;;  %12628 = vmatpush3.bf16.msra.mxu1 %v13039_v33  ;;  %v13688_v33 = vld [vmem:[%s13861_s22 + $0x188] sm:$0xff]  }
 0x4de   : > { %v4886_v60 = vadd.f32 %v14947_v28, %v4885_v54  ;;  %v4887_v0 = vpop.f32.mrb[251].mxu0  ;;  %v5309_v7 = vmax.f32 %v4883_v25, 0.0 }
 0x4e0   : > { %v5310_v22 = vmax.f32 %v4886_v60, 0.0  ;;  %5097 = vmatmul.mubr.bf16.gmra.mrb[100].mxu0 %v14865_v1 }
 0x4e1   : > { %11041 = vmatprep.mubr.msk.bf16.mxu0 %vm1270_vm2, %v13681_v23 }
 0x4e2   : > { %v5423_v31 = vpack.c.bf16 %v5310_v22, %v5309_v7 }
 0x4e3   : > { %v4890_v37 = vpop.f32.mrb[252].mxu0 }
 0x4e4   : > { %v4891_v43 = vadd.f32 %v14947_v28, %v4890_v37  ;;  %v4892_v14 = vpop.f32.mrb[253].mxu0  ;;  %12527 = vmatprep.mubr.bf16.mxu1 %v5423_v31 }
 0x4e5   : > { %v4893_v3 = vpop.f32.mrb[254].mxu0 }
 0x4e6   : > { %v4894_v56 = vadd.f32 %v14947_v28, %v4893_v3  ;;  %v4895_v46 = vpop.f32.mrb[255].mxu0  ;;  %v5311_v63 = vmax.f32 %v4891_v43, 0.0 }
 0x4e8   : > { %v5312_v47 = vmax.f32 %v4894_v56, 0.0  ;;  %5105 = vmatmul.mubr.bf16.gmra.mrb[104].mxu0 %v14878_v32 }
 0x4e9   : > { %11042 = vmatprep.mubr.msk.bf16.mxu0 %vm1270_vm2, %v13682_v48  ;;  %v13040_v48 = vld [vmem:[%s16968_s16 + $0x8] sm:$0xff]  }
 0x4ea   : > { %v5424_v1 = vpack.c.bf16 %v5312_v47, %v5311_v63  ;;  %v13686_v47 = vld [vmem:[%s13861_s22 + $0x178] sm:$0xff]   ;;  %7698 = vmatpush1.bf16.msra.mxu0 %v13040_v48 }
 0x4eb   : > { %v4898_v12 = vpop.f32.mrb[0].mxu0  ;;  %7699 = vmatprep.subr.bf16.mxu0 %v13722_v35 }
 0x4ec   : > { %v4899_v57 = vadd.f32 %v14947_v28, %v4898_v12  ;;  %v4900_v15 = vpop.f32.mrb[1].mxu0  ;;  %12528 = vmatmul.mubr.bf16.gmra.mrb[92].mxu1 %v5424_v1 }
 0x4ed   : > { %v4901_v59 = vpop.f32.mrb[2].mxu0 }
 0x4ee   : > { %v4902_v5 = vadd.f32 %v14947_v28, %v4901_v59  ;;  %v4903_v41 = vpop.f32.mrb[3].mxu0  ;;  %v5313_v50 = vmax.f32 %v4899_v57, 0.0 }
 0x4f0   : > { %v5314_v36 = vmax.f32 %v4902_v5, 0.0  ;;  %5113 = vmatmul.mubr.bf16.gmra.mrb[108].mxu0 %v14876_v4 }
 0x4f1   : > { %11043 = vmatprep.mubr.msk.bf16.mxu0 %vm1270_vm2, %v13683_v13 }
 0x4f2   : > { %v5425_v32 = vpack.c.bf16 %v5314_v36, %v5313_v50  ;;  %v13687_v50 = vld [vmem:[%s13861_s22 + $0x180] sm:$0xff]  }
 0x4f3   : > { %v4906_v44 = vpop.f32.mrb[4].mxu0 }
 0x4f4   : > { %v4907_v26 = vadd.f32 %v14947_v28, %v4906_v44  ;;  %v4908_v27 = vpop.f32.mrb[5].mxu0  ;;  %12531 = vmatprep.mubr.bf16.mxu1 %v5425_v32 }
 0x4f5   : > { %v4909_v29 = vpop.f32.mrb[6].mxu0 }
 0x4f6   : > { %v4910_v45 = vadd.f32 %v14947_v28, %v4909_v29  ;;  %v4911_v30 = vpop.f32.mrb[7].mxu0  ;;  %v5315_v24 = vmax.f32 %v4907_v26, 0.0 }
 0x4f8   : > { %v5316_v4 = vmax.f32 %v4910_v45, 0.0  ;;  %5121 = vmatmul.mubr.bf16.gmra.mrb[112].mxu0 %v14889_v19  ;;  %v13685_v19 = vld [vmem:[%s13861_s22 + $0x170] sm:$0xff]   ;;  %v13041_v45 = vld [vmem:[%s16966_s14 + $0x8] sm:$0xff]  }
 0x4f9   : > { %11044 = vmatprep.mubr.msk.bf16.mxu0 %vm1270_vm2, %v13684_v34  ;;  %12629 = vmatprep.subr.bf16.mxu1 %v13041_v45 }
 0x4fa   : > { %v5426_v10 = vpack.c.bf16 %v5316_v4, %v5315_v24  ;;  %12630 = vmatpush3.bf16.msra.mxu1 %v13041_v45 }
 0x4fb   : > { %v4914_v38 = vpop.f32.mrb[8].mxu0 }
 0x4fc   : > { %v4915_v25 = vadd.f32 %v14947_v28, %v4914_v38  ;;  %v4916_v20 = vpop.f32.mrb[9].mxu0  ;;  %12532 = vmatmul.mubr.bf16.gmra.mrb[96].mxu1 %v5426_v10 }
 0x4fd   : > { %v4917_v54 = vpop.f32.mrb[10].mxu0 }
 0x4fe   : > { %v4918_v60 = vadd.f32 %v14947_v28, %v4917_v54  ;;  %v4919_v0 = vpop.f32.mrb[11].mxu0  ;;  %v5317_v7 = vmax.f32 %v4915_v25, 0.0 }
 0x500   : > { %v5318_v22 = vmax.f32 %v4918_v60, 0.0  ;;  %5129 = vmatmul.mubr.bf16.gmra.mrb[116].mxu0 %v14887_v17 }
 0x501   : > { %11045 = vmatprep.mubr.msk.bf16.mxu0 %vm1270_vm2, %v13685_v19 }
 0x502   : > { %v5427_v23 = vpack.c.bf16 %v5318_v22, %v5317_v7 }
 0x503   : > { %v4922_v31 = vpop.f32.mrb[12].mxu0 }
 0x504   : > { %v4923_v37 = vadd.f32 %v14947_v28, %v4922_v31  ;;  %v4924_v43 = vpop.f32.mrb[13].mxu0  ;;  %12535 = vmatprep.mubr.bf16.mxu1 %v5427_v23 }
 0x505   : > { %v4925_v14 = vpop.f32.mrb[14].mxu0 }
 0x506   : > { %v4926_v3 = vadd.f32 %v14947_v28, %v4925_v14  ;;  %v4927_v56 = vpop.f32.mrb[15].mxu0  ;;  %v5319_v46 = vmax.f32 %v4923_v37, 0.0 }
 0x508   : > { %v5320_v63 = vmax.f32 %v4926_v3, 0.0  ;;  %5137 = vmatmul.mubr.bf16.gmra.mrb[120].mxu0 %v14900_v58  ;;  %v13690_v3 = vld [vmem:[%s13861_s22 + $0x198] sm:$0xff]  }
 0x509   : > { %11046 = vmatprep.mubr.msk.bf16.mxu0 %vm1270_vm2, %v13686_v47 }
 0x50a   : > { %v5428_v17 = vpack.c.bf16 %v5320_v63, %v5319_v46 }
 0x50b   : > { %v4930_v1 = vpop.f32.mrb[16].mxu0 }
 0x50c   : > { %v4931_v12 = vadd.f32 %v14947_v28, %v4930_v1  ;;  %v4932_v57 = vpop.f32.mrb[17].mxu0  ;;  %12536 = vmatmul.mubr.bf16.gmra.mrb[100].mxu1 %v5428_v17 }
 0x50d   : > { %v4933_v15 = vpop.f32.mrb[18].mxu0  ;;  %v13691_v57 = vld [vmem:[%s13861_s22 + $0x1a0] sm:$0xff]  }
 0x50e   : > { %v4934_v58 = vadd.f32 %v14947_v28, %v4933_v15  ;;  %v4935_v59 = vpop.f32.mrb[19].mxu0  ;;  %v5321_v5 = vmax.f32 %v4931_v12, 0.0 }
 0x510   : > { %v5322_v41 = vmax.f32 %v4934_v58, 0.0  ;;  %5145 = vmatmul.mubr.bf16.gmra.mrb[124].mxu0 %v14898_v61 }
 0x511   : > { %11047 = vmatprep.mubr.msk.bf16.mxu0 %vm1270_vm2, %v13687_v50 }
 0x512   : > { %v5429_v36 = vpack.c.bf16 %v5322_v41, %v5321_v5 }
 0x513   : > { %v4938_v13 = vpop.f32.mrb[20].mxu0 }
 0x514   : > { %v4939_v32 = vadd.f32 %v14947_v28, %v4938_v13  ;;  %v4940_v44 = vpop.f32.mrb[21].mxu0  ;;  %12539 = vmatprep.mubr.bf16.mxu1 %v5429_v36  ;;  %v13042_v36 = vld [vmem:[%s16966_s14 + $0x10] sm:$0xff]  }
 0x515   : > { %v4941_v26 = vpop.f32.mrb[22].mxu0  ;;  %12631 = vmatprep.subr.bf16.mxu1 %v13042_v36 }
 0x516   : > { %v4942_v27 = vadd.f32 %v14947_v28, %v4941_v26  ;;  %v4943_v29 = vpop.f32.mrb[23].mxu0  ;;  %v5323_v30 = vmax.f32 %v4939_v32, 0.0  ;;  %v13692_v32 = vld [vmem:[%s13861_s22 + $0x1a8] sm:$0xff]   ;;  %12632 = vmatpush3.bf16.msra.mxu1 %v13042_v36  ;;  %v13043_v26 = vld [vmem:[%s16968_s16 + $0x10] sm:$0xff]  }
 0x517   : > { %7700 = vmatpush1.bf16.msra.mxu0 %v13043_v26 }
 0x518   : > { %v5324_v61 = vmax.f32 %v4942_v27, 0.0  ;;  %5153 = vmatmul.mubr.bf16.gmra.mrb[128].mxu0 %v14911_v6  ;;  %v13689_v6 = vld [vmem:[%s13861_s22 + $0x190] sm:$0xff]   ;;  %7701 = vmatprep.subr.bf16.mxu0 %v13722_v35 }
 0x519   : > { %11048 = vmatprep.mubr.msk.bf16.mxu0 %vm1270_vm2, %v13688_v33 }
 0x51a   : > { %v5430_v24 = vpack.c.bf16 %v5324_v61, %v5323_v30 }
 0x51b   : > { %v4946_v4 = vpop.f32.mrb[24].mxu0 }
 0x51c   : > { %v4947_v34 = vadd.f32 %v14947_v28, %v4946_v4  ;;  %v4948_v10 = vpop.f32.mrb[25].mxu0  ;;  %12540 = vmatmul.mubr.bf16.gmra.mrb[104].mxu1 %v5430_v24  ;;  %v13693_v4 = vld [vmem:[%s13861_s22 + $0x1b0] sm:$0xff]  }
 0x51d   : > { %v4949_v38 = vpop.f32.mrb[26].mxu0 }
 0x51e   : > { %v4950_v25 = vadd.f32 %v14947_v28, %v4949_v38  ;;  %v4951_v20 = vpop.f32.mrb[27].mxu0  ;;  %v5325_v54 = vmax.f32 %v4947_v34, 0.0 }
 0x520   : > { %v5326_v60 = vmax.f32 %v4950_v25, 0.0  ;;  %5161 = vmatmul.mubr.bf16.gmra.mrb[132].mxu0 %v14909_v9 }
 0x521   : > { %11049 = vmatprep.mubr.msk.bf16.mxu0 %vm1270_vm2, %v13689_v6 }
 0x522   : > { %v5431_v0 = vpack.c.bf16 %v5326_v60, %v5325_v54 }
 0x523   : > { %v4954_v7 = vpop.f32.mrb[28].mxu0 }
 0x524   : > { %v4955_v22 = vadd.f32 %v14947_v28, %v4954_v7  ;;  %v4956_v19 = vpop.f32.mrb[29].mxu0  ;;  %12543 = vmatprep.mubr.bf16.mxu1 %v5431_v0  ;;  %v13694_v7 = vld [vmem:[%s13861_s22 + $0x1b8] sm:$0xff]  }
 0x525   : > { %v4957_v23 = vpop.f32.mrb[30].mxu0 }
 0x526   : > { %v4958_v31 = vadd.f32 %v14947_v28, %v4957_v23  ;;  %v4959_v37 = vpop.f32.mrb[31].mxu0  ;;  %v5327_v43 = vmax.f32 %v4955_v22, 0.0 }
 0x527   : > { %v15153_v37 = vld [vmem:[%s16965_s13] ss:$0 sm:$0xff] }
 0x528   : > { %v5328_v14 = vmax.f32 %v4958_v31, 0.0  ;;  %5169 = vmatmul.mubr.bf16.gmra.mrb[136].mxu0 %v14922_v55 }
 0x529   : > { %11050 = vmatprep.mubr.msk.bf16.mxu0 %vm1270_vm2, %v13690_v3 }
 0x52a   : > { %v5432_v9 = vpack.c.bf16 %v5328_v14, %v5327_v43 }
 0x52b   : > { %v4962_v56 = vpop.f32.mrb[32].mxu0 }
 0x52c   : > { %v4963_v46 = vadd.f32 %v14947_v28, %v4962_v56  ;;  %v4964_v63 = vpop.f32.mrb[33].mxu0  ;;  %12544 = vmatmul.mubr.bf16.gmra.mrb[108].mxu1 %v5432_v9 }
 0x52d   : > { %v4965_v47 = vpop.f32.mrb[34].mxu0 }
 0x52e   : > { %v4966_v17 = vadd.f32 %v14947_v28, %v4965_v47  ;;  %v4967_v48 = vpop.f32.mrb[35].mxu0  ;;  %v5329_v1 = vmax.f32 %v4963_v46, 0.0 }
 0x530   : > { %v5330_v12 = vmax.f32 %v4966_v17, 0.0  ;;  %5177 = vmatmul.mubr.bf16.gmra.mrb[140].mxu0 %v14920_v52  ;;  %v13695_v17 = vld [vmem:[%s13861_s22 + $0x1c0] sm:$0xff]  }
 0x531   : > { %11051 = vmatprep.mubr.msk.bf16.mxu0 %vm1270_vm2, %v13691_v57 }
 0x532   : > { %v5433_v55 = vpack.c.bf16 %v5330_v12, %v5329_v1 }
 0x533   : > { %v4970_v15 = vpop.f32.mrb[36].mxu0 }
 0x534   : > { %v4971_v58 = vadd.f32 %v14947_v28, %v4970_v15  ;;  %v4972_v59 = vpop.f32.mrb[37].mxu0  ;;  %12547 = vmatprep.mubr.bf16.mxu1 %v5433_v55 }
 0x535   : > { %v4973_v5 = vpop.f32.mrb[38].mxu0 }
 0x536   : > { %v4974_v41 = vadd.f32 %v14947_v28, %v4973_v5  ;;  %v4975_v50 = vpop.f32.mrb[39].mxu0  ;;  %v5331_v13 = vmax.f32 %v4971_v58, 0.0 }
 0x538   : > { %v5332_v52 = vmax.f32 %v4974_v41, 0.0  ;;  %5185 = vmatmul.mubr.bf16.gmra.mrb[144].mxu0 %v14938_v40 }
 0x539   : > { %11052 = vmatprep.mubr.msk.bf16.mxu0 %vm1270_vm2, %v13692_v32  ;;  %v13044_v32 = vld [vmem:[%s16966_s14 + $0x18] sm:$0xff]  }
 0x53a   : > { %v5434_v44 = vpack.c.bf16 %v5332_v52, %v5331_v13  ;;  %12633 = vmatprep.subr.bf16.mxu1 %v13044_v32 }
 0x53b   : > { %v4978_v27 = vpop.f32.mrb[40].mxu0  ;;  %12634 = vmatpush3.bf16.msra.mxu1 %v13044_v32  ;;  %v13699_v32 = vld [vmem:[%s13861_s22 + $0x1e0] sm:$0xff]  }
 0x53c   : > { %v4979_v29 = vadd.f32 %v14947_v28, %v4978_v27  ;;  %v4980_v45 = vpop.f32.mrb[41].mxu0  ;;  %12548 = vmatmul.mubr.bf16.gmra.mrb[112].mxu1 %v5434_v44 }
 0x53d   : > { %v4981_v30 = vpop.f32.mrb[42].mxu0 }
 0x53e   : > { %v4982_v40 = vadd.f32 %v14947_v28, %v4981_v30  ;;  %v4983_v61 = vpop.f32.mrb[43].mxu0  ;;  %v5333_v33 = vmax.f32 %v4979_v29, 0.0  ;;  %v13696_v29 = vld [vmem:[%s13861_s22 + $0x1c8] sm:$0xff]  }
 0x540   : > { %v5334_v24 = vmax.f32 %v4982_v40, 0.0  ;;  %5193 = vmatmul.mubr.bf16.gmra.mrb[148].mxu0 %v14936_v49 }
 0x541   : > { %11053 = vmatprep.mubr.msk.bf16.mxu0 %vm1270_vm2, %v13693_v4 }
 0x542   : > { %v5435_v34 = vpack.c.bf16 %v5334_v24, %v5333_v33 }
 0x543   : > { %v4986_v10 = vpop.f32.mrb[44].mxu0 }
 0x544   : > { %v4987_v38 = vadd.f32 %v14947_v28, %v4986_v10  ;;  %v4988_v25 = vpop.f32.mrb[45].mxu0  ;;  %12551 = vmatprep.mubr.bf16.mxu1 %v5435_v34 }
 0x545   : > { %v4989_v20 = vpop.f32.mrb[46].mxu0 }
 0x546   : > { %v4990_v54 = vadd.f32 %v14947_v28, %v4989_v20  ;;  %v4991_v60 = vpop.f32.mrb[47].mxu0  ;;  %v5335_v6 = vmax.f32 %v4987_v38, 0.0 }
 0x547   : > { %v13697_v60 = vld [vmem:[%s13861_s22 + $0x1d0] sm:$0xff]  }
 0x548   : > { %v5336_v0 = vmax.f32 %v4990_v54, 0.0  ;;  %5201 = vmatmul.mubr.bf16.gmra.mrb[152].mxu0 %v14955_v42 }
 0x549   : > { %11054 = vmatprep.mubr.msk.bf16.mxu0 %vm1270_vm2, %v13694_v7 }
 0x54a   : > { %v5436_v49 = vpack.c.bf16 %v5336_v0, %v5335_v6 }
 0x54b   : > { %v4994_v22 = vpop.f32.mrb[48].mxu0 }
 0x54c   : > { %v4995_v19 = vadd.f32 %v14947_v28, %v4994_v22  ;;  %v4996_v23 = vpop.f32.mrb[49].mxu0  ;;  %12552 = vmatmul.mubr.bf16.gmra.mrb[116].mxu1 %v5436_v49 }
 0x54d   : > { %v4997_v31 = vpop.f32.mrb[50].mxu0 }
 0x54e   : > { %v4998_v43 = vadd.f32 %v14947_v28, %v4997_v31  ;;  %v4999_v14 = vpop.f32.mrb[51].mxu0  ;;  %v5337_v3 = vmax.f32 %v4995_v19, 0.0 }
 0x54f   : > { %v12501_v42 = vpop.f32.mrb[64].mxu1 }
 0x550   : > { %v5338_v9 = vmax.f32 %v4998_v43, 0.0  ;;  %v5587_v56 = vadd.f32 %v12501_v42, %v15153_v37  ;;  %5209 = vmatmul.mubr.bf16.gmra.mrb[156].mxu0 %v14953_v18  ;;  %v5578_v46 = vpop.f32.mrb[65].mxu1 }
 0x551   : > { %v5579_v63 = vadd.f32 %v15153_v37, %v5578_v46  ;;  %v12502_v47 = vpop.f32.mrb[66].mxu1  ;;  %11055 = vmatprep.mubr.msk.bf16.mxu0 %vm1270_vm2, %v13695_v17  ;;  %v13698_v17 = vld [vmem:[%s13861_s22 + $0x1d8] sm:$0xff]  }
 0x552   : > { %v5590_v48 = vadd.f32 %v12502_v47, %v15153_v37  ;;  %v5581_v1 = vpop.f32.mrb[67].mxu1  ;;  %v5437_v12 = vpack.c.bf16 %v5338_v9, %v5337_v3  ;;  %v6091_v15 = vmax.f32 %v5587_v56, 0.0 }
 0x553   : > { %v5582_v57 = vadd.f32 %v15153_v37, %v5581_v1  ;;  %v5002_v55 = vpop.f32.mrb[52].mxu0  ;;  %v6089_v5 = vmax.f32 %v5579_v63, 0.0 }
 0x554   : > { %v6092_v58 = vmax.f32 %v5590_v48, 0.0  ;;  %v5003_v59 = vadd.f32 %v14947_v28, %v5002_v55  ;;  %v5004_v18 = vpop.f32.mrb[53].mxu0  ;;  %12555 = vmatprep.mubr.bf16.mxu1 %v5437_v12 }
 0x555   : > { %v6090_v41 = vmax.f32 %v5582_v57, 0.0  ;;  %v5005_v50 = vpop.f32.mrb[54].mxu0 }
 0x556   : > { %v15164_v36 = vpack.c.bf16 %v6092_v58, %v6091_v15  ;;  %v5006_v13 = vadd.f32 %v14947_v28, %v5005_v50  ;;  %v5007_v52 = vpop.f32.mrb[55].mxu0  ;;  %v5339_v26 = vmax.f32 %v5003_v59, 0.0  ;;  %v13045_v59 = vld [vmem:[%s16968_s16 + $0x18] sm:$0xff]  }
 0x557   : > { %v15170_v44 = vpack.c.bf16 %v6090_v41, %v6089_v5  ;;  %7702 = vmatpush1.bf16.msra.mxu0 %v13045_v59 }
 0x558   : > { %v5340_v27 = vmax.f32 %v5006_v13, 0.0  ;;  %5217 = vmatmul.mubr.bf16.gmra.mrb[160].mxu0 %v14968_v51  ;;  %7703 = vmatprep.subr.bf16.mxu0 %v13722_v35 }
 0x559   : > { %11056 = vmatprep.mubr.msk.bf16.mxu0 %vm1270_vm2, %v13696_v29 }
 0x55a   : > { %v5438_v45 = vpack.c.bf16 %v5340_v27, %v5339_v26 }
 0x55b   : > { %v5010_v30 = vpop.f32.mrb[56].mxu0 }
 0x55c   : > { %v5011_v40 = vadd.f32 %v14947_v28, %v5010_v30  ;;  %v5012_v61 = vpop.f32.mrb[57].mxu0  ;;  %12556 = vmatmul.mubr.bf16.gmra.mrb[120].mxu1 %v5438_v45 }
 0x55d   : > { %v5013_v33 = vpop.f32.mrb[58].mxu0 }
 0x55e   : > { %v5014_v24 = vadd.f32 %v14947_v28, %v5013_v33  ;;  %v5015_v4 = vpop.f32.mrb[59].mxu0  ;;  %v5341_v10 = vmax.f32 %v5011_v40, 0.0 }
 0x55f   : > { %v12505_v34 = vpop.f32.mrb[68].mxu1 }
 0x560   : > { %v5342_v38 = vmax.f32 %v5014_v24, 0.0  ;;  %v5603_v51 = vadd.f32 %v12505_v34, %v15153_v37  ;;  %5225 = vmatmul.mubr.bf16.gmra.mrb[164].mxu0 %v14966_v16  ;;  %v5594_v25 = vpop.f32.mrb[69].mxu1 }
 0x561   : > { %v5595_v20 = vadd.f32 %v15153_v37, %v5594_v25  ;;  %v12506_v54 = vpop.f32.mrb[70].mxu1  ;;  %11057 = vmatprep.mubr.msk.bf16.mxu0 %vm1270_vm2, %v13697_v60  ;;  %v13046_v25 = vld [vmem:[%s16966_s14 + $0x20] sm:$0xff]  }
 0x562   : > { %v5606_v6 = vadd.f32 %v12506_v54, %v15153_v37  ;;  %v5597_v0 = vpop.f32.mrb[71].mxu1  ;;  %v5439_v7 = vpack.c.bf16 %v5342_v38, %v5341_v10  ;;  %v6095_v19 = vmax.f32 %v5603_v51, 0.0  ;;  %12635 = vmatprep.subr.bf16.mxu1 %v13046_v25 }
 0x563   : > { %v5598_v49 = vadd.f32 %v15153_v37, %v5597_v0  ;;  %v5018_v22 = vpop.f32.mrb[60].mxu0  ;;  %v6093_v43 = vmax.f32 %v5595_v20, 0.0  ;;  %12636 = vmatpush3.bf16.msra.mxu1 %v13046_v25 }
 0x564   : > { %v6096_v23 = vmax.f32 %v5606_v6, 0.0  ;;  %v5019_v31 = vadd.f32 %v14947_v28, %v5018_v22  ;;  %v5020_v16 = vpop.f32.mrb[61].mxu0  ;;  %12559 = vmatprep.mubr.bf16.mxu1 %v5439_v7  ;;  %v13701_v6 = vld [vmem:[%s13861_s22 + $0x1e8] sm:$0xff]  }
 0x565   : > { %v6094_v14 = vmax.f32 %v5598_v49, 0.0  ;;  %v5021_v42 = vpop.f32.mrb[62].mxu0 }
 0x566   : > { %v15185_v3 = vpack.c.bf16 %v6096_v23, %v6095_v19  ;;  %v5022_v9 = vadd.f32 %v14947_v28, %v5021_v42  ;;  %v5023_v56 = vpop.f32.mrb[63].mxu0  ;;  %v5343_v63 = vmax.f32 %v5019_v31, 0.0 }
 0x567   : > { %v15188_v46 = vpack.c.bf16 %v6094_v14, %v6093_v43 }
 0x568   : > { %v5344_v47 = vmax.f32 %v5022_v9, 0.0  ;;  %5233 = vmatmul.mubr.bf16.gmra.mrb[168].mxu0 %v14981_v11 }
 0x569   : > { %11058 = vmatprep.mubr.msk.bf16.mxu0 %vm1270_vm2, %v13698_v17 }
 0x56a   : > { %v5440_v48 = vpack.c.bf16 %v5344_v47, %v5343_v63  ;;  %v13702_v63 = vld [vmem:[%s13861_s22 + $0x1f0] sm:$0xff]  }
 0x56b   : > { %v5026_v1 = vpop.f32.mrb[64].mxu0 }
 0x56c   : > { %v5027_v12 = vadd.f32 %v14947_v28, %v5026_v1  ;;  %v5028_v57 = vpop.f32.mrb[65].mxu0  ;;  %12560 = vmatmul.mubr.bf16.gmra.mrb[124].mxu1 %v5440_v48 }
 0x56d   : > { %v5029_v55 = vpop.f32.mrb[66].mxu0 }
 0x56e   : > { %v5030_v15 = vadd.f32 %v14947_v28, %v5029_v55  ;;  %v5031_v58 = vpop.f32.mrb[67].mxu0  ;;  %v5345_v11 = vmax.f32 %v5027_v12, 0.0 }
 0x56f   : > { %v12509_v18 = vpop.f32.mrb[72].mxu1 }
 0x570   : > { %v5346_v5 = vmax.f32 %v5030_v15, 0.0  ;;  %v5619_v41 = vadd.f32 %v12509_v18, %v15153_v37  ;;  %5241 = vmatmul.mubr.bf16.gmra.mrb[172].mxu0 %v14979_v62  ;;  %v5610_v50 = vpop.f32.mrb[73].mxu1  ;;  %v15209_v62 = vld [vmem:[%s16963_s11] ss:$0 sm:$0xff] }
 0x571   : > { %v5611_v13 = vadd.f32 %v15153_v37, %v5610_v50  ;;  %v12510_v52 = vpop.f32.mrb[74].mxu1  ;;  %11059 = vmatprep.mubr.msk.bf16.mxu0 %vm1270_vm2, %v13699_v32  ;;  %v13703_v32 = vld [vmem:[%s13861_s22 + $0x1f8] sm:$0xff]  }
 0x572   : > { %v5622_v28 = vadd.f32 %v12510_v52, %v15153_v37  ;;  %v5613_v26 = vpop.f32.mrb[75].mxu1  ;;  %v5441_v27 = vpack.c.bf16 %v5346_v5, %v5345_v11  ;;  %v6099_v30 = vmax.f32 %v5619_v41, 0.0 }
 0x573   : > { %v5614_v29 = vadd.f32 %v15153_v37, %v5613_v26  ;;  %v5034_v45 = vpop.f32.mrb[68].mxu0  ;;  %v6097_v24 = vmax.f32 %v5611_v13, 0.0 }
 0x574   : > { %v6100_v40 = vmax.f32 %v5622_v28, 0.0  ;;  %v5035_v61 = vadd.f32 %v15209_v62, %v5034_v45  ;;  %v5036_v33 = vpop.f32.mrb[69].mxu0  ;;  %12563 = vmatprep.mubr.bf16.mxu1 %v5441_v27 }
 0x575   : > { %v6098_v4 = vmax.f32 %v5614_v29, 0.0  ;;  %v5037_v34 = vpop.f32.mrb[70].mxu0 }
 0x576   : > { %v15212_v10 = vpack.c.bf16 %v6100_v40, %v6099_v30  ;;  %v5038_v38 = vadd.f32 %v15209_v62, %v5037_v34  ;;  %v5039_v51 = vpop.f32.mrb[71].mxu0  ;;  %v5347_v54 = vmax.f32 %v5035_v61, 0.0 }
 0x577   : > { %v15218_v20 = vpack.c.bf16 %v6098_v4, %v6097_v24 }
 0x578   : > { %v5348_v60 = vmax.f32 %v5038_v38, 0.0  ;;  %5249 = vmatmul.mubr.bf16.gmra.mrb[176].mxu0 %v14994_v53 }
 0x579   : > { %11060 = vmatprep.mubr.msk.bf16.mxu0 %vm1270_vm2, %v13701_v6 }
 0x57a   : > { %v5442_v0 = vpack.c.bf16 %v5348_v60, %v5347_v54 }
 0x57b   : > { %v5042_v7 = vpop.f32.mrb[72].mxu0 }
 0x57c   : > { %v5043_v49 = vadd.f32 %v15209_v62, %v5042_v7  ;;  %v5044_v22 = vpop.f32.mrb[73].mxu0  ;;  %12564 = vmatmul.mubr.bf16.gmra.mrb[128].mxu1 %v5442_v0 }
 0x57d   : > { %v5045_v19 = vpop.f32.mrb[74].mxu0 }
 0x57e   : > { %v5046_v23 = vadd.f32 %v15209_v62, %v5045_v19  ;;  %v5047_v31 = vpop.f32.mrb[75].mxu0  ;;  %v5349_v43 = vmax.f32 %v5043_v49, 0.0 }
 0x57f   : > { %v12513_v16 = vpop.f32.mrb[76].mxu1 }
 0x580   : > { %v5350_v14 = vmax.f32 %v5046_v23, 0.0  ;;  %v5635_v53 = vadd.f32 %v12513_v16, %v15153_v37  ;;  %5257 = vmatmul.mubr.bf16.gmra.mrb[180].mxu0 %v14992_v39  ;;  %v5626_v42 = vpop.f32.mrb[77].mxu1 }
 0x581   : > { %v5627_v9 = vadd.f32 %v15153_v37, %v5626_v42  ;;  %v12514_v56 = vpop.f32.mrb[78].mxu1  ;;  %11061 = vmatprep.mubr.msk.bf16.mxu0 %vm1270_vm2, %v13702_v63 }
 0x582   : > { %v5638_v47 = vadd.f32 %v12514_v56, %v15153_v37  ;;  %v5629_v17 = vpop.f32.mrb[79].mxu1  ;;  %v5443_v48 = vpack.c.bf16 %v5350_v14, %v5349_v43  ;;  %v6103_v57 = vmax.f32 %v5635_v53, 0.0  ;;  %v13047_v14 = vld [vmem:[%s16966_s14 + $0x28] sm:$0xff]  }
 0x583   : > { %v5630_v1 = vadd.f32 %v15153_v37, %v5629_v17  ;;  %v5050_v12 = vpop.f32.mrb[76].mxu0  ;;  %v6101_v58 = vmax.f32 %v5627_v9, 0.0  ;;  %12637 = vmatprep.subr.bf16.mxu1 %v13047_v14 }
 0x584   : > { %v6104_v55 = vmax.f32 %v5638_v47, 0.0  ;;  %v5051_v15 = vadd.f32 %v15209_v62, %v5050_v12  ;;  %v5052_v39 = vpop.f32.mrb[77].mxu0  ;;  %12567 = vmatprep.mubr.bf16.mxu1 %v5443_v48  ;;  %12638 = vmatpush3.bf16.msra.mxu1 %v13047_v14 }
 0x585   : > { %v6102_v59 = vmax.f32 %v5630_v1, 0.0  ;;  %v5053_v18 = vpop.f32.mrb[78].mxu0 }
 0x586   : > { %v15233_v11 = vpack.c.bf16 %v6104_v55, %v6103_v57  ;;  %v5054_v5 = vadd.f32 %v15209_v62, %v5053_v18  ;;  %v5055_v41 = vpop.f32.mrb[79].mxu0  ;;  %v5351_v13 = vmax.f32 %v5051_v15, 0.0 }
 0x587   : > { %v15236_v50 = vpack.c.bf16 %v6102_v59, %v6101_v58  ;;  %v13048_v59 = vld [vmem:[%s16968_s16 + $0x20] sm:$0xff]  }
 0x588   : > { %v5352_v52 = vmax.f32 %v5054_v5, 0.0  ;;  %5265 = vmatmul.mubr.bf16.gmra.mrb[184].mxu0 %v15007_v21 }
 0x589   : > { %11062 = vmatprep.mubr.msk.bf16.mxu0 %vm1270_vm2, %v13703_v32  ;;  %7704 = vmatpush1.bf16.msra.mxu0 %v13048_v59  ;;  %v13049_v59 = vld [vmem:[%s16966_s14 + $0x30] sm:$0xff]  }
 0x58a   : > { %v5444_v28 = vpack.c.bf16 %v5352_v52, %v5351_v13  ;;  %7705 = vmatprep.subr.bf16.mxu0 %v13722_v35  ;;  %12639 = vmatprep.subr.bf16.mxu1 %v13049_v59 }
 0x58b   : > { %v5058_v26 = vpop.f32.mrb[80].mxu0  ;;  %12640 = vmatpush3.bf16.msra.mxu1 %v13049_v59 }
 0x58c   : > { %v5059_v27 = vadd.f32 %v15209_v62, %v5058_v26  ;;  %v5060_v29 = vpop.f32.mrb[81].mxu0  ;;  %12568 = vmatmul.mubr.bf16.gmra.mrb[132].mxu1 %v5444_v28 }
 0x58d   : > { %v5061_v45 = vpop.f32.mrb[82].mxu0 }
 0x58e   : > { %v5062_v30 = vadd.f32 %v15209_v62, %v5061_v45  ;;  %v5063_v40 = vpop.f32.mrb[83].mxu0  ;;  %v5353_v33 = vmax.f32 %v5059_v27, 0.0 }
 0x58f   : > { %v12517_v61 = vpop.f32.mrb[80].mxu1 }
 0x590   : > { %v5354_v24 = vmax.f32 %v5062_v30, 0.0  ;;  %v5651_v4 = vadd.f32 %v12517_v61, %v15153_v37  ;;  %5273 = vmatmul.mubr.bf16.gmra.mrb[188].mxu0 %v15005_v8  ;;  %v5642_v21 = vpop.f32.mrb[81].mxu1 }
 0x591   : > { %v5643_v34 = vadd.f32 %v15153_v37, %v5642_v21  ;;  %v12518_v38 = vpop.f32.mrb[82].mxu1 }
 0x592   : > { %v5654_v51 = vadd.f32 %v12518_v38, %v15153_v37  ;;  %v5645_v25 = vpop.f32.mrb[83].mxu1  ;;  %v5445_v54 = vpack.c.bf16 %v5354_v24, %v5353_v33  ;;  %v6107_v0 = vmax.f32 %v5651_v4, 0.0 }
 0x593   : > { %v5646_v60 = vadd.f32 %v15153_v37, %v5645_v25  ;;  %v5066_v6 = vpop.f32.mrb[84].mxu0  ;;  %v6105_v19 = vmax.f32 %v5643_v34, 0.0 }
 0x594   : > { %v6108_v7 = vmax.f32 %v5654_v51, 0.0  ;;  %v5067_v49 = vadd.f32 %v15209_v62, %v5066_v6  ;;  %v5068_v22 = vpop.f32.mrb[85].mxu0  ;;  %12571 = vmatprep.mubr.bf16.mxu1 %v5445_v54 }
 0x595   : > { %v6106_v23 = vmax.f32 %v5646_v60, 0.0  ;;  %v5069_v8 = vpop.f32.mrb[86].mxu0 }
 0x596   : > { %v15249_v31 = vpack.c.bf16 %v6108_v7, %v6107_v0  ;;  %v5070_v16 = vadd.f32 %v15209_v62, %v5069_v8  ;;  %v5071_v43 = vpop.f32.mrb[87].mxu0  ;;  %v5355_v42 = vmax.f32 %v5067_v49, 0.0 }
 0x597   : > { %v15255_v53 = vpack.c.bf16 %v6106_v23, %v6105_v19 }
 0x598   : > { %v5356_v9 = vmax.f32 %v5070_v16, 0.0 }
 0x59a   : > { %v5446_v56 = vpack.c.bf16 %v5356_v9, %v5355_v42 }
 0x59b   : > { %v5074_v63 = vpop.f32.mrb[88].mxu0 }
 0x59c   : > { %v5075_v47 = vadd.f32 %v15209_v62, %v5074_v63  ;;  %v5076_v17 = vpop.f32.mrb[89].mxu0  ;;  %12572 = vmatmul.mubr.bf16.gmra.mrb[136].mxu1 %v5446_v56 }
 0x59d   : > { %v5077_v48 = vpop.f32.mrb[90].mxu0 }
 0x59e   : > { %v5078_v1 = vadd.f32 %v15209_v62, %v5077_v48  ;;  %v5079_v12 = vpop.f32.mrb[91].mxu0  ;;  %v5357_v55 = vmax.f32 %v5075_v47, 0.0 }
 0x59f   : > { %v12521_v57 = vpop.f32.mrb[84].mxu1 }
 0x5a0   : > { %v5358_v15 = vmax.f32 %v5078_v1, 0.0  ;;  %v5667_v39 = vadd.f32 %v12521_v57, %v15153_v37  ;;  %v5658_v58 = vpop.f32.mrb[85].mxu1 }
 0x5a1   : > { %v5659_v18 = vadd.f32 %v15153_v37, %v5658_v58  ;;  %v12522_v5 = vpop.f32.mrb[86].mxu1 }
 0x5a2   : > { %v5670_v41 = vadd.f32 %v12522_v5, %v15153_v37  ;;  %v5661_v13 = vpop.f32.mrb[87].mxu1  ;;  %v5447_v52 = vpack.c.bf16 %v5358_v15, %v5357_v55  ;;  %v6111_v26 = vmax.f32 %v5667_v39, 0.0 }
 0x5a3   : > { %v5662_v32 = vadd.f32 %v15153_v37, %v5661_v13  ;;  %v5082_v28 = vpop.f32.mrb[92].mxu0  ;;  %v6109_v30 = vmax.f32 %v5659_v18, 0.0 }
 0x5a4   : > { %v6112_v27 = vmax.f32 %v5670_v41, 0.0  ;;  %v5083_v29 = vadd.f32 %v15209_v62, %v5082_v28  ;;  %v5084_v45 = vpop.f32.mrb[93].mxu0  ;;  %12575 = vmatprep.mubr.bf16.mxu1 %v5447_v52 }
 0x5a5   : > { %v6110_v40 = vmax.f32 %v5662_v32, 0.0  ;;  %v5085_v61 = vpop.f32.mrb[94].mxu0 }
 0x5a6   : > { %v15268_v33 = vpack.c.bf16 %v6112_v27, %v6111_v26  ;;  %v5086_v24 = vadd.f32 %v15209_v62, %v5085_v61  ;;  %v5087_v4 = vpop.f32.mrb[95].mxu0  ;;  %v5359_v34 = vmax.f32 %v5083_v29, 0.0 }
 0x5a7   : > { %v15271_v21 = vpack.c.bf16 %v6110_v40, %v6109_v30 }
 0x5a8   : > { %v5360_v38 = vmax.f32 %v5086_v24, 0.0 }
 0x5aa   : > { %v5448_v51 = vpack.c.bf16 %v5360_v38, %v5359_v34 }
 0x5ab   : > { %v5090_v25 = vpop.f32.mrb[96].mxu0 }
 0x5ac   : > { %v5091_v54 = vadd.f32 %v15209_v62, %v5090_v25  ;;  %v5092_v60 = vpop.f32.mrb[97].mxu0  ;;  %12576 = vmatmul.mubr.bf16.gmra.mrb[140].mxu1 %v5448_v51 }
 0x5ad   : > { %v5093_v6 = vpop.f32.mrb[98].mxu0 }
 0x5ae   : > { %v5094_v0 = vadd.f32 %v15209_v62, %v5093_v6  ;;  %v5095_v7 = vpop.f32.mrb[99].mxu0  ;;  %v5361_v22 = vmax.f32 %v5091_v54, 0.0 }
 0x5af   : > { %v12525_v49 = vpop.f32.mrb[88].mxu1 }
 0x5b0   : > { %v5362_v19 = vmax.f32 %v5094_v0, 0.0  ;;  %v5683_v23 = vadd.f32 %v12525_v49, %v15153_v37  ;;  %v5674_v8 = vpop.f32.mrb[89].mxu1 }
 0x5b1   : > { %v5675_v16 = vadd.f32 %v15153_v37, %v5674_v8  ;;  %v12526_v43 = vpop.f32.mrb[90].mxu1 }
 0x5b2   : > { %v5686_v14 = vadd.f32 %v12526_v43, %v15153_v37  ;;  %v5677_v42 = vpop.f32.mrb[91].mxu1  ;;  %v5449_v9 = vpack.c.bf16 %v5362_v19, %v5361_v22  ;;  %v6115_v47 = vmax.f32 %v5683_v23, 0.0 }
 0x5b3   : > { %v5678_v56 = vadd.f32 %v15153_v37, %v5677_v42  ;;  %v5098_v63 = vpop.f32.mrb[100].mxu0  ;;  %v6113_v12 = vmax.f32 %v5675_v16, 0.0 }
 0x5b4   : > { %v6116_v17 = vmax.f32 %v5686_v14, 0.0  ;;  %v5099_v48 = vadd.f32 %v15209_v62, %v5098_v63  ;;  %v5100_v1 = vpop.f32.mrb[101].mxu0  ;;  %12579 = vmatprep.mubr.bf16.mxu1 %v5449_v9 }
 0x5b5   : > { %v6114_v57 = vmax.f32 %v5678_v56, 0.0  ;;  %v5101_v55 = vpop.f32.mrb[102].mxu0 }
 0x5b6   : > { %v15280_v15 = vpack.c.bf16 %v6116_v17, %v6115_v47  ;;  %v5102_v39 = vadd.f32 %v15209_v62, %v5101_v55  ;;  %v5103_v58 = vpop.f32.mrb[103].mxu0  ;;  %v5363_v5 = vmax.f32 %v5099_v48, 0.0 }
 0x5b7   : > { %v15286_v18 = vpack.c.bf16 %v6114_v57, %v6113_v12 }
 0x5b8   : > { %v5364_v41 = vmax.f32 %v5102_v39, 0.0 }
 0x5ba   : > { %v5450_v13 = vpack.c.bf16 %v5364_v41, %v5363_v5 }
 0x5bb   : > { %v5106_v52 = vpop.f32.mrb[104].mxu0 }
 0x5bc   : > { %v5107_v32 = vadd.f32 %v15209_v62, %v5106_v52  ;;  %v5108_v28 = vpop.f32.mrb[105].mxu0  ;;  %12580 = vmatmul.mubr.bf16.gmra.mrb[144].mxu1 %v5450_v13 }
 0x5bd   : > { %v5109_v26 = vpop.f32.mrb[106].mxu0 }
 0x5be   : > { %v5110_v27 = vadd.f32 %v15209_v62, %v5109_v26  ;;  %v5111_v29 = vpop.f32.mrb[107].mxu0  ;;  %v5365_v30 = vmax.f32 %v5107_v32, 0.0 }
 0x5bf   : > { %v12529_v45 = vpop.f32.mrb[92].mxu1 }
 0x5c0   : > { %v5366_v40 = vmax.f32 %v5110_v27, 0.0  ;;  %v5699_v61 = vadd.f32 %v12529_v45, %v15153_v37  ;;  %v5690_v24 = vpop.f32.mrb[93].mxu1 }
 0x5c1   : > { %v5691_v4 = vadd.f32 %v15153_v37, %v5690_v24  ;;  %v12530_v34 = vpop.f32.mrb[94].mxu1 }
 0x5c2   : > { %v5702_v38 = vadd.f32 %v12530_v34, %v15153_v37  ;;  %v5693_v51 = vpop.f32.mrb[95].mxu1  ;;  %v5451_v25 = vpack.c.bf16 %v5366_v40, %v5365_v30  ;;  %v6119_v6 = vmax.f32 %v5699_v61, 0.0 }
 0x5c3   : > { %v5694_v54 = vadd.f32 %v15153_v37, %v5693_v51  ;;  %v5114_v60 = vpop.f32.mrb[108].mxu0  ;;  %v6117_v22 = vmax.f32 %v5691_v4, 0.0  ;;  %v13050_v51 = vld [vmem:[%s16968_s16 + $0x28] sm:$0xff]  }
 0x5c4   : > { %v6120_v0 = vmax.f32 %v5702_v38, 0.0  ;;  %v5115_v7 = vadd.f32 %v15209_v62, %v5114_v60  ;;  %v5116_v49 = vpop.f32.mrb[109].mxu0  ;;  %12583 = vmatprep.mubr.bf16.mxu1 %v5451_v25  ;;  %v13051_v25 = vld [vmem:[%s16966_s14 + $0x38] sm:$0xff]   ;;  %7706 = vmatpush1.bf16.msra.mxu0 %v13050_v51 }
 0x5c5   : > { %v6118_v19 = vmax.f32 %v5694_v54, 0.0  ;;  %v5117_v23 = vpop.f32.mrb[110].mxu0  ;;  %12641 = vmatprep.subr.bf16.mxu1 %v13051_v25  ;;  %7707 = vmatprep.subr.bf16.mxu0 %v13722_v35 }
 0x5c6   : > { %v15295_v8 = vpack.c.bf16 %v6120_v0, %v6119_v6  ;;  %v5118_v16 = vadd.f32 %v15209_v62, %v5117_v23  ;;  %v5119_v43 = vpop.f32.mrb[111].mxu0  ;;  %v5367_v42 = vmax.f32 %v5115_v7, 0.0  ;;  %12642 = vmatpush3.bf16.msra.mxu1 %v13051_v25 }
 0x5c7   : > { %v15298_v14 = vpack.c.bf16 %v6118_v19, %v6117_v22 }
 0x5c8   : > { %v5368_v9 = vmax.f32 %v5118_v16, 0.0 }
 0x5ca   : > { %v5452_v56 = vpack.c.bf16 %v5368_v9, %v5367_v42 }
 0x5cb   : > { %v5122_v63 = vpop.f32.mrb[112].mxu0 }
 0x5cc   : > { %v5123_v47 = vadd.f32 %v15209_v62, %v5122_v63  ;;  %v5124_v17 = vpop.f32.mrb[113].mxu0  ;;  %12584 = vmatmul.mubr.bf16.gmra.mrb[148].mxu1 %v5452_v56 }
 0x5cd   : > { %v5125_v48 = vpop.f32.mrb[114].mxu0 }
 0x5ce   : > { %v5126_v1 = vadd.f32 %v15209_v62, %v5125_v48  ;;  %v5127_v12 = vpop.f32.mrb[115].mxu0  ;;  %v5369_v55 = vmax.f32 %v5123_v47, 0.0 }
 0x5cf   : > { %v12533_v57 = vpop.f32.mrb[96].mxu1 }
 0x5d0   : > { %v5370_v39 = vmax.f32 %v5126_v1, 0.0  ;;  %v5715_v58 = vadd.f32 %v12533_v57, %v15153_v37  ;;  %v5706_v59 = vpop.f32.mrb[97].mxu1 }
 0x5d1   : > { %v5707_v5 = vadd.f32 %v15153_v37, %v5706_v59  ;;  %v12534_v41 = vpop.f32.mrb[98].mxu1 }
 0x5d2   : > { %v5718_v13 = vadd.f32 %v12534_v41, %v15153_v37  ;;  %v5709_v52 = vpop.f32.mrb[99].mxu1  ;;  %v5453_v32 = vpack.c.bf16 %v5370_v39, %v5369_v55  ;;  %v6123_v27 = vmax.f32 %v5715_v58, 0.0 }
 0x5d3   : > { %v5710_v28 = vadd.f32 %v15153_v37, %v5709_v52  ;;  %v5130_v26 = vpop.f32.mrb[116].mxu0  ;;  %v6121_v40 = vmax.f32 %v5707_v5, 0.0 }
 0x5d4   : > { %v6124_v29 = vmax.f32 %v5718_v13, 0.0  ;;  %v5131_v45 = vadd.f32 %v15209_v62, %v5130_v26  ;;  %v5132_v30 = vpop.f32.mrb[117].mxu0  ;;  %12587 = vmatprep.mubr.bf16.mxu1 %v5453_v32 }
 0x5d5   : > { %v6122_v61 = vmax.f32 %v5710_v28, 0.0  ;;  %v5133_v24 = vpop.f32.mrb[118].mxu0 }
 0x5d6   : > { %v15307_v4 = vpack.c.bf16 %v6124_v29, %v6123_v27  ;;  %v5134_v34 = vadd.f32 %v15209_v62, %v5133_v24  ;;  %v5135_v38 = vpop.f32.mrb[119].mxu0  ;;  %v5371_v60 = vmax.f32 %v5131_v45, 0.0 }
 0x5d7   : > { %v15316_v54 = vpack.c.bf16 %v6122_v61, %v6121_v40 }
 0x5d8   : > { %v5372_v6 = vmax.f32 %v5134_v34, 0.0 }
 0x5da   : > { %v5454_v0 = vpack.c.bf16 %v5372_v6, %v5371_v60 }
 0x5db   : > { %v5138_v7 = vpop.f32.mrb[120].mxu0 }
 0x5dc   : > { %v5139_v49 = vadd.f32 %v15209_v62, %v5138_v7  ;;  %v5140_v22 = vpop.f32.mrb[121].mxu0  ;;  %12588 = vmatmul.mubr.bf16.gmra.mrb[152].mxu1 %v5454_v0 }
 0x5dd   : > { %v5141_v19 = vpop.f32.mrb[122].mxu0 }
 0x5de   : > { %v5142_v23 = vadd.f32 %v15209_v62, %v5141_v19  ;;  %v5143_v16 = vpop.f32.mrb[123].mxu0  ;;  %v5373_v42 = vmax.f32 %v5139_v49, 0.0 }
 0x5df   : > { %v12537_v43 = vpop.f32.mrb[100].mxu1 }
 0x5e0   : > { %v5374_v9 = vmax.f32 %v5142_v23, 0.0  ;;  %v5731_v56 = vadd.f32 %v12537_v43, %v15153_v37  ;;  %v5722_v63 = vpop.f32.mrb[101].mxu1 }
 0x5e1   : > { %v5723_v47 = vadd.f32 %v15153_v37, %v5722_v63  ;;  %v12538_v17 = vpop.f32.mrb[102].mxu1 }
 0x5e2   : > { %v5734_v48 = vadd.f32 %v12538_v17, %v15153_v37  ;;  %v5725_v1 = vpop.f32.mrb[103].mxu1  ;;  %v5455_v12 = vpack.c.bf16 %v5374_v9, %v5373_v42  ;;  %v6127_v39 = vmax.f32 %v5731_v56, 0.0 }
 0x5e3   : > { %v5726_v57 = vadd.f32 %v15153_v37, %v5725_v1  ;;  %v5146_v55 = vpop.f32.mrb[124].mxu0  ;;  %v6125_v41 = vmax.f32 %v5723_v47, 0.0 }
 0x5e4   : > { %v6128_v58 = vmax.f32 %v5734_v48, 0.0  ;;  %v5147_v59 = vadd.f32 %v15209_v62, %v5146_v55  ;;  %v5148_v5 = vpop.f32.mrb[125].mxu0  ;;  %12591 = vmatprep.mubr.bf16.mxu1 %v5455_v12 }
 0x5e5   : > { %v6126_v13 = vmax.f32 %v5726_v57, 0.0  ;;  %v5149_v52 = vpop.f32.mrb[126].mxu0 }
 0x5e6   : > { %v15326_v32 = vpack.c.bf16 %v6128_v58, %v6127_v39  ;;  %v5150_v28 = vadd.f32 %v15209_v62, %v5149_v52  ;;  %v5151_v26 = vpop.f32.mrb[127].mxu0  ;;  %v5375_v29 = vmax.f32 %v5147_v59, 0.0 }
 0x5e7   : > { %v15329_v27 = vpack.c.bf16 %v6126_v13, %v6125_v41 }
 0x5e8   : > { %v5376_v45 = vmax.f32 %v5150_v28, 0.0 }
 0x5ea   : > { %v5456_v30 = vpack.c.bf16 %v5376_v45, %v5375_v29 }
 0x5eb   : > { %v5154_v40 = vpop.f32.mrb[128].mxu0 }
 0x5ec   : > { %v5155_v61 = vadd.f32 %v15209_v62, %v5154_v40  ;;  %v5156_v24 = vpop.f32.mrb[129].mxu0  ;;  %12592 = vmatmul.mubr.bf16.gmra.mrb[156].mxu1 %v5456_v30 }
 0x5ed   : > { %v5157_v34 = vpop.f32.mrb[130].mxu0 }
 0x5ee   : > { %v5158_v38 = vadd.f32 %v15209_v62, %v5157_v34  ;;  %v5159_v51 = vpop.f32.mrb[131].mxu0  ;;  %v5377_v60 = vmax.f32 %v5155_v61, 0.0 }
 0x5ef   : > { %v12541_v25 = vpop.f32.mrb[104].mxu1 }
 0x5f0   : > { %v5378_v6 = vmax.f32 %v5158_v38, 0.0  ;;  %v5747_v0 = vadd.f32 %v12541_v25, %v15153_v37  ;;  %v5738_v7 = vpop.f32.mrb[105].mxu1 }
 0x5f1   : > { %v5739_v49 = vadd.f32 %v15153_v37, %v5738_v7  ;;  %v12542_v22 = vpop.f32.mrb[106].mxu1 }
 0x5f2   : > { %v5750_v19 = vadd.f32 %v12542_v22, %v15153_v37  ;;  %v5741_v23 = vpop.f32.mrb[107].mxu1  ;;  %v5457_v16 = vpack.c.bf16 %v5378_v6, %v5377_v60  ;;  %v6131_v9 = vmax.f32 %v5747_v0, 0.0 }
 0x5f3   : > { %v5742_v43 = vadd.f32 %v15153_v37, %v5741_v23  ;;  %v5162_v42 = vpop.f32.mrb[132].mxu0  ;;  %v6129_v17 = vmax.f32 %v5739_v49, 0.0 }
 0x5f4   : > { %v6132_v56 = vmax.f32 %v5750_v19, 0.0  ;;  %v5163_v63 = vadd.f32 %v15209_v62, %v5162_v42  ;;  %v5164_v47 = vpop.f32.mrb[133].mxu0  ;;  %12595 = vmatprep.mubr.bf16.mxu1 %v5457_v16 }
 0x5f5   : > { %v6130_v48 = vmax.f32 %v5742_v43, 0.0  ;;  %v5165_v1 = vpop.f32.mrb[134].mxu0 }
 0x5f6   : > { %v15338_v12 = vpack.c.bf16 %v6132_v56, %v6131_v9  ;;  %v5166_v57 = vadd.f32 %v15209_v62, %v5165_v1  ;;  %v5167_v55 = vpop.f32.mrb[135].mxu0  ;;  %v5379_v58 = vmax.f32 %v5163_v63, 0.0  ;;  %v13052_v63 = vld [vmem:[%s16968_s16 + $0x30] sm:$0xff]  }
 0x5f7   : > { %v15341_v39 = vpack.c.bf16 %v6130_v48, %v6129_v17  ;;  %7708 = vmatpush1.bf16.msra.mxu0 %v13052_v63 }
 0x5f8   : > { %v5380_v59 = vmax.f32 %v5166_v57, 0.0  ;;  %7709 = vmatprep.subr.bf16.mxu0 %v13722_v35 }
 0x5fa   : > { %v5458_v5 = vpack.c.bf16 %v5380_v59, %v5379_v58 }
 0x5fb   : > { %v5170_v41 = vpop.f32.mrb[136].mxu0 }
 0x5fc   : > { %v5171_v13 = vadd.f32 %v15209_v62, %v5170_v41  ;;  %v5172_v52 = vpop.f32.mrb[137].mxu0  ;;  %12596 = vmatmul.mubr.bf16.gmra.mrb[160].mxu1 %v5458_v5 }
 0x5fd   : > { %v5173_v28 = vpop.f32.mrb[138].mxu0 }
 0x5fe   : > { %v5174_v26 = vadd.f32 %v15209_v62, %v5173_v28  ;;  %v5175_v29 = vpop.f32.mrb[139].mxu0  ;;  %v5381_v30 = vmax.f32 %v5171_v13, 0.0 }
 0x5ff   : > { %v12545_v45 = vpop.f32.mrb[108].mxu1 }
 0x600   : > { %v5382_v40 = vmax.f32 %v5174_v26, 0.0  ;;  %v5763_v61 = vadd.f32 %v12545_v45, %v15153_v37  ;;  %v5754_v24 = vpop.f32.mrb[109].mxu1 }
 0x601   : > { %v5755_v34 = vadd.f32 %v15153_v37, %v5754_v24  ;;  %v12546_v38 = vpop.f32.mrb[110].mxu1 }
 0x602   : > { %v5766_v51 = vadd.f32 %v12546_v38, %v15153_v37  ;;  %v5757_v25 = vpop.f32.mrb[111].mxu1  ;;  %v5459_v60 = vpack.c.bf16 %v5382_v40, %v5381_v30  ;;  %v6135_v7 = vmax.f32 %v5763_v61, 0.0 }
 0x603   : > { %v5758_v6 = vadd.f32 %v15153_v37, %v5757_v25  ;;  %v5178_v0 = vpop.f32.mrb[140].mxu0  ;;  %v6133_v23 = vmax.f32 %v5755_v34, 0.0 }
 0x604   : > { %v6136_v49 = vmax.f32 %v5766_v51, 0.0  ;;  %v5179_v22 = vadd.f32 %v15209_v62, %v5178_v0  ;;  %v5180_v19 = vpop.f32.mrb[141].mxu0  ;;  %12599 = vmatprep.mubr.bf16.mxu1 %v5459_v60 }
 0x605   : > { %v6134_v16 = vmax.f32 %v5758_v6, 0.0  ;;  %v5181_v43 = vpop.f32.mrb[142].mxu0 }
 0x606   : > { %v15350_v42 = vpack.c.bf16 %v6136_v49, %v6135_v7  ;;  %v5182_v9 = vadd.f32 %v15209_v62, %v5181_v43  ;;  %v5183_v56 = vpop.f32.mrb[143].mxu0  ;;  %v5383_v17 = vmax.f32 %v5179_v22, 0.0 }
 0x607   : > { %v15356_v47 = vpack.c.bf16 %v6134_v16, %v6133_v23 }
 0x608   : > { %v5384_v48 = vmax.f32 %v5182_v9, 0.0 }
 0x60a   : > { %v5460_v1 = vpack.c.bf16 %v5384_v48, %v5383_v17 }
 0x60b   : > { %v5186_v57 = vpop.f32.mrb[144].mxu0 }
 0x60c   : > { %v5187_v55 = vadd.f32 %v15209_v62, %v5186_v57  ;;  %v5188_v58 = vpop.f32.mrb[145].mxu0  ;;  %12600 = vmatmul.mubr.bf16.gmra.mrb[164].mxu1 %v5460_v1 }
 0x60d   : > { %v5189_v59 = vpop.f32.mrb[146].mxu0 }
 0x60e   : > { %v5190_v5 = vadd.f32 %v15209_v62, %v5189_v59  ;;  %v5191_v41 = vpop.f32.mrb[147].mxu0  ;;  %v5385_v52 = vmax.f32 %v5187_v55, 0.0 }
 0x60f   : > { %v12549_v13 = vpop.f32.mrb[112].mxu1 }
 0x610   : > { %v5386_v28 = vmax.f32 %v5190_v5, 0.0  ;;  %v5779_v26 = vadd.f32 %v12549_v13, %v15153_v37  ;;  %v5770_v29 = vpop.f32.mrb[113].mxu1 }
 0x611   : > { %v5771_v45 = vadd.f32 %v15153_v37, %v5770_v29  ;;  %v12550_v30 = vpop.f32.mrb[114].mxu1 }
 0x612   : > { %v5782_v40 = vadd.f32 %v12550_v30, %v15153_v37  ;;  %v5773_v61 = vpop.f32.mrb[115].mxu1  ;;  %v5461_v24 = vpack.c.bf16 %v5386_v28, %v5385_v52  ;;  %v6139_v51 = vmax.f32 %v5779_v26, 0.0 }
 0x613   : > { %v5774_v34 = vadd.f32 %v15153_v37, %v5773_v61  ;;  %v5194_v38 = vpop.f32.mrb[148].mxu0  ;;  %v6137_v0 = vmax.f32 %v5771_v45, 0.0 }
 0x614   : > { %v6140_v25 = vmax.f32 %v5782_v40, 0.0  ;;  %v5195_v60 = vadd.f32 %v15209_v62, %v5194_v38  ;;  %v5196_v6 = vpop.f32.mrb[149].mxu0  ;;  %12603 = vmatprep.mubr.bf16.mxu1 %v5461_v24 }
 0x615   : > { %v6138_v7 = vmax.f32 %v5774_v34, 0.0  ;;  %v5197_v49 = vpop.f32.mrb[150].mxu0 }
 0x616   : > { %v15366_v22 = vpack.c.bf16 %v6140_v25, %v6139_v51  ;;  %v5198_v19 = vadd.f32 %v15209_v62, %v5197_v49  ;;  %v5199_v23 = vpop.f32.mrb[151].mxu0  ;;  %v5387_v43 = vmax.f32 %v5195_v60, 0.0 }
 0x617   : > { %v15369_v16 = vpack.c.bf16 %v6138_v7, %v6137_v0 }
 0x618   : > { %v5388_v9 = vmax.f32 %v5198_v19, 0.0 }
 0x61a   : > { %v5462_v56 = vpack.c.bf16 %v5388_v9, %v5387_v43 }
 0x61b   : > { %v5202_v63 = vpop.f32.mrb[152].mxu0 }
 0x61c   : > { %v5203_v17 = vadd.f32 %v15209_v62, %v5202_v63  ;;  %v5204_v48 = vpop.f32.mrb[153].mxu0  ;;  %12604 = vmatmul.mubr.bf16.gmra.mrb[168].mxu1 %v5462_v56 }
 0x61d   : > { %v5205_v1 = vpop.f32.mrb[154].mxu0 }
 0x61e   : > { %v5206_v57 = vadd.f32 %v15209_v62, %v5205_v1  ;;  %v5207_v55 = vpop.f32.mrb[155].mxu0  ;;  %v5389_v59 = vmax.f32 %v5203_v17, 0.0 }
 0x61f   : > { %v12553_v58 = vpop.f32.mrb[116].mxu1 }
 0x620   : > { %v5390_v5 = vmax.f32 %v5206_v57, 0.0  ;;  %v5795_v41 = vadd.f32 %v12553_v58, %v15153_v37  ;;  %v5786_v13 = vpop.f32.mrb[117].mxu1  ;;  %v15388_v58 = vld [vmem:[%s16965_s13] ss:$0 sm:$0xff] }
 0x621   : > { %v5787_v52 = vadd.f32 %v15153_v37, %v5786_v13  ;;  %v12554_v28 = vpop.f32.mrb[118].mxu1 }
 0x622   : > { %v5798_v26 = vadd.f32 %v12554_v28, %v15153_v37  ;;  %v5789_v29 = vpop.f32.mrb[119].mxu1  ;;  %v5463_v45 = vpack.c.bf16 %v5390_v5, %v5389_v59  ;;  %v6143_v61 = vmax.f32 %v5795_v41, 0.0 }
 0x623   : > { %v5790_v30 = vadd.f32 %v15153_v37, %v5789_v29  ;;  %v5210_v40 = vpop.f32.mrb[156].mxu0  ;;  %v6141_v51 = vmax.f32 %v5787_v52, 0.0 }
 0x624   : > { %v6144_v24 = vmax.f32 %v5798_v26, 0.0  ;;  %v5211_v34 = vadd.f32 %v15209_v62, %v5210_v40  ;;  %v5212_v38 = vpop.f32.mrb[157].mxu0  ;;  %12607 = vmatprep.mubr.bf16.mxu1 %v5463_v45 }
 0x625   : > { %v6142_v25 = vmax.f32 %v5790_v30, 0.0  ;;  %v5213_v60 = vpop.f32.mrb[158].mxu0 }
 0x626   : > { %v15378_v6 = vpack.c.bf16 %v6144_v24, %v6143_v61  ;;  %v5214_v0 = vadd.f32 %v15209_v62, %v5213_v60  ;;  %v5215_v7 = vpop.f32.mrb[159].mxu0  ;;  %v5391_v19 = vmax.f32 %v5211_v34, 0.0 }
 0x627   : > { %v15381_v49 = vpack.c.bf16 %v6142_v25, %v6141_v51  ;;  %v13053_v7 = vld [vmem:[%s16968_s16 + $0x38] sm:$0xff]  }
 0x628   : > { %v5392_v23 = vmax.f32 %v5214_v0, 0.0  ;;  %7710 = vmatpush1.bf16.msra.mxu0 %v13053_v7 }
 0x629   : > { %7711 = vmatprep.subr.bf16.mxu0 %v13722_v35 }
 0x62a   : > { %v5464_v37 = vpack.c.bf16 %v5392_v23, %v5391_v19 }
 0x62b   : > { %v5218_v43 = vpop.f32.mrb[160].mxu0 }
 0x62c   : > { %v5219_v9 = vadd.f32 %v15209_v62, %v5218_v43  ;;  %v5220_v56 = vpop.f32.mrb[161].mxu0  ;;  %12608 = vmatmul.mubr.bf16.gmra.mrb[172].mxu1 %v5464_v37 }
 0x62d   : > { %v5221_v63 = vpop.f32.mrb[162].mxu0 }
 0x62e   : > { %v5222_v17 = vadd.f32 %v15209_v62, %v5221_v63  ;;  %v5223_v48 = vpop.f32.mrb[163].mxu0  ;;  %v5393_v57 = vmax.f32 %v5219_v9, 0.0 }
 0x62f   : > { %v12557_v1 = vpop.f32.mrb[120].mxu1 }
 0x630   : > { %v5394_v55 = vmax.f32 %v5222_v17, 0.0  ;;  %v5811_v59 = vadd.f32 %v15388_v58, %v12557_v1  ;;  %v5802_v5 = vpop.f32.mrb[121].mxu1 }
 0x631   : > { %v5803_v41 = vadd.f32 %v15388_v58, %v5802_v5  ;;  %v12558_v13 = vpop.f32.mrb[122].mxu1 }
 0x632   : > { %v5814_v52 = vadd.f32 %v15388_v58, %v12558_v13  ;;  %v5805_v28 = vpop.f32.mrb[123].mxu1  ;;  %v5465_v26 = vpack.c.bf16 %v5394_v55, %v5393_v57  ;;  %v6147_v30 = vmax.f32 %v5811_v59, 0.0 }
 0x633   : > { %v5806_v29 = vadd.f32 %v15388_v58, %v5805_v28  ;;  %v5226_v45 = vpop.f32.mrb[164].mxu0  ;;  %v6145_v34 = vmax.f32 %v5803_v41, 0.0 }
 0x634   : > { %v6148_v40 = vmax.f32 %v5814_v52, 0.0  ;;  %v5227_v61 = vadd.f32 %v15209_v62, %v5226_v45  ;;  %v5228_v24 = vpop.f32.mrb[165].mxu0  ;;  %12611 = vmatprep.mubr.bf16.mxu1 %v5465_v26 }
 0x635   : > { %v6146_v38 = vmax.f32 %v5806_v29, 0.0  ;;  %v5229_v51 = vpop.f32.mrb[166].mxu0 }
 0x636   : > { %v15395_v25 = vpack.c.bf16 %v6148_v40, %v6147_v30  ;;  %v5230_v60 = vadd.f32 %v15209_v62, %v5229_v51  ;;  %v5231_v0 = vpop.f32.mrb[167].mxu0  ;;  %v5395_v23 = vmax.f32 %v5227_v61, 0.0 }
 0x637   : > { %v15401_v19 = vpack.c.bf16 %v6146_v38, %v6145_v34 }
 0x638   : > { %v5396_v37 = vmax.f32 %v5230_v60, 0.0 }
 0x63a   : > { %v5466_v43 = vpack.c.bf16 %v5396_v37, %v5395_v23 }
 0x63b   : > { %v5234_v9 = vpop.f32.mrb[168].mxu0 }
 0x63c   : > { %v5235_v56 = vadd.f32 %v15209_v62, %v5234_v9  ;;  %v5236_v63 = vpop.f32.mrb[169].mxu0  ;;  %12612 = vmatmul.mubr.bf16.gmra.mrb[176].mxu1 %v5466_v43 }
 0x63d   : > { %v5237_v17 = vpop.f32.mrb[170].mxu0 }
 0x63e   : > { %v5238_v48 = vadd.f32 %v15209_v62, %v5237_v17  ;;  %v5239_v1 = vpop.f32.mrb[171].mxu0  ;;  %v5397_v55 = vmax.f32 %v5235_v56, 0.0 }
 0x63f   : > { %v12561_v57 = vpop.f32.mrb[124].mxu1 }
 0x640   : > { %v5398_v59 = vmax.f32 %v5238_v48, 0.0  ;;  %v5827_v5 = vadd.f32 %v15388_v58, %v12561_v57  ;;  %v5818_v41 = vpop.f32.mrb[125].mxu1 }
 0x641   : > { %v5819_v13 = vadd.f32 %v15388_v58, %v5818_v41  ;;  %v12562_v52 = vpop.f32.mrb[126].mxu1 }
 0x642   : > { %v5830_v28 = vadd.f32 %v15388_v58, %v12562_v52  ;;  %v5821_v26 = vpop.f32.mrb[127].mxu1  ;;  %v5467_v29 = vpack.c.bf16 %v5398_v59, %v5397_v55  ;;  %v6151_v40 = vmax.f32 %v5827_v5, 0.0 }
 0x643   : > { %v5822_v45 = vadd.f32 %v15388_v58, %v5821_v26  ;;  %v5242_v30 = vpop.f32.mrb[172].mxu0  ;;  %v6149_v38 = vmax.f32 %v5819_v13, 0.0 }
 0x644   : > { %v6152_v61 = vmax.f32 %v5830_v28, 0.0  ;;  %v5243_v24 = vadd.f32 %v15209_v62, %v5242_v30  ;;  %v5244_v34 = vpop.f32.mrb[173].mxu0  ;;  %12615 = vmatprep.mubr.bf16.mxu1 %v5467_v29 }
 0x645   : > { %v6150_v51 = vmax.f32 %v5822_v45, 0.0  ;;  %v5245_v60 = vpop.f32.mrb[174].mxu0 }
 0x646   : > { %v15411_v0 = vpack.c.bf16 %v6152_v61, %v6151_v40  ;;  %v5246_v7 = vadd.f32 %v15209_v62, %v5245_v60  ;;  %v5247_v23 = vpop.f32.mrb[175].mxu0  ;;  %v5399_v43 = vmax.f32 %v5243_v24, 0.0 }
 0x647   : > { %v15414_v37 = vpack.c.bf16 %v6150_v51, %v6149_v38 }
 0x648   : > { %v5400_v9 = vmax.f32 %v5246_v7, 0.0 }
 0x64a   : > { %v5468_v56 = vpack.c.bf16 %v5400_v9, %v5399_v43  ;;  %v13705_v9 = vld [vmem:[%s16963_s11] ss:$0 sm:$0xff] }
 0x64b   : > { %v5250_v63 = vpop.f32.mrb[176].mxu0 }
 0x64c   : > { %v5251_v17 = vadd.f32 %v15209_v62, %v5250_v63  ;;  %v5252_v48 = vpop.f32.mrb[177].mxu0  ;;  %12616 = vmatmul.mubr.bf16.gmra.mrb[180].mxu1 %v5468_v56 }
 0x64d   : > { %v5253_v1 = vpop.f32.mrb[178].mxu0 }
 0x64e   : > { %v5254_v57 = vadd.f32 %v15209_v62, %v5253_v1  ;;  %v5255_v55 = vpop.f32.mrb[179].mxu0  ;;  %v5401_v5 = vmax.f32 %v5251_v17, 0.0 }
 0x64f   : > { %v12565_v59 = vpop.f32.mrb[128].mxu1 }
 0x650   : > { %v5402_v41 = vmax.f32 %v5254_v57, 0.0  ;;  %v5843_v13 = vadd.f32 %v15388_v58, %v12565_v59  ;;  %v5834_v52 = vpop.f32.mrb[129].mxu1 }
 0x651   : > { %v5835_v28 = vadd.f32 %v15388_v58, %v5834_v52  ;;  %v12566_v26 = vpop.f32.mrb[130].mxu1 }
 0x652   : > { %v5846_v29 = vadd.f32 %v15388_v58, %v12566_v26  ;;  %v5837_v45 = vpop.f32.mrb[131].mxu1  ;;  %v5469_v30 = vpack.c.bf16 %v5402_v41, %v5401_v5  ;;  %v6155_v24 = vmax.f32 %v5843_v13, 0.0 }
 0x653   : > { %v5838_v40 = vadd.f32 %v15388_v58, %v5837_v45  ;;  %v5258_v61 = vpop.f32.mrb[180].mxu0  ;;  %v6153_v60 = vmax.f32 %v5835_v28, 0.0 }
 0x654   : > { %v6156_v34 = vmax.f32 %v5846_v29, 0.0  ;;  %v5259_v38 = vadd.f32 %v15209_v62, %v5258_v61  ;;  %v5260_v51 = vpop.f32.mrb[181].mxu0  ;;  %12619 = vmatprep.mubr.bf16.mxu1 %v5469_v30 }
 0x655   : > { %v6154_v7 = vmax.f32 %v5838_v40, 0.0  ;;  %v5261_v23 = vpop.f32.mrb[182].mxu0 }
 0x656   : > { %v15423_v43 = vpack.c.bf16 %v6156_v34, %v6155_v24  ;;  %v5262_v56 = vadd.f32 %v13705_v9, %v5261_v23  ;;  %v5263_v63 = vpop.f32.mrb[183].mxu0  ;;  %v5403_v48 = vmax.f32 %v5259_v38, 0.0 }
 0x657   : > { %v15428_v17 = vpack.c.bf16 %v6154_v7, %v6153_v60 }
 0x658   : > { %v5404_v1 = vmax.f32 %v5262_v56, 0.0 }
 0x65a   : > { %v5470_v57 = vpack.c.bf16 %v5404_v1, %v5403_v48 }
 0x65b   : > { %v5266_v55 = vpop.f32.mrb[184].mxu0 }
 0x65c   : > { %v5267_v62 = vadd.f32 %v13705_v9, %v5266_v55  ;;  %v5268_v59 = vpop.f32.mrb[185].mxu0  ;;  %12620 = vmatmul.mubr.bf16.gmra.mrb[184].mxu1 %v5470_v57 }
 0x65d   : > { %v5269_v5 = vpop.f32.mrb[186].mxu0  ;;  %v13054_v59 = vld [vmem:[%s16968_s16 + $0x40] sm:$0xff]  }
 0x65e   : > { %v5270_v41 = vadd.f32 %v13705_v9, %v5269_v5  ;;  %v5271_v13 = vpop.f32.mrb[187].mxu0  ;;  %v5405_v28 = vmax.f32 %v5267_v62, 0.0  ;;  %7712 = vmatpush1.bf16.msra.mxu0 %v13054_v59 }
 0x65f   : > { %v12569_v52 = vpop.f32.mrb[132].mxu1  ;;  %7713 = vmatprep.subr.bf16.mxu0 %v13722_v35 }
 0x660   : > { %v5406_v26 = vmax.f32 %v5270_v41, 0.0  ;;  %v5859_v29 = vadd.f32 %v15388_v58, %v12569_v52  ;;  %v5850_v45 = vpop.f32.mrb[133].mxu1 }
 0x661   : > { %v5851_v30 = vadd.f32 %v15388_v58, %v5850_v45  ;;  %v12570_v40 = vpop.f32.mrb[134].mxu1 }
 0x662   : > { %v5862_v61 = vadd.f32 %v15388_v58, %v12570_v40  ;;  %v5853_v24 = vpop.f32.mrb[135].mxu1  ;;  %v5471_v34 = vpack.c.bf16 %v5406_v26, %v5405_v28  ;;  %v6159_v60 = vmax.f32 %v5859_v29, 0.0 }
 0x663   : > { %v5854_v38 = vadd.f32 %v15388_v58, %v5853_v24  ;;  %v5274_v51 = vpop.f32.mrb[188].mxu0  ;;  %v6157_v63 = vmax.f32 %v5851_v30, 0.0 }
 0x664   : > { %v6160_v7 = vmax.f32 %v5862_v61, 0.0  ;;  %v5275_v23 = vadd.f32 %v13705_v9, %v5274_v51  ;;  %v5276_v56 = vpop.f32.mrb[189].mxu0  ;;  %12623 = vmatprep.mubr.bf16.mxu1 %v5471_v34 }
 0x665   : > { %v6158_v48 = vmax.f32 %v5854_v38, 0.0  ;;  %v5277_v1 = vpop.f32.mrb[190].mxu0 }
 0x666   : > { %v15434_v57 = vpack.c.bf16 %v6160_v7, %v6159_v60  ;;  %v5278_v55 = vadd.f32 %v13705_v9, %v5277_v1  ;;  %v5279_v62 = vpop.f32.mrb[191].mxu0  ;;  %v5407_v41 = vmax.f32 %v5275_v23, 0.0 }
 0x667   : > { %v15439_v5 = vpack.c.bf16 %v6158_v48, %v6157_v63 }
 0x668   : > { %v5408_v13 = vmax.f32 %v5278_v55, 0.0 }
 0x66a   : > { %v5472_v52 = vpack.c.bf16 %v5408_v13, %v5407_v41 }
 0x66c   : > { %12624 = vmatmul.mubr.bf16.gmra.mrb[188].mxu1 %v5472_v52 }
 0x66d   : > { %12643 = vmatprep.mubr.bf16.mxu1 %v15170_v44 }
 0x66f   : > { %v12573_v28 = vpop.f32.mrb[136].mxu1 }
 0x670   : > { %v5875_v26 = vadd.f32 %v15388_v58, %v12573_v28  ;;  %v5866_v9 = vpop.f32.mrb[137].mxu1 }
 0x671   : > { %v5867_v29 = vadd.f32 %v15388_v58, %v5866_v9  ;;  %v12574_v45 = vpop.f32.mrb[138].mxu1 }
 0x672   : > { %v5878_v30 = vadd.f32 %v15388_v58, %v12574_v45  ;;  %v5869_v40 = vpop.f32.mrb[139].mxu1  ;;  %v6163_v24 = vmax.f32 %v5875_v26, 0.0 }
 0x673   : > { %v5870_v61 = vadd.f32 %v15388_v58, %v5869_v40  ;;  %v6161_v35 = vmax.f32 %v5867_v29, 0.0 }
 0x674   : > { %v6164_v34 = vmax.f32 %v5878_v30, 0.0  ;;  %12644 = vmatmul.mubr.bf16.vlgmr.msra.gmra.mrb[192].mxu1 %v15164_v36 }
 0x675   : > { %v6162_v38 = vmax.f32 %v5870_v61, 0.0  ;;  %12647 = vmatprep.mubr.bf16.mxu1 %v15188_v46  ;;  %v13055_v61 = vld [vmem:[%s16968_s16 + $0x48] sm:$0x3f]  }
 0x676   : > { %v15449_v44 = vpack.c.bf16 %v6164_v34, %v6163_v24 }
 0x677   : > { %v15451_v51 = vpack.c.bf16 %v6162_v38, %v6161_v35 }
 0x67c   : > { %12648 = vmatmul.mubr.bf16.gmra.mrb[196].mxu1 %v15185_v3 }
 0x67d   : > { %12651 = vmatprep.mubr.bf16.mxu1 %v15218_v20 }
 0x67f   : > { %v12577_v60 = vpop.f32.mrb[140].mxu1 }
 0x680   : > { %v5891_v7 = vadd.f32 %v15388_v58, %v12577_v60  ;;  %v5882_v23 = vpop.f32.mrb[141].mxu1 }
 0x681   : > { %v5883_v56 = vadd.f32 %v15388_v58, %v5882_v23  ;;  %v12578_v63 = vpop.f32.mrb[142].mxu1 }
 0x682   : > { %v5894_v36 = vadd.f32 %v15388_v58, %v12578_v63  ;;  %v5885_v48 = vpop.f32.mrb[143].mxu1  ;;  %v6167_v1 = vmax.f32 %v5891_v7, 0.0 }
 0x683   : > { %v5886_v46 = vadd.f32 %v15388_v58, %v5885_v48  ;;  %v6165_v62 = vmax.f32 %v5883_v56, 0.0 }
 0x684   : > { %v6168_v55 = vmax.f32 %v5894_v36, 0.0  ;;  %12652 = vmatmul.mubr.bf16.gmra.mrb[200].mxu1 %v15212_v10 }
 0x685   : > { %v6166_v3 = vmax.f32 %v5886_v46, 0.0  ;;  %12655 = vmatprep.mubr.bf16.mxu1 %v15236_v50 }
 0x686   : > { %v15461_v20 = vpack.c.bf16 %v6168_v55, %v6167_v1 }
 0x687   : > { %v15463_v59 = vpack.c.bf16 %v6166_v3, %v6165_v62 }
 0x68c   : > { %12656 = vmatmul.mubr.bf16.gmra.mrb[204].mxu1 %v15233_v11 }
 0x68d   : > { %12659 = vmatprep.mubr.bf16.mxu1 %v15255_v53 }
 0x68f   : > { %v12581_v41 = vpop.f32.mrb[144].mxu1 }
 0x690   : > { %v5907_v13 = vadd.f32 %v15388_v58, %v12581_v41  ;;  %v5898_v52 = vpop.f32.mrb[145].mxu1 }
 0x691   : > { %v5899_v28 = vadd.f32 %v15388_v58, %v5898_v52  ;;  %v12582_v26 = vpop.f32.mrb[146].mxu1 }
 0x692   : > { %v5910_v10 = vadd.f32 %v15388_v58, %v12582_v26  ;;  %v5901_v9 = vpop.f32.mrb[147].mxu1  ;;  %v6171_v29 = vmax.f32 %v5907_v13, 0.0 }
 0x693   : > { %v5902_v50 = vadd.f32 %v15388_v58, %v5901_v9  ;;  %v6169_v30 = vmax.f32 %v5899_v28, 0.0 }
 0x694   : > { %v6172_v45 = vmax.f32 %v5910_v10, 0.0  ;;  %12660 = vmatmul.mubr.bf16.gmra.mrb[208].mxu1 %v15249_v31  ;;  %v7690_v31 = vsel %vm7688_vm3, 4294967295, %v13721_v2 }
 0x695   : > { %v6170_v11 = vmax.f32 %v5902_v50, 0.0  ;;  %12663 = vmatprep.mubr.bf16.mxu1 %v15271_v21  ;;  %v7691_v34 = vsel %vm7689_vm4, %v7690_v31, 0 }
 0x696   : > { %v15473_v53 = vpack.c.bf16 %v6172_v45, %v6171_v29  ;;  %v7693_v38 = vand.u32 %v13055_v61, %v7691_v34 }
 0x697   : > { %v15475_v40 = vpack.c.bf16 %v6170_v11, %v6169_v30 }
 0x698   : > { %7714 = vmatpush1.bf16.msra.mxu0 %v7693_v38 }
 0x69c   : > { %12664 = vmatmul.mubr.bf16.gmra.mrb[212].mxu1 %v15268_v33 }
 0x69d   : > { %12667 = vmatprep.mubr.bf16.mxu1 %v15286_v18 }
 0x69f   : > { %v12585_v24 = vpop.f32.mrb[148].mxu1 }
 0x6a0   : > { %v5923_v21 = vadd.f32 %v15388_v58, %v12585_v24  ;;  %v5914_v35 = vpop.f32.mrb[149].mxu1 }
 0x6a1   : > { %v5915_v60 = vadd.f32 %v15388_v58, %v5914_v35  ;;  %v12586_v7 = vpop.f32.mrb[150].mxu1 }
 0x6a2   : > { %v5926_v33 = vadd.f32 %v15388_v58, %v12586_v7  ;;  %v5917_v18 = vpop.f32.mrb[151].mxu1  ;;  %v6175_v56 = vmax.f32 %v5923_v21, 0.0  ;;  %v13056_v21 = vld [vmem:[%s13986_s25] sm:$0xff]  }
 0x6a3   : > { %v5918_v23 = vadd.f32 %v15388_v58, %v5917_v18  ;;  %v6173_v2 = vmax.f32 %v5915_v60, 0.0  ;;  %11156 = vmatprep.mubr.msk.bf16.mxu0 %vm7495_vm5, %v13056_v21 }
 0x6a4   : > { %v6176_v63 = vmax.f32 %v5926_v33, 0.0  ;;  %12668 = vmatmul.mubr.bf16.gmra.mrb[216].mxu1 %v15280_v15 }
 0x6a5   : > { %v6174_v36 = vmax.f32 %v5918_v23, 0.0  ;;  %12671 = vmatprep.mubr.bf16.mxu1 %v15298_v14 }
 0x6a6   : > { %v15489_v48 = vpack.c.bf16 %v6176_v63, %v6175_v56 }
 0x6a7   : > { %v15491_v46 = vpack.c.bf16 %v6174_v36, %v6173_v2 }
 0x6ac   : > { %12672 = vmatmul.mubr.bf16.gmra.mrb[220].mxu1 %v15295_v8 }
 0x6ad   : > { %12675 = vmatprep.mubr.bf16.mxu1 %v15316_v54 }
 0x6af   : > { %v12589_v1 = vpop.f32.mrb[152].mxu1 }
 0x6b0   : > { %v5939_v55 = vadd.f32 %v15388_v58, %v12589_v1  ;;  %v5930_v62 = vpop.f32.mrb[153].mxu1 }
 0x6b1   : > { %v5931_v3 = vadd.f32 %v15388_v58, %v5930_v62  ;;  %v12590_v41 = vpop.f32.mrb[154].mxu1 }
 0x6b2   : > { %v5942_v15 = vadd.f32 %v15388_v58, %v12590_v41  ;;  %v5933_v13 = vpop.f32.mrb[155].mxu1  ;;  %v6179_v52 = vmax.f32 %v5939_v55, 0.0 }
 0x6b3   : > { %v5934_v14 = vadd.f32 %v15388_v58, %v5933_v13  ;;  %v6177_v26 = vmax.f32 %v5931_v3, 0.0 }
 0x6b4   : > { %v6180_v28 = vmax.f32 %v5942_v15, 0.0  ;;  %12676 = vmatmul.mubr.bf16.gmra.mrb[224].mxu1 %v15307_v4 }
 0x6b5   : > { %v6178_v8 = vmax.f32 %v5934_v14, 0.0  ;;  %12679 = vmatprep.mubr.bf16.mxu1 %v15329_v27 }
 0x6b6   : > { %v15501_v54 = vpack.c.bf16 %v6180_v28, %v6179_v52 }
 0x6b7   : > { %v15503_v10 = vpack.c.bf16 %v6178_v8, %v6177_v26 }
 0x6bc   : > { %12680 = vmatmul.mubr.bf16.gmra.mrb[228].mxu1 %v15326_v32 }
 0x6bd   : > { %12683 = vmatprep.mubr.bf16.mxu1 %v15341_v39 }
 0x6bf   : > { %v12593_v9 = vpop.f32.mrb[156].mxu1 }
 0x6c0   : > { %v5955_v50 = vadd.f32 %v15388_v58, %v12593_v9  ;;  %v5946_v29 = vpop.f32.mrb[157].mxu1 }
 0x6c1   : > { %v5947_v45 = vadd.f32 %v15388_v58, %v5946_v29  ;;  %v12594_v4 = vpop.f32.mrb[158].mxu1 }
 0x6c2   : > { %v5958_v30 = vadd.f32 %v15388_v58, %v12594_v4  ;;  %v5949_v11 = vpop.f32.mrb[159].mxu1  ;;  %v6183_v61 = vmax.f32 %v5955_v50, 0.0 }
 0x6c3   : > { %v5950_v27 = vadd.f32 %v15388_v58, %v5949_v11  ;;  %v6181_v32 = vmax.f32 %v5947_v45, 0.0 }
 0x6c4   : > { %v6184_v31 = vmax.f32 %v5958_v30, 0.0  ;;  %12684 = vmatmul.mubr.bf16.gmra.mrb[232].mxu1 %v15338_v12 }
 0x6c5   : > { %v6182_v24 = vmax.f32 %v5950_v27, 0.0  ;;  %12687 = vmatprep.mubr.bf16.mxu1 %v15356_v47 }
 0x6c6   : > { %v15513_v39 = vpack.c.bf16 %v6184_v31, %v6183_v61 }
 0x6c7   : > { %v15515_v34 = vpack.c.bf16 %v6182_v24, %v6181_v32 }
 0x6cc   : > { %12688 = vmatmul.mubr.bf16.gmra.mrb[236].mxu1 %v15350_v42 }
 0x6cd   : > { %12691 = vmatprep.mubr.bf16.mxu1 %v15369_v16 }
 0x6cf   : > { %v12597_v35 = vpop.f32.mrb[160].mxu1 }
 0x6d0   : > { %v5971_v38 = vadd.f32 %v15388_v58, %v12597_v35  ;;  %v5962_v60 = vpop.f32.mrb[161].mxu1 }
 0x6d1   : > { %v5963_v12 = vadd.f32 %v15388_v58, %v5962_v60  ;;  %v12598_v7 = vpop.f32.mrb[162].mxu1 }
 0x6d2   : > { %v5974_v47 = vadd.f32 %v15388_v58, %v12598_v7  ;;  %v5965_v33 = vpop.f32.mrb[163].mxu1  ;;  %v6187_v23 = vmax.f32 %v5971_v38, 0.0 }
 0x6d3   : > { %v5966_v18 = vadd.f32 %v15388_v58, %v5965_v33  ;;  %v6185_v16 = vmax.f32 %v5963_v12, 0.0 }
 0x6d4   : > { %v6188_v42 = vmax.f32 %v5974_v47, 0.0  ;;  %12692 = vmatmul.mubr.bf16.gmra.mrb[240].mxu1 %v15366_v22 }
 0x6d5   : > { %v6186_v56 = vmax.f32 %v5966_v18, 0.0  ;;  %12695 = vmatprep.mubr.bf16.mxu1 %v15381_v49 }
 0x6d6   : > { %v15527_v63 = vpack.c.bf16 %v6188_v42, %v6187_v23 }
 0x6d7   : > { %v15529_v2 = vpack.c.bf16 %v6186_v56, %v6185_v16 }
 0x6dc   : > { %12696 = vmatmul.mubr.bf16.gmra.mrb[244].mxu1 %v15378_v6 }
 0x6dd   : > { %12699 = vmatprep.mubr.bf16.mxu1 %v15401_v19 }
 0x6df   : > { %v12601_v36 = vpop.f32.mrb[164].mxu1 }
 0x6e0   : > { %v5987_v1 = vadd.f32 %v15388_v58, %v12601_v36  ;;  %v5978_v55 = vpop.f32.mrb[165].mxu1 }
 0x6e1   : > { %v5979_v62 = vadd.f32 %v15388_v58, %v5978_v55  ;;  %v12602_v3 = vpop.f32.mrb[166].mxu1 }
 0x6e2   : > { %v5990_v22 = vadd.f32 %v15388_v58, %v12602_v3  ;;  %v5981_v41 = vpop.f32.mrb[167].mxu1  ;;  %v6191_v15 = vmax.f32 %v5987_v1, 0.0 }
 0x6e3   : > { %v5982_v49 = vadd.f32 %v15388_v58, %v5981_v41  ;;  %v6189_v14 = vmax.f32 %v5979_v62, 0.0 }
 0x6e4   : > { %v6192_v13 = vmax.f32 %v5990_v22, 0.0  ;;  %12700 = vmatmul.mubr.bf16.gmra.mrb[248].mxu1 %v15395_v25 }
 0x6e5   : > { %v6190_v6 = vmax.f32 %v5982_v49, 0.0  ;;  %12703 = vmatprep.mubr.bf16.mxu1 %v15414_v37 }
 0x6e6   : > { %v15539_v19 = vpack.c.bf16 %v6192_v13, %v6191_v15 }
 0x6e7   : > { %v15541_v52 = vpack.c.bf16 %v6190_v6, %v6189_v14 }
 0x6ec   : > { %12704 = vmatmul.mubr.bf16.gmra.mrb[252].mxu1 %v15411_v0 }
 0x6ed   : > { %12707 = vmatprep.mubr.bf16.mxu1 %v15428_v17 }
 0x6ef   : > { %v12605_v28 = vpop.f32.mrb[168].mxu1 }
 0x6f0   : > { %v6003_v26 = vadd.f32 %v15388_v58, %v12605_v28  ;;  %v5994_v8 = vpop.f32.mrb[169].mxu1 }
 0x6f1   : > { %v5995_v9 = vadd.f32 %v15388_v58, %v5994_v8  ;;  %v12606_v50 = vpop.f32.mrb[170].mxu1 }
 0x6f2   : > { %v6006_v25 = vadd.f32 %v15388_v58, %v12606_v50  ;;  %v5997_v29 = vpop.f32.mrb[171].mxu1  ;;  %v6195_v45 = vmax.f32 %v6003_v26, 0.0 }
 0x6f3   : > { %v5998_v37 = vadd.f32 %v15388_v58, %v5997_v29  ;;  %v6193_v30 = vmax.f32 %v5995_v9, 0.0 }
 0x6f4   : > { %v6196_v4 = vmax.f32 %v6006_v25, 0.0  ;;  %12708 = vmatmul.mubr.bf16.gmra.mrb[0].mxu1 %v15423_v43 }
 0x6f5   : > { %v6194_v0 = vmax.f32 %v5998_v37, 0.0  ;;  %12711 = vmatprep.mubr.bf16.mxu1 %v15439_v5 }
 0x6f6   : > { %v15551_v17 = vpack.c.bf16 %v6196_v4, %v6195_v45 }
 0x6f7   : > { %v15553_v11 = vpack.c.bf16 %v6194_v0, %v6193_v30 }
 0x6fc   : > { %12712 = vmatmul.mubr.bf16.gmra.mrb[4].mxu1 %v15434_v57 }
 0x6fd   : > { %12715 = vmatprep.mubr.bf16.mxu1 %v15451_v51 }
 0x6ff   : > { %v12609_v27 = vpop.f32.mrb[172].mxu1 }
 0x700   : > { %v6019_v61 = vadd.f32 %v15388_v58, %v12609_v27  ;;  %v6010_v31 = vpop.f32.mrb[173].mxu1 }
 0x701   : > { %v6011_v32 = vadd.f32 %v15388_v58, %v6010_v31  ;;  %v12610_v24 = vpop.f32.mrb[174].mxu1 }
 0x702   : > { %v6022_v43 = vadd.f32 %v15388_v58, %v12610_v24  ;;  %v6013_v21 = vpop.f32.mrb[175].mxu1  ;;  %v6199_v35 = vmax.f32 %v6019_v61, 0.0 }
 0x703   : > { %v6014_v5 = vadd.f32 %v15388_v58, %v6013_v21  ;;  %v6197_v60 = vmax.f32 %v6011_v32, 0.0 }
 0x704   : > { %v6200_v38 = vmax.f32 %v6022_v43, 0.0  ;;  %12716 = vmatmul.mubr.bf16.gmra.mrb[8].mxu1 %v15449_v44 }
 0x705   : > { %v6198_v57 = vmax.f32 %v6014_v5, 0.0  ;;  %12719 = vmatprep.mubr.bf16.mxu1 %v15463_v59 }
 0x706   : > { %v15563_v51 = vpack.c.bf16 %v6200_v38, %v6199_v35 }
 0x707   : > { %v15565_v12 = vpack.c.bf16 %v6198_v57, %v6197_v60 }
 0x70c   : > { %12720 = vmatmul.mubr.bf16.gmra.mrb[12].mxu1 %v15461_v20 }
 0x70d   : > { %12723 = vmatprep.mubr.bf16.mxu1 %v15475_v40 }
 0x70f   : > { %v12613_v7 = vpop.f32.mrb[176].mxu1 }
 0x710   : > { %v6035_v47 = vadd.f32 %v15388_v58, %v12613_v7  ;;  %v6026_v33 = vpop.f32.mrb[177].mxu1 }
 0x711   : > { %v6027_v18 = vadd.f32 %v15388_v58, %v6026_v33  ;;  %v12614_v23 = vpop.f32.mrb[178].mxu1 }
 0x712   : > { %v6038_v44 = vadd.f32 %v15388_v58, %v12614_v23  ;;  %v6029_v42 = vpop.f32.mrb[179].mxu1  ;;  %v6203_v16 = vmax.f32 %v6035_v47, 0.0 }
 0x713   : > { %v6030_v59 = vadd.f32 %v15388_v58, %v6029_v42  ;;  %v6201_v36 = vmax.f32 %v6027_v18, 0.0 }
 0x714   : > { %v6204_v56 = vmax.f32 %v6038_v44, 0.0  ;;  %12724 = vmatmul.mubr.bf16.gmra.mrb[16].mxu1 %v15473_v53 }
 0x715   : > { %v6202_v20 = vmax.f32 %v6030_v59, 0.0  ;;  %12727 = vmatprep.mubr.bf16.mxu1 %v15491_v46  ;;  %v13057_v59 = vld [vmem:[%s13986_s25 + $0x8] sm:$0xff]  }
 0x716   : > { %v15575_v40 = vpack.c.bf16 %v6204_v56, %v6203_v16 }
 0x717   : > { %v15577_v1 = vpack.c.bf16 %v6202_v20, %v6201_v36 }
 0x71c   : > { %12728 = vmatmul.mubr.bf16.gmra.mrb[20].mxu1 %v15489_v48 }
 0x71d   : > { %12731 = vmatprep.mubr.bf16.mxu1 %v15503_v10 }
 0x71f   : > { %v12617_v55 = vpop.f32.mrb[180].mxu1 }
 0x720   : > { %v6051_v62 = vadd.f32 %v15388_v58, %v12617_v55  ;;  %v6042_v3 = vpop.f32.mrb[181].mxu1 }
 0x721   : > { %v6043_v22 = vadd.f32 %v15388_v58, %v6042_v3  ;;  %v12618_v41 = vpop.f32.mrb[182].mxu1 }
 0x722   : > { %v6054_v53 = vadd.f32 %v15388_v58, %v12618_v41  ;;  %v6045_v49 = vpop.f32.mrb[183].mxu1  ;;  %v6207_v15 = vmax.f32 %v6051_v62, 0.0 }
 0x723   : > { %v6046_v46 = vadd.f32 %v15388_v58, %v6045_v49  ;;  %v6205_v14 = vmax.f32 %v6043_v22, 0.0 }
 0x724   : > { %v6208_v13 = vmax.f32 %v6054_v53, 0.0  ;;  %12732 = vmatmul.mubr.bf16.gmra.mrb[24].mxu1 %v15501_v54 }
 0x725   : > { %v6206_v48 = vmax.f32 %v6046_v46, 0.0  ;;  %12735 = vmatprep.mubr.bf16.mxu1 %v15515_v34 }
 0x726   : > { %v15587_v10 = vpack.c.bf16 %v6208_v13, %v6207_v15  ;;  %v13058_v15 = vld [vmem:[%s13986_s25 + $0x10] sm:$0xff]  }
 0x727   : > { %v15589_v6 = vpack.c.bf16 %v6206_v48, %v6205_v14 }
 0x72c   : > { %12736 = vmatmul.mubr.bf16.gmra.mrb[28].mxu1 %v15513_v39 }
 0x72d   : > { %12739 = vmatprep.mubr.bf16.mxu1 %v15529_v2 }
 0x72f   : > { %v12621_v28 = vpop.f32.mrb[184].mxu1 }
 0x730   : > { %v6067_v26 = vadd.f32 %v15388_v58, %v12621_v28  ;;  %v6058_v8 = vpop.f32.mrb[185].mxu1 }
 0x731   : > { %v6059_v9 = vadd.f32 %v15388_v58, %v6058_v8  ;;  %v12622_v50 = vpop.f32.mrb[186].mxu1 }
 0x732   : > { %v6070_v54 = vadd.f32 %v15388_v58, %v12622_v50  ;;  %v6061_v25 = vpop.f32.mrb[187].mxu1  ;;  %v6211_v29 = vmax.f32 %v6067_v26, 0.0 }
 0x733   : > { %v6062_v34 = vadd.f32 %v15388_v58, %v6061_v25  ;;  %v6209_v45 = vmax.f32 %v6059_v9, 0.0 }
 0x734   : > { %v6212_v37 = vmax.f32 %v6070_v54, 0.0  ;;  %12740 = vmatmul.mubr.bf16.gmra.mrb[32].mxu1 %v15527_v63 }
 0x735   : > { %v6210_v39 = vmax.f32 %v6062_v34, 0.0  ;;  %12743 = vmatprep.mubr.bf16.mxu1 %v15541_v52 }
 0x736   : > { %v15599_v2 = vpack.c.bf16 %v6212_v37, %v6211_v29  ;;  %v13059_v37 = vld [vmem:[%s13986_s25 + $0x18] sm:$0xff]  }
 0x737   : > { %v15601_v4 = vpack.c.bf16 %v6210_v39, %v6209_v45 }
 0x73c   : > { %12744 = vmatmul.mubr.bf16.gmra.mrb[36].mxu1 %v15539_v19 }
 0x73d   : > { %12747 = vmatprep.mubr.bf16.mxu1 %v15553_v11  ;;  %v15614_v11 = vld [vmem:[%s16967_s15] ss:$0 sm:$0xff] }
 0x73f   : > { %v12625_v30 = vpop.f32.mrb[188].mxu1 }
 0x740   : > { %v6083_v0 = vadd.f32 %v15388_v58, %v12625_v30  ;;  %v6074_v27 = vpop.f32.mrb[189].mxu1 }
 0x741   : > { %v6075_v61 = vadd.f32 %v15388_v58, %v6074_v27  ;;  %v12626_v31 = vpop.f32.mrb[190].mxu1 }
 0x742   : > { %v6086_v63 = vadd.f32 %v15388_v58, %v12626_v31  ;;  %v6077_v32 = vpop.f32.mrb[191].mxu1  ;;  %v6215_v24 = vmax.f32 %v6083_v0, 0.0 }
 0x743   : > { %v6078_v52 = vadd.f32 %v15388_v58, %v6077_v32  ;;  %v6213_v21 = vmax.f32 %v6075_v61, 0.0 }
 0x744   : > { %v6216_v43 = vmax.f32 %v6086_v63, 0.0  ;;  %12748 = vmatmul.mubr.bf16.gmra.mrb[40].mxu1 %v15551_v17 }
 0x745   : > { %v6214_v19 = vmax.f32 %v6078_v52, 0.0  ;;  %12751 = vmatprep.mubr.bf16.mxu1 %v15565_v12 }
 0x746   : > { %v15616_v5 = vpack.c.bf16 %v6216_v43, %v6215_v24 }
 0x747   : > { %v12645_v35 = vpop.f32.mrb[192].mxu1  ;;  %v15618_v38 = vpack.c.bf16 %v6214_v19, %v6213_v21  ;;  %v13060_v21 = vld [vmem:[%s13986_s25 + $0x20] sm:$0xff]  }
 0x748   : > { %v6395_v58 = vadd.f32 %v12645_v35, %v15614_v11  ;;  %v6386_v60 = vpop.f32.mrb[193].mxu1 }
 0x749   : > { %v6387_v17 = vadd.f32 %v15614_v11, %v6386_v60  ;;  %v12646_v57 = vpop.f32.mrb[194].mxu1 }
 0x74a   : > { %v6398_v7 = vadd.f32 %v12646_v57, %v15614_v11  ;;  %v6389_v12 = vpop.f32.mrb[195].mxu1  ;;  %v6899_v33 = vmax.f32 %v6395_v58, 0.0 }
 0x74b   : > { %v6390_v47 = vadd.f32 %v15614_v11, %v6389_v12  ;;  %v6897_v23 = vmax.f32 %v6387_v17, 0.0 }
 0x74c   : > { %v6900_v18 = vmax.f32 %v6398_v7, 0.0  ;;  %12752 = vmatmul.mubr.bf16.gmra.mrb[44].mxu1 %v15563_v51 }
 0x74d   : > { %v6898_v44 = vmax.f32 %v6390_v47, 0.0  ;;  %12755 = vmatprep.mubr.bf16.mxu1 %v15577_v1 }
 0x74e   : > { %v7026_v42 = vpack.c.bf16 %v6900_v18, %v6899_v33 }
 0x74f   : > { %v7025_v16 = vpack.c.bf16 %v6898_v44, %v6897_v23  ;;  %v12649_v56 = vpop.f32.mrb[196].mxu1  ;;  %v13061_v44 = vld [vmem:[%s13986_s25 + $0x28] sm:$0xff]  }
 0x750   : > { %v6411_v36 = vadd.f32 %v12649_v56, %v15614_v11  ;;  %v6402_v20 = vpop.f32.mrb[197].mxu1 }
 0x751   : > { %v6403_v55 = vadd.f32 %v15614_v11, %v6402_v20  ;;  %v12650_v62 = vpop.f32.mrb[198].mxu1  ;;  %7728 = vmatmul.mubr.bf16.vlgmr.msra.gmra.mrb[192].mxu0 %v7025_v16 }
 0x752   : > { %v6414_v3 = vadd.f32 %v12650_v62, %v15614_v11  ;;  %v6405_v22 = vpop.f32.mrb[199].mxu1  ;;  %11157 = vmatprep.mubr.msk.bf16.mxu0 %vm7495_vm5, %v13057_v59  ;;  %v6903_v1 = vmax.f32 %v6411_v36, 0.0 }
 0x753   : > { %v6406_v51 = vadd.f32 %v15614_v11, %v6405_v22  ;;  %v6901_v53 = vmax.f32 %v6403_v55, 0.0 }
 0x754   : > { %v6904_v41 = vmax.f32 %v6414_v3, 0.0  ;;  %12756 = vmatmul.mubr.bf16.gmra.mrb[48].mxu1 %v15575_v40 }
 0x755   : > { %v6902_v49 = vmax.f32 %v6406_v51, 0.0  ;;  %12759 = vmatprep.mubr.bf16.mxu1 %v15589_v6 }
 0x756   : > { %v7028_v46 = vpack.c.bf16 %v6904_v41, %v6903_v1 }
 0x757   : > { %v7027_v13 = vpack.c.bf16 %v6902_v49, %v6901_v53  ;;  %v12653_v14 = vpop.f32.mrb[200].mxu1  ;;  %v13062_v53 = vld [vmem:[%s13986_s25 + $0x30] sm:$0xff]  }
 0x758   : > { %v6427_v48 = vadd.f32 %v12653_v14, %v15614_v11  ;;  %v6418_v28 = vpop.f32.mrb[201].mxu1 }
 0x759   : > { %v6419_v26 = vadd.f32 %v15614_v11, %v6418_v28  ;;  %v12654_v8 = vpop.f32.mrb[202].mxu1  ;;  %7736 = vmatmul.mubr.bf16.gmra.mrb[196].mxu0 %v7026_v42 }
 0x75a   : > { %v6430_v9 = vadd.f32 %v12654_v8, %v15614_v11  ;;  %v6421_v50 = vpop.f32.mrb[203].mxu1  ;;  %11158 = vmatprep.mubr.msk.bf16.mxu0 %vm7495_vm5, %v13058_v15  ;;  %v6907_v6 = vmax.f32 %v6427_v48, 0.0 }
 0x75b   : > { %v6422_v40 = vadd.f32 %v15614_v11, %v6421_v50  ;;  %v6905_v25 = vmax.f32 %v6419_v26, 0.0 }
 0x75c   : > { %v6908_v54 = vmax.f32 %v6430_v9, 0.0  ;;  %12760 = vmatmul.mubr.bf16.gmra.mrb[52].mxu1 %v15587_v10 }
 0x75d   : > { %v6906_v34 = vmax.f32 %v6422_v40, 0.0  ;;  %12763 = vmatprep.mubr.bf16.mxu1 %v15601_v4 }
 0x75e   : > { %v7030_v29 = vpack.c.bf16 %v6908_v54, %v6907_v6 }
 0x75f   : > { %v7029_v45 = vpack.c.bf16 %v6906_v34, %v6905_v25  ;;  %v12657_v39 = vpop.f32.mrb[204].mxu1  ;;  %v13063_v25 = vld [vmem:[%s13986_s25 + $0x38] sm:$0xff]  }
 0x760   : > { %v6443_v30 = vadd.f32 %v12657_v39, %v15614_v11  ;;  %v6434_v0 = vpop.f32.mrb[205].mxu1 }
 0x761   : > { %v6435_v27 = vadd.f32 %v15614_v11, %v6434_v0  ;;  %v12658_v61 = vpop.f32.mrb[206].mxu1  ;;  %7744 = vmatmul.mubr.bf16.gmra.mrb[200].mxu0 %v7027_v13 }
 0x762   : > { %v6446_v31 = vadd.f32 %v12658_v61, %v15614_v11  ;;  %v6437_v63 = vpop.f32.mrb[207].mxu1  ;;  %11159 = vmatprep.mubr.msk.bf16.mxu0 %vm7495_vm5, %v13059_v37  ;;  %v6911_v4 = vmax.f32 %v6443_v30, 0.0 }
 0x763   : > { %v6438_v10 = vadd.f32 %v15614_v11, %v6437_v63  ;;  %v6909_v52 = vmax.f32 %v6435_v27, 0.0 }
 0x764   : > { %v6912_v32 = vmax.f32 %v6446_v31, 0.0  ;;  %12764 = vmatmul.mubr.bf16.gmra.mrb[56].mxu1 %v15599_v2 }
 0x765   : > { %v6910_v24 = vmax.f32 %v6438_v10, 0.0  ;;  %12767 = vmatprep.mubr.bf16.mxu1 %v15618_v38 }
 0x766   : > { %v15650_v43 = vpack.c.bf16 %v6912_v32, %v6911_v4 }
 0x767   : > { %v7031_v19 = vpack.c.bf16 %v6910_v24, %v6909_v52  ;;  %v12661_v35 = vpop.f32.mrb[208].mxu1  ;;  %v13064_v52 = vld [vmem:[%s13986_s25 + $0x40] sm:$0xff]  }
 0x768   : > { %v6459_v58 = vadd.f32 %v12661_v35, %v15614_v11  ;;  %v6450_v60 = vpop.f32.mrb[209].mxu1 }
 0x769   : > { %v6451_v17 = vadd.f32 %v15614_v11, %v6450_v60  ;;  %v12662_v57 = vpop.f32.mrb[210].mxu1  ;;  %7752 = vmatmul.mubr.bf16.gmra.mrb[204].mxu0 %v7028_v46 }
 0x76a   : > { %v6462_v7 = vadd.f32 %v12662_v57, %v15614_v11  ;;  %v6453_v2 = vpop.f32.mrb[211].mxu1  ;;  %11160 = vmatprep.mubr.msk.bf16.mxu0 %vm7495_vm5, %v13060_v21  ;;  %v6915_v12 = vmax.f32 %v6459_v58, 0.0 }
 0x76b   : > { %v6454_v38 = vadd.f32 %v15614_v11, %v6453_v2  ;;  %v6913_v33 = vmax.f32 %v6451_v17, 0.0 }
 0x76c   : > { %v6916_v47 = vmax.f32 %v6462_v7, 0.0  ;;  %12768 = vmatmul.mubr.bf16.gmra.mrb[60].mxu1 %v15616_v5 }
 0x76d   : > { %v6914_v18 = vmax.f32 %v6454_v38, 0.0 }
 0x76e   : > { %v15659_v23 = vpack.c.bf16 %v6916_v47, %v6915_v12 }
 0x76f   : > { %v15662_v42 = vpack.c.bf16 %v6914_v18, %v6913_v33  ;;  %v12665_v59 = vpop.f32.mrb[212].mxu1  ;;  %v13065_v18 = vld [vmem:[%s13986_s25 + $0x48] sm:$0xff]  }
 0x770   : > { %v6475_v16 = vadd.f32 %v12665_v59, %v15614_v11  ;;  %v6466_v56 = vpop.f32.mrb[213].mxu1 }
 0x771   : > { %v6467_v36 = vadd.f32 %v15614_v11, %v6466_v56  ;;  %v12666_v20 = vpop.f32.mrb[214].mxu1  ;;  %7760 = vmatmul.mubr.bf16.gmra.mrb[208].mxu0 %v7029_v45 }
 0x772   : > { %v6478_v55 = vadd.f32 %v12666_v20, %v15614_v11  ;;  %v6469_v62 = vpop.f32.mrb[215].mxu1  ;;  %11161 = vmatprep.mubr.msk.bf16.mxu0 %vm7495_vm5, %v13061_v44  ;;  %v6919_v3 = vmax.f32 %v6475_v16, 0.0 }
 0x773   : > { %v6470_v5 = vadd.f32 %v15614_v11, %v6469_v62  ;;  %v6917_v51 = vmax.f32 %v6467_v36, 0.0 }
 0x774   : > { %v6920_v22 = vmax.f32 %v6478_v55, 0.0 }
 0x775   : > { %v6918_v1 = vmax.f32 %v6470_v5, 0.0 }
 0x776   : > { %v15669_v41 = vpack.c.bf16 %v6920_v22, %v6919_v3 }
 0x777   : > { %v15672_v49 = vpack.c.bf16 %v6918_v1, %v6917_v51  ;;  %v12669_v46 = vpop.f32.mrb[216].mxu1 }
 0x778   : > { %v6491_v15 = vadd.f32 %v12669_v46, %v15614_v11  ;;  %v6482_v13 = vpop.f32.mrb[217].mxu1 }
 0x779   : > { %v6483_v14 = vadd.f32 %v15614_v11, %v6482_v13  ;;  %v12670_v48 = vpop.f32.mrb[218].mxu1  ;;  %7768 = vmatmul.mubr.bf16.gmra.mrb[212].mxu0 %v7030_v29 }
 0x77a   : > { %v6494_v28 = vadd.f32 %v12670_v48, %v15614_v11  ;;  %v6485_v26 = vpop.f32.mrb[219].mxu1  ;;  %11162 = vmatprep.mubr.msk.bf16.mxu0 %vm7495_vm5, %v13062_v53  ;;  %v6923_v9 = vmax.f32 %v6491_v15, 0.0  ;;  %v13066_v53 = vld [vmem:[%s13986_s25 + $0x50] sm:$0xff]  }
 0x77b   : > { %v6486_v8 = vadd.f32 %v15614_v11, %v6485_v26  ;;  %v6921_v40 = vmax.f32 %v6483_v14, 0.0 }
 0x77c   : > { %v6924_v50 = vmax.f32 %v6494_v28, 0.0 }
 0x77d   : > { %v6922_v6 = vmax.f32 %v6486_v8, 0.0 }
 0x77e   : > { %v15679_v54 = vpack.c.bf16 %v6924_v50, %v6923_v9 }
 0x77f   : > { %v15682_v34 = vpack.c.bf16 %v6922_v6, %v6921_v40  ;;  %v12673_v37 = vpop.f32.mrb[220].mxu1 }
 0x780   : > { %v6507_v29 = vadd.f32 %v12673_v37, %v15614_v11  ;;  %v6498_v45 = vpop.f32.mrb[221].mxu1  ;;  %v13067_v37 = vld [vmem:[%s13986_s25 + $0x58] sm:$0xff]  }
 0x781   : > { %v6499_v39 = vadd.f32 %v15614_v11, %v6498_v45  ;;  %v12674_v30 = vpop.f32.mrb[222].mxu1  ;;  %7776 = vmatmul.mubr.bf16.gmra.mrb[216].mxu0 %v7031_v19 }
 0x782   : > { %v6510_v0 = vadd.f32 %v12674_v30, %v15614_v11  ;;  %v6501_v27 = vpop.f32.mrb[223].mxu1  ;;  %11163 = vmatprep.mubr.msk.bf16.mxu0 %vm7495_vm5, %v13063_v25  ;;  %v6927_v31 = vmax.f32 %v6507_v29, 0.0 }
 0x783   : > { %v6502_v61 = vadd.f32 %v15614_v11, %v6501_v27  ;;  %v6925_v10 = vmax.f32 %v6499_v39, 0.0 }
 0x784   : > { %v6928_v63 = vmax.f32 %v6510_v0, 0.0 }
 0x785   : > { %v6926_v4 = vmax.f32 %v6502_v61, 0.0 }
 0x786   : > { %v15689_v32 = vpack.c.bf16 %v6928_v63, %v6927_v31  ;;  %v13083_v63 = vld [vmem:[%s16970_s18] sm:$0xff]  }
 0x787   : > { %v15692_v24 = vpack.c.bf16 %v6926_v4, %v6925_v10  ;;  %v12677_v21 = vpop.f32.mrb[224].mxu1  ;;  %12771 = vmatprep.subr.bf16.mxu1 %v13083_v63 }
 0x788   : > { %v6523_v19 = vadd.f32 %v12677_v21, %v15614_v11  ;;  %v6514_v35 = vpop.f32.mrb[225].mxu1  ;;  %12772 = vmatpush3.bf16.msra.mxu1 %v13083_v63  ;;  %v13071_v63 = vld [vmem:[%s13986_s25 + $0x78] sm:$0xff]  }
 0x789   : > { %v6515_v58 = vadd.f32 %v15614_v11, %v6514_v35  ;;  %v12678_v60 = vpop.f32.mrb[226].mxu1  ;;  %7784 = vmatmul.mubr.bf16.gmra.mrb[220].mxu0 %v15650_v43  ;;  %v13068_v35 = vld [vmem:[%s13986_s25 + $0x60] sm:$0xff]  }
 0x78a   : > { %v6526_v17 = vadd.f32 %v12678_v60, %v15614_v11  ;;  %v6517_v57 = vpop.f32.mrb[227].mxu1  ;;  %11164 = vmatprep.mubr.msk.bf16.mxu0 %vm7495_vm5, %v13064_v52  ;;  %v6931_v2 = vmax.f32 %v6523_v19, 0.0  ;;  %v13085_v60 = vld [vmem:[%s16970_s18 + $0x8] sm:$0xff]  }
 0x78b   : > { %v6518_v7 = vadd.f32 %v15614_v11, %v6517_v57  ;;  %v6929_v12 = vmax.f32 %v6515_v58, 0.0  ;;  %12773 = vmatprep.subr.bf16.mxu1 %v13085_v60 }
 0x78c   : > { %v6932_v38 = vmax.f32 %v6526_v17, 0.0  ;;  %12774 = vmatpush3.bf16.msra.mxu1 %v13085_v60 }
 0x78d   : > { %v6930_v47 = vmax.f32 %v6518_v7, 0.0 }
 0x78e   : > { %v15700_v33 = vpack.c.bf16 %v6932_v38, %v6931_v2 }
 0x78f   : > { %v15703_v44 = vpack.c.bf16 %v6930_v47, %v6929_v12  ;;  %v12681_v59 = vpop.f32.mrb[228].mxu1 }
 0x790   : > { %v6539_v43 = vadd.f32 %v12681_v59, %v15614_v11  ;;  %v6530_v16 = vpop.f32.mrb[229].mxu1 }
 0x791   : > { %v6531_v56 = vadd.f32 %v15614_v11, %v6530_v16  ;;  %v12682_v36 = vpop.f32.mrb[230].mxu1  ;;  %7792 = vmatmul.mubr.bf16.gmra.mrb[224].mxu0 %v15662_v42 }
 0x792   : > { %v6542_v20 = vadd.f32 %v12682_v36, %v15614_v11  ;;  %v6533_v55 = vpop.f32.mrb[231].mxu1  ;;  %11165 = vmatprep.mubr.msk.bf16.mxu0 %vm7495_vm5, %v13065_v18  ;;  %v6935_v5 = vmax.f32 %v6539_v43, 0.0  ;;  %v13086_v18 = vld [vmem:[%s16970_s18 + $0x10] sm:$0xff]  }
 0x793   : > { %v6534_v62 = vadd.f32 %v15614_v11, %v6533_v55  ;;  %v6933_v22 = vmax.f32 %v6531_v56, 0.0  ;;  %12775 = vmatprep.subr.bf16.mxu1 %v13086_v18 }
 0x794   : > { %v6936_v3 = vmax.f32 %v6542_v20, 0.0  ;;  %12776 = vmatpush3.bf16.msra.mxu1 %v13086_v18 }
 0x795   : > { %v6934_v51 = vmax.f32 %v6534_v62, 0.0  ;;  %v13088_v62 = vld [vmem:[%s16970_s18 + $0x18] sm:$0xff]  }
 0x796   : > { %v15711_v1 = vpack.c.bf16 %v6936_v3, %v6935_v5  ;;  %12777 = vmatprep.subr.bf16.mxu1 %v13088_v62 }
 0x797   : > { %v15714_v46 = vpack.c.bf16 %v6934_v51, %v6933_v22  ;;  %v12685_v15 = vpop.f32.mrb[232].mxu1 }
 0x798   : > { %v6555_v42 = vadd.f32 %v12685_v15, %v15614_v11  ;;  %v6546_v13 = vpop.f32.mrb[233].mxu1  ;;  %12778 = vmatpush3.bf16.msra.mxu1 %v13088_v62 }
 0x799   : > { %v6547_v14 = vadd.f32 %v15614_v11, %v6546_v13  ;;  %v12686_v48 = vpop.f32.mrb[234].mxu1  ;;  %7800 = vmatmul.mubr.bf16.gmra.mrb[228].mxu0 %v15659_v23 }
 0x79a   : > { %v6558_v28 = vadd.f32 %v12686_v48, %v15614_v11  ;;  %v6549_v26 = vpop.f32.mrb[235].mxu1  ;;  %11166 = vmatprep.mubr.msk.bf16.mxu0 %vm7495_vm5, %v13066_v53  ;;  %v6939_v9 = vmax.f32 %v6555_v42, 0.0 }
 0x79b   : > { %v6550_v8 = vadd.f32 %v15614_v11, %v6549_v26  ;;  %v6937_v40 = vmax.f32 %v6547_v14, 0.0 }
 0x79c   : > { %v6940_v50 = vmax.f32 %v6558_v28, 0.0 }
 0x79d   : > { %v6938_v6 = vmax.f32 %v6550_v8, 0.0  ;;  %v13070_v8 = vld [vmem:[%s13986_s25 + $0x70] sm:$0xff]  }
 0x79e   : > { %v15722_v25 = vpack.c.bf16 %v6940_v50, %v6939_v9 }
 0x79f   : > { %v15725_v29 = vpack.c.bf16 %v6938_v6, %v6937_v40  ;;  %v12689_v45 = vpop.f32.mrb[236].mxu1 }
 0x7a0   : > { %v6571_v39 = vadd.f32 %v12689_v45, %v15614_v11  ;;  %v6562_v23 = vpop.f32.mrb[237].mxu1 }
 0x7a1   : > { %v6563_v30 = vadd.f32 %v15614_v11, %v6562_v23  ;;  %v12690_v0 = vpop.f32.mrb[238].mxu1  ;;  %7808 = vmatmul.mubr.bf16.gmra.mrb[232].mxu0 %v15672_v49 }
 0x7a2   : > { %v6574_v27 = vadd.f32 %v12690_v0, %v15614_v11  ;;  %v6565_v61 = vpop.f32.mrb[239].mxu1  ;;  %11167 = vmatprep.mubr.msk.bf16.mxu0 %vm7495_vm5, %v13067_v37  ;;  %v6943_v10 = vmax.f32 %v6571_v39, 0.0 }
 0x7a3   : > { %v6566_v31 = vadd.f32 %v15614_v11, %v6565_v61  ;;  %v6941_v52 = vmax.f32 %v6563_v30, 0.0 }
 0x7a4   : > { %v6944_v4 = vmax.f32 %v6574_v27, 0.0 }
 0x7a5   : > { %v6942_v21 = vmax.f32 %v6566_v31, 0.0 }
 0x7a6   : > { %v15736_v19 = vpack.c.bf16 %v6944_v4, %v6943_v10 }
 0x7a7   : > { %v15739_v49 = vpack.c.bf16 %v6942_v21, %v6941_v52  ;;  %v12693_v58 = vpop.f32.mrb[240].mxu1 }
 0x7a8   : > { %v6587_v17 = vadd.f32 %v12693_v58, %v15614_v11  ;;  %v6578_v57 = vpop.f32.mrb[241].mxu1 }
 0x7a9   : > { %v6579_v7 = vadd.f32 %v15614_v11, %v6578_v57  ;;  %v12694_v2 = vpop.f32.mrb[242].mxu1  ;;  %7816 = vmatmul.mubr.bf16.gmra.mrb[236].mxu0 %v15669_v41  ;;  %v13069_v41 = vld [vmem:[%s13986_s25 + $0x68] sm:$0xff]  }
 0x7aa   : > { %v6590_v38 = vadd.f32 %v12694_v2, %v15614_v11  ;;  %v6581_v12 = vpop.f32.mrb[243].mxu1  ;;  %11168 = vmatprep.mubr.msk.bf16.mxu0 %vm7495_vm5, %v13068_v35  ;;  %v6947_v59 = vmax.f32 %v6587_v17, 0.0 }
 0x7ab   : > { %v6582_v47 = vadd.f32 %v15614_v11, %v6581_v12  ;;  %v6945_v16 = vmax.f32 %v6579_v7, 0.0 }
 0x7ac   : > { %v6948_v43 = vmax.f32 %v6590_v38, 0.0 }
 0x7ad   : > { %v6946_v56 = vmax.f32 %v6582_v47, 0.0  ;;  %v13072_v47 = vld [vmem:[%s13986_s25 + $0x80] sm:$0xff]  }
 0x7ae   : > { %v15753_v36 = vpack.c.bf16 %v6948_v43, %v6947_v59 }
 0x7af   : > { %v15756_v20 = vpack.c.bf16 %v6946_v56, %v6945_v16  ;;  %v12697_v55 = vpop.f32.mrb[244].mxu1 }
 0x7b0   : > { %v6603_v5 = vadd.f32 %v12697_v55, %v15614_v11  ;;  %v6594_v3 = vpop.f32.mrb[245].mxu1 }
 0x7b1   : > { %v6595_v22 = vadd.f32 %v15614_v11, %v6594_v3  ;;  %v12698_v51 = vpop.f32.mrb[246].mxu1  ;;  %7824 = vmatmul.mubr.bf16.gmra.mrb[240].mxu0 %v15682_v34 }
 0x7b2   : > { %v6606_v53 = vadd.f32 %v12698_v51, %v15614_v11  ;;  %v6597_v15 = vpop.f32.mrb[247].mxu1  ;;  %11169 = vmatprep.mubr.msk.bf16.mxu0 %vm7495_vm5, %v13069_v41  ;;  %v6951_v13 = vmax.f32 %v6603_v5, 0.0 }
 0x7b3   : > { %v6598_v42 = vadd.f32 %v15614_v11, %v6597_v15  ;;  %v6949_v48 = vmax.f32 %v6595_v22, 0.0  ;;  %v13073_v15 = vld [vmem:[%s13986_s25 + $0x88] sm:$0xff]  }
 0x7b4   : > { %v6952_v14 = vmax.f32 %v6606_v53, 0.0 }
 0x7b5   : > { %v6950_v28 = vmax.f32 %v6598_v42, 0.0 }
 0x7b6   : > { %v15767_v26 = vpack.c.bf16 %v6952_v14, %v6951_v13 }
 0x7b7   : > { %v15770_v9 = vpack.c.bf16 %v6950_v28, %v6949_v48  ;;  %v12701_v34 = vpop.f32.mrb[248].mxu1 }
 0x7b8   : > { %v6619_v50 = vadd.f32 %v12701_v34, %v15614_v11  ;;  %v6610_v40 = vpop.f32.mrb[249].mxu1 }
 0x7b9   : > { %v6611_v6 = vadd.f32 %v15614_v11, %v6610_v40  ;;  %v12702_v37 = vpop.f32.mrb[250].mxu1  ;;  %7832 = vmatmul.mubr.bf16.gmra.mrb[244].mxu0 %v15679_v54 }
 0x7ba   : > { %v6622_v45 = vadd.f32 %v12702_v37, %v15614_v11  ;;  %v6613_v39 = vpop.f32.mrb[251].mxu1  ;;  %11170 = vmatprep.mubr.msk.bf16.mxu0 %vm7495_vm5, %v13070_v8  ;;  %v6955_v30 = vmax.f32 %v6619_v50, 0.0 }
 0x7bb   : > { %v6614_v23 = vadd.f32 %v15614_v11, %v6613_v39  ;;  %v6953_v27 = vmax.f32 %v6611_v6, 0.0 }
 0x7bc   : > { %v6956_v0 = vmax.f32 %v6622_v45, 0.0 }
 0x7bd   : > { %v6954_v61 = vmax.f32 %v6614_v23, 0.0  ;;  %v13074_v23 = vld [vmem:[%s13986_s25 + $0x90] sm:$0xff]  }
 0x7be   : > { %v15778_v31 = vpack.c.bf16 %v6956_v0, %v6955_v30 }
 0x7bf   : > { %v15781_v10 = vpack.c.bf16 %v6954_v61, %v6953_v27  ;;  %v12705_v4 = vpop.f32.mrb[252].mxu1 }
 0x7c0   : > { %v6635_v54 = vadd.f32 %v12705_v4, %v15614_v11  ;;  %v6626_v52 = vpop.f32.mrb[253].mxu1 }
 0x7c1   : > { %v6627_v21 = vadd.f32 %v15614_v11, %v6626_v52  ;;  %v12706_v35 = vpop.f32.mrb[254].mxu1  ;;  %7840 = vmatmul.mubr.bf16.gmra.mrb[248].mxu0 %v15692_v24 }
 0x7c2   : > { %v6638_v58 = vadd.f32 %v12706_v35, %v15614_v11  ;;  %v6629_v60 = vpop.f32.mrb[255].mxu1  ;;  %11171 = vmatprep.mubr.msk.bf16.mxu0 %vm7495_vm5, %v13071_v63  ;;  %v6959_v57 = vmax.f32 %v6635_v54, 0.0 }
 0x7c3   : > { %v6630_v17 = vadd.f32 %v15614_v11, %v6629_v60  ;;  %v6957_v2 = vmax.f32 %v6627_v21, 0.0 }
 0x7c4   : > { %v6960_v7 = vmax.f32 %v6638_v58, 0.0 }
 0x7c5   : > { %v6958_v38 = vmax.f32 %v6630_v17, 0.0 }
 0x7c6   : > { %v15789_v12 = vpack.c.bf16 %v6960_v7, %v6959_v57  ;;  %v13075_v57 = vld [vmem:[%s13986_s25 + $0x98] sm:$0xff]  }
 0x7c7   : > { %v15792_v18 = vpack.c.bf16 %v6958_v38, %v6957_v2  ;;  %v12709_v59 = vpop.f32.mrb[0].mxu1 }
 0x7c8   : > { %v6651_v24 = vadd.f32 %v12709_v59, %v15614_v11  ;;  %v6642_v43 = vpop.f32.mrb[1].mxu1 }
 0x7c9   : > { %v6643_v16 = vadd.f32 %v15614_v11, %v6642_v43  ;;  %v12710_v56 = vpop.f32.mrb[2].mxu1  ;;  %7848 = vmatmul.mubr.bf16.gmra.mrb[252].mxu0 %v15689_v32 }
 0x7ca   : > { %v6654_v41 = vadd.f32 %v12710_v56, %v15614_v11  ;;  %v6645_v55 = vpop.f32.mrb[3].mxu1  ;;  %11172 = vmatprep.mubr.msk.bf16.mxu0 %vm7495_vm5, %v13072_v47  ;;  %v6963_v5 = vmax.f32 %v6651_v24, 0.0 }
 0x7cb   : > { %v6646_v62 = vadd.f32 %v15614_v11, %v6645_v55  ;;  %v6961_v22 = vmax.f32 %v6643_v16, 0.0 }
 0x7cc   : > { %v6964_v3 = vmax.f32 %v6654_v41, 0.0 }
 0x7cd   : > { %v6962_v51 = vmax.f32 %v6646_v62, 0.0 }
 0x7ce   : > { %v15800_v53 = vpack.c.bf16 %v6964_v3, %v6963_v5  ;;  %v13076_v3 = vld [vmem:[%s13986_s25 + $0xa0] sm:$0xff]  }
 0x7cf   : > { %v15803_v42 = vpack.c.bf16 %v6962_v51, %v6961_v22  ;;  %v12713_v13 = vpop.f32.mrb[4].mxu1 }
 0x7d0   : > { %v6667_v32 = vadd.f32 %v12713_v13, %v15614_v11  ;;  %v6658_v14 = vpop.f32.mrb[5].mxu1 }
 0x7d1   : > { %v6659_v48 = vadd.f32 %v15614_v11, %v6658_v14  ;;  %v12714_v28 = vpop.f32.mrb[6].mxu1  ;;  %7856 = vmatmul.mubr.bf16.gmra.mrb[0].mxu0 %v15703_v44 }
 0x7d2   : > { %v6670_v8 = vadd.f32 %v12714_v28, %v15614_v11  ;;  %v6661_v34 = vpop.f32.mrb[7].mxu1  ;;  %11173 = vmatprep.mubr.msk.bf16.mxu0 %vm7495_vm5, %v13073_v15  ;;  %v6967_v40 = vmax.f32 %v6667_v32, 0.0 }
 0x7d3   : > { %v6662_v50 = vadd.f32 %v15614_v11, %v6661_v34  ;;  %v6965_v37 = vmax.f32 %v6659_v48, 0.0 }
 0x7d4   : > { %v6968_v6 = vmax.f32 %v6670_v8, 0.0 }
 0x7d5   : > { %v6966_v45 = vmax.f32 %v6662_v50, 0.0 }
 0x7d6   : > { %v15811_v39 = vpack.c.bf16 %v6968_v6, %v6967_v40 }
 0x7d7   : > { %v15814_v30 = vpack.c.bf16 %v6966_v45, %v6965_v37  ;;  %v12717_v0 = vpop.f32.mrb[8].mxu1  ;;  %v13077_v37 = vld [vmem:[%s13986_s25 + $0xa8] sm:$0xff]  }
 0x7d8   : > { %v6683_v44 = vadd.f32 %v12717_v0, %v15614_v11  ;;  %v6674_v27 = vpop.f32.mrb[9].mxu1 }
 0x7d9   : > { %v6675_v61 = vadd.f32 %v15614_v11, %v6674_v27  ;;  %v12718_v63 = vpop.f32.mrb[10].mxu1  ;;  %7864 = vmatmul.mubr.bf16.gmra.mrb[4].mxu0 %v15700_v33 }
 0x7da   : > { %v6686_v4 = vadd.f32 %v12718_v63, %v15614_v11  ;;  %v6677_v54 = vpop.f32.mrb[11].mxu1  ;;  %11174 = vmatprep.mubr.msk.bf16.mxu0 %vm7495_vm5, %v13074_v23  ;;  %v6971_v21 = vmax.f32 %v6683_v44, 0.0 }
 0x7db   : > { %v6678_v52 = vadd.f32 %v15614_v11, %v6677_v54  ;;  %v6969_v58 = vmax.f32 %v6675_v61, 0.0 }
 0x7dc   : > { %v6972_v35 = vmax.f32 %v6686_v4, 0.0 }
 0x7dd   : > { %v6970_v60 = vmax.f32 %v6678_v52, 0.0 }
 0x7de   : > { %v15822_v17 = vpack.c.bf16 %v6972_v35, %v6971_v21 }
 0x7df   : > { %v15825_v7 = vpack.c.bf16 %v6970_v60, %v6969_v58  ;;  %v12721_v2 = vpop.f32.mrb[12].mxu1  ;;  %v13078_v60 = vld [vmem:[%s13986_s25 + $0xb0] sm:$0xff]  }
 0x7e0   : > { %v6699_v33 = vadd.f32 %v12721_v2, %v15614_v11  ;;  %v6690_v38 = vpop.f32.mrb[13].mxu1 }
 0x7e1   : > { %v6691_v47 = vadd.f32 %v15614_v11, %v6690_v38  ;;  %v12722_v59 = vpop.f32.mrb[14].mxu1  ;;  %7872 = vmatmul.mubr.bf16.gmra.mrb[8].mxu0 %v15714_v46 }
 0x7e2   : > { %v6702_v24 = vadd.f32 %v12722_v59, %v15614_v11  ;;  %v6693_v43 = vpop.f32.mrb[15].mxu1  ;;  %11175 = vmatprep.mubr.msk.bf16.mxu0 %vm7495_vm5, %v13075_v57  ;;  %v6975_v56 = vmax.f32 %v6699_v33, 0.0 }
 0x7e3   : > { %v6694_v16 = vadd.f32 %v15614_v11, %v6693_v43  ;;  %v6973_v55 = vmax.f32 %v6691_v47, 0.0 }
 0x7e4   : > { %v6976_v41 = vmax.f32 %v6702_v24, 0.0 }
 0x7e5   : > { %v6974_v62 = vmax.f32 %v6694_v16, 0.0 }
 0x7e6   : > { %v15833_v5 = vpack.c.bf16 %v6976_v41, %v6975_v56 }
 0x7e7   : > { %v15836_v22 = vpack.c.bf16 %v6974_v62, %v6973_v55  ;;  %v12725_v51 = vpop.f32.mrb[16].mxu1 }
 0x7e8   : > { %v6715_v46 = vadd.f32 %v12725_v51, %v15614_v11  ;;  %v6706_v15 = vpop.f32.mrb[17].mxu1 }
 0x7e9   : > { %v6707_v13 = vadd.f32 %v15614_v11, %v6706_v15  ;;  %v12726_v32 = vpop.f32.mrb[18].mxu1  ;;  %7880 = vmatmul.mubr.bf16.gmra.mrb[12].mxu0 %v15711_v1 }
 0x7ea   : > { %v6718_v14 = vadd.f32 %v12726_v32, %v15614_v11  ;;  %v6709_v48 = vpop.f32.mrb[19].mxu1  ;;  %11176 = vmatprep.mubr.msk.bf16.mxu0 %vm7495_vm5, %v13076_v3  ;;  %v6979_v8 = vmax.f32 %v6715_v46, 0.0  ;;  %v13079_v3 = vld [vmem:[%s13986_s25 + $0xb8] sm:$0xff]  }
 0x7eb   : > { %v6710_v28 = vadd.f32 %v15614_v11, %v6709_v48  ;;  %v6977_v50 = vmax.f32 %v6707_v13, 0.0 }
 0x7ec   : > { %v6980_v34 = vmax.f32 %v6718_v14, 0.0 }
 0x7ed   : > { %v6978_v40 = vmax.f32 %v6710_v28, 0.0 }
 0x7ee   : > { %v15844_v6 = vpack.c.bf16 %v6980_v34, %v6979_v8 }
 0x7ef   : > { %v15847_v45 = vpack.c.bf16 %v6978_v40, %v6977_v50  ;;  %v12729_v23 = vpop.f32.mrb[20].mxu1 }
 0x7f0   : > { %v6731_v1 = vadd.f32 %v12729_v23, %v15614_v11  ;;  %v6722_v0 = vpop.f32.mrb[21].mxu1  ;;  %v13080_v23 = vld [vmem:[%s13986_s25 + $0xc0] sm:$0xff]  }
 0x7f1   : > { %v6723_v44 = vadd.f32 %v15614_v11, %v6722_v0  ;;  %v12730_v27 = vpop.f32.mrb[22].mxu1  ;;  %7888 = vmatmul.mubr.bf16.gmra.mrb[16].mxu0 %v15725_v29 }
 0x7f2   : > { %v6734_v61 = vadd.f32 %v12730_v27, %v15614_v11  ;;  %v6725_v63 = vpop.f32.mrb[23].mxu1  ;;  %11177 = vmatprep.mubr.msk.bf16.mxu0 %vm7495_vm5, %v13077_v37  ;;  %v6983_v54 = vmax.f32 %v6731_v1, 0.0 }
 0x7f3   : > { %v6726_v4 = vadd.f32 %v15614_v11, %v6725_v63  ;;  %v6981_v21 = vmax.f32 %v6723_v44, 0.0 }
 0x7f4   : > { %v6984_v52 = vmax.f32 %v6734_v61, 0.0 }
 0x7f5   : > { %v6982_v35 = vmax.f32 %v6726_v4, 0.0 }
 0x7f6   : > { %v15855_v58 = vpack.c.bf16 %v6984_v52, %v6983_v54 }
 0x7f7   : > { %v15858_v57 = vpack.c.bf16 %v6982_v35, %v6981_v21  ;;  %v12733_v2 = vpop.f32.mrb[24].mxu1 }
 0x7f8   : > { %v6747_v29 = vadd.f32 %v12733_v2, %v15614_v11  ;;  %v6738_v33 = vpop.f32.mrb[25].mxu1 }
 0x7f9   : > { %v6739_v38 = vadd.f32 %v15614_v11, %v6738_v33  ;;  %v12734_v47 = vpop.f32.mrb[26].mxu1  ;;  %7896 = vmatmul.mubr.bf16.gmra.mrb[20].mxu0 %v15722_v25 }
 0x7fa   : > { %v6750_v59 = vadd.f32 %v12734_v47, %v15614_v11  ;;  %v6741_v24 = vpop.f32.mrb[27].mxu1  ;;  %11178 = vmatprep.mubr.msk.bf16.mxu0 %vm7495_vm5, %v13078_v60  ;;  %v6987_v16 = vmax.f32 %v6747_v29, 0.0  ;;  %v13081_v29 = vld [vmem:[%s13986_s25 + $0xc8] sm:$0xff]  }
 0x7fb   : > { %v6742_v43 = vadd.f32 %v15614_v11, %v6741_v24  ;;  %v6985_v41 = vmax.f32 %v6739_v38, 0.0 }
 0x7fc   : > { %v6988_v56 = vmax.f32 %v6750_v59, 0.0 }
 0x7fd   : > { %v6986_v55 = vmax.f32 %v6742_v43, 0.0 }
 0x7fe   : > { %v15866_v62 = vpack.c.bf16 %v6988_v56, %v6987_v16 }
 0x7ff   : > { %v15869_v51 = vpack.c.bf16 %v6986_v55, %v6985_v41  ;;  %v12737_v46 = vpop.f32.mrb[28].mxu1 }
 0x800   : > { %v6763_v25 = vadd.f32 %v12737_v46, %v15614_v11  ;;  %v6754_v15 = vpop.f32.mrb[29].mxu1 }
 0x801   : > { %v6755_v13 = vadd.f32 %v15614_v11, %v6754_v15  ;;  %v12738_v32 = vpop.f32.mrb[30].mxu1  ;;  %7904 = vmatmul.mubr.bf16.gmra.mrb[24].mxu0 %v15739_v49  ;;  %v13082_v15 = vld [vmem:[%s13986_s25 + $0xd0] sm:$0xff]  }
 0x802   : > { %v6766_v14 = vadd.f32 %v12738_v32, %v15614_v11  ;;  %v6757_v48 = vpop.f32.mrb[31].mxu1  ;;  %11179 = vmatprep.mubr.msk.bf16.mxu0 %vm7495_vm5, %v13079_v3  ;;  %v6991_v8 = vmax.f32 %v6763_v25, 0.0 }
 0x803   : > { %v6758_v28 = vadd.f32 %v15614_v11, %v6757_v48  ;;  %v6989_v50 = vmax.f32 %v6755_v13, 0.0 }
 0x804   : > { %v6992_v34 = vmax.f32 %v6766_v14, 0.0 }
 0x805   : > { %v6990_v40 = vmax.f32 %v6758_v28, 0.0 }
 0x806   : > { %v15877_v37 = vpack.c.bf16 %v6992_v34, %v6991_v8 }
 0x807   : > { %v15880_v1 = vpack.c.bf16 %v6990_v40, %v6989_v50  ;;  %v12741_v0 = vpop.f32.mrb[32].mxu1 }
 0x808   : > { %v6779_v49 = vadd.f32 %v12741_v0, %v15614_v11  ;;  %v6770_v44 = vpop.f32.mrb[33].mxu1 }
 0x809   : > { %v6771_v27 = vadd.f32 %v15614_v11, %v6770_v44  ;;  %v12742_v61 = vpop.f32.mrb[34].mxu1  ;;  %7912 = vmatmul.mubr.bf16.gmra.mrb[28].mxu0 %v15736_v19 }
 0x80a   : > { %v6782_v63 = vadd.f32 %v12742_v61, %v15614_v11  ;;  %v6773_v4 = vpop.f32.mrb[35].mxu1  ;;  %11180 = vmatprep.mubr.msk.bf16.mxu0 %vm7495_vm5, %v13080_v23  ;;  %v6995_v52 = vmax.f32 %v6779_v49, 0.0 }
 0x80b   : > { %v6774_v54 = vadd.f32 %v15614_v11, %v6773_v4  ;;  %v6993_v35 = vmax.f32 %v6771_v27, 0.0  ;;  %v13084_v27 = vld [vmem:[%s13986_s25 + $0xd8] sm:$0xff]  }
 0x80c   : > { %v6996_v21 = vmax.f32 %v6782_v63, 0.0 }
 0x80d   : > { %v6994_v60 = vmax.f32 %v6774_v54, 0.0 }
 0x80e   : > { %v15888_v2 = vpack.c.bf16 %v6996_v21, %v6995_v52 }
 0x80f   : > { %v15891_v33 = vpack.c.bf16 %v6994_v60, %v6993_v35  ;;  %v12745_v38 = vpop.f32.mrb[36].mxu1  ;;  %v15922_v60 = vld [vmem:[%s16969_s17] ss:$0 sm:$0xff] }
 0x810   : > { %v6795_v19 = vadd.f32 %v12745_v38, %v15614_v11  ;;  %v6786_v47 = vpop.f32.mrb[37].mxu1 }
 0x811   : > { %v6787_v59 = vadd.f32 %v15614_v11, %v6786_v47  ;;  %v12746_v24 = vpop.f32.mrb[38].mxu1  ;;  %7920 = vmatmul.mubr.bf16.gmra.mrb[32].mxu0 %v15756_v20 }
 0x812   : > { %v6798_v43 = vadd.f32 %v12746_v24, %v15614_v11  ;;  %v6789_v16 = vpop.f32.mrb[39].mxu1  ;;  %11181 = vmatprep.mubr.msk.bf16.mxu0 %vm7495_vm5, %v13081_v29  ;;  %v6999_v41 = vmax.f32 %v6795_v19, 0.0 }
 0x813   : > { %v6790_v56 = vadd.f32 %v15614_v11, %v6789_v16  ;;  %v6997_v3 = vmax.f32 %v6787_v59, 0.0 }
 0x814   : > { %v7000_v55 = vmax.f32 %v6798_v43, 0.0 }
 0x815   : > { %v6998_v46 = vmax.f32 %v6790_v56, 0.0 }
 0x816   : > { %v15899_v25 = vpack.c.bf16 %v7000_v55, %v6999_v41  ;;  %v13087_v41 = vld [vmem:[%s13986_s25 + $0xe0] sm:$0xff]  }
 0x817   : > { %v15902_v13 = vpack.c.bf16 %v6998_v46, %v6997_v3  ;;  %v12749_v32 = vpop.f32.mrb[40].mxu1 }
 0x818   : > { %v6811_v20 = vadd.f32 %v12749_v32, %v15614_v11  ;;  %v6802_v14 = vpop.f32.mrb[41].mxu1 }
 0x819   : > { %v6803_v48 = vadd.f32 %v15614_v11, %v6802_v14  ;;  %v12750_v28 = vpop.f32.mrb[42].mxu1  ;;  %7928 = vmatmul.mubr.bf16.gmra.mrb[36].mxu0 %v15753_v36 }
 0x81a   : > { %v6814_v8 = vadd.f32 %v12750_v28, %v15614_v11  ;;  %v6805_v34 = vpop.f32.mrb[43].mxu1  ;;  %11182 = vmatprep.mubr.msk.bf16.mxu0 %vm7495_vm5, %v13082_v15  ;;  %v7003_v40 = vmax.f32 %v6811_v20, 0.0 }
 0x81b   : > { %v6806_v50 = vadd.f32 %v15614_v11, %v6805_v34  ;;  %v7001_v0 = vmax.f32 %v6803_v48, 0.0  ;;  %v15940_v34 = vld [vmem:[%s16967_s15] ss:$0 sm:$0xff] }
 0x81c   : > { %v7004_v23 = vmax.f32 %v6814_v8, 0.0 }
 0x81d   : > { %v7002_v49 = vmax.f32 %v6806_v50, 0.0 }
 0x81e   : > { %v15910_v44 = vpack.c.bf16 %v7004_v23, %v7003_v40 }
 0x81f   : > { %v15913_v61 = vpack.c.bf16 %v7002_v49, %v7001_v0  ;;  %v12753_v63 = vpop.f32.mrb[44].mxu1 }
 0x820   : > { %v6827_v4 = vadd.f32 %v12753_v63, %v15614_v11  ;;  %v6818_v36 = vpop.f32.mrb[45].mxu1 }
 0x821   : > { %v6819_v54 = vadd.f32 %v15614_v11, %v6818_v36  ;;  %v12754_v52 = vpop.f32.mrb[46].mxu1  ;;  %7936 = vmatmul.mubr.bf16.gmra.mrb[40].mxu0 %v15770_v9 }
 0x822   : > { %v6830_v21 = vadd.f32 %v12754_v52, %v15614_v11  ;;  %v6821_v35 = vpop.f32.mrb[47].mxu1  ;;  %11183 = vmatprep.mubr.msk.bf16.mxu0 %vm7495_vm5, %v13084_v27  ;;  %v7007_v38 = vmax.f32 %v6827_v4, 0.0 }
 0x823   : > { %v6822_v29 = vadd.f32 %v15614_v11, %v6821_v35  ;;  %v7005_v59 = vmax.f32 %v6819_v54, 0.0 }
 0x824   : > { %v7008_v19 = vmax.f32 %v6830_v21, 0.0  ;;  %v7729_v47 = vpop.f32.mrb[192].mxu0  ;;  %v13089_v21 = vld [vmem:[%s13986_s25 + $0xe8] sm:$0xff]  }
 0x825   : > { %v7006_v24 = vmax.f32 %v6822_v29, 0.0  ;;  %v7730_v43 = vadd.f32 %v15922_v60, %v7729_v47  ;;  %v7731_v9 = vpop.f32.mrb[193].mxu0 }
 0x826   : > { %v15927_v16 = vpack.c.bf16 %v7008_v19, %v7007_v38  ;;  %v7732_v56 = vpop.f32.mrb[194].mxu0 }
 0x827   : > { %v15930_v55 = vpack.c.bf16 %v7006_v24, %v7005_v59  ;;  %v8240_v3 = vmax.f32 %v7730_v43, 0.0  ;;  %v7733_v46 = vadd.f32 %v15922_v60, %v7732_v56  ;;  %v12757_v15 = vpop.f32.mrb[48].mxu1  ;;  %v7734_v32 = vpop.f32.mrb[195].mxu0 }
 0x828   : > { %v6843_v20 = vadd.f32 %v12757_v15, %v15614_v11  ;;  %v6834_v14 = vpop.f32.mrb[49].mxu1 }
 0x829   : > { %v8241_v48 = vmax.f32 %v7733_v46, 0.0  ;;  %v6835_v28 = vadd.f32 %v15614_v11, %v6834_v14  ;;  %v12758_v8 = vpop.f32.mrb[50].mxu1  ;;  %7944 = vmatmul.mubr.bf16.gmra.mrb[44].mxu0 %v15767_v26  ;;  %10105 = vrot.lane.b32.xlu0 %v8240_v3, %s13723_s21 }
 0x82a   : > { %v6846_v50 = vadd.f32 %v15940_v34, %v12758_v8  ;;  %v6837_v40 = vpop.f32.mrb[51].mxu1  ;;  %11184 = vmatprep.mubr.msk.bf16.mxu0 %vm7495_vm5, %v13087_v41  ;;  %v7011_v0 = vmax.f32 %v6843_v20, 0.0 }
 0x82b   : > { %v8368_v23 = vpack.c.bf16 %v8241_v48, %v8240_v3  ;;  %v6838_v11 = vadd.f32 %v15940_v34, %v6837_v40  ;;  %v7009_v27 = vmax.f32 %v6835_v28, 0.0 }
 0x82c   : > { %v7012_v26 = vmax.f32 %v6846_v50, 0.0  ;;  %v7737_v49 = vpop.f32.mrb[196].mxu0 }
 0x82d   : > { %v7010_v63 = vmax.f32 %v6838_v11, 0.0  ;;  %v7738_v4 = vadd.f32 %v15922_v60, %v7737_v49  ;;  %v7739_v36 = vpop.f32.mrb[197].mxu0  ;;  %10107 = vrot.lane.b32.xlu0 %v8241_v48, %s13723_s21  ;;  %12779 = vmatprep.mubr.msk.bf16.mxu1 %vm8471_vm6, %v8368_v23  ;;  %v13090_v23 = vld [vmem:[%s13986_s25 + $0xf0] sm:$0xff]  }
 0x82e   : > { %v15948_v54 = vpack.c.bf16 %v7012_v26, %v7011_v0  ;;  %v7740_v52 = vpop.f32.mrb[198].mxu0 }
 0x82f   : > { %v15951_v35 = vpack.c.bf16 %v7010_v63, %v7009_v27  ;;  %v8242_v29 = vmax.f32 %v7738_v4, 0.0  ;;  %v7741_v38 = vadd.f32 %v15922_v60, %v7740_v52  ;;  %v12761_v19 = vpop.f32.mrb[52].mxu1  ;;  %v7742_v47 = vpop.f32.mrb[199].mxu0 }
 0x830   : > { %v6859_v59 = vadd.f32 %v15940_v34, %v12761_v19  ;;  %v6850_v24 = vpop.f32.mrb[53].mxu1 }
 0x831   : > { %v8243_v43 = vmax.f32 %v7741_v38, 0.0  ;;  %v6851_v9 = vadd.f32 %v15940_v34, %v6850_v24  ;;  %v12762_v56 = vpop.f32.mrb[54].mxu1  ;;  %7952 = vmatmul.mubr.bf16.gmra.mrb[48].mxu0 %v15781_v10  ;;  %10109 = vrot.lane.b32.xlu1 %v8242_v29, %s13723_s21 }
 0x832   : > { %v6862_v41 = vadd.f32 %v15940_v34, %v12762_v56  ;;  %v6853_v3 = vpop.f32.mrb[55].mxu1  ;;  %11185 = vmatprep.mubr.msk.bf16.mxu0 %vm7495_vm5, %v13089_v21  ;;  %v7015_v32 = vmax.f32 %v6859_v59, 0.0 }
 0x833   : > { %v8369_v46 = vpack.c.bf16 %v8243_v43, %v8242_v29  ;;  %v6854_v15 = vadd.f32 %v15940_v34, %v6853_v3  ;;  %v7013_v48 = vmax.f32 %v6851_v9, 0.0 }
 0x834   : > { %v7016_v20 = vmax.f32 %v6862_v41, 0.0  ;;  %v7745_v14 = vpop.f32.mrb[200].mxu0 }
 0x835   : > { %v7014_v28 = vmax.f32 %v6854_v15, 0.0  ;;  %v7746_v8 = vadd.f32 %v15922_v60, %v7745_v14  ;;  %v7747_v50 = vpop.f32.mrb[201].mxu0  ;;  %10111 = vrot.lane.b32.xlu1 %v8243_v43, %s13723_s21  ;;  %12780 = vmatmul.mubr.msk.bf16.vlgmr.msra.gmra.mrb[64].mxu1 %vm8471_vm6, %v8369_v46  ;;  %v13091_v15 = vld [vmem:[%s13986_s25 + $0xf8] sm:$0xff]  }
 0x836   : > { %v15964_v10 = vpack.c.bf16 %v7016_v20, %v7015_v32  ;;  %v7748_v40 = vpop.f32.mrb[202].mxu0 }
 0x837   : > { %v15967_v11 = vpack.c.bf16 %v7014_v28, %v7013_v48  ;;  %v8244_v0 = vmax.f32 %v7746_v8, 0.0  ;;  %v7749_v26 = vadd.f32 %v15922_v60, %v7748_v40  ;;  %v12765_v49 = vpop.f32.mrb[56].mxu1  ;;  %v7750_v27 = vpop.f32.mrb[203].mxu0 }
 0x838   : > { %v6875_v63 = vadd.f32 %v15940_v34, %v12765_v49  ;;  %v6866_v4 = vpop.f32.mrb[57].mxu1 }
 0x839   : > { %v8245_v36 = vmax.f32 %v7749_v26, 0.0  ;;  %v6867_v52 = vadd.f32 %v15940_v34, %v6866_v4  ;;  %v12766_v21 = vpop.f32.mrb[58].mxu1  ;;  %7960 = vmatmul.mubr.bf16.gmra.mrb[52].mxu0 %v15778_v31  ;;  %10113 = vrot.lane.b32.xlu0 %v8244_v0, %s13723_s21 }
 0x83a   : > { %v6878_v29 = vadd.f32 %v15940_v34, %v12766_v21  ;;  %v6869_v38 = vpop.f32.mrb[59].mxu1  ;;  %11186 = vmatprep.mubr.msk.bf16.mxu0 %vm7495_vm5, %v13090_v23  ;;  %v7019_v59 = vmax.f32 %v6875_v63, 0.0 }
 0x83b   : > { %v8370_v19 = vpack.c.bf16 %v8245_v36, %v8244_v0  ;;  %v6870_v47 = vadd.f32 %v15940_v34, %v6869_v38  ;;  %10115 = vrot.lane.b32.xlu1 %v8245_v36, %s13723_s21  ;;  %v7017_v9 = vmax.f32 %v6867_v52, 0.0 }
 0x83c   : > { %v7020_v24 = vmax.f32 %v6878_v29, 0.0  ;;  %v7753_v43 = vpop.f32.mrb[204].mxu0 }
 0x83d   : > { %v7018_v56 = vmax.f32 %v6870_v47, 0.0  ;;  %v7754_v31 = vadd.f32 %v15922_v60, %v7753_v43  ;;  %v7755_v41 = vpop.f32.mrb[205].mxu0  ;;  %12783 = vmatprep.mubr.msk.bf16.mxu1 %vm8471_vm6, %v8370_v19 }
 0x83e   : > { %v15980_v3 = vpack.c.bf16 %v7020_v24, %v7019_v59  ;;  %v7756_v46 = vpop.f32.mrb[206].mxu0  ;;  %v13092_v59 = vld [vmem:[%s13986_s25 + $0x100] sm:$0xff]  }
 0x83f   : > { %v15983_v32 = vpack.c.bf16 %v7018_v56, %v7017_v9  ;;  %v8246_v20 = vmax.f32 %v7754_v31, 0.0  ;;  %v7757_v14 = vadd.f32 %v15922_v60, %v7756_v46  ;;  %v12769_v48 = vpop.f32.mrb[60].mxu1  ;;  %v7758_v28 = vpop.f32.mrb[207].mxu0 }
 0x840   : > { %v6891_v8 = vadd.f32 %v15940_v34, %v12769_v48  ;;  %v6882_v50 = vpop.f32.mrb[61].mxu1 }
 0x841   : > { %v8247_v40 = vmax.f32 %v7757_v14, 0.0  ;;  %v6883_v23 = vadd.f32 %v15940_v34, %v6882_v50  ;;  %v12770_v0 = vpop.f32.mrb[62].mxu1  ;;  %7968 = vmatmul.mubr.bf16.gmra.mrb[56].mxu0 %v15792_v18  ;;  %10117 = vrot.lane.b32.xlu0 %v8246_v20, %s13723_s21  ;;  %v13093_v14 = vld [vmem:[%s13986_s25 + $0x108] sm:$0xff]  }
 0x842   : > { %v6894_v26 = vadd.f32 %v15940_v34, %v12770_v0  ;;  %v6885_v49 = vpop.f32.mrb[63].mxu1  ;;  %11187 = vmatprep.mubr.msk.bf16.mxu0 %vm7495_vm5, %v13091_v15  ;;  %v7023_v4 = vmax.f32 %v6891_v8, 0.0 }
 0x843   : > { %v8371_v27 = vpack.c.bf16 %v8247_v40, %v8246_v20  ;;  %v6886_v63 = vadd.f32 %v15940_v34, %v6885_v49  ;;  %10119 = vrot.lane.b32.xlu1 %v8247_v40, %s13723_s21  ;;  %v7021_v21 = vmax.f32 %v6883_v23, 0.0  ;;  %v13094_v49 = vld [vmem:[%s13986_s25 + $0x110] sm:$0xff]  }
 0x844   : > { %v7024_v36 = vmax.f32 %v6894_v26, 0.0  ;;  %v7761_v52 = vpop.f32.mrb[208].mxu0 }
 0x845   : > { %v7022_v29 = vmax.f32 %v6886_v63, 0.0  ;;  %v7762_v18 = vadd.f32 %v15922_v60, %v7761_v52  ;;  %v7763_v38 = vpop.f32.mrb[209].mxu0  ;;  %12784 = vmatmul.mubr.msk.bf16.gmra.mrb[68].mxu1 %vm8471_vm6, %v8371_v27 }
 0x846   : > { %v15996_v19 = vpack.c.bf16 %v7024_v36, %v7023_v4  ;;  %v7764_v47 = vpop.f32.mrb[210].mxu0  ;;  %v13095_v38 = vld [vmem:[%s13986_s25 + $0x118] sm:$0xff]  }
 0x847   : > { %v15999_v24 = vpack.c.bf16 %v7022_v29, %v7021_v21  ;;  %v8248_v34 = vmax.f32 %v7762_v18, 0.0  ;;  %v7765_v43 = vadd.f32 %v15922_v60, %v7764_v47  ;;  %v7766_v9 = vpop.f32.mrb[211].mxu0 }
 0x849   : > { %v8249_v56 = vmax.f32 %v7765_v43, 0.0  ;;  %7976 = vmatmul.mubr.bf16.gmra.mrb[60].mxu0 %v15789_v12  ;;  %10121 = vrot.lane.b32.xlu0 %v8248_v34, %s13723_s21 }
 0x84a   : > { %11188 = vmatprep.mubr.msk.bf16.mxu0 %vm7495_vm5, %v13092_v59 }
 0x84b   : > { %v8372_v31 = vpack.c.bf16 %v8249_v56, %v8248_v34  ;;  %10123 = vrot.lane.b32.xlu1 %v8249_v56, %s13723_s21 }
 0x84c   : > { %v7769_v41 = vpop.f32.mrb[212].mxu0 }
 0x84d   : > { %v7770_v46 = vadd.f32 %v15922_v60, %v7769_v41  ;;  %v7771_v15 = vpop.f32.mrb[213].mxu0  ;;  %12787 = vmatprep.mubr.msk.bf16.mxu1 %vm8471_vm6, %v8372_v31 }
 0x84e   : > { %v7772_v20 = vpop.f32.mrb[214].mxu0 }
 0x84f   : > { %v8250_v48 = vmax.f32 %v7770_v46, 0.0  ;;  %v7773_v28 = vadd.f32 %v15922_v60, %v7772_v20  ;;  %v7774_v12 = vpop.f32.mrb[215].mxu0  ;;  %v13096_v46 = vld [vmem:[%s13986_s25 + $0x120] sm:$0xff]  }
 0x851   : > { %v8251_v8 = vmax.f32 %v7773_v28, 0.0  ;;  %7984 = vmatmul.mubr.bf16.gmra.mrb[64].mxu0 %v15803_v42  ;;  %10125 = vrot.lane.b32.xlu0 %v8250_v48, %s13723_s21 }
 0x852   : > { %11189 = vmatprep.mubr.msk.bf16.mxu0 %vm7495_vm5, %v13093_v14 }
 0x853   : > { %v8373_v50 = vpack.c.bf16 %v8251_v8, %v8250_v48  ;;  %10127 = vrot.lane.b32.xlu1 %v8251_v8, %s13723_s21 }
 0x854   : > { %v7777_v40 = vpop.f32.mrb[216].mxu0 }
 0x855   : > { %v7778_v23 = vadd.f32 %v15922_v60, %v7777_v40  ;;  %v7779_v0 = vpop.f32.mrb[217].mxu0  ;;  %12788 = vmatmul.mubr.msk.bf16.gmra.mrb[72].mxu1 %vm8471_vm6, %v8373_v50  ;;  %v13097_v40 = vld [vmem:[%s13986_s25 + $0x128] sm:$0xff]  }
 0x856   : > { %v7780_v26 = vpop.f32.mrb[218].mxu0 }
 0x857   : > { %v8252_v27 = vmax.f32 %v7778_v23, 0.0  ;;  %v7781_v63 = vadd.f32 %v15922_v60, %v7780_v26  ;;  %v7782_v42 = vpop.f32.mrb[219].mxu0 }
 0x859   : > { %v8253_v4 = vmax.f32 %v7781_v63, 0.0  ;;  %7992 = vmatmul.mubr.bf16.gmra.mrb[68].mxu0 %v15800_v53  ;;  %10129 = vrot.lane.b32.xlu0 %v8252_v27, %s13723_s21 }
 0x85a   : > { %11190 = vmatprep.mubr.msk.bf16.mxu0 %vm7495_vm5, %v13094_v49 }
 0x85b   : > { %v8374_v36 = vpack.c.bf16 %v8253_v4, %v8252_v27  ;;  %10131 = vrot.lane.b32.xlu1 %v8253_v4, %s13723_s21 }
 0x85c   : > { %v7785_v52 = vpop.f32.mrb[220].mxu0 }
 0x85d   : > { %v7786_v21 = vadd.f32 %v15922_v60, %v7785_v52  ;;  %v7787_v29 = vpop.f32.mrb[221].mxu0  ;;  %12791 = vmatprep.mubr.msk.bf16.mxu1 %vm8471_vm6, %v8374_v36  ;;  %v13098_v36 = vld [vmem:[%s13986_s25 + $0x130] sm:$0xff]  }
 0x85e   : > { %v7788_v18 = vpop.f32.mrb[222].mxu0 }
 0x85f   : > { %v8254_v47 = vmax.f32 %v7786_v21, 0.0  ;;  %v7789_v59 = vadd.f32 %v15922_v60, %v7788_v18  ;;  %v7790_v53 = vpop.f32.mrb[223].mxu0 }
 0x861   : > { %v8255_v34 = vmax.f32 %v7789_v59, 0.0  ;;  %8000 = vmatmul.mubr.bf16.gmra.mrb[72].mxu0 %v15814_v30  ;;  %10133 = vrot.lane.b32.xlu0 %v8254_v47, %s13723_s21 }
 0x862   : > { %11191 = vmatprep.mubr.msk.bf16.mxu0 %vm7495_vm5, %v13095_v38 }
 0x863   : > { %v8375_v43 = vpack.c.bf16 %v8255_v34, %v8254_v47  ;;  %10135 = vrot.lane.b32.xlu1 %v8255_v34, %s13723_s21  ;;  %v13099_v34 = vld [vmem:[%s13986_s25 + $0x138] sm:$0xff]  }
 0x864   : > { %v7793_v9 = vpop.f32.mrb[224].mxu0 }
 0x865   : > { %v7794_v56 = vadd.f32 %v15922_v60, %v7793_v9  ;;  %v7795_v31 = vpop.f32.mrb[225].mxu0  ;;  %12792 = vmatmul.mubr.msk.bf16.gmra.mrb[76].mxu1 %vm8471_vm6, %v8375_v43 }
 0x866   : > { %v7796_v41 = vpop.f32.mrb[226].mxu0 }
 0x867   : > { %v8256_v15 = vmax.f32 %v7794_v56, 0.0  ;;  %v7797_v20 = vadd.f32 %v15922_v60, %v7796_v41  ;;  %v7798_v30 = vpop.f32.mrb[227].mxu0 }
 0x868   : > { %v13100_v30 = vld [vmem:[%s13986_s25 + $0x140] sm:$0xff]  }
 0x869   : > { %v8257_v14 = vmax.f32 %v7797_v20, 0.0  ;;  %8008 = vmatmul.mubr.bf16.gmra.mrb[76].mxu0 %v15811_v39  ;;  %10137 = vrot.lane.b32.xlu0 %v8256_v15, %s13723_s21 }
 0x86a   : > { %11192 = vmatprep.mubr.msk.bf16.mxu0 %vm7495_vm5, %v13096_v46 }
 0x86b   : > { %v8376_v48 = vpack.c.bf16 %v8257_v14, %v8256_v15  ;;  %10139 = vrot.lane.b32.xlu1 %v8257_v14, %s13723_s21 }
 0x86c   : > { %v7801_v28 = vpop.f32.mrb[228].mxu0 }
 0x86d   : > { %v7802_v12 = vadd.f32 %v15922_v60, %v7801_v28  ;;  %v7803_v8 = vpop.f32.mrb[229].mxu0  ;;  %12795 = vmatprep.mubr.msk.bf16.mxu1 %vm8471_vm6, %v8376_v48 }
 0x86e   : > { %v7804_v50 = vpop.f32.mrb[230].mxu0 }
 0x86f   : > { %v8258_v23 = vmax.f32 %v7802_v12, 0.0  ;;  %v7805_v0 = vadd.f32 %v15922_v60, %v7804_v50  ;;  %v7806_v39 = vpop.f32.mrb[231].mxu0 }
 0x871   : > { %v8259_v26 = vmax.f32 %v7805_v0, 0.0  ;;  %8016 = vmatmul.mubr.bf16.gmra.mrb[80].mxu0 %v15825_v7  ;;  %10141 = vrot.lane.b32.xlu0 %v8258_v23, %s13723_s21  ;;  %v13101_v0 = vld [vmem:[%s13986_s25 + $0x148] sm:$0xff]  }
 0x872   : > { %11193 = vmatprep.mubr.msk.bf16.mxu0 %vm7495_vm5, %v13097_v40 }
 0x873   : > { %v8377_v49 = vpack.c.bf16 %v8259_v26, %v8258_v23  ;;  %10143 = vrot.lane.b32.xlu1 %v8259_v26, %s13723_s21 }
 0x874   : > { %v7809_v27 = vpop.f32.mrb[232].mxu0 }
 0x875   : > { %v7810_v63 = vadd.f32 %v15922_v60, %v7809_v27  ;;  %v7811_v42 = vpop.f32.mrb[233].mxu0  ;;  %12796 = vmatmul.mubr.msk.bf16.gmra.mrb[80].mxu1 %vm8471_vm6, %v8377_v49 }
 0x876   : > { %v7812_v4 = vpop.f32.mrb[234].mxu0 }
 0x877   : > { %v8260_v52 = vmax.f32 %v7810_v63, 0.0  ;;  %v7813_v21 = vadd.f32 %v15922_v60, %v7812_v4  ;;  %v7814_v7 = vpop.f32.mrb[235].mxu0 }
 0x879   : > { %v8261_v29 = vmax.f32 %v7813_v21, 0.0  ;;  %8024 = vmatmul.mubr.bf16.gmra.mrb[84].mxu0 %v15822_v17  ;;  %10145 = vrot.lane.b32.xlu0 %v8260_v52, %s13723_s21 }
 0x87a   : > { %11194 = vmatprep.mubr.msk.bf16.mxu0 %vm7495_vm5, %v13098_v36 }
 0x87b   : > { %v8378_v18 = vpack.c.bf16 %v8261_v29, %v8260_v52  ;;  %10147 = vrot.lane.b32.xlu1 %v8261_v29, %s13723_s21  ;;  %v13102_v52 = vld [vmem:[%s13986_s25 + $0x150] sm:$0xff]  }
 0x87c   : > { %v7817_v38 = vpop.f32.mrb[236].mxu0 }
 0x87d   : > { %v7818_v47 = vadd.f32 %v15922_v60, %v7817_v38  ;;  %v7819_v59 = vpop.f32.mrb[237].mxu0  ;;  %12799 = vmatprep.mubr.msk.bf16.mxu1 %vm8471_vm6, %v8378_v18 }
 0x87e   : > { %v7820_v53 = vpop.f32.mrb[238].mxu0 }
 0x87f   : > { %v8262_v43 = vmax.f32 %v7818_v47, 0.0  ;;  %v7821_v9 = vadd.f32 %v15922_v60, %v7820_v53  ;;  %v7822_v17 = vpop.f32.mrb[239].mxu0 }
 0x881   : > { %v8263_v56 = vmax.f32 %v7821_v9, 0.0  ;;  %8032 = vmatmul.mubr.bf16.gmra.mrb[88].mxu0 %v15836_v22  ;;  %10149 = vrot.lane.b32.xlu0 %v8262_v43, %s13723_s21 }
 0x882   : > { %11195 = vmatprep.mubr.msk.bf16.mxu0 %vm7495_vm5, %v13099_v34  ;;  %v13103_v34 = vld [vmem:[%s13986_s25 + $0x158] sm:$0xff]  }
 0x883   : > { %v8379_v31 = vpack.c.bf16 %v8263_v56, %v8262_v43  ;;  %10151 = vrot.lane.b32.xlu1 %v8263_v56, %s13723_s21 }
 0x884   : > { %v7825_v41 = vpop.f32.mrb[240].mxu0 }
 0x885   : > { %v7826_v46 = vadd.f32 %v15922_v60, %v7825_v41  ;;  %v7827_v15 = vpop.f32.mrb[241].mxu0  ;;  %12800 = vmatmul.mubr.msk.bf16.gmra.mrb[84].mxu1 %vm8471_vm6, %v8379_v31 }
 0x886   : > { %v7828_v20 = vpop.f32.mrb[242].mxu0 }
 0x887   : > { %v8264_v14 = vmax.f32 %v7826_v46, 0.0  ;;  %v7829_v48 = vadd.f32 %v15922_v60, %v7828_v20  ;;  %v7830_v22 = vpop.f32.mrb[243].mxu0  ;;  %v13104_v20 = vld [vmem:[%s13986_s25 + $0x160] sm:$0xff]  }
 0x889   : > { %v8265_v28 = vmax.f32 %v7829_v48, 0.0  ;;  %8040 = vmatmul.mubr.bf16.gmra.mrb[92].mxu0 %v15833_v5  ;;  %10153 = vrot.lane.b32.xlu0 %v8264_v14, %s13723_s21 }
 0x88a   : > { %11196 = vmatprep.mubr.msk.bf16.mxu0 %vm7495_vm5, %v13100_v30 }
 0x88b   : > { %v8380_v12 = vpack.c.bf16 %v8265_v28, %v8264_v14  ;;  %10155 = vrot.lane.b32.xlu1 %v8265_v28, %s13723_s21 }
 0x88c   : > { %v7833_v8 = vpop.f32.mrb[244].mxu0 }
 0x88d   : > { %v7834_v50 = vadd.f32 %v15922_v60, %v7833_v8  ;;  %v7835_v40 = vpop.f32.mrb[245].mxu0  ;;  %12803 = vmatprep.mubr.msk.bf16.mxu1 %vm8471_vm6, %v8380_v12 }
 0x88e   : > { %v7836_v23 = vpop.f32.mrb[246].mxu0  ;;  %v13105_v40 = vld [vmem:[%s13986_s25 + $0x168] sm:$0xff]  }
 0x88f   : > { %v8266_v39 = vmax.f32 %v7834_v50, 0.0  ;;  %v7837_v26 = vadd.f32 %v15922_v60, %v7836_v23  ;;  %v7838_v5 = vpop.f32.mrb[247].mxu0 }
 0x891   : > { %v8267_v49 = vmax.f32 %v7837_v26, 0.0  ;;  %8048 = vmatmul.mubr.bf16.gmra.mrb[96].mxu0 %v15847_v45  ;;  %10157 = vrot.lane.b32.xlu0 %v8266_v39, %s13723_s21 }
 0x892   : > { %11197 = vmatprep.mubr.msk.bf16.mxu0 %vm7495_vm5, %v13101_v0 }
 0x893   : > { %v8381_v27 = vpack.c.bf16 %v8267_v49, %v8266_v39  ;;  %10159 = vrot.lane.b32.xlu1 %v8267_v49, %s13723_s21 }
 0x894   : > { %v7841_v63 = vpop.f32.mrb[248].mxu0 }
 0x895   : > { %v7842_v42 = vadd.f32 %v15922_v60, %v7841_v63  ;;  %v7843_v4 = vpop.f32.mrb[249].mxu0  ;;  %12804 = vmatmul.mubr.msk.bf16.gmra.mrb[88].mxu1 %vm8471_vm6, %v8381_v27 }
 0x896   : > { %v7844_v36 = vpop.f32.mrb[250].mxu0 }
 0x897   : > { %v8268_v21 = vmax.f32 %v7842_v42, 0.0  ;;  %v7845_v7 = vadd.f32 %v15922_v60, %v7844_v36  ;;  %v7846_v45 = vpop.f32.mrb[251].mxu0  ;;  %v13106_v42 = vld [vmem:[%s13986_s25 + $0x170] sm:$0xff]  }
 0x899   : > { %v8269_v29 = vmax.f32 %v7845_v7, 0.0  ;;  %8056 = vmatmul.mubr.bf16.gmra.mrb[100].mxu0 %v15844_v6  ;;  %10161 = vrot.lane.b32.xlu0 %v8268_v21, %s13723_s21 }
 0x89a   : > { %11198 = vmatprep.mubr.msk.bf16.mxu0 %vm7495_vm5, %v13102_v52 }
 0x89b   : > { %v8382_v18 = vpack.c.bf16 %v8269_v29, %v8268_v21  ;;  %10163 = vrot.lane.b32.xlu1 %v8269_v29, %s13723_s21 }
 0x89c   : > { %v7849_v38 = vpop.f32.mrb[252].mxu0 }
 0x89d   : > { %v7850_v47 = vadd.f32 %v15922_v60, %v7849_v38  ;;  %v7851_v59 = vpop.f32.mrb[253].mxu0  ;;  %12807 = vmatprep.mubr.msk.bf16.mxu1 %vm8471_vm6, %v8382_v18  ;;  %v13107_v38 = vld [vmem:[%s13986_s25 + $0x178] sm:$0xff]  }
 0x89e   : > { %v7852_v53 = vpop.f32.mrb[254].mxu0 }
 0x89f   : > { %v8270_v43 = vmax.f32 %v7850_v47, 0.0  ;;  %v7853_v9 = vadd.f32 %v15922_v60, %v7852_v53  ;;  %v7854_v6 = vpop.f32.mrb[255].mxu0 }
 0x8a1   : > { %v8271_v17 = vmax.f32 %v7853_v9, 0.0  ;;  %8064 = vmatmul.mubr.bf16.gmra.mrb[104].mxu0 %v15858_v57  ;;  %10165 = vrot.lane.b32.xlu0 %v8270_v43, %s13723_s21 }
 0x8a2   : > { %11199 = vmatprep.mubr.msk.bf16.mxu0 %vm7495_vm5, %v13103_v34 }
 0x8a3   : > { %v8383_v56 = vpack.c.bf16 %v8271_v17, %v8270_v43  ;;  %10167 = vrot.lane.b32.xlu1 %v8271_v17, %s13723_s21 }
 0x8a4   : > { %v7857_v31 = vpop.f32.mrb[0].mxu0 }
 0x8a5   : > { %v7858_v41 = vadd.f32 %v15922_v60, %v7857_v31  ;;  %v7859_v46 = vpop.f32.mrb[1].mxu0  ;;  %12808 = vmatmul.mubr.msk.bf16.gmra.mrb[92].mxu1 %vm8471_vm6, %v8383_v56  ;;  %v13108_v56 = vld [vmem:[%s13986_s25 + $0x180] sm:$0xff]  }
 0x8a6   : > { %v7860_v15 = vpop.f32.mrb[2].mxu0 }
 0x8a7   : > { %v8272_v30 = vmax.f32 %v7858_v41, 0.0  ;;  %v7861_v14 = vadd.f32 %v15922_v60, %v7860_v15  ;;  %v7862_v57 = vpop.f32.mrb[3].mxu0 }
 0x8a9   : > { %v8273_v48 = vmax.f32 %v7861_v14, 0.0  ;;  %8072 = vmatmul.mubr.bf16.gmra.mrb[108].mxu0 %v15855_v58  ;;  %10169 = vrot.lane.b32.xlu0 %v8272_v30, %s13723_s21 }
 0x8aa   : > { %11200 = vmatprep.mubr.msk.bf16.mxu0 %vm7495_vm5, %v13104_v20 }
 0x8ab   : > { %v8384_v22 = vpack.c.bf16 %v8273_v48, %v8272_v30  ;;  %10171 = vrot.lane.b32.xlu1 %v8273_v48, %s13723_s21  ;;  %v13109_v48 = vld [vmem:[%s13986_s25 + $0x188] sm:$0xff]  }
 0x8ac   : > { %v7865_v28 = vpop.f32.mrb[4].mxu0 }
 0x8ad   : > { %v7866_v12 = vadd.f32 %v15922_v60, %v7865_v28  ;;  %v7867_v8 = vpop.f32.mrb[5].mxu0  ;;  %12811 = vmatprep.mubr.msk.bf16.mxu1 %vm8471_vm6, %v8384_v22 }
 0x8ae   : > { %v7868_v50 = vpop.f32.mrb[6].mxu0 }
 0x8af   : > { %v8274_v23 = vmax.f32 %v7866_v12, 0.0  ;;  %v7869_v0 = vadd.f32 %v15922_v60, %v7868_v50  ;;  %v7870_v58 = vpop.f32.mrb[7].mxu0 }
 0x8b0   : > { %v13110_v58 = vld [vmem:[%s13986_s25 + $0x190] sm:$0xff]  }
 0x8b1   : > { %v8275_v39 = vmax.f32 %v7869_v0, 0.0  ;;  %8080 = vmatmul.mubr.bf16.gmra.mrb[112].mxu0 %v15869_v51  ;;  %10173 = vrot.lane.b32.xlu0 %v8274_v23, %s13723_s21 }
 0x8b2   : > { %11201 = vmatprep.mubr.msk.bf16.mxu0 %vm7495_vm5, %v13105_v40 }
 0x8b3   : > { %v8385_v26 = vpack.c.bf16 %v8275_v39, %v8274_v23  ;;  %10175 = vrot.lane.b32.xlu1 %v8275_v39, %s13723_s21 }
 0x8b4   : > { %v7873_v5 = vpop.f32.mrb[8].mxu0 }
 0x8b5   : > { %v7874_v49 = vadd.f32 %v15922_v60, %v7873_v5  ;;  %v7875_v27 = vpop.f32.mrb[9].mxu0  ;;  %12812 = vmatmul.mubr.msk.bf16.gmra.mrb[96].mxu1 %vm8471_vm6, %v8385_v26 }
 0x8b6   : > { %v7876_v63 = vpop.f32.mrb[10].mxu0 }
 0x8b7   : > { %v8276_v4 = vmax.f32 %v7874_v49, 0.0  ;;  %v7877_v36 = vadd.f32 %v15922_v60, %v7876_v63  ;;  %v7878_v51 = vpop.f32.mrb[11].mxu0 }
 0x8b9   : > { %v8277_v52 = vmax.f32 %v7877_v36, 0.0  ;;  %8088 = vmatmul.mubr.bf16.gmra.mrb[116].mxu0 %v15866_v62  ;;  %10177 = vrot.lane.b32.xlu0 %v8276_v4, %s13723_s21  ;;  %v13111_v36 = vld [vmem:[%s13986_s25 + $0x198] sm:$0xff]  }
 0x8ba   : > { %11202 = vmatprep.mubr.msk.bf16.mxu0 %vm7495_vm5, %v13106_v42 }
 0x8bb   : > { %v8386_v21 = vpack.c.bf16 %v8277_v52, %v8276_v4  ;;  %10179 = vrot.lane.b32.xlu1 %v8277_v52, %s13723_s21 }
 0x8bc   : > { %v7881_v7 = vpop.f32.mrb[12].mxu0 }
 0x8bd   : > { %v7882_v45 = vadd.f32 %v15922_v60, %v7881_v7  ;;  %v7883_v29 = vpop.f32.mrb[13].mxu0  ;;  %12815 = vmatprep.mubr.msk.bf16.mxu1 %vm8471_vm6, %v8386_v21 }
 0x8be   : > { %v7884_v18 = vpop.f32.mrb[14].mxu0 }
 0x8bf   : > { %v8278_v47 = vmax.f32 %v7882_v45, 0.0  ;;  %v7885_v59 = vadd.f32 %v15922_v60, %v7884_v18  ;;  %v7886_v62 = vpop.f32.mrb[15].mxu0 }
 0x8c1   : > { %v8279_v53 = vmax.f32 %v7885_v59, 0.0  ;;  %8096 = vmatmul.mubr.bf16.gmra.mrb[120].mxu0 %v15880_v1  ;;  %10181 = vrot.lane.b32.xlu0 %v8278_v47, %s13723_s21 }
 0x8c2   : > { %11203 = vmatprep.mubr.msk.bf16.mxu0 %vm7495_vm5, %v13107_v38 }
 0x8c3   : > { %v8387_v34 = vpack.c.bf16 %v8279_v53, %v8278_v47  ;;  %10183 = vrot.lane.b32.xlu1 %v8279_v53, %s13723_s21  ;;  %v13112_v47 = vld [vmem:[%s13986_s25 + $0x1a0] sm:$0xff]  }
 0x8c4   : > { %v7889_v43 = vpop.f32.mrb[16].mxu0 }
 0x8c5   : > { %v7890_v9 = vadd.f32 %v15922_v60, %v7889_v43  ;;  %v7891_v6 = vpop.f32.mrb[17].mxu0  ;;  %12816 = vmatmul.mubr.msk.bf16.gmra.mrb[100].mxu1 %vm8471_vm6, %v8387_v34 }
 0x8c6   : > { %v7892_v17 = vpop.f32.mrb[18].mxu0 }
 0x8c7   : > { %v8280_v31 = vmax.f32 %v7890_v9, 0.0  ;;  %v7893_v41 = vadd.f32 %v15922_v60, %v7892_v17  ;;  %v7894_v1 = vpop.f32.mrb[19].mxu0 }
 0x8c9   : > { %v8281_v46 = vmax.f32 %v7893_v41, 0.0  ;;  %8104 = vmatmul.mubr.bf16.gmra.mrb[124].mxu0 %v15877_v37  ;;  %10185 = vrot.lane.b32.xlu0 %v8280_v31, %s13723_s21 }
 0x8ca   : > { %11204 = vmatprep.mubr.msk.bf16.mxu0 %vm7495_vm5, %v13108_v56  ;;  %v13113_v56 = vld [vmem:[%s13986_s25 + $0x1a8] sm:$0xff]  }
 0x8cb   : > { %v8388_v15 = vpack.c.bf16 %v8281_v46, %v8280_v31  ;;  %10187 = vrot.lane.b32.xlu1 %v8281_v46, %s13723_s21 }
 0x8cc   : > { %v7897_v20 = vpop.f32.mrb[20].mxu0 }
 0x8cd   : > { %v7898_v30 = vadd.f32 %v15922_v60, %v7897_v20  ;;  %v7899_v14 = vpop.f32.mrb[21].mxu0  ;;  %12819 = vmatprep.mubr.msk.bf16.mxu1 %vm8471_vm6, %v8388_v15 }
 0x8ce   : > { %v7900_v57 = vpop.f32.mrb[22].mxu0 }
 0x8cf   : > { %v8282_v22 = vmax.f32 %v7898_v30, 0.0  ;;  %v7901_v28 = vadd.f32 %v15922_v60, %v7900_v57  ;;  %v7902_v37 = vpop.f32.mrb[23].mxu0  ;;  %v13114_v57 = vld [vmem:[%s13986_s25 + $0x1b0] sm:$0xff]  }
 0x8d1   : > { %v8283_v12 = vmax.f32 %v7901_v28, 0.0  ;;  %8112 = vmatmul.mubr.bf16.gmra.mrb[128].mxu0 %v15891_v33  ;;  %10189 = vrot.lane.b32.xlu0 %v8282_v22, %s13723_s21 }
 0x8d2   : > { %11205 = vmatprep.mubr.msk.bf16.mxu0 %vm7495_vm5, %v13109_v48 }
 0x8d3   : > { %v8389_v8 = vpack.c.bf16 %v8283_v12, %v8282_v22  ;;  %10191 = vrot.lane.b32.xlu1 %v8283_v12, %s13723_s21 }
 0x8d4   : > { %v7905_v50 = vpop.f32.mrb[24].mxu0 }
 0x8d5   : > { %v7906_v40 = vadd.f32 %v15922_v60, %v7905_v50  ;;  %v7907_v23 = vpop.f32.mrb[25].mxu0  ;;  %12820 = vmatmul.mubr.msk.bf16.gmra.mrb[104].mxu1 %vm8471_vm6, %v8389_v8 }
 0x8d6   : > { %v7908_v0 = vpop.f32.mrb[26].mxu0  ;;  %v13115_v23 = vld [vmem:[%s13986_s25 + $0x1b8] sm:$0xff]  }
 0x8d7   : > { %v8284_v39 = vmax.f32 %v7906_v40, 0.0  ;;  %v7909_v26 = vadd.f32 %v15922_v60, %v7908_v0  ;;  %v7910_v33 = vpop.f32.mrb[27].mxu0 }
 0x8d9   : > { %v8285_v5 = vmax.f32 %v7909_v26, 0.0  ;;  %8120 = vmatmul.mubr.bf16.gmra.mrb[132].mxu0 %v15888_v2  ;;  %10193 = vrot.lane.b32.xlu0 %v8284_v39, %s13723_s21 }
 0x8da   : > { %11206 = vmatprep.mubr.msk.bf16.mxu0 %vm7495_vm5, %v13110_v58 }
 0x8db   : > { %v8390_v49 = vpack.c.bf16 %v8285_v5, %v8284_v39  ;;  %10195 = vrot.lane.b32.xlu1 %v8285_v5, %s13723_s21 }
 0x8dc   : > { %v7913_v27 = vpop.f32.mrb[28].mxu0 }
 0x8dd   : > { %v7914_v63 = vadd.f32 %v15922_v60, %v7913_v27  ;;  %v7915_v42 = vpop.f32.mrb[29].mxu0  ;;  %12823 = vmatprep.mubr.msk.bf16.mxu1 %vm8471_vm6, %v8390_v49 }
 0x8de   : > { %v7916_v4 = vpop.f32.mrb[30].mxu0 }
 0x8df   : > { %v8286_v51 = vmax.f32 %v7914_v63, 0.0  ;;  %v7917_v52 = vadd.f32 %v15922_v60, %v7916_v4  ;;  %v7918_v2 = vpop.f32.mrb[31].mxu0  ;;  %v16195_v63 = vld [vmem:[%s16971_s19] ss:$0 sm:$0xff] }
 0x8e1   : > { %v8287_v21 = vmax.f32 %v7917_v52, 0.0  ;;  %8128 = vmatmul.mubr.bf16.gmra.mrb[136].mxu0 %v15902_v13  ;;  %10197 = vrot.lane.b32.xlu0 %v8286_v51, %s13723_s21 }
 0x8e2   : > { %11207 = vmatprep.mubr.msk.bf16.mxu0 %vm7495_vm5, %v13111_v36 }
 0x8e3   : > { %v8391_v7 = vpack.c.bf16 %v8287_v21, %v8286_v51  ;;  %10199 = vrot.lane.b32.xlu1 %v8287_v21, %s13723_s21 }
 0x8e4   : > { %v7921_v45 = vpop.f32.mrb[32].mxu0 }
 0x8e5   : > { %v7922_v29 = vadd.f32 %v15922_v60, %v7921_v45  ;;  %v7923_v18 = vpop.f32.mrb[33].mxu0  ;;  %12824 = vmatmul.mubr.msk.bf16.gmra.mrb[108].mxu1 %vm8471_vm6, %v8391_v7 }
 0x8e6   : > { %v7924_v38 = vpop.f32.mrb[34].mxu0 }
 0x8e7   : > { %v8288_v59 = vmax.f32 %v7922_v29, 0.0  ;;  %v7925_v62 = vadd.f32 %v15922_v60, %v7924_v38  ;;  %v7926_v13 = vpop.f32.mrb[35].mxu0 }
 0x8e8   : > { %v16210_v13 = vld [vmem:[%s16969_s17] ss:$0 sm:$0xff] }
 0x8e9   : > { %v8289_v53 = vmax.f32 %v7925_v62, 0.0  ;;  %8136 = vmatmul.mubr.bf16.gmra.mrb[140].mxu0 %v15899_v25  ;;  %10201 = vrot.lane.b32.xlu0 %v8288_v59, %s13723_s21 }
 0x8ea   : > { %11208 = vmatprep.mubr.msk.bf16.mxu0 %vm7495_vm5, %v13112_v47 }
 0x8eb   : > { %v8392_v34 = vpack.c.bf16 %v8289_v53, %v8288_v59  ;;  %10203 = vrot.lane.b32.xlu1 %v8289_v53, %s13723_s21 }
 0x8ec   : > { %v7929_v43 = vpop.f32.mrb[36].mxu0 }
 0x8ed   : > { %v7930_v9 = vadd.f32 %v15922_v60, %v7929_v43  ;;  %v7931_v6 = vpop.f32.mrb[37].mxu0  ;;  %12827 = vmatprep.mubr.msk.bf16.mxu1 %vm8471_vm6, %v8392_v34 }
 0x8ee   : > { %v7932_v17 = vpop.f32.mrb[38].mxu0  ;;  %v13117_v6 = vld [vmem:[%s13986_s25 + $0x1c8] sm:$0xff]  }
 0x8ef   : > { %v8290_v31 = vmax.f32 %v7930_v9, 0.0  ;;  %v7933_v41 = vadd.f32 %v15922_v60, %v7932_v17  ;;  %v7934_v25 = vpop.f32.mrb[39].mxu0 }
 0x8f1   : > { %v8291_v1 = vmax.f32 %v7933_v41, 0.0  ;;  %8144 = vmatmul.mubr.bf16.gmra.mrb[144].mxu0 %v15913_v61  ;;  %10205 = vrot.lane.b32.xlu0 %v8290_v31, %s13723_s21 }
 0x8f2   : > { %11209 = vmatprep.mubr.msk.bf16.mxu0 %vm7495_vm5, %v13113_v56 }
 0x8f3   : > { %v8393_v46 = vpack.c.bf16 %v8291_v1, %v8290_v31  ;;  %10207 = vrot.lane.b32.xlu1 %v8291_v1, %s13723_s21 }
 0x8f4   : > { %v7937_v15 = vpop.f32.mrb[40].mxu0 }
 0x8f5   : > { %v7938_v20 = vadd.f32 %v15922_v60, %v7937_v15  ;;  %v7939_v30 = vpop.f32.mrb[41].mxu0  ;;  %12828 = vmatmul.mubr.msk.bf16.gmra.mrb[112].mxu1 %vm8471_vm6, %v8393_v46 }
 0x8f6   : > { %v7940_v14 = vpop.f32.mrb[42].mxu0  ;;  %v13118_v30 = vld [vmem:[%s13986_s25 + $0x1d0] sm:$0xff]  }
 0x8f7   : > { %v8292_v48 = vmax.f32 %v7938_v20, 0.0  ;;  %v7941_v22 = vadd.f32 %v15922_v60, %v7940_v14  ;;  %v7942_v61 = vpop.f32.mrb[43].mxu0 }
 0x8f9   : > { %v8293_v28 = vmax.f32 %v7941_v22, 0.0  ;;  %8152 = vmatmul.mubr.bf16.gmra.mrb[148].mxu0 %v15910_v44  ;;  %10209 = vrot.lane.b32.xlu0 %v8292_v48, %s13723_s21 }
 0x8fa   : > { %11210 = vmatprep.mubr.msk.bf16.mxu0 %vm7495_vm5, %v13114_v57 }
 0x8fb   : > { %v8394_v37 = vpack.c.bf16 %v8293_v28, %v8292_v48  ;;  %10211 = vrot.lane.b32.xlu1 %v8293_v28, %s13723_s21 }
 0x8fc   : > { %v7945_v12 = vpop.f32.mrb[44].mxu0 }
 0x8fd   : > { %v7946_v8 = vadd.f32 %v15922_v60, %v7945_v12  ;;  %v7947_v50 = vpop.f32.mrb[45].mxu0  ;;  %12831 = vmatprep.mubr.msk.bf16.mxu1 %vm8471_vm6, %v8394_v37 }
 0x8fe   : > { %v7948_v40 = vpop.f32.mrb[46].mxu0 }
 0x8ff   : > { %v8294_v0 = vmax.f32 %v7946_v8, 0.0  ;;  %v7949_v58 = vadd.f32 %v15922_v60, %v7948_v40  ;;  %v7950_v44 = vpop.f32.mrb[47].mxu0 }
 0x901   : > { %v8295_v39 = vmax.f32 %v7949_v58, 0.0  ;;  %8160 = vmatmul.mubr.bf16.gmra.mrb[152].mxu0 %v15930_v55  ;;  %10213 = vrot.lane.b32.xlu0 %v8294_v0, %s13723_s21  ;;  %v13116_v55 = vld [vmem:[%s13986_s25 + $0x1c0] sm:$0xff]  }
 0x902   : > { %11211 = vmatprep.mubr.msk.bf16.mxu0 %vm7495_vm5, %v13115_v23 }
 0x903   : > { %v8395_v26 = vpack.c.bf16 %v8295_v39, %v8294_v0  ;;  %10215 = vrot.lane.b32.xlu1 %v8295_v39, %s13723_s21 }
 0x904   : > { %v7953_v33 = vpop.f32.mrb[48].mxu0 }
 0x905   : > { %v7954_v5 = vadd.f32 %v15922_v60, %v7953_v33  ;;  %v7955_v49 = vpop.f32.mrb[49].mxu0  ;;  %12832 = vmatmul.mubr.msk.bf16.gmra.mrb[116].mxu1 %vm8471_vm6, %v8395_v26 }
 0x906   : > { %v7956_v27 = vpop.f32.mrb[50].mxu0 }
 0x907   : > { %v8296_v42 = vmax.f32 %v7954_v5, 0.0  ;;  %v7957_v4 = vadd.f32 %v15922_v60, %v7956_v27  ;;  %v7958_v36 = vpop.f32.mrb[51].mxu0 }
 0x908   : > { %v12781_v51 = vpop.f32.mrb[64].mxu1 }
 0x909   : > { %v8297_v52 = vmax.f32 %v7957_v4, 0.0  ;;  %v8707_v2 = vadd.f32 %v12781_v51, %v16195_v63  ;;  %8168 = vmatmul.mubr.bf16.gmra.mrb[156].mxu0 %v15927_v16  ;;  %10217 = vrot.lane.b32.xlu0 %v8296_v42, %s13723_s21  ;;  %v8698_v21 = vpop.f32.mrb[65].mxu1 }
 0x90a   : > { %v8699_v7 = vadd.f32 %v16195_v63, %v8698_v21  ;;  %v12782_v45 = vpop.f32.mrb[66].mxu1  ;;  %11212 = vmatprep.mubr.msk.bf16.mxu0 %vm7495_vm5, %v13116_v55 }
 0x90b   : > { %v8396_v29 = vpack.c.bf16 %v8297_v52, %v8296_v42  ;;  %v11291_v18 = vmul.f32 -1.442695, %v8707_v2  ;;  %v8710_v60 = vadd.f32 %v12782_v45, %v16195_v63  ;;  %10219 = vrot.lane.b32.xlu1 %v8297_v52, %s13723_s21  ;;  %v8701_v38 = vpop.f32.mrb[67].mxu1  ;;  %v13119_v2 = vld [vmem:[%s13986_s25 + $0x1d8] sm:$0xff]  }
 0x90c   : > { %v11289_v47 = vmul.f32 -1.442695, %v8699_v7  ;;  %v8702_v59 = vadd.f32 %v16195_v63, %v8701_v38  ;;  %v7961_v16 = vpop.f32.mrb[52].mxu0 }
 0x90d   : > { %13124 = vpow2.f32 %v11291_v18  ;;  %v11292_v62 = vmul.f32 -1.442695, %v8710_v60  ;;  %v7962_v53 = vadd.f32 %v16210_v13, %v7961_v16  ;;  %v7963_v34 = vpop.f32.mrb[53].mxu0  ;;  %12835 = vmatprep.mubr.msk.bf16.mxu1 %vm8471_vm6, %v8396_v29  ;;  %v10110_v29 = vpop.permute.xlu1 %10109 }
 0x90e   : > { %13126 = vpow2.f32 %v11289_v47  ;;  %v11290_v43 = vmul.f32 -1.442695, %v8702_v59  ;;  %v7964_v9 = vpop.f32.mrb[54].mxu0  ;;  %v10106_v18 = vpop.permute.xlu0 %10105 }
 0x90f   : > { %13128 = vpow2.f32 %v11292_v62  ;;  %v8298_v17 = vmax.f32 %v7962_v53, 0.0  ;;  %v7965_v56 = vadd.f32 %v16210_v13, %v7964_v9  ;;  %v7966_v31 = vpop.f32.mrb[55].mxu0 }
 0x910   : > { %13130 = vpow2.f32 %v11290_v43 }
 0x911   : > { %v8299_v41 = vmax.f32 %v7965_v56, 0.0  ;;  %8176 = vmatmul.mubr.bf16.gmra.mrb[160].mxu0 %v15951_v35  ;;  %10221 = vrot.lane.b32.xlu0 %v8298_v17, %s13723_s21  ;;  %v10112_v43 = vpop.permute.xlu1 %10111 }
 0x912   : > { %11213 = vmatprep.mubr.msk.bf16.mxu0 %vm7495_vm5, %v13117_v6  ;;  %v10108_v31 = vpop.permute.xlu0 %10107 }
 0x913   : > { %v8397_v25 = vpack.c.bf16 %v8299_v41, %v8298_v17  ;;  %10223 = vrot.lane.b32.xlu1 %v8299_v41, %s13723_s21  ;;  %v13120_v17 = vld [vmem:[%s13986_s25 + $0x1e0] sm:$0xff]  }
 0x914   : > { %v7969_v1 = vpop.f32.mrb[56].mxu0 }
 0x915   : > { %v7970_v46 = vadd.f32 %v16210_v13, %v7969_v1  ;;  %v7971_v15 = vpop.f32.mrb[57].mxu0  ;;  %12836 = vmatmul.mubr.msk.bf16.gmra.mrb[120].mxu1 %vm8471_vm6, %v8397_v25 }
 0x916   : > { %v7972_v20 = vpop.f32.mrb[58].mxu0 }
 0x917   : > { %v13125_v14 = vpop.eup %13124  ;;  %v8300_v57 = vmax.f32 %v7970_v46, 0.0  ;;  %v7973_v48 = vadd.f32 %v16210_v13, %v7972_v20  ;;  %v7974_v35 = vpop.f32.mrb[59].mxu0 }
 0x918   : > { %v13127_v22 = vpop.eup %13126  ;;  %v9595_v61 = vadd.f32 1.0, %v13125_v14  ;;  %v12785_v28 = vpop.f32.mrb[68].mxu1 }
 0x919   : > { %v13129_v37 = vpop.eup %13128  ;;  %v9593_v12 = vadd.f32 1.0, %v13127_v22  ;;  %v8301_v8 = vmax.f32 %v7973_v48, 0.0  ;;  %v8723_v50 = vadd.f32 %v12785_v28, %v16195_v63  ;;  %8184 = vmatmul.mubr.bf16.gmra.mrb[164].mxu0 %v15948_v54  ;;  %10225 = vrot.lane.b32.xlu0 %v8300_v57, %s13723_s21  ;;  %v8714_v40 = vpop.f32.mrb[69].mxu1 }
 0x91a   : > { %v13131_v23 = vpop.eup %13130  ;;  %13132 = vrcp.f32 %v9595_v61  ;;  %v9596_v0 = vadd.f32 1.0, %v13129_v37  ;;  %v8715_v58 = vadd.f32 %v16195_v63, %v8714_v40  ;;  %v12786_v44 = vpop.f32.mrb[70].mxu1  ;;  %11214 = vmatprep.mubr.msk.bf16.mxu0 %vm7495_vm5, %v13118_v30 }
 0x91b   : > { %13134 = vrcp.f32 %v9593_v12  ;;  %v9594_v39 = vadd.f32 1.0, %v13131_v23  ;;  %v8398_v26 = vpack.c.bf16 %v8301_v8, %v8300_v57  ;;  %v11295_v33 = vmul.f32 -1.442695, %v8723_v50  ;;  %10227 = vrot.lane.b32.xlu1 %v8301_v8, %s13723_s21  ;;  %v8717_v5 = vpop.f32.mrb[71].mxu1 }
 0x91c   : > { %13136 = vrcp.f32 %v9596_v0  ;;  %v11293_v54 = vmul.f32 -1.442695, %v8715_v58  ;;  %v8726_v49 = vadd.f32 %v12786_v44, %v16195_v63  ;;  %v8718_v27 = vadd.f32 %v16195_v63, %v8717_v5  ;;  %v7977_v55 = vpop.f32.mrb[60].mxu0 }
 0x91d   : > { %13138 = vrcp.f32 %v9594_v39  ;;  %v7978_v42 = vadd.f32 %v16210_v13, %v7977_v55  ;;  %v7979_v4 = vpop.f32.mrb[61].mxu0  ;;  %12839 = vmatprep.mubr.msk.bf16.mxu1 %vm8471_vm6, %v8398_v26 }
 0x91e   : > { %13140 = vpow2.f32 %v11295_v33  ;;  %v11296_v36 = vmul.f32 -1.442695, %v8726_v49  ;;  %v11294_v51 = vmul.f32 -1.442695, %v8718_v27  ;;  %v7980_v52 = vpop.f32.mrb[62].mxu0  ;;  %v13121_v27 = vld [vmem:[%s13986_s25 + $0x1e8] sm:$0xff]  }
 0x91f   : > { %13142 = vpow2.f32 %v11293_v54  ;;  %v8302_v21 = vmax.f32 %v7978_v42, 0.0  ;;  %v7981_v7 = vadd.f32 %v16210_v13, %v7980_v52  ;;  %v7982_v45 = vpop.f32.mrb[63].mxu0 }
 0x920   : > { %13144 = vpow2.f32 %v11296_v36 }
 0x921   : > { %13146 = vpow2.f32 %v11294_v51  ;;  %v8303_v60 = vmax.f32 %v7981_v7, 0.0  ;;  %8192 = vmatmul.mubr.bf16.gmra.mrb[168].mxu0 %v15967_v11  ;;  %10229 = vrot.lane.b32.xlu0 %v8302_v21, %s13723_s21  ;;  %v10114_v51 = vpop.permute.xlu0 %10113 }
 0x922   : > { %11215 = vmatprep.mubr.msk.bf16.mxu0 %vm7495_vm5, %v13119_v2  ;;  %v10116_v2 = vpop.permute.xlu1 %10115 }
 0x923   : > { %v8399_v38 = vpack.c.bf16 %v8303_v60, %v8302_v21  ;;  %10231 = vrot.lane.b32.xlu1 %v8303_v60, %s13723_s21 }
 0x924   : > { %v13133_v47 = vpop.eup %13132  ;;  %v7985_v59 = vpop.f32.mrb[64].mxu0 }
 0x925   : > { %v13135_v11 = vpop.eup %13134  ;;  %v10492_v16 = vsel %vm10489_vm7, %v13133_v47, %v10110_v29  ;;  %v7986_v62 = vadd.f32 %v16210_v13, %v7985_v59  ;;  %v7987_v53 = vpop.f32.mrb[65].mxu0  ;;  %12840 = vmatmul.mubr.msk.bf16.gmra.mrb[124].mxu1 %vm8471_vm6, %v8399_v38  ;;  %v13122_v59 = vld [vmem:[%s13986_s25 + $0x1f0] sm:$0xff]  }
 0x926   : > { %v13137_v34 = vpop.eup %13136  ;;  %10621 = vst.msk [vmem:[%s16243_s23 + $0x10] sm:$0xff] %vm10618_vm8, %v10492_v16  ;;  %v10490_v9 = vsel %vm10489_vm7, %v13135_v11, %v10106_v18  ;;  %v7988_v6 = vpop.f32.mrb[66].mxu0 }
 0x927   : > { %v13139_v56 = vpop.eup %13138  ;;  %10619 = vst.msk [vmem:[%s16243_s23] sm:$0xff] %vm10618_vm8, %v10490_v9  ;;  %v10493_v41 = vsel %vm10489_vm7, %v13137_v34, %v10112_v43  ;;  %v8304_v25 = vmax.f32 %v7986_v62, 0.0  ;;  %v7989_v1 = vadd.f32 %v16210_v13, %v7988_v6  ;;  %v7990_v46 = vpop.f32.mrb[67].mxu0 }
 0x928   : > { %v13141_v15 = vpop.eup %13140  ;;  %10622 = vst.msk [vmem:[%s16243_s23 + $0x18] sm:$0xff] %vm10618_vm8, %v10493_v41  ;;  %v10491_v20 = vsel %vm10489_vm7, %v13139_v56, %v10108_v31  ;;  %v12789_v30 = vpop.f32.mrb[72].mxu1 }
 0x929   : > { %v13143_v14 = vpop.eup %13142  ;;  %10620 = vst.msk [vmem:[%s16243_s23 + $0x8] sm:$0xff] %vm10618_vm8, %v10491_v20  ;;  %v9599_v57 = vadd.f32 1.0, %v13141_v15  ;;  %v8305_v48 = vmax.f32 %v7989_v1, 0.0  ;;  %v8739_v35 = vadd.f32 %v12789_v30, %v16195_v63  ;;  %8200 = vmatmul.mubr.bf16.gmra.mrb[172].mxu0 %v15964_v10  ;;  %10233 = vrot.lane.b32.xlu0 %v8304_v25, %s13723_s21  ;;  %v8730_v22 = vpop.f32.mrb[73].mxu1 }
 0x92a   : > { %v13145_v61 = vpop.eup %13144  ;;  %v9597_v28 = vadd.f32 1.0, %v13143_v14  ;;  %v8731_v37 = vadd.f32 %v16195_v63, %v8730_v22  ;;  %v12790_v12 = vpop.f32.mrb[74].mxu1  ;;  %11216 = vmatprep.mubr.msk.bf16.mxu0 %vm7495_vm5, %v13120_v17 }
 0x92b   : > { %v13147_v8 = vpop.eup %13146  ;;  %13148 = vrcp.f32 %v9599_v57  ;;  %v9600_v50 = vadd.f32 1.0, %v13145_v61  ;;  %v8400_v40 = vpack.c.bf16 %v8305_v48, %v8304_v25  ;;  %v11299_v23 = vmul.f32 -1.442695, %v8739_v35  ;;  %10235 = vrot.lane.b32.xlu1 %v8305_v48, %s13723_s21  ;;  %v8733_v0 = vpop.f32.mrb[75].mxu1 }
 0x92c   : > { %13150 = vrcp.f32 %v9597_v28  ;;  %v9598_v10 = vadd.f32 1.0, %v13147_v8  ;;  %v11297_v58 = vmul.f32 -1.442695, %v8731_v37  ;;  %v8742_v44 = vadd.f32 %v12790_v12, %v16195_v63  ;;  %v7993_v39 = vpop.f32.mrb[68].mxu0  ;;  %v10118_v29 = vpop.permute.xlu0 %10117 }
 0x92d   : > { %13152 = vrcp.f32 %v9600_v50  ;;  %v8734_v26 = vadd.f32 %v16195_v63, %v8733_v0  ;;  %v7994_v33 = vadd.f32 %v16210_v13, %v7993_v39  ;;  %v7995_v5 = vpop.f32.mrb[69].mxu0  ;;  %12843 = vmatprep.mubr.msk.bf16.mxu1 %vm8471_vm6, %v8400_v40  ;;  %v10120_v16 = vpop.permute.xlu1 %10119 }
 0x92e   : > { %13154 = vrcp.f32 %v9598_v10  ;;  %v11300_v54 = vmul.f32 -1.442695, %v8742_v44  ;;  %v7996_v49 = vpop.f32.mrb[70].mxu0 }
 0x92f   : > { %13156 = vpow2.f32 %v11299_v23  ;;  %v11298_v55 = vmul.f32 -1.442695, %v8734_v26  ;;  %v8306_v42 = vmax.f32 %v7994_v33, 0.0  ;;  %v7997_v4 = vadd.f32 %v16210_v13, %v7996_v49  ;;  %v7998_v36 = vpop.f32.mrb[71].mxu0 }
 0x930   : > { %13158 = vpow2.f32 %v11297_v58  ;;  %v13123_v58 = vld [vmem:[%s13986_s25 + $0x1f8] sm:$0xff]  }
 0x931   : > { %13160 = vpow2.f32 %v11300_v54  ;;  %v8307_v52 = vmax.f32 %v7997_v4, 0.0  ;;  %8208 = vmatmul.mubr.bf16.gmra.mrb[176].mxu0 %v15983_v32  ;;  %10237 = vrot.lane.b32.xlu0 %v8306_v42, %s13723_s21  ;;  %v10122_v54 = vpop.permute.xlu0 %10121 }
 0x932   : > { %13162 = vpow2.f32 %v11298_v55  ;;  %11217 = vmatprep.mubr.msk.bf16.mxu0 %vm7495_vm5, %v13121_v27  ;;  %v10124_v27 = vpop.permute.xlu1 %10123 }
 0x933   : > { %v8401_v21 = vpack.c.bf16 %v8307_v52, %v8306_v42  ;;  %10239 = vrot.lane.b32.xlu1 %v8307_v52, %s13723_s21 }
 0x934   : > { %v8001_v7 = vpop.f32.mrb[72].mxu0 }
 0x935   : > { %v13149_v45 = vpop.eup %13148  ;;  %v8002_v18 = vadd.f32 %v16210_v13, %v8001_v7  ;;  %v8003_v60 = vpop.f32.mrb[73].mxu0  ;;  %12844 = vmatmul.mubr.msk.bf16.gmra.mrb[128].mxu1 %vm8471_vm6, %v8401_v21 }
 0x936   : > { %v13151_v32 = vpop.eup %13150  ;;  %v10496_v38 = vsel %vm10489_vm7, %v13149_v45, %v10118_v29  ;;  %v8004_v47 = vpop.f32.mrb[74].mxu0 }
 0x937   : > { %v13153_v11 = vpop.eup %13152  ;;  %10625 = vst.msk [vmem:[%s16243_s23 + $0x30] sm:$0xff] %vm10618_vm8, %v10496_v38  ;;  %v10494_v62 = vsel %vm10489_vm7, %v13151_v32, %v10114_v51  ;;  %v8308_v53 = vmax.f32 %v8002_v18, 0.0  ;;  %v8005_v34 = vadd.f32 %v16210_v13, %v8004_v47  ;;  %v8006_v43 = vpop.f32.mrb[75].mxu0 }
 0x938   : > { %v13155_v9 = vpop.eup %13154  ;;  %10623 = vst.msk [vmem:[%s16243_s23 + $0x20] sm:$0xff] %vm10618_vm8, %v10494_v62  ;;  %v10497_v6 = vsel %vm10489_vm7, %v13153_v11, %v10120_v16  ;;  %v12793_v17 = vpop.f32.mrb[76].mxu1 }
 0x939   : > { %v13157_v56 = vpop.eup %13156  ;;  %10626 = vst.msk [vmem:[%s16243_s23 + $0x38] sm:$0xff] %vm10618_vm8, %v10497_v6  ;;  %v10495_v31 = vsel %vm10489_vm7, %v13155_v9, %v10116_v2  ;;  %v8309_v41 = vmax.f32 %v8005_v34, 0.0  ;;  %v8755_v25 = vadd.f32 %v12793_v17, %v16195_v63  ;;  %8216 = vmatmul.mubr.bf16.gmra.mrb[180].mxu0 %v15980_v3  ;;  %10241 = vrot.lane.b32.xlu0 %v8308_v53, %s13723_s21  ;;  %v8746_v1 = vpop.f32.mrb[77].mxu1 }
 0x93a   : > { %v13159_v46 = vpop.eup %13158  ;;  %10624 = vst.msk [vmem:[%s16243_s23 + $0x28] sm:$0xff] %vm10618_vm8, %v10495_v31  ;;  %v9603_v15 = vadd.f32 1.0, %v13157_v56  ;;  %v8747_v20 = vadd.f32 %v16195_v63, %v8746_v1  ;;  %v12794_v30 = vpop.f32.mrb[78].mxu1  ;;  %11218 = vmatprep.mubr.msk.bf16.mxu0 %vm7495_vm5, %v13122_v59 }
 0x93b   : > { %v13161_v14 = vpop.eup %13160  ;;  %v9601_v57 = vadd.f32 1.0, %v13159_v46  ;;  %v8402_v48 = vpack.c.bf16 %v8309_v41, %v8308_v53  ;;  %v8758_v35 = vadd.f32 %v12794_v30, %v16195_v63  ;;  %10243 = vrot.lane.b32.xlu1 %v8309_v41, %s13723_s21  ;;  %v8749_v3 = vpop.f32.mrb[79].mxu1  ;;  %v11303_v28 = vmul.f32 -1.442695, %v8755_v25 }
 0x93c   : > { %v13163_v22 = vpop.eup %13162  ;;  %13164 = vrcp.f32 %v9603_v15  ;;  %v9604_v61 = vadd.f32 1.0, %v13161_v14  ;;  %v8750_v37 = vadd.f32 %v16195_v63, %v8749_v3  ;;  %v8009_v12 = vpop.f32.mrb[76].mxu0  ;;  %v11301_v50 = vmul.f32 -1.442695, %v8747_v20 }
 0x93d   : > { %13166 = vrcp.f32 %v9601_v57  ;;  %v9602_v8 = vadd.f32 1.0, %v13163_v22  ;;  %v8010_v40 = vadd.f32 %v16210_v13, %v8009_v12  ;;  %v8011_v23 = vpop.f32.mrb[77].mxu0  ;;  %12847 = vmatprep.mubr.msk.bf16.mxu1 %vm8471_vm6, %v8402_v48  ;;  %v11304_v0 = vmul.f32 -1.442695, %v8758_v35  ;;  %v10126_v36 = vpop.permute.xlu0 %10125 }
 0x93e   : > { %13168 = vrcp.f32 %v9604_v61  ;;  %v8012_v10 = vpop.f32.mrb[78].mxu0  ;;  %v11302_v44 = vmul.f32 -1.442695, %v8750_v37  ;;  %v10128_v18 = vpop.permute.xlu1 %10127 }
 0x93f   : > { %13170 = vrcp.f32 %v9602_v8  ;;  %v8310_v39 = vmax.f32 %v8010_v40, 0.0  ;;  %v8013_v26 = vadd.f32 %v16210_v13, %v8012_v10  ;;  %v8014_v33 = vpop.f32.mrb[79].mxu0 }
 0x940   : > { %13172 = vpow2.f32 %v11303_v28 }
 0x941   : > { %13174 = vpow2.f32 %v11301_v50  ;;  %v8311_v5 = vmax.f32 %v8013_v26, 0.0  ;;  %8224 = vmatmul.mubr.bf16.gmra.mrb[184].mxu0 %v15999_v24  ;;  %10245 = vrot.lane.b32.xlu0 %v8310_v39, %s13723_s21  ;;  %v10130_v8 = vpop.permute.xlu0 %10129 }
 0x942   : > { %13176 = vpow2.f32 %v11304_v0  ;;  %11219 = vmatprep.mubr.msk.bf16.mxu0 %vm7495_vm5, %v13123_v58  ;;  %v10132_v23 = vpop.permute.xlu1 %10131 }
 0x943   : > { %13178 = vpow2.f32 %v11302_v44  ;;  %v8403_v49 = vpack.c.bf16 %v8311_v5, %v8310_v39  ;;  %10247 = vrot.lane.b32.xlu1 %v8311_v5, %s13723_s21 }
 0x944   : > { %v8017_v55 = vpop.f32.mrb[80].mxu0 }
 0x945   : > { %v8018_v42 = vadd.f32 %v16210_v13, %v8017_v55  ;;  %v8019_v4 = vpop.f32.mrb[81].mxu0  ;;  %12848 = vmatmul.mubr.msk.bf16.gmra.mrb[132].mxu1 %vm8471_vm6, %v8403_v49  ;;  %v10134_v39 = vpop.permute.xlu0 %10133 }
 0x946   : > { %v13165_v24 = vpop.eup %13164  ;;  %v8020_v51 = vpop.f32.mrb[82].mxu0 }
 0x947   : > { %v13167_v52 = vpop.eup %13166  ;;  %v10500_v2 = vsel %vm10489_vm7, %v13165_v24, %v10126_v36  ;;  %v8312_v21 = vmax.f32 %v8018_v42, 0.0  ;;  %v8021_v7 = vadd.f32 %v16210_v13, %v8020_v51  ;;  %v8022_v45 = vpop.f32.mrb[83].mxu0 }
 0x948   : > { %v13169_v29 = vpop.eup %13168  ;;  %10629 = vst.msk [vmem:[%s16243_s23 + $0x50] sm:$0xff] %vm10618_vm8, %v10500_v2  ;;  %v10498_v60 = vsel %vm10489_vm7, %v13167_v52, %v10122_v54  ;;  %v12797_v32 = vpop.f32.mrb[80].mxu1 }
 0x949   : > { %v13171_v38 = vpop.eup %13170  ;;  %10627 = vst.msk [vmem:[%s16243_s23 + $0x40] sm:$0xff] %vm10618_vm8, %v10498_v60  ;;  %v10501_v47 = vsel %vm10489_vm7, %v13169_v29, %v10128_v18  ;;  %v8313_v59 = vmax.f32 %v8021_v7, 0.0  ;;  %v8771_v11 = vadd.f32 %v12797_v32, %v16195_v63  ;;  %8232 = vmatmul.mubr.bf16.gmra.mrb[188].mxu0 %v15996_v19  ;;  %10249 = vrot.lane.b32.xlu0 %v8312_v21, %s13723_s21  ;;  %v8762_v16 = vpop.f32.mrb[81].mxu1 }
 0x94a   : > { %v13173_v62 = vpop.eup %13172  ;;  %10630 = vst.msk [vmem:[%s16243_s23 + $0x58] sm:$0xff] %vm10618_vm8, %v10501_v47  ;;  %v10499_v53 = vsel %vm10489_vm7, %v13171_v38, %v10124_v27  ;;  %v8763_v34 = vadd.f32 %v16195_v63, %v8762_v16  ;;  %v12798_v43 = vpop.f32.mrb[82].mxu1 }
 0x94b   : > { %v13175_v9 = vpop.eup %13174  ;;  %10628 = vst.msk [vmem:[%s16243_s23 + $0x48] sm:$0xff] %vm10618_vm8, %v10499_v53  ;;  %v9607_v6 = vadd.f32 1.0, %v13173_v62  ;;  %v8404_v17 = vpack.c.bf16 %v8313_v59, %v8312_v21  ;;  %v8774_v56 = vadd.f32 %v12798_v43, %v16195_v63  ;;  %10251 = vrot.lane.b32.xlu1 %v8313_v59, %s13723_s21  ;;  %v8765_v19 = vpop.f32.mrb[83].mxu1  ;;  %v11307_v20 = vmul.f32 -1.442695, %v8771_v11 }
 0x94c   : > { %v13177_v31 = vpop.eup %13176  ;;  %v9605_v41 = vadd.f32 1.0, %v13175_v9  ;;  %v8766_v25 = vadd.f32 %v16195_v63, %v8765_v19  ;;  %v8025_v1 = vpop.f32.mrb[84].mxu0  ;;  %v11305_v48 = vmul.f32 -1.442695, %v8763_v34 }
 0x94d   : > { %v13179_v46 = vpop.eup %13178  ;;  %13180 = vrcp.f32 %v9607_v6  ;;  %v9608_v15 = vadd.f32 1.0, %v13177_v31  ;;  %v8026_v30 = vadd.f32 %v16210_v13, %v8025_v1  ;;  %v8027_v14 = vpop.f32.mrb[85].mxu0  ;;  %12851 = vmatprep.mubr.msk.bf16.mxu1 %vm8471_vm6, %v8404_v17  ;;  %v11308_v3 = vmul.f32 -1.442695, %v8774_v56 }
 0x94e   : > { %13182 = vrcp.f32 %v9605_v41  ;;  %v9606_v57 = vadd.f32 1.0, %v13179_v46  ;;  %v8028_v35 = vpop.f32.mrb[86].mxu0  ;;  %v11306_v37 = vmul.f32 -1.442695, %v8766_v25  ;;  %v10136_v42 = vpop.permute.xlu1 %10135 }
 0x94f   : > { %13184 = vrcp.f32 %v9608_v15  ;;  %v8314_v22 = vmax.f32 %v8026_v30, 0.0  ;;  %v8029_v61 = vadd.f32 %v16210_v13, %v8028_v35  ;;  %v8030_v28 = vpop.f32.mrb[87].mxu0  ;;  %v10138_v30 = vpop.permute.xlu0 %10137 }
 0x950   : > { %13186 = vrcp.f32 %v9606_v57 }
 0x951   : > { %13188 = vpow2.f32 %v11307_v20  ;;  %v8315_v12 = vmax.f32 %v8029_v61, 0.0  ;;  %10253 = vrot.lane.b32.xlu0 %v8314_v22, %s13723_s21 }
 0x952   : > { %13190 = vpow2.f32 %v11305_v48  ;;  %v10140_v35 = vpop.permute.xlu1 %10139 }
 0x953   : > { %13192 = vpow2.f32 %v11308_v3  ;;  %v8405_v50 = vpack.c.bf16 %v8315_v12, %v8314_v22  ;;  %10255 = vrot.lane.b32.xlu1 %v8315_v12, %s13723_s21 }
 0x954   : > { %13194 = vpow2.f32 %v11306_v37  ;;  %v8033_v40 = vpop.f32.mrb[88].mxu0 }
 0x955   : > { %v8034_v0 = vadd.f32 %v16210_v13, %v8033_v40  ;;  %v8035_v10 = vpop.f32.mrb[89].mxu0  ;;  %12852 = vmatmul.mubr.msk.bf16.gmra.mrb[136].mxu1 %vm8471_vm6, %v8405_v50 }
 0x956   : > { %v8036_v58 = vpop.f32.mrb[90].mxu0 }
 0x957   : > { %v13181_v44 = vpop.eup %13180  ;;  %v8316_v26 = vmax.f32 %v8034_v0, 0.0  ;;  %v8037_v33 = vadd.f32 %v16210_v13, %v8036_v58  ;;  %v8038_v5 = vpop.f32.mrb[91].mxu0 }
 0x958   : > { %v13183_v54 = vpop.eup %13182  ;;  %v10504_v49 = vsel %vm10489_vm7, %v13181_v44, %v10134_v39  ;;  %v12801_v27 = vpop.f32.mrb[84].mxu1 }
 0x959   : > { %v13185_v55 = vpop.eup %13184  ;;  %10633 = vst.msk [vmem:[%s16243_s23 + $0x70] sm:$0xff] %vm10618_vm8, %v10504_v49  ;;  %v10502_v4 = vsel %vm10489_vm7, %v13183_v54, %v10130_v8  ;;  %v8317_v24 = vmax.f32 %v8037_v33, 0.0  ;;  %v8787_v36 = vadd.f32 %v12801_v27, %v16195_v63  ;;  %10257 = vrot.lane.b32.xlu0 %v8316_v26, %s13723_s21  ;;  %v8778_v51 = vpop.f32.mrb[85].mxu1 }
 0x95a   : > { %v13187_v52 = vpop.eup %13186  ;;  %10631 = vst.msk [vmem:[%s16243_s23 + $0x60] sm:$0xff] %vm10618_vm8, %v10502_v4  ;;  %v10505_v2 = vsel %vm10489_vm7, %v13185_v55, %v10136_v42  ;;  %v8779_v21 = vadd.f32 %v16195_v63, %v8778_v51  ;;  %v12802_v7 = vpop.f32.mrb[86].mxu1 }
 0x95b   : > { %v13189_v45 = vpop.eup %13188  ;;  %10634 = vst.msk [vmem:[%s16243_s23 + $0x78] sm:$0xff] %vm10618_vm8, %v10505_v2  ;;  %v10503_v29 = vsel %vm10489_vm7, %v13187_v52, %v10132_v23  ;;  %v8406_v18 = vpack.c.bf16 %v8317_v24, %v8316_v26  ;;  %v11311_v60 = vmul.f32 -1.442695, %v8787_v36  ;;  %v8790_v32 = vadd.f32 %v12802_v7, %v16195_v63  ;;  %10259 = vrot.lane.b32.xlu1 %v8317_v24, %s13723_s21  ;;  %v8781_v38 = vpop.f32.mrb[87].mxu1 }
 0x95c   : > { %v13191_v47 = vpop.eup %13190  ;;  %10632 = vst.msk [vmem:[%s16243_s23 + $0x68] sm:$0xff] %vm10618_vm8, %v10503_v29  ;;  %v9611_v59 = vadd.f32 1.0, %v13189_v45  ;;  %v8782_v11 = vadd.f32 %v16195_v63, %v8781_v38  ;;  %v8041_v16 = vpop.f32.mrb[92].mxu0  ;;  %v11309_v17 = vmul.f32 -1.442695, %v8779_v21 }
 0x95d   : > { %v13193_v62 = vpop.eup %13192  ;;  %v9609_v53 = vadd.f32 1.0, %v13191_v47  ;;  %13196 = vpow2.f32 %v11311_v60  ;;  %v8042_v34 = vadd.f32 %v16210_v13, %v8041_v16  ;;  %v8043_v43 = vpop.f32.mrb[93].mxu0  ;;  %12855 = vmatprep.mubr.msk.bf16.mxu1 %vm8471_vm6, %v8406_v18  ;;  %v11312_v56 = vmul.f32 -1.442695, %v8790_v32 }
 0x95e   : > { %v13195_v9 = vpop.eup %13194  ;;  %13198 = vrcp.f32 %v9611_v59  ;;  %v9612_v6 = vadd.f32 1.0, %v13193_v62  ;;  %v8044_v19 = vpop.f32.mrb[94].mxu0  ;;  %v11310_v46 = vmul.f32 -1.442695, %v8782_v11 }
 0x95f   : > { %13200 = vrcp.f32 %v9609_v53  ;;  %v9610_v31 = vadd.f32 1.0, %v13195_v9  ;;  %v8318_v41 = vmax.f32 %v8042_v34, 0.0  ;;  %v8045_v25 = vadd.f32 %v16210_v13, %v8044_v19  ;;  %v8046_v1 = vpop.f32.mrb[95].mxu0  ;;  %v10142_v8 = vpop.permute.xlu0 %10141 }
 0x960   : > { %13202 = vrcp.f32 %v9612_v6  ;;  %v10144_v26 = vpop.permute.xlu1 %10143 }
 0x961   : > { %13204 = vrcp.f32 %v9610_v31  ;;  %v8319_v15 = vmax.f32 %v8045_v25, 0.0  ;;  %10261 = vrot.lane.b32.xlu0 %v8318_v41, %s13723_s21 }
 0x962   : > { %13206 = vpow2.f32 %v11309_v17 }
 0x963   : > { %13208 = vpow2.f32 %v11312_v56  ;;  %v8407_v20 = vpack.c.bf16 %v8319_v15, %v8318_v41  ;;  %10263 = vrot.lane.b32.xlu1 %v8319_v15, %s13723_s21  ;;  %v10146_v34 = vpop.permute.xlu0 %10145 }
 0x964   : > { %13210 = vpow2.f32 %v11310_v46  ;;  %v8049_v14 = vpop.f32.mrb[96].mxu0  ;;  %v10148_v25 = vpop.permute.xlu1 %10147 }
 0x965   : > { %v8050_v57 = vadd.f32 %v16210_v13, %v8049_v14  ;;  %v8051_v48 = vpop.f32.mrb[97].mxu0  ;;  %12856 = vmatmul.mubr.msk.bf16.gmra.mrb[140].mxu1 %vm8471_vm6, %v8407_v20 }
 0x966   : > { %v8052_v3 = vpop.f32.mrb[98].mxu0 }
 0x967   : > { %v13197_v22 = vpop.eup %13196  ;;  %v8320_v61 = vmax.f32 %v8050_v57, 0.0  ;;  %v8053_v28 = vadd.f32 %v16210_v13, %v8052_v3  ;;  %v8054_v37 = vpop.f32.mrb[99].mxu0 }
 0x968   : > { %v13199_v12 = vpop.eup %13198  ;;  %v9615_v50 = vadd.f32 1.0, %v13197_v22  ;;  %v12805_v40 = vpop.f32.mrb[88].mxu1 }
 0x969   : > { %v13201_v23 = vpop.eup %13200  ;;  %v10508_v0 = vsel %vm10489_vm7, %v13199_v12, %v10142_v8  ;;  %v8321_v10 = vmax.f32 %v8053_v28, 0.0  ;;  %v8803_v58 = vadd.f32 %v12805_v40, %v16195_v63  ;;  %10265 = vrot.lane.b32.xlu0 %v8320_v61, %s13723_s21  ;;  %v8794_v44 = vpop.f32.mrb[89].mxu1 }
 0x96a   : > { %v13203_v39 = vpop.eup %13202  ;;  %10637 = vst.msk [vmem:[%s16243_s23 + $0x90] sm:$0xff] %vm10618_vm8, %v10508_v0  ;;  %v10506_v33 = vsel %vm10489_vm7, %v13201_v23, %v10138_v30  ;;  %13212 = vrcp.f32 %v9615_v50  ;;  %v8795_v5 = vadd.f32 %v16195_v63, %v8794_v44  ;;  %v12806_v54 = vpop.f32.mrb[90].mxu1 }
 0x96b   : > { %v13205_v49 = vpop.eup %13204  ;;  %10635 = vst.msk [vmem:[%s16243_s23 + $0x80] sm:$0xff] %vm10618_vm8, %v10506_v33  ;;  %v10509_v27 = vsel %vm10489_vm7, %v13203_v39, %v10144_v26  ;;  %v8408_v55 = vpack.c.bf16 %v8321_v10, %v8320_v61  ;;  %v11315_v42 = vmul.f32 -1.442695, %v8803_v58  ;;  %v8806_v4 = vadd.f32 %v12806_v54, %v16195_v63  ;;  %10267 = vrot.lane.b32.xlu1 %v8321_v10, %s13723_s21  ;;  %v8797_v24 = vpop.f32.mrb[91].mxu1 }
 0x96c   : > { %v13207_v36 = vpop.eup %13206  ;;  %10638 = vst.msk [vmem:[%s16243_s23 + $0x98] sm:$0xff] %vm10618_vm8, %v10509_v27  ;;  %v10507_v51 = vsel %vm10489_vm7, %v13205_v49, %v10140_v35  ;;  %v11313_v52 = vmul.f32 -1.442695, %v8795_v5  ;;  %v8798_v2 = vadd.f32 %v16195_v63, %v8797_v24  ;;  %v8057_v21 = vpop.f32.mrb[100].mxu0 }
 0x96d   : > { %v13209_v7 = vpop.eup %13208  ;;  %10636 = vst.msk [vmem:[%s16243_s23 + $0x88] sm:$0xff] %vm10618_vm8, %v10507_v51  ;;  %v9613_v45 = vadd.f32 1.0, %v13207_v36  ;;  %13214 = vpow2.f32 %v11315_v42  ;;  %v8058_v29 = vadd.f32 %v16210_v13, %v8057_v21  ;;  %v8059_v18 = vpop.f32.mrb[101].mxu0  ;;  %12859 = vmatprep.mubr.msk.bf16.mxu1 %vm8471_vm6, %v8408_v55  ;;  %v11316_v38 = vmul.f32 -1.442695, %v8806_v4 }
 0x96e   : > { %v13211_v60 = vpop.eup %13210  ;;  %v9616_v32 = vadd.f32 1.0, %v13209_v7  ;;  %13216 = vpow2.f32 %v11313_v52  ;;  %v11314_v47 = vmul.f32 -1.442695, %v8798_v2  ;;  %v8060_v59 = vpop.f32.mrb[102].mxu0 }
 0x96f   : > { %13218 = vrcp.f32 %v9613_v45  ;;  %v9614_v11 = vadd.f32 1.0, %v13211_v60  ;;  %v8322_v16 = vmax.f32 %v8058_v29, 0.0  ;;  %v8061_v62 = vadd.f32 %v16210_v13, %v8060_v59  ;;  %v8062_v53 = vpop.f32.mrb[103].mxu0  ;;  %v10150_v17 = vpop.permute.xlu0 %10149 }
 0x970   : > { %13220 = vrcp.f32 %v9616_v32  ;;  %v10152_v12 = vpop.permute.xlu1 %10151 }
 0x971   : > { %13222 = vrcp.f32 %v9614_v11  ;;  %v8323_v43 = vmax.f32 %v8061_v62, 0.0  ;;  %10269 = vrot.lane.b32.xlu0 %v8322_v16, %s13723_s21 }
 0x972   : > { %13224 = vpow2.f32 %v11316_v38 }
 0x973   : > { %13226 = vpow2.f32 %v11314_v47  ;;  %v8409_v9 = vpack.c.bf16 %v8323_v43, %v8322_v16  ;;  %10271 = vrot.lane.b32.xlu1 %v8323_v43, %s13723_s21  ;;  %v10154_v7 = vpop.permute.xlu0 %10153 }
 0x974   : > { %v13213_v6 = vpop.eup %13212  ;;  %v8065_v56 = vpop.f32.mrb[104].mxu0 }
 0x975   : > { %v10512_v19 = vsel %vm10489_vm7, %v13213_v6, %v10150_v17  ;;  %v8066_v31 = vadd.f32 %v16210_v13, %v8065_v56  ;;  %v8067_v41 = vpop.f32.mrb[105].mxu0  ;;  %12860 = vmatmul.mubr.msk.bf16.gmra.mrb[144].mxu1 %vm8471_vm6, %v8409_v9  ;;  %v10156_v47 = vpop.permute.xlu1 %10155  ;;  %v16426_v9 = vld [vmem:[%s16969_s17] ss:$0 sm:$0xff] }
 0x976   : > { %10641 = vst.msk [vmem:[%s16243_s23 + $0xb0] sm:$0xff] %vm10618_vm8, %v10512_v19  ;;  %v8068_v1 = vpop.f32.mrb[106].mxu0 }
 0x977   : > { %v13215_v46 = vpop.eup %13214  ;;  %v8324_v15 = vmax.f32 %v8066_v31, 0.0  ;;  %v8069_v20 = vadd.f32 %v16210_v13, %v8068_v1  ;;  %v8070_v30 = vpop.f32.mrb[107].mxu0 }
 0x978   : > { %v13217_v14 = vpop.eup %13216  ;;  %v9619_v57 = vadd.f32 1.0, %v13215_v46  ;;  %v12809_v48 = vpop.f32.mrb[92].mxu1  ;;  %v16432_v46 = vld [vmem:[%s16971_s19] ss:$0 sm:$0xff] }
 0x979   : > { %v13219_v35 = vpop.eup %13218  ;;  %v9617_v3 = vadd.f32 1.0, %v13217_v14  ;;  %v8325_v22 = vmax.f32 %v8069_v20, 0.0  ;;  %v8819_v61 = vadd.f32 %v12809_v48, %v16195_v63  ;;  %10273 = vrot.lane.b32.xlu0 %v8324_v15, %s13723_s21  ;;  %v8810_v28 = vpop.f32.mrb[93].mxu1 }
 0x97a   : > { %v13221_v37 = vpop.eup %13220  ;;  %v10510_v8 = vsel %vm10489_vm7, %v13219_v35, %v10146_v34  ;;  %13228 = vrcp.f32 %v9619_v57  ;;  %v8811_v50 = vadd.f32 %v16195_v63, %v8810_v28  ;;  %v12810_v40 = vpop.f32.mrb[94].mxu1 }
 0x97b   : > { %v13223_v23 = vpop.eup %13222  ;;  %10639 = vst.msk [vmem:[%s16243_s23 + $0xa0] sm:$0xff] %vm10618_vm8, %v10510_v8  ;;  %v10513_v0 = vsel %vm10489_vm7, %v13221_v37, %v10152_v12  ;;  %13230 = vrcp.f32 %v9617_v3  ;;  %v8410_v10 = vpack.c.bf16 %v8325_v22, %v8324_v15  ;;  %v11319_v58 = vmul.f32 -1.442695, %v8819_v61  ;;  %10275 = vrot.lane.b32.xlu1 %v8325_v22, %s13723_s21  ;;  %v8813_v44 = vpop.f32.mrb[95].mxu1 }
 0x97c   : > { %v13225_v39 = vpop.eup %13224  ;;  %10642 = vst.msk [vmem:[%s16243_s23 + $0xb8] sm:$0xff] %vm10618_vm8, %v10513_v0  ;;  %v10511_v26 = vsel %vm10489_vm7, %v13223_v23, %v10148_v25  ;;  %v11317_v33 = vmul.f32 -1.442695, %v8811_v50  ;;  %v8822_v5 = vadd.f32 %v12810_v40, %v16195_v63  ;;  %v8814_v54 = vadd.f32 %v16195_v63, %v8813_v44  ;;  %v8073_v49 = vpop.f32.mrb[108].mxu0 }
 0x97d   : > { %v13227_v27 = vpop.eup %13226  ;;  %10640 = vst.msk [vmem:[%s16243_s23 + $0xa8] sm:$0xff] %vm10618_vm8, %v10511_v26  ;;  %v9620_v55 = vadd.f32 1.0, %v13225_v39  ;;  %13232 = vpow2.f32 %v11319_v58  ;;  %v8074_v42 = vadd.f32 %v16210_v13, %v8073_v49  ;;  %v8075_v4 = vpop.f32.mrb[109].mxu0  ;;  %12863 = vmatprep.mubr.msk.bf16.mxu1 %vm8471_vm6, %v8410_v10 }
 0x97e   : > { %v9618_v24 = vadd.f32 1.0, %v13227_v27  ;;  %13234 = vpow2.f32 %v11317_v33  ;;  %v11320_v36 = vmul.f32 -1.442695, %v8822_v5  ;;  %v11318_v51 = vmul.f32 -1.442695, %v8814_v54  ;;  %v8076_v52 = vpop.f32.mrb[110].mxu0  ;;  %v10158_v60 = vpop.permute.xlu0 %10157 }
 0x97f   : > { %13236 = vrcp.f32 %v9620_v55  ;;  %v8326_v2 = vmax.f32 %v8074_v42, 0.0  ;;  %v8077_v63 = vadd.f32 %v16210_v13, %v8076_v52  ;;  %v8078_v21 = vpop.f32.mrb[111].mxu0  ;;  %v10160_v41 = vpop.permute.xlu1 %10159 }
 0x980   : > { %13238 = vrcp.f32 %v9618_v24 }
 0x981   : > { %13240 = vpow2.f32 %v11320_v36  ;;  %v8327_v45 = vmax.f32 %v8077_v63, 0.0  ;;  %10277 = vrot.lane.b32.xlu0 %v8326_v2, %s13723_s21 }
 0x982   : > { %13242 = vpow2.f32 %v11318_v51  ;;  %v10162_v49 = vpop.permute.xlu0 %10161 }
 0x983   : > { %v8411_v29 = vpack.c.bf16 %v8327_v45, %v8326_v2  ;;  %10279 = vrot.lane.b32.xlu1 %v8327_v45, %s13723_s21  ;;  %v10164_v55 = vpop.permute.xlu1 %10163 }
 0x984   : > { %v13229_v18 = vpop.eup %13228  ;;  %v8081_v32 = vpop.f32.mrb[112].mxu0 }
 0x985   : > { %v13231_v38 = vpop.eup %13230  ;;  %v10516_v59 = vsel %vm10489_vm7, %v13229_v18, %v10158_v60  ;;  %v8082_v11 = vadd.f32 %v16210_v13, %v8081_v32  ;;  %v8083_v16 = vpop.f32.mrb[113].mxu0  ;;  %12864 = vmatmul.mubr.msk.bf16.gmra.mrb[148].mxu1 %vm8471_vm6, %v8411_v29 }
 0x986   : > { %10645 = vst.msk [vmem:[%s16243_s23 + $0xd0] sm:$0xff] %vm10618_vm8, %v10516_v59  ;;  %v10514_v62 = vsel %vm10489_vm7, %v13231_v38, %v10154_v7  ;;  %v8084_v53 = vpop.f32.mrb[114].mxu0  ;;  %v10166_v24 = vpop.permute.xlu0 %10165 }
 0x987   : > { %v13233_v34 = vpop.eup %13232  ;;  %10643 = vst.msk [vmem:[%s16243_s23 + $0xc0] sm:$0xff] %vm10618_vm8, %v10514_v62  ;;  %v8328_v43 = vmax.f32 %v8082_v11, 0.0  ;;  %v8085_v6 = vadd.f32 %v16426_v9, %v8084_v53  ;;  %v8086_v13 = vpop.f32.mrb[115].mxu0 }
 0x988   : > { %v13235_v17 = vpop.eup %13234  ;;  %v9623_v56 = vadd.f32 1.0, %v13233_v34  ;;  %v12813_v19 = vpop.f32.mrb[96].mxu1 }
 0x989   : > { %v13237_v31 = vpop.eup %13236  ;;  %v9621_v25 = vadd.f32 1.0, %v13235_v17  ;;  %v8329_v1 = vmax.f32 %v8085_v6, 0.0  ;;  %v8835_v15 = vadd.f32 %v16432_v46, %v12813_v19  ;;  %10281 = vrot.lane.b32.xlu0 %v8328_v43, %s13723_s21  ;;  %v8826_v20 = vpop.f32.mrb[97].mxu1 }
 0x98a   : > { %v13239_v30 = vpop.eup %13238  ;;  %v10517_v14 = vsel %vm10489_vm7, %v13237_v31, %v10160_v41  ;;  %13244 = vrcp.f32 %v9623_v56  ;;  %v8827_v57 = vadd.f32 %v16432_v46, %v8826_v20  ;;  %v12814_v48 = vpop.f32.mrb[98].mxu1 }
 0x98b   : > { %v13241_v35 = vpop.eup %13240  ;;  %10646 = vst.msk [vmem:[%s16243_s23 + $0xd8] sm:$0xff] %vm10618_vm8, %v10517_v14  ;;  %v10515_v3 = vsel %vm10489_vm7, %v13239_v30, %v10156_v47  ;;  %13246 = vrcp.f32 %v9621_v25  ;;  %v8412_v22 = vpack.c.bf16 %v8329_v1, %v8328_v43  ;;  %v11323_v61 = vmul.f32 -1.442695, %v8835_v15  ;;  %10283 = vrot.lane.b32.xlu1 %v8329_v1, %s13723_s21  ;;  %v8829_v28 = vpop.f32.mrb[99].mxu1 }
 0x98c   : > { %v13243_v37 = vpop.eup %13242  ;;  %10644 = vst.msk [vmem:[%s16243_s23 + $0xc8] sm:$0xff] %vm10618_vm8, %v10515_v3  ;;  %v9624_v12 = vadd.f32 1.0, %v13241_v35  ;;  %v11321_v8 = vmul.f32 -1.442695, %v8827_v57  ;;  %v8838_v50 = vadd.f32 %v16432_v46, %v12814_v48  ;;  %v8830_v40 = vadd.f32 %v16432_v46, %v8829_v28  ;;  %v8089_v23 = vpop.f32.mrb[116].mxu0 }
 0x98d   : > { %v9622_v0 = vadd.f32 1.0, %v13243_v37  ;;  %13248 = vpow2.f32 %v11323_v61  ;;  %v8090_v10 = vadd.f32 %v16426_v9, %v8089_v23  ;;  %v8091_v58 = vpop.f32.mrb[117].mxu0  ;;  %12867 = vmatprep.mubr.msk.bf16.mxu1 %vm8471_vm6, %v8412_v22  ;;  %v10168_v38 = vpop.permute.xlu1 %10167 }
 0x98e   : > { %13250 = vrcp.f32 %v9624_v12  ;;  %v11324_v44 = vmul.f32 -1.442695, %v8838_v50  ;;  %v11322_v39 = vmul.f32 -1.442695, %v8830_v40  ;;  %v8092_v26 = vpop.f32.mrb[118].mxu0  ;;  %v10170_v50 = vpop.permute.xlu0 %10169 }
 0x98f   : > { %13252 = vrcp.f32 %v9622_v0  ;;  %v8330_v33 = vmax.f32 %v8090_v10, 0.0  ;;  %v8093_v5 = vadd.f32 %v16426_v9, %v8092_v26  ;;  %v8094_v54 = vpop.f32.mrb[119].mxu0 }
 0x990   : > { %13254 = vpow2.f32 %v11321_v8 }
 0x991   : > { %13256 = vpow2.f32 %v11324_v44  ;;  %v8331_v27 = vmax.f32 %v8093_v5, 0.0  ;;  %10285 = vrot.lane.b32.xlu0 %v8330_v33, %s13723_s21  ;;  %v10172_v23 = vpop.permute.xlu1 %10171 }
 0x992   : > { %13258 = vpow2.f32 %v11322_v39  ;;  %v10174_v58 = vpop.permute.xlu0 %10173 }
 0x993   : > { %v8413_v42 = vpack.c.bf16 %v8331_v27, %v8330_v33  ;;  %10287 = vrot.lane.b32.xlu1 %v8331_v27, %s13723_s21 }
 0x994   : > { %v13245_v4 = vpop.eup %13244  ;;  %v8097_v36 = vpop.f32.mrb[120].mxu0 }
 0x995   : > { %v13247_v51 = vpop.eup %13246  ;;  %v10520_v52 = vsel %vm10489_vm7, %v13245_v4, %v10166_v24  ;;  %v8098_v2 = vadd.f32 %v16426_v9, %v8097_v36  ;;  %v8099_v63 = vpop.f32.mrb[121].mxu0  ;;  %12868 = vmatmul.mubr.msk.bf16.gmra.mrb[152].mxu1 %vm8471_vm6, %v8413_v42 }
 0x996   : > { %10649 = vst.msk [vmem:[%s16243_s23 + $0xf0] sm:$0xff] %vm10618_vm8, %v10520_v52  ;;  %v10518_v21 = vsel %vm10489_vm7, %v13247_v51, %v10162_v49  ;;  %v8100_v7 = vpop.f32.mrb[122].mxu0  ;;  %v10176_v4 = vpop.permute.xlu1 %10175 }
 0x997   : > { %v13249_v45 = vpop.eup %13248  ;;  %10647 = vst.msk [vmem:[%s16243_s23 + $0xe0] sm:$0xff] %vm10618_vm8, %v10518_v21  ;;  %v8332_v29 = vmax.f32 %v8098_v2, 0.0  ;;  %v8101_v18 = vadd.f32 %v16426_v9, %v8100_v7  ;;  %v8102_v60 = vpop.f32.mrb[123].mxu0 }
 0x998   : > { %v13251_v32 = vpop.eup %13250  ;;  %v9627_v47 = vadd.f32 1.0, %v13249_v45  ;;  %v12817_v59 = vpop.f32.mrb[100].mxu1 }
 0x999   : > { %v13253_v11 = vpop.eup %13252  ;;  %v10521_v16 = vsel %vm10489_vm7, %v13251_v32, %v10168_v38  ;;  %v8333_v62 = vmax.f32 %v8101_v18, 0.0  ;;  %v8851_v53 = vadd.f32 %v16432_v46, %v12817_v59  ;;  %10289 = vrot.lane.b32.xlu0 %v8332_v29, %s13723_s21  ;;  %v8842_v34 = vpop.f32.mrb[101].mxu1 }
 0x99a   : > { %v13255_v43 = vpop.eup %13254  ;;  %10650 = vst.msk [vmem:[%s16243_s23 + $0xf8] sm:$0xff] %vm10618_vm8, %v10521_v16  ;;  %v10519_v6 = vsel %vm10489_vm7, %v13253_v11, %v10164_v55  ;;  %13260 = vrcp.f32 %v9627_v47  ;;  %v8843_v13 = vadd.f32 %v16432_v46, %v8842_v34  ;;  %v12818_v17 = vpop.f32.mrb[102].mxu1 }
 0x99b   : > { %v13257_v56 = vpop.eup %13256  ;;  %10648 = vst.msk [vmem:[%s16243_s23 + $0xe8] sm:$0xff] %vm10618_vm8, %v10519_v6  ;;  %v9625_v19 = vadd.f32 1.0, %v13255_v43  ;;  %v8414_v31 = vpack.c.bf16 %v8333_v62, %v8332_v29  ;;  %v8854_v41 = vadd.f32 %v16432_v46, %v12818_v17  ;;  %10291 = vrot.lane.b32.xlu1 %v8333_v62, %s13723_s21  ;;  %v8845_v25 = vpop.f32.mrb[103].mxu1  ;;  %v11327_v20 = vmul.f32 -1.442695, %v8851_v53 }
 0x99c   : > { %v13259_v1 = vpop.eup %13258  ;;  %v9628_v15 = vadd.f32 1.0, %v13257_v56  ;;  %v8846_v30 = vadd.f32 %v16432_v46, %v8845_v25  ;;  %v8105_v14 = vpop.f32.mrb[124].mxu0  ;;  %v11325_v48 = vmul.f32 -1.442695, %v8843_v13 }
 0x99d   : > { %13262 = vrcp.f32 %v9625_v19  ;;  %v9626_v57 = vadd.f32 1.0, %v13259_v1  ;;  %v8106_v35 = vadd.f32 %v16426_v9, %v8105_v14  ;;  %v8107_v3 = vpop.f32.mrb[125].mxu0  ;;  %12871 = vmatprep.mubr.msk.bf16.mxu1 %vm8471_vm6, %v8414_v31  ;;  %v11328_v22 = vmul.f32 -1.442695, %v8854_v41  ;;  %v10178_v14 = vpop.permute.xlu0 %10177 }
 0x99e   : > { %13264 = vrcp.f32 %v9628_v15  ;;  %v8108_v61 = vpop.f32.mrb[126].mxu0  ;;  %v11326_v28 = vmul.f32 -1.442695, %v8846_v30 }
 0x99f   : > { %13266 = vrcp.f32 %v9626_v57  ;;  %v8334_v37 = vmax.f32 %v8106_v35, 0.0  ;;  %v8109_v12 = vadd.f32 %v16426_v9, %v8108_v61  ;;  %v8110_v8 = vpop.f32.mrb[127].mxu0  ;;  %v10180_v35 = vpop.permute.xlu1 %10179 }
 0x9a0   : > { %13268 = vpow2.f32 %v11327_v20 }
 0x9a1   : > { %13270 = vpow2.f32 %v11325_v48  ;;  %v8335_v40 = vmax.f32 %v8109_v12, 0.0  ;;  %10293 = vrot.lane.b32.xlu0 %v8334_v37, %s13723_s21 }
 0x9a2   : > { %13272 = vpow2.f32 %v11328_v22 }
 0x9a3   : > { %13274 = vpow2.f32 %v11326_v28  ;;  %v8415_v0 = vpack.c.bf16 %v8335_v40, %v8334_v37  ;;  %10295 = vrot.lane.b32.xlu1 %v8335_v40, %s13723_s21  ;;  %v10182_v37 = vpop.permute.xlu0 %10181 }
 0x9a4   : > { %v13261_v10 = vpop.eup %13260  ;;  %v8113_v44 = vpop.f32.mrb[128].mxu0 }
 0x9a5   : > { %v10524_v39 = vsel %vm10489_vm7, %v13261_v10, %v10174_v58  ;;  %v8114_v26 = vadd.f32 %v16426_v9, %v8113_v44  ;;  %v8115_v33 = vpop.f32.mrb[129].mxu0  ;;  %12872 = vmatmul.mubr.msk.bf16.gmra.mrb[156].mxu1 %vm8471_vm6, %v8415_v0  ;;  %v10184_v58 = vpop.permute.xlu1 %10183 }
 0x9a6   : > { %10653 = vst.msk [vmem:[%s16243_s23 + $0x110] sm:$0xff] %vm10618_vm8, %v10524_v39  ;;  %v8116_v5 = vpop.f32.mrb[130].mxu0 }
 0x9a7   : > { %v13263_v54 = vpop.eup %13262  ;;  %v8336_v49 = vmax.f32 %v8114_v26, 0.0  ;;  %v8117_v27 = vadd.f32 %v16426_v9, %v8116_v5  ;;  %v8118_v55 = vpop.f32.mrb[131].mxu0 }
 0x9a8   : > { %v13265_v42 = vpop.eup %13264  ;;  %v10522_v24 = vsel %vm10489_vm7, %v13263_v54, %v10170_v50  ;;  %v12821_v36 = vpop.f32.mrb[104].mxu1 }
 0x9a9   : > { %v13267_v51 = vpop.eup %13266  ;;  %10651 = vst.msk [vmem:[%s16243_s23 + $0x100] sm:$0xff] %vm10618_vm8, %v10522_v24  ;;  %v10525_v52 = vsel %vm10489_vm7, %v13265_v42, %v10176_v4  ;;  %v8337_v2 = vmax.f32 %v8117_v27, 0.0  ;;  %v8867_v63 = vadd.f32 %v16432_v46, %v12821_v36  ;;  %10297 = vrot.lane.b32.xlu0 %v8336_v49, %s13723_s21  ;;  %v8858_v21 = vpop.f32.mrb[105].mxu1 }
 0x9aa   : > { %v13269_v7 = vpop.eup %13268  ;;  %10654 = vst.msk [vmem:[%s16243_s23 + $0x118] sm:$0xff] %vm10618_vm8, %v10525_v52  ;;  %v10523_v45 = vsel %vm10489_vm7, %v13267_v51, %v10172_v23  ;;  %v8859_v29 = vadd.f32 %v16432_v46, %v8858_v21  ;;  %v12822_v18 = vpop.f32.mrb[106].mxu1 }
 0x9ab   : > { %v13271_v60 = vpop.eup %13270  ;;  %10652 = vst.msk [vmem:[%s16243_s23 + $0x108] sm:$0xff] %vm10618_vm8, %v10523_v45  ;;  %v9631_v32 = vadd.f32 1.0, %v13269_v7  ;;  %v8416_v38 = vpack.c.bf16 %v8337_v2, %v8336_v49  ;;  %v8870_v47 = vadd.f32 %v16432_v46, %v12822_v18  ;;  %10299 = vrot.lane.b32.xlu1 %v8337_v2, %s13723_s21  ;;  %v8861_v59 = vpop.f32.mrb[107].mxu1  ;;  %v11331_v6 = vmul.f32 -1.442695, %v8867_v63 }
 0x9ac   : > { %v13273_v11 = vpop.eup %13272  ;;  %v9629_v16 = vadd.f32 1.0, %v13271_v60  ;;  %v8862_v62 = vadd.f32 %v16432_v46, %v8861_v59  ;;  %v8121_v53 = vpop.f32.mrb[132].mxu0  ;;  %v11329_v19 = vmul.f32 -1.442695, %v8859_v29 }
 0x9ad   : > { %v13275_v34 = vpop.eup %13274  ;;  %13276 = vrcp.f32 %v9631_v32  ;;  %v9632_v43 = vadd.f32 1.0, %v13273_v11  ;;  %v8122_v13 = vadd.f32 %v16426_v9, %v8121_v53  ;;  %v8123_v17 = vpop.f32.mrb[133].mxu0  ;;  %12875 = vmatprep.mubr.msk.bf16.mxu1 %vm8471_vm6, %v8416_v38  ;;  %v11332_v41 = vmul.f32 -1.442695, %v8870_v47 }
 0x9ae   : > { %13278 = vrcp.f32 %v9629_v16  ;;  %v9630_v56 = vadd.f32 1.0, %v13275_v34  ;;  %v8124_v31 = vpop.f32.mrb[134].mxu0  ;;  %v11330_v20 = vmul.f32 -1.442695, %v8862_v62 }
 0x9af   : > { %13280 = vrcp.f32 %v9632_v43  ;;  %v8338_v25 = vmax.f32 %v8122_v13, 0.0  ;;  %v8125_v1 = vadd.f32 %v16426_v9, %v8124_v31  ;;  %v8126_v15 = vpop.f32.mrb[135].mxu0  ;;  %v10186_v13 = vpop.permute.xlu0 %10185 }
 0x9b0   : > { %13282 = vrcp.f32 %v9630_v56  ;;  %v10188_v31 = vpop.permute.xlu1 %10187 }
 0x9b1   : > { %13284 = vpow2.f32 %v11331_v6  ;;  %v8339_v30 = vmax.f32 %v8125_v1, 0.0  ;;  %10301 = vrot.lane.b32.xlu0 %v8338_v25, %s13723_s21 }
 0x9b2   : > { %13286 = vpow2.f32 %v11329_v19 }
 0x9b3   : > { %13288 = vpow2.f32 %v11332_v41  ;;  %v8417_v57 = vpack.c.bf16 %v8339_v30, %v8338_v25  ;;  %10303 = vrot.lane.b32.xlu1 %v8339_v30, %s13723_s21 }
 0x9b4   : > { %13290 = vpow2.f32 %v11330_v20  ;;  %v8129_v48 = vpop.f32.mrb[136].mxu0 }
 0x9b5   : > { %v8130_v3 = vadd.f32 %v16426_v9, %v8129_v48  ;;  %v8131_v22 = vpop.f32.mrb[137].mxu0  ;;  %12876 = vmatmul.mubr.msk.bf16.gmra.mrb[160].mxu1 %vm8471_vm6, %v8417_v57 }
 0x9b6   : > { %v8132_v61 = vpop.f32.mrb[138].mxu0 }
 0x9b7   : > { %v13277_v28 = vpop.eup %13276  ;;  %v8340_v12 = vmax.f32 %v8130_v3, 0.0  ;;  %v8133_v8 = vadd.f32 %v16426_v9, %v8132_v61  ;;  %v8134_v50 = vpop.f32.mrb[139].mxu0 }
 0x9b8   : > { %v13279_v40 = vpop.eup %13278  ;;  %v10528_v23 = vsel %vm10489_vm7, %v13277_v28, %v10182_v37  ;;  %v12825_v0 = vpop.f32.mrb[108].mxu1 }
 0x9b9   : > { %v13281_v10 = vpop.eup %13280  ;;  %10657 = vst.msk [vmem:[%s16243_s23 + $0x130] sm:$0xff] %vm10618_vm8, %v10528_v23  ;;  %v10526_v44 = vsel %vm10489_vm7, %v13279_v40, %v10178_v14  ;;  %v8341_v39 = vmax.f32 %v8133_v8, 0.0  ;;  %v8883_v26 = vadd.f32 %v16432_v46, %v12825_v0  ;;  %10305 = vrot.lane.b32.xlu0 %v8340_v12, %s13723_s21  ;;  %v8874_v33 = vpop.f32.mrb[109].mxu1 }
 0x9ba   : > { %v13283_v5 = vpop.eup %13282  ;;  %10655 = vst.msk [vmem:[%s16243_s23 + $0x120] sm:$0xff] %vm10618_vm8, %v10526_v44  ;;  %v10529_v54 = vsel %vm10489_vm7, %v13281_v10, %v10184_v58  ;;  %v8875_v49 = vadd.f32 %v16432_v46, %v8874_v33  ;;  %v12826_v27 = vpop.f32.mrb[110].mxu1 }
 0x9bb   : > { %v13285_v55 = vpop.eup %13284  ;;  %10658 = vst.msk [vmem:[%s16243_s23 + $0x138] sm:$0xff] %vm10618_vm8, %v10529_v54  ;;  %v10527_v42 = vsel %vm10489_vm7, %v13283_v5, %v10180_v35  ;;  %v8418_v4 = vpack.c.bf16 %v8341_v39, %v8340_v12  ;;  %v11335_v24 = vmul.f32 -1.442695, %v8883_v26  ;;  %v8886_v36 = vadd.f32 %v16432_v46, %v12826_v27  ;;  %10307 = vrot.lane.b32.xlu1 %v8341_v39, %s13723_s21  ;;  %v8877_v51 = vpop.f32.mrb[111].mxu1 }
 0x9bc   : > { %v13287_v52 = vpop.eup %13286  ;;  %10656 = vst.msk [vmem:[%s16243_s23 + $0x128] sm:$0xff] %vm10618_vm8, %v10527_v42  ;;  %v9635_v2 = vadd.f32 1.0, %v13285_v55  ;;  %v8878_v63 = vadd.f32 %v16432_v46, %v8877_v51  ;;  %v8137_v21 = vpop.f32.mrb[140].mxu0  ;;  %v11333_v38 = vmul.f32 -1.442695, %v8875_v49 }
 0x9bd   : > { %v13289_v7 = vpop.eup %13288  ;;  %v9633_v45 = vadd.f32 1.0, %v13287_v52  ;;  %13292 = vpow2.f32 %v11335_v24  ;;  %v8138_v29 = vadd.f32 %v16426_v9, %v8137_v21  ;;  %v8139_v18 = vpop.f32.mrb[141].mxu0  ;;  %12879 = vmatprep.mubr.msk.bf16.mxu1 %vm8471_vm6, %v8418_v4  ;;  %v11336_v47 = vmul.f32 -1.442695, %v8886_v36 }
 0x9be   : > { %v13291_v60 = vpop.eup %13290  ;;  %13294 = vrcp.f32 %v9635_v2  ;;  %v9636_v32 = vadd.f32 1.0, %v13289_v7  ;;  %v8140_v59 = vpop.f32.mrb[142].mxu0  ;;  %v11334_v34 = vmul.f32 -1.442695, %v8878_v63 }
 0x9bf   : > { %13296 = vrcp.f32 %v9633_v45  ;;  %v9634_v11 = vadd.f32 1.0, %v13291_v60  ;;  %v8342_v16 = vmax.f32 %v8138_v29, 0.0  ;;  %v8141_v62 = vadd.f32 %v16426_v9, %v8140_v59  ;;  %v8142_v53 = vpop.f32.mrb[143].mxu0  ;;  %v10190_v14 = vpop.permute.xlu0 %10189 }
 0x9c0   : > { %13298 = vrcp.f32 %v9636_v32  ;;  %v10192_v12 = vpop.permute.xlu1 %10191 }
 0x9c1   : > { %13300 = vrcp.f32 %v9634_v11  ;;  %v8343_v43 = vmax.f32 %v8141_v62, 0.0  ;;  %10309 = vrot.lane.b32.xlu0 %v8342_v16, %s13723_s21 }
 0x9c2   : > { %13302 = vpow2.f32 %v11333_v38 }
 0x9c3   : > { %13304 = vpow2.f32 %v11336_v47  ;;  %v8419_v6 = vpack.c.bf16 %v8343_v43, %v8342_v16  ;;  %10311 = vrot.lane.b32.xlu1 %v8343_v43, %s13723_s21  ;;  %v10194_v29 = vpop.permute.xlu0 %10193 }
 0x9c4   : > { %13306 = vpow2.f32 %v11334_v34  ;;  %v8145_v17 = vpop.f32.mrb[144].mxu0  ;;  %v10196_v62 = vpop.permute.xlu1 %10195 }
 0x9c5   : > { %v8146_v56 = vadd.f32 %v16426_v9, %v8145_v17  ;;  %v8147_v19 = vpop.f32.mrb[145].mxu0  ;;  %12880 = vmatmul.mubr.msk.bf16.gmra.mrb[164].mxu1 %vm8471_vm6, %v8419_v6 }
 0x9c6   : > { %v8148_v41 = vpop.f32.mrb[146].mxu0 }
 0x9c7   : > { %v13293_v25 = vpop.eup %13292  ;;  %v8344_v1 = vmax.f32 %v8146_v56, 0.0  ;;  %v8149_v15 = vadd.f32 %v16426_v9, %v8148_v41  ;;  %v8150_v20 = vpop.f32.mrb[147].mxu0 }
 0x9c8   : > { %v13295_v30 = vpop.eup %13294  ;;  %v9639_v57 = vadd.f32 1.0, %v13293_v25  ;;  %v12829_v48 = vpop.f32.mrb[112].mxu1 }
 0x9c9   : > { %v13297_v35 = vpop.eup %13296  ;;  %v10532_v3 = vsel %vm10489_vm7, %v13295_v30, %v10190_v14  ;;  %v8345_v22 = vmax.f32 %v8149_v15, 0.0  ;;  %v8899_v61 = vadd.f32 %v16432_v46, %v12829_v48  ;;  %10313 = vrot.lane.b32.xlu0 %v8344_v1, %s13723_s21  ;;  %v8890_v28 = vpop.f32.mrb[113].mxu1 }
 0x9ca   : > { %v13299_v37 = vpop.eup %13298  ;;  %10661 = vst.msk [vmem:[%s16243_s23 + $0x150] sm:$0xff] %vm10618_vm8, %v10532_v3  ;;  %v10530_v8 = vsel %vm10489_vm7, %v13297_v35, %v10186_v13  ;;  %13308 = vrcp.f32 %v9639_v57  ;;  %v8891_v50 = vadd.f32 %v16432_v46, %v8890_v28  ;;  %v12830_v40 = vpop.f32.mrb[114].mxu1 }
 0x9cb   : > { %v13301_v23 = vpop.eup %13300  ;;  %10659 = vst.msk [vmem:[%s16243_s23 + $0x140] sm:$0xff] %vm10618_vm8, %v10530_v8  ;;  %v10533_v0 = vsel %vm10489_vm7, %v13299_v37, %v10192_v12  ;;  %v8420_v10 = vpack.c.bf16 %v8345_v22, %v8344_v1  ;;  %v11339_v58 = vmul.f32 -1.442695, %v8899_v61  ;;  %v8902_v44 = vadd.f32 %v16432_v46, %v12830_v40  ;;  %10315 = vrot.lane.b32.xlu1 %v8345_v22, %s13723_s21  ;;  %v8893_v39 = vpop.f32.mrb[115].mxu1 }
 0x9cc   : > { %v13303_v26 = vpop.eup %13302  ;;  %10662 = vst.msk [vmem:[%s16243_s23 + $0x158] sm:$0xff] %vm10618_vm8, %v10533_v0  ;;  %v10531_v33 = vsel %vm10489_vm7, %v13301_v23, %v10188_v31  ;;  %v11337_v5 = vmul.f32 -1.442695, %v8891_v50  ;;  %v8894_v54 = vadd.f32 %v16432_v46, %v8893_v39  ;;  %v8153_v49 = vpop.f32.mrb[148].mxu0 }
 0x9cd   : > { %v13305_v27 = vpop.eup %13304  ;;  %10660 = vst.msk [vmem:[%s16243_s23 + $0x148] sm:$0xff] %vm10618_vm8, %v10531_v33  ;;  %v9637_v55 = vadd.f32 1.0, %v13303_v26  ;;  %13310 = vpow2.f32 %v11339_v58  ;;  %v8154_v42 = vadd.f32 %v16426_v9, %v8153_v49  ;;  %v8155_v4 = vpop.f32.mrb[149].mxu0  ;;  %12883 = vmatprep.mubr.msk.bf16.mxu1 %vm8471_vm6, %v8420_v10  ;;  %v11340_v51 = vmul.f32 -1.442695, %v8902_v44 }
 0x9ce   : > { %v13307_v24 = vpop.eup %13306  ;;  %v9640_v36 = vadd.f32 1.0, %v13305_v27  ;;  %13312 = vpow2.f32 %v11337_v5  ;;  %v11338_v52 = vmul.f32 -1.442695, %v8894_v54  ;;  %v8156_v2 = vpop.f32.mrb[150].mxu0 }
 0x9cf   : > { %13314 = vrcp.f32 %v9637_v55  ;;  %v9638_v63 = vadd.f32 1.0, %v13307_v24  ;;  %v8346_v21 = vmax.f32 %v8154_v42, 0.0  ;;  %v8157_v7 = vadd.f32 %v16426_v9, %v8156_v2  ;;  %v8158_v45 = vpop.f32.mrb[151].mxu0  ;;  %v10198_v38 = vpop.permute.xlu0 %10197 }
 0x9d0   : > { %13316 = vrcp.f32 %v9640_v36  ;;  %v10200_v30 = vpop.permute.xlu1 %10199 }
 0x9d1   : > { %13318 = vrcp.f32 %v9638_v63  ;;  %v8347_v18 = vmax.f32 %v8157_v7, 0.0  ;;  %10317 = vrot.lane.b32.xlu0 %v8346_v21, %s13723_s21 }
 0x9d2   : > { %13320 = vpow2.f32 %v11340_v51 }
 0x9d3   : > { %13322 = vpow2.f32 %v11338_v52  ;;  %v8421_v60 = vpack.c.bf16 %v8347_v18, %v8346_v21  ;;  %10319 = vrot.lane.b32.xlu1 %v8347_v18, %s13723_s21  ;;  %v10202_v55 = vpop.permute.xlu0 %10201 }
 0x9d4   : > { %v13309_v32 = vpop.eup %13308  ;;  %v8161_v47 = vpop.f32.mrb[152].mxu0 }
 0x9d5   : > { %v10536_v59 = vsel %vm10489_vm7, %v13309_v32, %v10198_v38  ;;  %v8162_v11 = vadd.f32 %v16426_v9, %v8161_v47  ;;  %v8163_v16 = vpop.f32.mrb[153].mxu0  ;;  %12884 = vmatmul.mubr.msk.bf16.gmra.mrb[168].mxu1 %vm8471_vm6, %v8421_v60  ;;  %v10204_v2 = vpop.permute.xlu1 %10203 }
 0x9d6   : > { %10665 = vst.msk [vmem:[%s16243_s23 + $0x170] sm:$0xff] %vm10618_vm8, %v10536_v59  ;;  %v8164_v53 = vpop.f32.mrb[154].mxu0 }
 0x9d7   : > { %v13311_v34 = vpop.eup %13310  ;;  %v8348_v43 = vmax.f32 %v8162_v11, 0.0  ;;  %v8165_v6 = vadd.f32 %v16426_v9, %v8164_v53  ;;  %v8166_v13 = vpop.f32.mrb[155].mxu0 }
 0x9d8   : > { %v13313_v17 = vpop.eup %13312  ;;  %v9643_v56 = vadd.f32 1.0, %v13311_v34  ;;  %v12833_v19 = vpop.f32.mrb[116].mxu1 }
 0x9d9   : > { %v13315_v31 = vpop.eup %13314  ;;  %v9641_v41 = vadd.f32 1.0, %v13313_v17  ;;  %v8349_v25 = vmax.f32 %v8165_v6, 0.0  ;;  %v8915_v1 = vadd.f32 %v16432_v46, %v12833_v19  ;;  %10321 = vrot.lane.b32.xlu0 %v8348_v43, %s13723_s21  ;;  %v8906_v15 = vpop.f32.mrb[117].mxu1 }
 0x9da   : > { %v13317_v20 = vpop.eup %13316  ;;  %v10534_v14 = vsel %vm10489_vm7, %v13315_v31, %v10194_v29  ;;  %13324 = vrcp.f32 %v9643_v56  ;;  %v8907_v57 = vadd.f32 %v16432_v46, %v8906_v15  ;;  %v12834_v48 = vpop.f32.mrb[118].mxu1 }
 0x9db   : > { %v13319_v35 = vpop.eup %13318  ;;  %10663 = vst.msk [vmem:[%s16243_s23 + $0x160] sm:$0xff] %vm10618_vm8, %v10534_v14  ;;  %v10537_v3 = vsel %vm10489_vm7, %v13317_v20, %v10200_v30  ;;  %13326 = vrcp.f32 %v9641_v41  ;;  %v8422_v22 = vpack.c.bf16 %v8349_v25, %v8348_v43  ;;  %v11343_v61 = vmul.f32 -1.442695, %v8915_v1  ;;  %10323 = vrot.lane.b32.xlu1 %v8349_v25, %s13723_s21  ;;  %v8909_v28 = vpop.f32.mrb[119].mxu1 }
 0x9dc   : > { %v13321_v37 = vpop.eup %13320  ;;  %10666 = vst.msk [vmem:[%s16243_s23 + $0x178] sm:$0xff] %vm10618_vm8, %v10537_v3  ;;  %v10535_v12 = vsel %vm10489_vm7, %v13319_v35, %v10196_v62  ;;  %v11341_v8 = vmul.f32 -1.442695, %v8907_v57  ;;  %v8918_v50 = vadd.f32 %v16432_v46, %v12834_v48  ;;  %v8910_v40 = vadd.f32 %v16432_v46, %v8909_v28  ;;  %v8169_v23 = vpop.f32.mrb[156].mxu0 }
 0x9dd   : > { %v13323_v0 = vpop.eup %13322  ;;  %10664 = vst.msk [vmem:[%s16243_s23 + $0x168] sm:$0xff] %vm10618_vm8, %v10535_v12  ;;  %v9644_v10 = vadd.f32 1.0, %v13321_v37  ;;  %13328 = vpow2.f32 %v11343_v61  ;;  %v8170_v58 = vadd.f32 %v16426_v9, %v8169_v23  ;;  %v8171_v44 = vpop.f32.mrb[157].mxu0  ;;  %12887 = vmatprep.mubr.msk.bf16.mxu1 %vm8471_vm6, %v8422_v22 }
 0x9de   : > { %v9642_v39 = vadd.f32 1.0, %v13323_v0  ;;  %13330 = vpow2.f32 %v11341_v8  ;;  %v11344_v26 = vmul.f32 -1.442695, %v8918_v50  ;;  %v11342_v33 = vmul.f32 -1.442695, %v8910_v40  ;;  %v8172_v5 = vpop.f32.mrb[158].mxu0  ;;  %v10206_v36 = vpop.permute.xlu0 %10205 }
 0x9df   : > { %13332 = vrcp.f32 %v9644_v10  ;;  %v8350_v54 = vmax.f32 %v8170_v58, 0.0  ;;  %v8173_v49 = vadd.f32 %v16426_v9, %v8172_v5  ;;  %v8174_v27 = vpop.f32.mrb[159].mxu0  ;;  %v10208_v62 = vpop.permute.xlu1 %10207 }
 0x9e0   : > { %13334 = vrcp.f32 %v9642_v39 }
 0x9e1   : > { %13336 = vpow2.f32 %v11344_v26  ;;  %v8351_v42 = vmax.f32 %v8173_v49, 0.0  ;;  %10325 = vrot.lane.b32.xlu0 %v8350_v54, %s13723_s21 }
 0x9e2   : > { %13338 = vpow2.f32 %v11342_v33  ;;  %v10210_v23 = vpop.permute.xlu0 %10209 }
 0x9e3   : > { %v8423_v4 = vpack.c.bf16 %v8351_v42, %v8350_v54  ;;  %10327 = vrot.lane.b32.xlu1 %v8351_v42, %s13723_s21  ;;  %v10212_v10 = vpop.permute.xlu1 %10211 }
 0x9e4   : > { %v13325_v24 = vpop.eup %13324  ;;  %v8177_v51 = vpop.f32.mrb[160].mxu0 }
 0x9e5   : > { %v13327_v52 = vpop.eup %13326  ;;  %v10540_v63 = vsel %vm10489_vm7, %v13325_v24, %v10206_v36  ;;  %v8178_v21 = vadd.f32 %v16426_v9, %v8177_v51  ;;  %v8179_v7 = vpop.f32.mrb[161].mxu0  ;;  %12888 = vmatmul.mubr.msk.bf16.gmra.mrb[172].mxu1 %vm8471_vm6, %v8423_v4 }
 0x9e6   : > { %10669 = vst.msk [vmem:[%s16243_s23 + $0x190] sm:$0xff] %vm10618_vm8, %v10540_v63  ;;  %v10538_v45 = vsel %vm10489_vm7, %v13327_v52, %v10202_v55  ;;  %v8180_v29 = vpop.f32.mrb[162].mxu0  ;;  %v10214_v39 = vpop.permute.xlu0 %10213 }
 0x9e7   : > { %v13329_v18 = vpop.eup %13328  ;;  %10667 = vst.msk [vmem:[%s16243_s23 + $0x180] sm:$0xff] %vm10618_vm8, %v10538_v45  ;;  %v8352_v60 = vmax.f32 %v8178_v21, 0.0  ;;  %v8181_v32 = vadd.f32 %v16426_v9, %v8180_v29  ;;  %v8182_v38 = vpop.f32.mrb[163].mxu0 }
 0x9e8   : > { %v13331_v47 = vpop.eup %13330  ;;  %v9647_v59 = vadd.f32 1.0, %v13329_v18  ;;  %v12837_v11 = vpop.f32.mrb[120].mxu1 }
 0x9e9   : > { %v13333_v16 = vpop.eup %13332  ;;  %v9645_v53 = vadd.f32 1.0, %v13331_v47  ;;  %v8353_v34 = vmax.f32 %v8181_v32, 0.0  ;;  %v8931_v43 = vadd.f32 %v16432_v46, %v12837_v11  ;;  %10329 = vrot.lane.b32.xlu0 %v8352_v60, %s13723_s21  ;;  %v8922_v6 = vpop.f32.mrb[121].mxu1 }
 0x9ea   : > { %v13335_v13 = vpop.eup %13334  ;;  %v10541_v17 = vsel %vm10489_vm7, %v13333_v16, %v10208_v62  ;;  %13340 = vrcp.f32 %v9647_v59  ;;  %v8923_v56 = vadd.f32 %v16432_v46, %v8922_v6  ;;  %v12838_v19 = vpop.f32.mrb[122].mxu1 }
 0x9eb   : > { %v13337_v31 = vpop.eup %13336  ;;  %10670 = vst.msk [vmem:[%s16243_s23 + $0x198] sm:$0xff] %vm10618_vm8, %v10541_v17  ;;  %v10539_v41 = vsel %vm10489_vm7, %v13335_v13, %v10204_v2  ;;  %13342 = vrcp.f32 %v9645_v53  ;;  %v8424_v25 = vpack.c.bf16 %v8353_v34, %v8352_v60  ;;  %v11347_v1 = vmul.f32 -1.442695, %v8931_v43  ;;  %10331 = vrot.lane.b32.xlu1 %v8353_v34, %s13723_s21  ;;  %v8925_v15 = vpop.f32.mrb[123].mxu1 }
 0x9ec   : > { %v13339_v20 = vpop.eup %13338  ;;  %10668 = vst.msk [vmem:[%s16243_s23 + $0x188] sm:$0xff] %vm10618_vm8, %v10539_v41  ;;  %v9648_v30 = vadd.f32 1.0, %v13337_v31  ;;  %v11345_v14 = vmul.f32 -1.442695, %v8923_v56  ;;  %v8934_v57 = vadd.f32 %v16432_v46, %v12838_v19  ;;  %v8926_v48 = vadd.f32 %v16432_v46, %v8925_v15  ;;  %v8185_v35 = vpop.f32.mrb[164].mxu0 }
 0x9ed   : > { %v9646_v3 = vadd.f32 1.0, %v13339_v20  ;;  %13344 = vpow2.f32 %v11347_v1  ;;  %v8186_v22 = vadd.f32 %v16426_v9, %v8185_v35  ;;  %v8187_v61 = vpop.f32.mrb[165].mxu0  ;;  %12891 = vmatprep.mubr.msk.bf16.mxu1 %vm8471_vm6, %v8424_v25  ;;  %v10216_v52 = vpop.permute.xlu1 %10215 }
 0x9ee   : > { %13346 = vrcp.f32 %v9648_v30  ;;  %v11348_v28 = vmul.f32 -1.442695, %v8934_v57  ;;  %v11346_v37 = vmul.f32 -1.442695, %v8926_v48  ;;  %v8188_v12 = vpop.f32.mrb[166].mxu0  ;;  %v10218_v57 = vpop.permute.xlu0 %10217 }
 0x9ef   : > { %13348 = vrcp.f32 %v9646_v3  ;;  %v8354_v8 = vmax.f32 %v8186_v22, 0.0  ;;  %v8189_v50 = vadd.f32 %v16426_v9, %v8188_v12  ;;  %v8190_v40 = vpop.f32.mrb[167].mxu0  ;;  %v16633_v30 = vld [vmem:[%s16969_s17] ss:$0 sm:$0xff] }
 0x9f0   : > { %13350 = vpow2.f32 %v11345_v14 }
 0x9f1   : > { %13352 = vpow2.f32 %v11348_v28  ;;  %v8355_v0 = vmax.f32 %v8189_v50, 0.0  ;;  %10333 = vrot.lane.b32.xlu0 %v8354_v8, %s13723_s21  ;;  %v10220_v48 = vpop.permute.xlu1 %10219 }
 0x9f2   : > { %13354 = vpow2.f32 %v11346_v37  ;;  %v10222_v22 = vpop.permute.xlu0 %10221 }
 0x9f3   : > { %v8425_v58 = vpack.c.bf16 %v8355_v0, %v8354_v8  ;;  %10335 = vrot.lane.b32.xlu1 %v8355_v0, %s13723_s21 }
 0x9f4   : > { %v13341_v44 = vpop.eup %13340  ;;  %v8193_v26 = vpop.f32.mrb[168].mxu0 }
 0x9f5   : > { %v13343_v33 = vpop.eup %13342  ;;  %v10544_v5 = vsel %vm10489_vm7, %v13341_v44, %v10214_v39  ;;  %v8194_v54 = vadd.f32 %v16426_v9, %v8193_v26  ;;  %v8195_v49 = vpop.f32.mrb[169].mxu0  ;;  %12892 = vmatmul.mubr.msk.bf16.gmra.mrb[176].mxu1 %vm8471_vm6, %v8425_v58 }
 0x9f6   : > { %10673 = vst.msk [vmem:[%s16243_s23 + $0x1b0] sm:$0xff] %vm10618_vm8, %v10544_v5  ;;  %v10542_v27 = vsel %vm10489_vm7, %v13343_v33, %v10210_v23  ;;  %v8196_v55 = vpop.f32.mrb[170].mxu0  ;;  %v10224_v58 = vpop.permute.xlu1 %10223 }
 0x9f7   : > { %v13345_v42 = vpop.eup %13344  ;;  %10671 = vst.msk [vmem:[%s16243_s23 + $0x1a0] sm:$0xff] %vm10618_vm8, %v10542_v27  ;;  %v8356_v4 = vmax.f32 %v8194_v54, 0.0  ;;  %v8197_v24 = vadd.f32 %v16426_v9, %v8196_v55  ;;  %v8198_v36 = vpop.f32.mrb[171].mxu0  ;;  %v16651_v54 = vld [vmem:[%s16971_s19] ss:$0 sm:$0xff] }
 0x9f8   : > { %v13347_v51 = vpop.eup %13346  ;;  %v9651_v2 = vadd.f32 1.0, %v13345_v42  ;;  %v12841_v63 = vpop.f32.mrb[124].mxu1 }
 0x9f9   : > { %v13349_v21 = vpop.eup %13348  ;;  %v10545_v7 = vsel %vm10489_vm7, %v13347_v51, %v10216_v52  ;;  %v8357_v45 = vmax.f32 %v8197_v24, 0.0  ;;  %v8947_v29 = vadd.f32 %v16432_v46, %v12841_v63  ;;  %10337 = vrot.lane.b32.xlu0 %v8356_v4, %s13723_s21  ;;  %v8938_v18 = vpop.f32.mrb[125].mxu1 }
 0x9fa   : > { %v13351_v60 = vpop.eup %13350  ;;  %10674 = vst.msk [vmem:[%s16243_s23 + $0x1b8] sm:$0xff] %vm10618_vm8, %v10545_v7  ;;  %v10543_v32 = vsel %vm10489_vm7, %v13349_v21, %v10212_v10  ;;  %13356 = vrcp.f32 %v9651_v2  ;;  %v8939_v38 = vadd.f32 %v16432_v46, %v8938_v18  ;;  %v12842_v47 = vpop.f32.mrb[126].mxu1 }
 0x9fb   : > { %v13353_v59 = vpop.eup %13352  ;;  %10672 = vst.msk [vmem:[%s16243_s23 + $0x1a8] sm:$0xff] %vm10618_vm8, %v10543_v32  ;;  %v9649_v11 = vadd.f32 1.0, %v13351_v60  ;;  %v8426_v16 = vpack.c.bf16 %v8357_v45, %v8356_v4  ;;  %v8950_v62 = vadd.f32 %v16432_v46, %v12842_v47  ;;  %10339 = vrot.lane.b32.xlu1 %v8357_v45, %s13723_s21  ;;  %v8941_v53 = vpop.f32.mrb[127].mxu1  ;;  %v11351_v6 = vmul.f32 -1.442695, %v8947_v29 }
 0x9fc   : > { %v13355_v34 = vpop.eup %13354  ;;  %v9652_v43 = vadd.f32 1.0, %v13353_v59  ;;  %v8942_v13 = vadd.f32 %v16432_v46, %v8941_v53  ;;  %v8201_v17 = vpop.f32.mrb[172].mxu0  ;;  %v11349_v19 = vmul.f32 -1.442695, %v8939_v38 }
 0x9fd   : > { %13358 = vrcp.f32 %v9649_v11  ;;  %v9650_v56 = vadd.f32 1.0, %v13355_v34  ;;  %v8202_v31 = vadd.f32 %v16426_v9, %v8201_v17  ;;  %v8203_v41 = vpop.f32.mrb[173].mxu0  ;;  %12895 = vmatprep.mubr.msk.bf16.mxu1 %vm8471_vm6, %v8426_v16  ;;  %v11352_v25 = vmul.f32 -1.442695, %v8950_v62  ;;  %v10226_v17 = vpop.permute.xlu0 %10225 }
 0x9fe   : > { %13360 = vrcp.f32 %v9652_v43  ;;  %v8204_v1 = vpop.f32.mrb[174].mxu0  ;;  %v11350_v15 = vmul.f32 -1.442695, %v8942_v13 }
 0x9ff   : > { %13362 = vrcp.f32 %v9650_v56  ;;  %v8358_v20 = vmax.f32 %v8202_v31, 0.0  ;;  %v8205_v46 = vadd.f32 %v16633_v30, %v8204_v1  ;;  %v8206_v14 = vpop.f32.mrb[175].mxu0  ;;  %v10228_v31 = vpop.permute.xlu1 %10227 }
 0xa00   : > { %13364 = vpow2.f32 %v11351_v6 }
 0xa01   : > { %13366 = vpow2.f32 %v11349_v19  ;;  %v8359_v9 = vmax.f32 %v8205_v46, 0.0  ;;  %10341 = vrot.lane.b32.xlu0 %v8358_v20, %s13723_s21 }
 0xa02   : > { %13368 = vpow2.f32 %v11352_v25 }
 0xa03   : > { %13370 = vpow2.f32 %v11350_v15  ;;  %v8427_v35 = vpack.c.bf16 %v8359_v9, %v8358_v20  ;;  %10343 = vrot.lane.b32.xlu1 %v8359_v9, %s13723_s21  ;;  %v10230_v20 = vpop.permute.xlu0 %10229 }
 0xa04   : > { %v13357_v3 = vpop.eup %13356  ;;  %v8209_v61 = vpop.f32.mrb[176].mxu0 }
 0xa05   : > { %v10548_v28 = vsel %vm10489_vm7, %v13357_v3, %v10222_v22  ;;  %v8210_v37 = vadd.f32 %v16633_v30, %v8209_v61  ;;  %v8211_v12 = vpop.f32.mrb[177].mxu0  ;;  %12896 = vmatmul.mubr.msk.bf16.gmra.mrb[180].mxu1 %vm8471_vm6, %v8427_v35  ;;  %v10232_v22 = vpop.permute.xlu1 %10231 }
 0xa06   : > { %10677 = vst.msk [vmem:[%s16243_s23 + $0x1d0] sm:$0xff] %vm10618_vm8, %v10548_v28  ;;  %v8212_v8 = vpop.f32.mrb[178].mxu0 }
 0xa07   : > { %v13359_v50 = vpop.eup %13358  ;;  %v8360_v40 = vmax.f32 %v8210_v37, 0.0  ;;  %v8213_v23 = vadd.f32 %v16633_v30, %v8212_v8  ;;  %v8214_v0 = vpop.f32.mrb[179].mxu0 }
 0xa08   : > { %v13361_v10 = vpop.eup %13360  ;;  %v10546_v44 = vsel %vm10489_vm7, %v13359_v50, %v10218_v57  ;;  %v12845_v39 = vpop.f32.mrb[128].mxu1 }
 0xa09   : > { %v13363_v26 = vpop.eup %13362  ;;  %10675 = vst.msk [vmem:[%s16243_s23 + $0x1c0] sm:$0xff] %vm10618_vm8, %v10546_v44  ;;  %v10549_v33 = vsel %vm10489_vm7, %v13361_v10, %v10224_v58  ;;  %v8361_v5 = vmax.f32 %v8213_v23, 0.0  ;;  %v8963_v49 = vadd.f32 %v16651_v54, %v12845_v39  ;;  %10345 = vrot.lane.b32.xlu0 %v8360_v40, %s13723_s21  ;;  %v8954_v27 = vpop.f32.mrb[129].mxu1 }
 0xa0a   : > { %v13365_v55 = vpop.eup %13364  ;;  %10678 = vst.msk [vmem:[%s16243_s23 + $0x1d8] sm:$0xff] %vm10618_vm8, %v10549_v33  ;;  %v10547_v42 = vsel %vm10489_vm7, %v13363_v26, %v10220_v48  ;;  %v8955_v4 = vadd.f32 %v16651_v54, %v8954_v27  ;;  %v12846_v24 = vpop.f32.mrb[130].mxu1 }
 0xa0b   : > { %v13367_v36 = vpop.eup %13366  ;;  %10676 = vst.msk [vmem:[%s16243_s23 + $0x1c8] sm:$0xff] %vm10618_vm8, %v10547_v42  ;;  %v9655_v51 = vadd.f32 1.0, %v13365_v55  ;;  %v8428_v52 = vpack.c.bf16 %v8361_v5, %v8360_v40  ;;  %v8966_v2 = vadd.f32 %v16651_v54, %v12846_v24  ;;  %10347 = vrot.lane.b32.xlu1 %v8361_v5, %s13723_s21  ;;  %v8957_v63 = vpop.f32.mrb[131].mxu1  ;;  %v11355_v32 = vmul.f32 -1.442695, %v8963_v49 }
 0xa0c   : > { %v13369_v21 = vpop.eup %13368  ;;  %v9653_v7 = vadd.f32 1.0, %v13367_v36  ;;  %v8958_v45 = vadd.f32 %v16651_v54, %v8957_v63  ;;  %v8217_v29 = vpop.f32.mrb[180].mxu0  ;;  %v11353_v11 = vmul.f32 -1.442695, %v8955_v4 }
 0xa0d   : > { %v13371_v18 = vpop.eup %13370  ;;  %13372 = vrcp.f32 %v9655_v51  ;;  %v9656_v60 = vadd.f32 1.0, %v13369_v21  ;;  %v8218_v38 = vadd.f32 %v16633_v30, %v8217_v29  ;;  %v8219_v47 = vpop.f32.mrb[181].mxu0  ;;  %12899 = vmatprep.mubr.msk.bf16.mxu1 %vm8471_vm6, %v8428_v52  ;;  %v11356_v62 = vmul.f32 -1.442695, %v8966_v2 }
 0xa0e   : > { %13374 = vrcp.f32 %v9653_v7  ;;  %v9654_v59 = vadd.f32 1.0, %v13371_v18  ;;  %v8220_v16 = vpop.f32.mrb[182].mxu0  ;;  %v11354_v6 = vmul.f32 -1.442695, %v8958_v45  ;;  %v10236_v47 = vpop.permute.xlu1 %10235 }
 0xa0f   : > { %13376 = vrcp.f32 %v9656_v60  ;;  %v8362_v53 = vmax.f32 %v8218_v38, 0.0  ;;  %v8221_v34 = vadd.f32 %v16633_v30, %v8220_v16  ;;  %v8222_v43 = vpop.f32.mrb[183].mxu0  ;;  %v10234_v38 = vpop.permute.xlu0 %10233 }
 0xa10   : > { %13378 = vrcp.f32 %v9654_v59 }
 0xa11   : > { %13380 = vpow2.f32 %v11355_v32  ;;  %v8363_v13 = vmax.f32 %v8221_v34, 0.0  ;;  %10349 = vrot.lane.b32.xlu0 %v8362_v53, %s13723_s21 }
 0xa12   : > { %13382 = vpow2.f32 %v11353_v11 }
 0xa13   : > { %13384 = vpow2.f32 %v11356_v62  ;;  %v8429_v56 = vpack.c.bf16 %v8363_v13, %v8362_v53  ;;  %10351 = vrot.lane.b32.xlu1 %v8363_v13, %s13723_s21  ;;  %v10238_v11 = vpop.permute.xlu0 %10237 }
 0xa14   : > { %13386 = vpow2.f32 %v11354_v6  ;;  %v8225_v19 = vpop.f32.mrb[184].mxu0 }
 0xa15   : > { %v8226_v41 = vadd.f32 %v16633_v30, %v8225_v19  ;;  %v8227_v25 = vpop.f32.mrb[185].mxu0  ;;  %12900 = vmatmul.mubr.msk.bf16.gmra.mrb[184].mxu1 %vm8471_vm6, %v8429_v56 }
 0xa16   : > { %v8228_v1 = vpop.f32.mrb[186].mxu0 }
 0xa17   : > { %v13373_v15 = vpop.eup %13372  ;;  %v8364_v46 = vmax.f32 %v8226_v41, 0.0  ;;  %v8229_v14 = vadd.f32 %v16633_v30, %v8228_v1  ;;  %v8230_v57 = vpop.f32.mrb[187].mxu0 }
 0xa18   : > { %v13375_v9 = vpop.eup %13374  ;;  %v10552_v48 = vsel %vm10489_vm7, %v13373_v15, %v10230_v20  ;;  %v12849_v35 = vpop.f32.mrb[132].mxu1 }
 0xa19   : > { %v13377_v3 = vpop.eup %13376  ;;  %10681 = vst.msk [vmem:[%s16243_s23 + $0x1f0] sm:$0xff] %vm10618_vm8, %v10552_v48  ;;  %v10550_v61 = vsel %vm10489_vm7, %v13375_v9, %v10226_v17  ;;  %v8365_v28 = vmax.f32 %v8229_v14, 0.0  ;;  %v8979_v37 = vadd.f32 %v16651_v54, %v12849_v35  ;;  %10353 = vrot.lane.b32.xlu0 %v8364_v46, %s13723_s21  ;;  %v8970_v12 = vpop.f32.mrb[133].mxu1 }
 0xa1a   : > { %v13379_v8 = vpop.eup %13378  ;;  %10679 = vst.msk [vmem:[%s16243_s23 + $0x1e0] sm:$0xff] %vm10618_vm8, %v10550_v61  ;;  %v10553_v50 = vsel %vm10489_vm7, %v13377_v3, %v10232_v22  ;;  %v8971_v40 = vadd.f32 %v16651_v54, %v8970_v12  ;;  %v12850_v23 = vpop.f32.mrb[134].mxu1 }
 0xa1b   : > { %v13381_v0 = vpop.eup %13380  ;;  %10682 = vst.msk [vmem:[%s16243_s23 + $0x1f8] sm:$0xff] %vm10618_vm8, %v10553_v50  ;;  %v10551_v10 = vsel %vm10489_vm7, %v13379_v8, %v10228_v31  ;;  %v8430_v58 = vpack.c.bf16 %v8365_v28, %v8364_v46  ;;  %v11359_v44 = vmul.f32 -1.442695, %v8979_v37  ;;  %v8982_v39 = vadd.f32 %v16651_v54, %v12850_v23  ;;  %10355 = vrot.lane.b32.xlu1 %v8365_v28, %s13723_s21  ;;  %v8973_v26 = vpop.f32.mrb[135].mxu1 }
 0xa1c   : > { %v13383_v33 = vpop.eup %13382  ;;  %10680 = vst.msk [vmem:[%s16243_s23 + $0x1e8] sm:$0xff] %vm10618_vm8, %v10551_v10  ;;  %v9659_v5 = vadd.f32 1.0, %v13381_v0  ;;  %v8974_v49 = vadd.f32 %v16651_v54, %v8973_v26  ;;  %v8233_v27 = vpop.f32.mrb[188].mxu0  ;;  %v11357_v52 = vmul.f32 -1.442695, %v8971_v40 }
 0xa1d   : > { %v13385_v55 = vpop.eup %13384  ;;  %v9657_v42 = vadd.f32 1.0, %v13383_v33  ;;  %13388 = vpow2.f32 %v11359_v44  ;;  %v8234_v4 = vadd.f32 %v16633_v30, %v8233_v27  ;;  %v8235_v24 = vpop.f32.mrb[189].mxu0  ;;  %12903 = vmatprep.mubr.msk.bf16.mxu1 %vm8471_vm6, %v8430_v58  ;;  %v11360_v2 = vmul.f32 -1.442695, %v8982_v39 }
 0xa1e   : > { %v13387_v36 = vpop.eup %13386  ;;  %13390 = vrcp.f32 %v9659_v5  ;;  %v9660_v51 = vadd.f32 1.0, %v13385_v55  ;;  %v8236_v63 = vpop.f32.mrb[190].mxu0  ;;  %v11358_v18 = vmul.f32 -1.442695, %v8974_v49 }
 0xa1f   : > { %13392 = vrcp.f32 %v9657_v42  ;;  %v9658_v21 = vadd.f32 1.0, %v13387_v36  ;;  %v8366_v7 = vmax.f32 %v8234_v4, 0.0  ;;  %v8237_v45 = vadd.f32 %v16633_v30, %v8236_v63  ;;  %v8238_v29 = vpop.f32.mrb[191].mxu0  ;;  %v10240_v17 = vpop.permute.xlu1 %10239 }
 0xa20   : > { %13394 = vrcp.f32 %v9660_v51  ;;  %v10242_v12 = vpop.permute.xlu0 %10241 }
 0xa21   : > { %13396 = vrcp.f32 %v9658_v21  ;;  %v8367_v60 = vmax.f32 %v8237_v45, 0.0  ;;  %10357 = vrot.lane.b32.xlu0 %v8366_v7, %s13723_s21 }
 0xa22   : > { %13398 = vpow2.f32 %v11357_v52 }
 0xa23   : > { %13400 = vpow2.f32 %v11360_v2  ;;  %v8431_v32 = vpack.c.bf16 %v8367_v60, %v8366_v7  ;;  %10359 = vrot.lane.b32.xlu1 %v8367_v60, %s13723_s21  ;;  %v10244_v23 = vpop.permute.xlu1 %10243 }
 0xa24   : > { %13402 = vpow2.f32 %v11358_v18  ;;  %v10246_v50 = vpop.permute.xlu0 %10245 }
 0xa25   : > { %12904 = vmatmul.mubr.msk.bf16.gmra.mrb[188].mxu1 %vm8471_vm6, %v8431_v32 }
 0xa27   : > { %v13389_v59 = vpop.eup %13388  ;;  %v10248_v27 = vpop.permute.xlu1 %10247 }
 0xa28   : > { %v13391_v30 = vpop.eup %13390  ;;  %v9663_v16 = vadd.f32 1.0, %v13389_v59  ;;  %v12853_v62 = vpop.f32.mrb[136].mxu1 }
 0xa29   : > { %v13393_v53 = vpop.eup %13392  ;;  %v10556_v34 = vsel %vm10489_vm7, %v13391_v30, %v10238_v11  ;;  %v8995_v43 = vadd.f32 %v16651_v54, %v12853_v62  ;;  %v8986_v6 = vpop.f32.mrb[137].mxu1 }
 0xa2a   : > { %v13395_v13 = vpop.eup %13394  ;;  %10685 = vst.msk [vmem:[%s16243_s23 + $0x210] sm:$0xff] %vm10618_vm8, %v10556_v34  ;;  %v10554_v56 = vsel %vm10489_vm7, %v13393_v53, %v10234_v38  ;;  %13404 = vrcp.f32 %v9663_v16  ;;  %v8987_v19 = vadd.f32 %v16651_v54, %v8986_v6  ;;  %v12854_v31 = vpop.f32.mrb[138].mxu1 }
 0xa2b   : > { %v13397_v41 = vpop.eup %13396  ;;  %10683 = vst.msk [vmem:[%s16243_s23 + $0x200] sm:$0xff] %vm10618_vm8, %v10554_v56  ;;  %v10557_v25 = vsel %vm10489_vm7, %v13395_v13, %v10240_v17  ;;  %v11363_v1 = vmul.f32 -1.442695, %v8995_v43  ;;  %v8998_v15 = vadd.f32 %v16651_v54, %v12854_v31  ;;  %v8989_v20 = vpop.f32.mrb[139].mxu1 }
 0xa2c   : > { %v13399_v46 = vpop.eup %13398  ;;  %10686 = vst.msk [vmem:[%s16243_s23 + $0x218] sm:$0xff] %vm10618_vm8, %v10557_v25  ;;  %v10555_v14 = vsel %vm10489_vm7, %v13397_v41, %v10236_v47  ;;  %v11361_v57 = vmul.f32 -1.442695, %v8987_v19  ;;  %v8990_v9 = vadd.f32 %v16651_v54, %v8989_v20  ;;  %v10250_v47 = vpop.permute.xlu0 %10249 }
 0xa2d   : > { %v13401_v48 = vpop.eup %13400  ;;  %10684 = vst.msk [vmem:[%s16243_s23 + $0x208] sm:$0xff] %vm10618_vm8, %v10555_v14  ;;  %v9661_v35 = vadd.f32 1.0, %v13399_v46  ;;  %13406 = vpow2.f32 %v11363_v1  ;;  %v11364_v61 = vmul.f32 -1.442695, %v8998_v15  ;;  %v10252_v16 = vpop.permute.xlu1 %10251 }
 0xa2e   : > { %v13403_v3 = vpop.eup %13402  ;;  %v9664_v22 = vadd.f32 1.0, %v13401_v48  ;;  %13408 = vpow2.f32 %v11361_v57  ;;  %v11362_v37 = vmul.f32 -1.442695, %v8990_v9 }
 0xa2f   : > { %13410 = vrcp.f32 %v9661_v35  ;;  %v9662_v28 = vadd.f32 1.0, %v13403_v3 }
 0xa30   : > { %13412 = vrcp.f32 %v9664_v22  ;;  %v10254_v30 = vpop.permute.xlu0 %10253 }
 0xa31   : > { %13414 = vrcp.f32 %v9662_v28  ;;  %v10256_v56 = vpop.permute.xlu1 %10255 }
 0xa32   : > { %13416 = vpow2.f32 %v11364_v61 }
 0xa33   : > { %13418 = vpow2.f32 %v11362_v37 }
 0xa34   : > { %v13405_v8 = vpop.eup %13404 }
 0xa35   : > { %v10560_v40 = vsel %vm10489_vm7, %v13405_v8, %v10246_v50  ;;  %v10258_v8 = vpop.permute.xlu0 %10257 }
 0xa36   : > { %10689 = vst.msk [vmem:[%s16243_s23 + $0x230] sm:$0xff] %vm10618_vm8, %v10560_v40  ;;  %v10260_v40 = vpop.permute.xlu1 %10259 }
 0xa37   : > { %v13407_v0 = vpop.eup %13406 }
 0xa38   : > { %v13409_v10 = vpop.eup %13408  ;;  %v9667_v58 = vadd.f32 1.0, %v13407_v0  ;;  %v12857_v44 = vpop.f32.mrb[140].mxu1 }
 0xa39   : > { %v13411_v39 = vpop.eup %13410  ;;  %v9665_v26 = vadd.f32 1.0, %v13409_v10  ;;  %v9011_v33 = vadd.f32 %v16651_v54, %v12857_v44  ;;  %v9002_v5 = vpop.f32.mrb[141].mxu1 }
 0xa3a   : > { %v13413_v49 = vpop.eup %13412  ;;  %v10558_v55 = vsel %vm10489_vm7, %v13411_v39, %v10242_v12  ;;  %13420 = vrcp.f32 %v9667_v58  ;;  %v9003_v42 = vadd.f32 %v16651_v54, %v9002_v5  ;;  %v12858_v4 = vpop.f32.mrb[142].mxu1 }
 0xa3b   : > { %v13415_v24 = vpop.eup %13414  ;;  %10687 = vst.msk [vmem:[%s16243_s23 + $0x220] sm:$0xff] %vm10618_vm8, %v10558_v55  ;;  %v10561_v36 = vsel %vm10489_vm7, %v13413_v49, %v10248_v27  ;;  %13422 = vrcp.f32 %v9665_v26  ;;  %v11367_v51 = vmul.f32 -1.442695, %v9011_v33  ;;  %v9014_v52 = vadd.f32 %v16651_v54, %v12858_v4  ;;  %v9005_v2 = vpop.f32.mrb[143].mxu1 }
 0xa3c   : > { %v13417_v63 = vpop.eup %13416  ;;  %10690 = vst.msk [vmem:[%s16243_s23 + $0x238] sm:$0xff] %vm10618_vm8, %v10561_v36  ;;  %v10559_v21 = vsel %vm10489_vm7, %v13415_v24, %v10244_v23  ;;  %v11365_v7 = vmul.f32 -1.442695, %v9003_v42  ;;  %v9006_v45 = vadd.f32 %v16651_v54, %v9005_v2  ;;  %v10262_v23 = vpop.permute.xlu0 %10261 }
 0xa3d   : > { %v13419_v29 = vpop.eup %13418  ;;  %10688 = vst.msk [vmem:[%s16243_s23 + $0x228] sm:$0xff] %vm10618_vm8, %v10559_v21  ;;  %v9668_v18 = vadd.f32 1.0, %v13417_v63  ;;  %13424 = vpow2.f32 %v11367_v51  ;;  %v11368_v60 = vmul.f32 -1.442695, %v9014_v52  ;;  %v10264_v26 = vpop.permute.xlu1 %10263 }
 0xa3e   : > { %v9666_v32 = vadd.f32 1.0, %v13419_v29  ;;  %13426 = vpow2.f32 %v11365_v7  ;;  %v11366_v38 = vmul.f32 -1.442695, %v9006_v45 }
 0xa3f   : > { %13428 = vrcp.f32 %v9668_v18 }
 0xa40   : > { %13430 = vrcp.f32 %v9666_v32 }
 0xa41   : > { %13432 = vpow2.f32 %v11368_v60 }
 0xa42   : > { %13434 = vpow2.f32 %v11366_v38 }
 0xa44   : > { %v13421_v59 = vpop.eup %13420 }
 0xa45   : > { %v13423_v11 = vpop.eup %13422  ;;  %v10564_v62 = vsel %vm10489_vm7, %v13421_v59, %v10254_v30  ;;  %v10266_v59 = vpop.permute.xlu0 %10265 }
 0xa46   : > { %10693 = vst.msk [vmem:[%s16243_s23 + $0x250] sm:$0xff] %vm10618_vm8, %v10564_v62  ;;  %v10562_v53 = vsel %vm10489_vm7, %v13423_v11, %v10250_v47  ;;  %v10268_v11 = vpop.permute.xlu1 %10267 }
 0xa47   : > { %v13425_v34 = vpop.eup %13424  ;;  %10691 = vst.msk [vmem:[%s16243_s23 + $0x240] sm:$0xff] %vm10618_vm8, %v10562_v53 }
 0xa48   : > { %v13427_v43 = vpop.eup %13426  ;;  %v9671_v6 = vadd.f32 1.0, %v13425_v34  ;;  %v12861_v13 = vpop.f32.mrb[144].mxu1 }
 0xa49   : > { %v13429_v17 = vpop.eup %13428  ;;  %v9669_v19 = vadd.f32 1.0, %v13427_v43  ;;  %v9027_v31 = vadd.f32 %v16651_v54, %v12861_v13  ;;  %v9018_v41 = vpop.f32.mrb[145].mxu1 }
 0xa4a   : > { %v13431_v25 = vpop.eup %13430  ;;  %v10565_v1 = vsel %vm10489_vm7, %v13429_v17, %v10256_v56  ;;  %13436 = vrcp.f32 %v9671_v6  ;;  %v9019_v15 = vadd.f32 %v16651_v54, %v9018_v41  ;;  %v12862_v20 = vpop.f32.mrb[146].mxu1 }
 0xa4b   : > { %v13433_v46 = vpop.eup %13432  ;;  %10694 = vst.msk [vmem:[%s16243_s23 + $0x258] sm:$0xff] %vm10618_vm8, %v10565_v1  ;;  %v10563_v14 = vsel %vm10489_vm7, %v13431_v25, %v10252_v16  ;;  %13438 = vrcp.f32 %v9669_v19  ;;  %v11371_v57 = vmul.f32 -1.442695, %v9027_v31  ;;  %v9030_v9 = vadd.f32 %v16651_v54, %v12862_v20  ;;  %v9021_v48 = vpop.f32.mrb[147].mxu1 }
 0xa4c   : > { %v13435_v35 = vpop.eup %13434  ;;  %10692 = vst.msk [vmem:[%s16243_s23 + $0x248] sm:$0xff] %vm10618_vm8, %v10563_v14  ;;  %v9672_v3 = vadd.f32 1.0, %v13433_v46  ;;  %v11369_v22 = vmul.f32 -1.442695, %v9019_v15  ;;  %v9022_v61 = vadd.f32 %v16651_v54, %v9021_v48  ;;  %v10270_v16 = vpop.permute.xlu0 %10269 }
 0xa4d   : > { %v9670_v28 = vadd.f32 1.0, %v13435_v35  ;;  %13440 = vpow2.f32 %v11371_v57  ;;  %v11372_v37 = vmul.f32 -1.442695, %v9030_v9  ;;  %v10272_v43 = vpop.permute.xlu1 %10271 }
 0xa4e   : > { %13442 = vrcp.f32 %v9672_v3  ;;  %v11370_v12 = vmul.f32 -1.442695, %v9022_v61 }
 0xa4f   : > { %13444 = vrcp.f32 %v9670_v28 }
 0xa50   : > { %13446 = vpow2.f32 %v11369_v22 }
 0xa51   : > { %13448 = vpow2.f32 %v11372_v37 }
 0xa52   : > { %13450 = vpow2.f32 %v11370_v12 }
 0xa54   : > { %v13437_v50 = vpop.eup %13436 }
 0xa55   : > { %v13439_v0 = vpop.eup %13438  ;;  %v10568_v10 = vsel %vm10489_vm7, %v13437_v50, %v10262_v23  ;;  %v10274_v50 = vpop.permute.xlu0 %10273 }
 0xa56   : > { %10697 = vst.msk [vmem:[%s16243_s23 + $0x270] sm:$0xff] %vm10618_vm8, %v10568_v10  ;;  %v10566_v58 = vsel %vm10489_vm7, %v13439_v0, %v10258_v8 }
 0xa57   : > { %v13441_v44 = vpop.eup %13440  ;;  %10695 = vst.msk [vmem:[%s16243_s23 + $0x260] sm:$0xff] %vm10618_vm8, %v10566_v58 }
 0xa58   : > { %v13443_v39 = vpop.eup %13442  ;;  %v9675_v33 = vadd.f32 1.0, %v13441_v44  ;;  %v12865_v5 = vpop.f32.mrb[148].mxu1 }
 0xa59   : > { %v13445_v49 = vpop.eup %13444  ;;  %v10569_v27 = vsel %vm10489_vm7, %v13443_v39, %v10264_v26  ;;  %v9043_v55 = vadd.f32 %v16651_v54, %v12865_v5  ;;  %v9034_v42 = vpop.f32.mrb[149].mxu1 }
 0xa5a   : > { %v13447_v4 = vpop.eup %13446  ;;  %10698 = vst.msk [vmem:[%s16243_s23 + $0x278] sm:$0xff] %vm10618_vm8, %v10569_v27  ;;  %v10567_v24 = vsel %vm10489_vm7, %v13445_v49, %v10260_v40  ;;  %13452 = vrcp.f32 %v9675_v33  ;;  %v9035_v36 = vadd.f32 %v16651_v54, %v9034_v42  ;;  %v12866_v51 = vpop.f32.mrb[150].mxu1 }
 0xa5b   : > { %v13449_v52 = vpop.eup %13448  ;;  %10696 = vst.msk [vmem:[%s16243_s23 + $0x268] sm:$0xff] %vm10618_vm8, %v10567_v24  ;;  %v9673_v2 = vadd.f32 1.0, %v13447_v4  ;;  %v9046_v63 = vadd.f32 %v16651_v54, %v12866_v51  ;;  %v9037_v21 = vpop.f32.mrb[151].mxu1  ;;  %v11375_v29 = vmul.f32 -1.442695, %v9043_v55 }
 0xa5c   : > { %v13451_v7 = vpop.eup %13450  ;;  %v9676_v45 = vadd.f32 1.0, %v13449_v52  ;;  %v9038_v18 = vadd.f32 %v16651_v54, %v9037_v21  ;;  %v11373_v32 = vmul.f32 -1.442695, %v9035_v36  ;;  %v10276_v40 = vpop.permute.xlu1 %10275 }
 0xa5d   : > { %13454 = vrcp.f32 %v9673_v2  ;;  %v9674_v60 = vadd.f32 1.0, %v13451_v7  ;;  %v11376_v38 = vmul.f32 -1.442695, %v9046_v63  ;;  %v10278_v0 = vpop.permute.xlu0 %10277 }
 0xa5e   : > { %13456 = vrcp.f32 %v9676_v45  ;;  %v11374_v47 = vmul.f32 -1.442695, %v9038_v18 }
 0xa5f   : > { %13458 = vrcp.f32 %v9674_v60 }
 0xa60   : > { %13460 = vpow2.f32 %v11375_v29  ;;  %v10280_v26 = vpop.permute.xlu1 %10279 }
 0xa61   : > { %13462 = vpow2.f32 %v11373_v32 }
 0xa62   : > { %13464 = vpow2.f32 %v11376_v38 }
 0xa63   : > { %13466 = vpow2.f32 %v11374_v47 }
 0xa64   : > { %v13453_v30 = vpop.eup %13452 }
 0xa65   : > { %v10572_v62 = vsel %vm10489_vm7, %v13453_v30, %v10270_v16  ;;  %v10282_v30 = vpop.permute.xlu0 %10281 }
 0xa66   : > { %10701 = vst.msk [vmem:[%s16243_s23 + $0x290] sm:$0xff] %vm10618_vm8, %v10572_v62 }
 0xa67   : > { %v13455_v53 = vpop.eup %13454 }
 0xa68   : > { %v13457_v34 = vpop.eup %13456  ;;  %v10570_v6 = vsel %vm10489_vm7, %v13455_v53, %v10266_v59  ;;  %v12869_v13 = vpop.f32.mrb[152].mxu1 }
 0xa69   : > { %v13459_v17 = vpop.eup %13458  ;;  %10699 = vst.msk [vmem:[%s16243_s23 + $0x280] sm:$0xff] %vm10618_vm8, %v10570_v6  ;;  %v10573_v56 = vsel %vm10489_vm7, %v13457_v34, %v10272_v43  ;;  %v9059_v19 = vadd.f32 %v16651_v54, %v12869_v13  ;;  %v9050_v31 = vpop.f32.mrb[153].mxu1 }
 0xa6a   : > { %v13461_v41 = vpop.eup %13460  ;;  %10702 = vst.msk [vmem:[%s16243_s23 + $0x298] sm:$0xff] %vm10618_vm8, %v10573_v56  ;;  %v10571_v25 = vsel %vm10489_vm7, %v13459_v17, %v10268_v11  ;;  %v9051_v1 = vadd.f32 %v16651_v54, %v9050_v31  ;;  %v12870_v15 = vpop.f32.mrb[154].mxu1 }
 0xa6b   : > { %v13463_v20 = vpop.eup %13462  ;;  %10700 = vst.msk [vmem:[%s16243_s23 + $0x288] sm:$0xff] %vm10618_vm8, %v10571_v25  ;;  %v9679_v46 = vadd.f32 1.0, %v13461_v41  ;;  %v9062_v14 = vadd.f32 %v16651_v54, %v12870_v15  ;;  %v9053_v57 = vpop.f32.mrb[155].mxu1  ;;  %v11379_v61 = vmul.f32 -1.442695, %v9059_v19 }
 0xa6c   : > { %v13465_v9 = vpop.eup %13464  ;;  %v9677_v48 = vadd.f32 1.0, %v13463_v20  ;;  %v9054_v35 = vadd.f32 %v16651_v54, %v9053_v57  ;;  %v11377_v37 = vmul.f32 -1.442695, %v9051_v1  ;;  %v10284_v11 = vpop.permute.xlu1 %10283 }
 0xa6d   : > { %v13467_v3 = vpop.eup %13466  ;;  %13468 = vrcp.f32 %v9679_v46  ;;  %v9680_v22 = vadd.f32 1.0, %v13465_v9  ;;  %v11380_v12 = vmul.f32 -1.442695, %v9062_v14  ;;  %v10286_v53 = vpop.permute.xlu0 %10285 }
 0xa6e   : > { %13470 = vrcp.f32 %v9677_v48  ;;  %v9678_v28 = vadd.f32 1.0, %v13467_v3  ;;  %v11378_v8 = vmul.f32 -1.442695, %v9054_v35 }
 0xa6f   : > { %13472 = vrcp.f32 %v9680_v22 }
 0xa70   : > { %13474 = vrcp.f32 %v9678_v28  ;;  %v10288_v31 = vpop.permute.xlu1 %10287 }
 0xa71   : > { %13476 = vpow2.f32 %v11379_v61 }
 0xa72   : > { %13478 = vpow2.f32 %v11377_v37 }
 0xa73   : > { %13480 = vpow2.f32 %v11380_v12 }
 0xa74   : > { %13482 = vpow2.f32 %v11378_v8 }
 0xa77   : > { %v13469_v23 = vpop.eup %13468 }
 0xa78   : > { %v13471_v10 = vpop.eup %13470  ;;  %v10576_v58 = vsel %vm10489_vm7, %v13469_v23, %v10278_v0  ;;  %v12873_v44 = vpop.f32.mrb[156].mxu1 }
 0xa79   : > { %v13473_v39 = vpop.eup %13472  ;;  %10705 = vst.msk [vmem:[%s16243_s23 + $0x2b0] sm:$0xff] %vm10618_vm8, %v10576_v58  ;;  %v10574_v33 = vsel %vm10489_vm7, %v13471_v10, %v10274_v50  ;;  %v9075_v5 = vadd.f32 %v16651_v54, %v12873_v44  ;;  %v9066_v49 = vpop.f32.mrb[157].mxu1 }
 0xa7a   : > { %v13475_v27 = vpop.eup %13474  ;;  %10703 = vst.msk [vmem:[%s16243_s23 + $0x2a0] sm:$0xff] %vm10618_vm8, %v10574_v33  ;;  %v10577_v55 = vsel %vm10489_vm7, %v13473_v39, %v10280_v26  ;;  %v9067_v42 = vadd.f32 %v16651_v54, %v9066_v49  ;;  %v12874_v4 = vpop.f32.mrb[158].mxu1 }
 0xa7b   : > { %v13477_v24 = vpop.eup %13476  ;;  %10706 = vst.msk [vmem:[%s16243_s23 + $0x2b8] sm:$0xff] %vm10618_vm8, %v10577_v55  ;;  %v10575_v36 = vsel %vm10489_vm7, %v13475_v27, %v10276_v40  ;;  %v11383_v51 = vmul.f32 -1.442695, %v9075_v5  ;;  %v9078_v52 = vadd.f32 %v16651_v54, %v12874_v4  ;;  %v9069_v2 = vpop.f32.mrb[159].mxu1 }
 0xa7c   : > { %v13479_v63 = vpop.eup %13478  ;;  %10704 = vst.msk [vmem:[%s16243_s23 + $0x2a8] sm:$0xff] %vm10618_vm8, %v10575_v36  ;;  %v9683_v21 = vadd.f32 1.0, %v13477_v24  ;;  %v9070_v7 = vadd.f32 %v16651_v54, %v9069_v2  ;;  %v11381_v32 = vmul.f32 -1.442695, %v9067_v42  ;;  %v10290_v40 = vpop.permute.xlu0 %10289 }
 0xa7d   : > { %v13481_v45 = vpop.eup %13480  ;;  %v9681_v29 = vadd.f32 1.0, %v13479_v63  ;;  %13484 = vpow2.f32 %v11383_v51  ;;  %v11384_v47 = vmul.f32 -1.442695, %v9078_v52  ;;  %v10292_v58 = vpop.permute.xlu1 %10291 }
 0xa7e   : > { %v13483_v18 = vpop.eup %13482  ;;  %13486 = vrcp.f32 %v9683_v21  ;;  %v9684_v60 = vadd.f32 1.0, %v13481_v45  ;;  %v11382_v59 = vmul.f32 -1.442695, %v9070_v7 }
 0xa7f   : > { %13488 = vrcp.f32 %v9681_v29  ;;  %v9682_v38 = vadd.f32 1.0, %v13483_v18 }
 0xa80   : > { %13490 = vrcp.f32 %v9684_v60  ;;  %v10294_v0 = vpop.permute.xlu0 %10293 }
 0xa81   : > { %13492 = vrcp.f32 %v9682_v38  ;;  %v10296_v4 = vpop.permute.xlu1 %10295 }
 0xa82   : > { %13494 = vpow2.f32 %v11381_v32 }
 0xa83   : > { %13496 = vpow2.f32 %v11384_v47 }
 0xa84   : > { %13498 = vpow2.f32 %v11382_v59 }
 0xa87   : > { %v13485_v16 = vpop.eup %13484 }
 0xa88   : > { %v13487_v62 = vpop.eup %13486  ;;  %v9687_v34 = vadd.f32 1.0, %v13485_v16  ;;  %v12877_v43 = vpop.f32.mrb[160].mxu1 }
 0xa89   : > { %v13489_v6 = vpop.eup %13488  ;;  %v10580_v13 = vsel %vm10489_vm7, %v13487_v62, %v10286_v53  ;;  %v9091_v17 = vadd.f32 %v16651_v54, %v12877_v43  ;;  %v9082_v56 = vpop.f32.mrb[161].mxu1 }
 0xa8a   : > { %v13491_v19 = vpop.eup %13490  ;;  %10709 = vst.msk [vmem:[%s16243_s23 + $0x2d0] sm:$0xff] %vm10618_vm8, %v10580_v13  ;;  %v10578_v41 = vsel %vm10489_vm7, %v13489_v6, %v10282_v30  ;;  %13500 = vrcp.f32 %v9687_v34  ;;  %v9083_v25 = vadd.f32 %v16651_v54, %v9082_v56  ;;  %v12878_v1 = vpop.f32.mrb[162].mxu1 }
 0xa8b   : > { %v13493_v15 = vpop.eup %13492  ;;  %10707 = vst.msk [vmem:[%s16243_s23 + $0x2c0] sm:$0xff] %vm10618_vm8, %v10578_v41  ;;  %v10581_v20 = vsel %vm10489_vm7, %v13491_v19, %v10288_v31  ;;  %v11387_v46 = vmul.f32 -1.442695, %v9091_v17  ;;  %v9094_v14 = vadd.f32 %v16651_v54, %v12878_v1  ;;  %v9085_v57 = vpop.f32.mrb[163].mxu1 }
 0xa8c   : > { %v13495_v9 = vpop.eup %13494  ;;  %10710 = vst.msk [vmem:[%s16243_s23 + $0x2d8] sm:$0xff] %vm10618_vm8, %v10581_v20  ;;  %v10579_v48 = vsel %vm10489_vm7, %v13493_v15, %v10284_v11  ;;  %v11385_v35 = vmul.f32 -1.442695, %v9083_v25  ;;  %v9086_v3 = vadd.f32 %v16651_v54, %v9085_v57  ;;  %v10298_v11 = vpop.permute.xlu0 %10297 }
 0xa8d   : > { %v13497_v22 = vpop.eup %13496  ;;  %10708 = vst.msk [vmem:[%s16243_s23 + $0x2c8] sm:$0xff] %vm10618_vm8, %v10579_v48  ;;  %v9685_v61 = vadd.f32 1.0, %v13495_v9  ;;  %13502 = vpow2.f32 %v11387_v46  ;;  %v11388_v12 = vmul.f32 -1.442695, %v9094_v14  ;;  %v10300_v34 = vpop.permute.xlu1 %10299 }
 0xa8e   : > { %v13499_v28 = vpop.eup %13498  ;;  %v9688_v37 = vadd.f32 1.0, %v13497_v22  ;;  %13504 = vpow2.f32 %v11385_v35  ;;  %v11386_v50 = vmul.f32 -1.442695, %v9086_v3 }
 0xa8f   : > { %13506 = vrcp.f32 %v9685_v61  ;;  %v9686_v8 = vadd.f32 1.0, %v13499_v28 }
 0xa90   : > { %13508 = vrcp.f32 %v9688_v37  ;;  %v10302_v62 = vpop.permute.xlu0 %10301 }
 0xa91   : > { %13510 = vrcp.f32 %v9686_v8  ;;  %v10304_v41 = vpop.permute.xlu1 %10303 }
 0xa92   : > { %13512 = vpow2.f32 %v11388_v12 }
 0xa93   : > { %13514 = vpow2.f32 %v11386_v50 }
 0xa94   : > { %v13501_v23 = vpop.eup %13500 }
 0xa95   : > { %v10584_v10 = vsel %vm10489_vm7, %v13501_v23, %v10294_v0  ;;  %v10306_v23 = vpop.permute.xlu0 %10305 }
 0xa96   : > { %10713 = vst.msk [vmem:[%s16243_s23 + $0x2f0] sm:$0xff] %vm10618_vm8, %v10584_v10  ;;  %v10308_v10 = vpop.permute.xlu1 %10307 }
 0xa97   : > { %v13503_v44 = vpop.eup %13502 }
 0xa98   : > { %v13505_v39 = vpop.eup %13504  ;;  %v9691_v26 = vadd.f32 1.0, %v13503_v44  ;;  %v12881_v33 = vpop.f32.mrb[164].mxu1 }
 0xa99   : > { %v13507_v5 = vpop.eup %13506  ;;  %v9689_v49 = vadd.f32 1.0, %v13505_v39  ;;  %v9107_v27 = vadd.f32 %v16651_v54, %v12881_v33  ;;  %v9098_v55 = vpop.f32.mrb[165].mxu1 }
 0xa9a   : > { %v13509_v42 = vpop.eup %13508  ;;  %v10582_v24 = vsel %vm10489_vm7, %v13507_v5, %v10290_v40  ;;  %13516 = vrcp.f32 %v9691_v26  ;;  %v9099_v36 = vadd.f32 %v16651_v54, %v9098_v55  ;;  %v12882_v51 = vpop.f32.mrb[166].mxu1 }
 0xa9b   : > { %v13511_v52 = vpop.eup %13510  ;;  %10711 = vst.msk [vmem:[%s16243_s23 + $0x2e0] sm:$0xff] %vm10618_vm8, %v10582_v24  ;;  %v10585_v2 = vsel %vm10489_vm7, %v13509_v42, %v10296_v4  ;;  %13518 = vrcp.f32 %v9689_v49  ;;  %v11391_v63 = vmul.f32 -1.442695, %v9107_v27  ;;  %v9110_v21 = vadd.f32 %v16651_v54, %v12882_v51  ;;  %v9101_v7 = vpop.f32.mrb[167].mxu1  ;;  %v16850_v4 = vld [vmem:[%s16971_s19] ss:$0 sm:$0xff] }
 0xa9c   : > { %v13513_v45 = vpop.eup %13512  ;;  %10714 = vst.msk [vmem:[%s16243_s23 + $0x2f8] sm:$0xff] %vm10618_vm8, %v10585_v2  ;;  %v10583_v29 = vsel %vm10489_vm7, %v13511_v52, %v10292_v58  ;;  %v11389_v18 = vmul.f32 -1.442695, %v9099_v36  ;;  %v9102_v60 = vadd.f32 %v16651_v54, %v9101_v7  ;;  %v10310_v58 = vpop.permute.xlu0 %10309 }
 0xa9d   : > { %v13515_v32 = vpop.eup %13514  ;;  %10712 = vst.msk [vmem:[%s16243_s23 + $0x2e8] sm:$0xff] %vm10618_vm8, %v10583_v29  ;;  %v9692_v38 = vadd.f32 1.0, %v13513_v45  ;;  %13520 = vpow2.f32 %v11391_v63  ;;  %v11392_v47 = vmul.f32 -1.442695, %v9110_v21  ;;  %v10312_v5 = vpop.permute.xlu1 %10311 }
 0xa9e   : > { %v9690_v59 = vadd.f32 1.0, %v13515_v32  ;;  %13522 = vpow2.f32 %v11389_v18  ;;  %v11390_v30 = vmul.f32 -1.442695, %v9102_v60 }
 0xa9f   : > { %13524 = vrcp.f32 %v9692_v38 }
 0xaa0   : > { %13526 = vrcp.f32 %v9690_v59 }
 0xaa1   : > { %13528 = vpow2.f32 %v11392_v47 }
 0xaa2   : > { %13530 = vpow2.f32 %v11390_v30 }
 0xaa4   : > { %v13517_v16 = vpop.eup %13516 }
 0xaa5   : > { %v13519_v53 = vpop.eup %13518  ;;  %v10588_v43 = vsel %vm10489_vm7, %v13517_v16, %v10302_v62  ;;  %v10314_v16 = vpop.permute.xlu0 %10313 }
 0xaa6   : > { %10717 = vst.msk [vmem:[%s16243_s23 + $0x310] sm:$0xff] %vm10618_vm8, %v10588_v43  ;;  %v10586_v6 = vsel %vm10489_vm7, %v13519_v53, %v10298_v11  ;;  %v10316_v53 = vpop.permute.xlu1 %10315 }
 0xaa7   : > { %v13521_v13 = vpop.eup %13520  ;;  %10715 = vst.msk [vmem:[%s16243_s23 + $0x300] sm:$0xff] %vm10618_vm8, %v10586_v6 }
 0xaa8   : > { %v13523_v17 = vpop.eup %13522  ;;  %v9695_v56 = vadd.f32 1.0, %v13521_v13  ;;  %v12885_v19 = vpop.f32.mrb[168].mxu1 }
 0xaa9   : > { %v13525_v31 = vpop.eup %13524  ;;  %v9693_v25 = vadd.f32 1.0, %v13523_v17  ;;  %v9123_v1 = vadd.f32 %v16651_v54, %v12885_v19  ;;  %v9114_v15 = vpop.f32.mrb[169].mxu1 }
 0xaaa   : > { %v13527_v20 = vpop.eup %13526  ;;  %v10589_v46 = vsel %vm10489_vm7, %v13525_v31, %v10304_v41  ;;  %13532 = vrcp.f32 %v9695_v56  ;;  %v9115_v14 = vadd.f32 %v16651_v54, %v9114_v15  ;;  %v12886_v57 = vpop.f32.mrb[170].mxu1 }
 0xaab   : > { %v13529_v9 = vpop.eup %13528  ;;  %10718 = vst.msk [vmem:[%s16243_s23 + $0x318] sm:$0xff] %vm10618_vm8, %v10589_v46  ;;  %v10587_v48 = vsel %vm10489_vm7, %v13527_v20, %v10300_v34  ;;  %13534 = vrcp.f32 %v9693_v25  ;;  %v11395_v35 = vmul.f32 -1.442695, %v9123_v1  ;;  %v9126_v3 = vadd.f32 %v16651_v54, %v12886_v57  ;;  %v9117_v22 = vpop.f32.mrb[171].mxu1 }
 0xaac   : > { %v13531_v61 = vpop.eup %13530  ;;  %10716 = vst.msk [vmem:[%s16243_s23 + $0x308] sm:$0xff] %vm10618_vm8, %v10587_v48  ;;  %v9696_v28 = vadd.f32 1.0, %v13529_v9  ;;  %v11393_v37 = vmul.f32 -1.442695, %v9115_v14  ;;  %v9118_v12 = vadd.f32 %v16651_v54, %v9117_v22  ;;  %v10318_v34 = vpop.permute.xlu0 %10317 }
 0xaad   : > { %v9694_v8 = vadd.f32 1.0, %v13531_v61  ;;  %13536 = vpow2.f32 %v11395_v35  ;;  %v11396_v50 = vmul.f32 -1.442695, %v9126_v3  ;;  %v10320_v17 = vpop.permute.xlu1 %10319 }
 0xaae   : > { %13538 = vrcp.f32 %v9696_v28  ;;  %v11394_v40 = vmul.f32 -1.442695, %v9118_v12 }
 0xaaf   : > { %13540 = vrcp.f32 %v9694_v8 }
 0xab0   : > { %13542 = vpow2.f32 %v11393_v37 }
 0xab1   : > { %13544 = vpow2.f32 %v11396_v50 }
 0xab2   : > { %13546 = vpow2.f32 %v11394_v40 }
 0xab4   : > { %v13533_v0 = vpop.eup %13532 }
 0xab5   : > { %v13535_v44 = vpop.eup %13534  ;;  %v10592_v39 = vsel %vm10489_vm7, %v13533_v0, %v10310_v58  ;;  %v10322_v0 = vpop.permute.xlu0 %10321 }
 0xab6   : > { %10721 = vst.msk [vmem:[%s16243_s23 + $0x330] sm:$0xff] %vm10618_vm8, %v10592_v39  ;;  %v10590_v54 = vsel %vm10489_vm7, %v13535_v44, %v10306_v23 }
 0xab7   : > { %v13537_v26 = vpop.eup %13536  ;;  %10719 = vst.msk [vmem:[%s16243_s23 + $0x320] sm:$0xff] %vm10618_vm8, %v10590_v54 }
 0xab8   : > { %v13539_v33 = vpop.eup %13538  ;;  %v9699_v49 = vadd.f32 1.0, %v13537_v26  ;;  %v12889_v27 = vpop.f32.mrb[172].mxu1 }
 0xab9   : > { %v13541_v55 = vpop.eup %13540  ;;  %v10593_v42 = vsel %vm10489_vm7, %v13539_v33, %v10312_v5  ;;  %v9139_v24 = vadd.f32 %v16850_v4, %v12889_v27  ;;  %v9130_v36 = vpop.f32.mrb[173].mxu1 }
 0xaba   : > { %v13543_v51 = vpop.eup %13542  ;;  %10722 = vst.msk [vmem:[%s16243_s23 + $0x338] sm:$0xff] %vm10618_vm8, %v10593_v42  ;;  %v10591_v52 = vsel %vm10489_vm7, %v13541_v55, %v10308_v10  ;;  %13548 = vrcp.f32 %v9699_v49  ;;  %v9131_v2 = vadd.f32 %v16850_v4, %v9130_v36  ;;  %v12890_v63 = vpop.f32.mrb[174].mxu1 }
 0xabb   : > { %v13545_v21 = vpop.eup %13544  ;;  %10720 = vst.msk [vmem:[%s16243_s23 + $0x328] sm:$0xff] %vm10618_vm8, %v10591_v52  ;;  %v9697_v7 = vadd.f32 1.0, %v13543_v51  ;;  %v9142_v45 = vadd.f32 %v16850_v4, %v12890_v63  ;;  %v9133_v29 = vpop.f32.mrb[175].mxu1  ;;  %v11399_v32 = vmul.f32 -1.442695, %v9139_v24 }
 0xabc   : > { %v13547_v18 = vpop.eup %13546  ;;  %v9700_v60 = vadd.f32 1.0, %v13545_v21  ;;  %v9134_v38 = vadd.f32 %v16850_v4, %v9133_v29  ;;  %v11397_v59 = vmul.f32 -1.442695, %v9131_v2  ;;  %v10324_v10 = vpop.permute.xlu1 %10323 }
 0xabd   : > { %13550 = vrcp.f32 %v9697_v7  ;;  %v9698_v47 = vadd.f32 1.0, %v13547_v18  ;;  %v11400_v30 = vmul.f32 -1.442695, %v9142_v45  ;;  %v10326_v44 = vpop.permute.xlu0 %10325 }
 0xabe   : > { %13552 = vrcp.f32 %v9700_v60  ;;  %v11398_v11 = vmul.f32 -1.442695, %v9134_v38 }
 0xabf   : > { %13554 = vrcp.f32 %v9698_v47 }
 0xac0   : > { %13556 = vpow2.f32 %v11399_v32  ;;  %v10328_v5 = vpop.permute.xlu1 %10327 }
 0xac1   : > { %13558 = vpow2.f32 %v11397_v59 }
 0xac2   : > { %13560 = vpow2.f32 %v11400_v30 }
 0xac3   : > { %13562 = vpow2.f32 %v11398_v11 }
 0xac4   : > { %v13549_v62 = vpop.eup %13548 }
 0xac5   : > { %v10596_v43 = vsel %vm10489_vm7, %v13549_v62, %v10318_v34  ;;  %v10330_v62 = vpop.permute.xlu0 %10329 }
 0xac6   : > { %10725 = vst.msk [vmem:[%s16243_s23 + $0x350] sm:$0xff] %vm10618_vm8, %v10596_v43 }
 0xac7   : > { %v13551_v6 = vpop.eup %13550 }
 0xac8   : > { %v13553_v13 = vpop.eup %13552  ;;  %v10594_v56 = vsel %vm10489_vm7, %v13551_v6, %v10314_v16  ;;  %v12893_v19 = vpop.f32.mrb[176].mxu1 }
 0xac9   : > { %v13555_v31 = vpop.eup %13554  ;;  %10723 = vst.msk [vmem:[%s16243_s23 + $0x340] sm:$0xff] %vm10618_vm8, %v10594_v56  ;;  %v10597_v41 = vsel %vm10489_vm7, %v13553_v13, %v10320_v17  ;;  %v9155_v25 = vadd.f32 %v16850_v4, %v12893_v19  ;;  %v9146_v1 = vpop.f32.mrb[177].mxu1 }
 0xaca   : > { %v13557_v15 = vpop.eup %13556  ;;  %10726 = vst.msk [vmem:[%s16243_s23 + $0x358] sm:$0xff] %vm10618_vm8, %v10597_v41  ;;  %v10595_v20 = vsel %vm10489_vm7, %v13555_v31, %v10316_v53  ;;  %v9147_v46 = vadd.f32 %v16850_v4, %v9146_v1  ;;  %v12894_v14 = vpop.f32.mrb[178].mxu1 }
 0xacb   : > { %v13559_v57 = vpop.eup %13558  ;;  %10724 = vst.msk [vmem:[%s16243_s23 + $0x348] sm:$0xff] %vm10618_vm8, %v10595_v20  ;;  %v9703_v9 = vadd.f32 1.0, %v13557_v15  ;;  %v9158_v48 = vadd.f32 %v16850_v4, %v12894_v14  ;;  %v9149_v35 = vpop.f32.mrb[179].mxu1  ;;  %v11403_v12 = vmul.f32 -1.442695, %v9155_v25 }
 0xacc   : > { %v13561_v3 = vpop.eup %13560  ;;  %v9701_v22 = vadd.f32 1.0, %v13559_v57  ;;  %v9150_v61 = vadd.f32 %v16850_v4, %v9149_v35  ;;  %v11401_v50 = vmul.f32 -1.442695, %v9147_v46  ;;  %v10332_v53 = vpop.permute.xlu1 %10331 }
 0xacd   : > { %v13563_v28 = vpop.eup %13562  ;;  %13564 = vrcp.f32 %v9703_v9  ;;  %v9704_v37 = vadd.f32 1.0, %v13561_v3  ;;  %v11404_v40 = vmul.f32 -1.442695, %v9158_v48  ;;  %v10334_v6 = vpop.permute.xlu0 %10333 }
 0xace   : > { %13566 = vrcp.f32 %v9701_v22  ;;  %v9702_v8 = vadd.f32 1.0, %v13563_v28  ;;  %v11402_v23 = vmul.f32 -1.442695, %v9150_v61 }
 0xacf   : > { %13568 = vrcp.f32 %v9704_v37 }
 0xad0   : > { %13570 = vrcp.f32 %v9702_v8  ;;  %v10336_v1 = vpop.permute.xlu1 %10335 }
 0xad1   : > { %13572 = vpow2.f32 %v11403_v12 }
 0xad2   : > { %13574 = vpow2.f32 %v11401_v50 }
 0xad3   : > { %13576 = vpow2.f32 %v11404_v40 }
 0xad4   : > { %13578 = vpow2.f32 %v11402_v23 }
 0xad7   : > { %v13565_v58 = vpop.eup %13564 }
 0xad8   : > { %v13567_v39 = vpop.eup %13566  ;;  %v10600_v54 = vsel %vm10489_vm7, %v13565_v58, %v10326_v44  ;;  %v12897_v26 = vpop.f32.mrb[180].mxu1 }
 0xad9   : > { %v13569_v33 = vpop.eup %13568  ;;  %10729 = vst.msk [vmem:[%s16243_s23 + $0x370] sm:$0xff] %vm10618_vm8, %v10600_v54  ;;  %v10598_v49 = vsel %vm10489_vm7, %v13567_v39, %v10322_v0  ;;  %v9171_v27 = vadd.f32 %v16850_v4, %v12897_v26  ;;  %v9162_v55 = vpop.f32.mrb[181].mxu1 }
 0xada   : > { %v13571_v42 = vpop.eup %13570  ;;  %10727 = vst.msk [vmem:[%s16243_s23 + $0x360] sm:$0xff] %vm10618_vm8, %v10598_v49  ;;  %v10601_v24 = vsel %vm10489_vm7, %v13569_v33, %v10328_v5  ;;  %v9163_v36 = vadd.f32 %v16850_v4, %v9162_v55  ;;  %v12898_v51 = vpop.f32.mrb[182].mxu1 }
 0xadb   : > { %v13573_v52 = vpop.eup %13572  ;;  %10730 = vst.msk [vmem:[%s16243_s23 + $0x378] sm:$0xff] %vm10618_vm8, %v10601_v24  ;;  %v10599_v2 = vsel %vm10489_vm7, %v13571_v42, %v10324_v10  ;;  %v11407_v63 = vmul.f32 -1.442695, %v9171_v27  ;;  %v9174_v21 = vadd.f32 %v16850_v4, %v12898_v51  ;;  %v9165_v7 = vpop.f32.mrb[183].mxu1 }
 0xadc   : > { %v13575_v45 = vpop.eup %13574  ;;  %10728 = vst.msk [vmem:[%s16243_s23 + $0x368] sm:$0xff] %vm10618_vm8, %v10599_v2  ;;  %v9707_v29 = vadd.f32 1.0, %v13573_v52  ;;  %v9166_v18 = vadd.f32 %v16850_v4, %v9165_v7  ;;  %v11405_v59 = vmul.f32 -1.442695, %v9163_v36  ;;  %v10338_v10 = vpop.permute.xlu0 %10337 }
 0xadd   : > { %v13577_v60 = vpop.eup %13576  ;;  %v9705_v32 = vadd.f32 1.0, %v13575_v45  ;;  %13580 = vpow2.f32 %v11407_v63  ;;  %v11408_v11 = vmul.f32 -1.442695, %v9174_v21  ;;  %v10340_v54 = vpop.permute.xlu1 %10339 }
 0xade   : > { %v13579_v38 = vpop.eup %13578  ;;  %13582 = vrcp.f32 %v9707_v29  ;;  %v9708_v47 = vadd.f32 1.0, %v13577_v60  ;;  %v11406_v16 = vmul.f32 -1.442695, %v9166_v18 }
 0xadf   : > { %13584 = vrcp.f32 %v9705_v32  ;;  %v9706_v30 = vadd.f32 1.0, %v13579_v38 }
 0xae0   : > { %13586 = vrcp.f32 %v9708_v47  ;;  %v10342_v44 = vpop.permute.xlu0 %10341 }
 0xae1   : > { %13588 = vrcp.f32 %v9706_v30  ;;  %v10344_v51 = vpop.permute.xlu1 %10343 }
 0xae2   : > { %13590 = vpow2.f32 %v11405_v59 }
 0xae3   : > { %13592 = vpow2.f32 %v11408_v11 }
 0xae4   : > { %13594 = vpow2.f32 %v11406_v16 }
 0xae7   : > { %v13581_v34 = vpop.eup %13580 }
 0xae8   : > { %v13583_v43 = vpop.eup %13582  ;;  %v9711_v13 = vadd.f32 1.0, %v13581_v34  ;;  %v12901_v17 = vpop.f32.mrb[184].mxu1 }
 0xae9   : > { %v13585_v56 = vpop.eup %13584  ;;  %v10604_v19 = vsel %vm10489_vm7, %v13583_v43, %v10334_v6  ;;  %v9187_v31 = vadd.f32 %v16850_v4, %v12901_v17  ;;  %v9178_v41 = vpop.f32.mrb[185].mxu1 }
 0xaea   : > { %v13587_v25 = vpop.eup %13586  ;;  %10733 = vst.msk [vmem:[%s16243_s23 + $0x390] sm:$0xff] %vm10618_vm8, %v10604_v19  ;;  %v10602_v15 = vsel %vm10489_vm7, %v13585_v56, %v10330_v62  ;;  %13596 = vrcp.f32 %v9711_v13  ;;  %v9179_v20 = vadd.f32 %v16850_v4, %v9178_v41  ;;  %v12902_v46 = vpop.f32.mrb[186].mxu1 }
 0xaeb   : > { %v13589_v14 = vpop.eup %13588  ;;  %10731 = vst.msk [vmem:[%s16243_s23 + $0x380] sm:$0xff] %vm10618_vm8, %v10602_v15  ;;  %v10605_v57 = vsel %vm10489_vm7, %v13587_v25, %v10336_v1  ;;  %v11411_v9 = vmul.f32 -1.442695, %v9187_v31  ;;  %v9190_v48 = vadd.f32 %v16850_v4, %v12902_v46  ;;  %v9181_v35 = vpop.f32.mrb[187].mxu1 }
 0xaec   : > { %v13591_v3 = vpop.eup %13590  ;;  %10734 = vst.msk [vmem:[%s16243_s23 + $0x398] sm:$0xff] %vm10618_vm8, %v10605_v57  ;;  %v10603_v22 = vsel %vm10489_vm7, %v13589_v14, %v10332_v53  ;;  %v11409_v61 = vmul.f32 -1.442695, %v9179_v20  ;;  %v9182_v28 = vadd.f32 %v16850_v4, %v9181_v35  ;;  %v10346_v53 = vpop.permute.xlu0 %10345 }
 0xaed   : > { %v13593_v37 = vpop.eup %13592  ;;  %10732 = vst.msk [vmem:[%s16243_s23 + $0x388] sm:$0xff] %vm10618_vm8, %v10603_v22  ;;  %v9709_v12 = vadd.f32 1.0, %v13591_v3  ;;  %13598 = vpow2.f32 %v11411_v9  ;;  %v11412_v40 = vmul.f32 -1.442695, %v9190_v48 }
 0xaee   : > { %v13595_v8 = vpop.eup %13594  ;;  %v9712_v50 = vadd.f32 1.0, %v13593_v37  ;;  %13600 = vpow2.f32 %v11409_v61  ;;  %v11410_v0 = vmul.f32 -1.442695, %v9182_v28 }
 0xaef   : > { %13602 = vrcp.f32 %v9709_v12  ;;  %v9710_v23 = vadd.f32 1.0, %v13595_v8 }
 0xaf0   : > { %13604 = vrcp.f32 %v9712_v50  ;;  %v10350_v43 = vpop.permute.xlu0 %10349 }
 0xaf1   : > { %13606 = vrcp.f32 %v9710_v23 }
 0xaf2   : > { %13608 = vpow2.f32 %v11412_v40 }
 0xaf3   : > { %13610 = vpow2.f32 %v11410_v0 }
 0xaf4   : > { %v13597_v58 = vpop.eup %13596  ;;  %v10354_v35 = vpop.permute.xlu0 %10353 }
 0xaf5   : > { %v10608_v39 = vsel %vm10489_vm7, %v13597_v58, %v10342_v44 }
 0xaf6   : > { %10737 = vst.msk [vmem:[%s16243_s23 + $0x3b0] sm:$0xff] %vm10618_vm8, %v10608_v39 }
 0xaf7   : > { %v13599_v26 = vpop.eup %13598 }
 0xaf8   : > { %v13601_v33 = vpop.eup %13600  ;;  %v9715_v5 = vadd.f32 1.0, %v13599_v26  ;;  %v12905_v49 = vpop.f32.mrb[188].mxu1 }
 0xaf9   : > { %v13603_v27 = vpop.eup %13602  ;;  %v9713_v55 = vadd.f32 1.0, %v13601_v33  ;;  %v9203_v42 = vadd.f32 %v16850_v4, %v12905_v49  ;;  %v9194_v24 = vpop.f32.mrb[189].mxu1 }
 0xafa   : > { %v13605_v36 = vpop.eup %13604  ;;  %v10606_v52 = vsel %vm10489_vm7, %v13603_v27, %v10338_v10  ;;  %13612 = vrcp.f32 %v9715_v5  ;;  %v9195_v2 = vadd.f32 %v16850_v4, %v9194_v24  ;;  %v12906_v63 = vpop.f32.mrb[190].mxu1 }
 0xafb   : > { %v13607_v21 = vpop.eup %13606  ;;  %10735 = vst.msk [vmem:[%s16243_s23 + $0x3a0] sm:$0xff] %vm10618_vm8, %v10606_v52  ;;  %v10609_v7 = vsel %vm10489_vm7, %v13605_v36, %v10344_v51  ;;  %13614 = vrcp.f32 %v9713_v55  ;;  %v11415_v45 = vmul.f32 -1.442695, %v9203_v42  ;;  %v9206_v29 = vadd.f32 %v16850_v4, %v12906_v63  ;;  %v9197_v18 = vpop.f32.mrb[191].mxu1 }
 0xafc   : > { %v13609_v60 = vpop.eup %13608  ;;  %10738 = vst.msk [vmem:[%s16243_s23 + $0x3b8] sm:$0xff] %vm10618_vm8, %v10609_v7  ;;  %v10607_v32 = vsel %vm10489_vm7, %v13607_v21, %v10340_v54  ;;  %v11413_v38 = vmul.f32 -1.442695, %v9195_v2  ;;  %v9198_v47 = vadd.f32 %v16850_v4, %v9197_v18  ;;  %v10348_v4 = vpop.permute.xlu1 %10347 }
 0xafd   : > { %v13611_v59 = vpop.eup %13610  ;;  %10736 = vst.msk [vmem:[%s16243_s23 + $0x3a8] sm:$0xff] %vm10618_vm8, %v10607_v32  ;;  %v9716_v30 = vadd.f32 1.0, %v13609_v60  ;;  %13616 = vpow2.f32 %v11415_v45  ;;  %v11416_v11 = vmul.f32 -1.442695, %v9206_v29  ;;  %v10358_v61 = vpop.permute.xlu0 %10357 }
 0xafe   : > { %v9714_v16 = vadd.f32 1.0, %v13611_v59  ;;  %13618 = vpow2.f32 %v11413_v38  ;;  %v11414_v62 = vmul.f32 -1.442695, %v9198_v47 }
 0xaff   : > { %13620 = vrcp.f32 %v9716_v30 }
 0xb00   : > { %13622 = vrcp.f32 %v9714_v16  ;;  %v10352_v25 = vpop.permute.xlu1 %10351 }
 0xb01   : > { %13624 = vpow2.f32 %v11416_v11 }
 0xb02   : > { %13626 = vpow2.f32 %v11414_v62 }
 0xb04   : > { %v13613_v34 = vpop.eup %13612  ;;  %v10356_v22 = vpop.permute.xlu1 %10355 }
 0xb05   : > { %v13615_v6 = vpop.eup %13614  ;;  %v10612_v13 = vsel %vm10489_vm7, %v13613_v34, %v10350_v43 }
 0xb06   : > { %10741 = vst.msk [vmem:[%s16243_s23 + $0x3d0] sm:$0xff] %vm10618_vm8, %v10612_v13  ;;  %v10610_v17 = vsel %vm10489_vm7, %v13615_v6, %v10346_v53 }
 0xb07   : > { %v13617_v56 = vpop.eup %13616  ;;  %10739 = vst.msk [vmem:[%s16243_s23 + $0x3c0] sm:$0xff] %vm10618_vm8, %v10610_v17 }
 0xb08   : > { %v13619_v19 = vpop.eup %13618  ;;  %v9719_v31 = vadd.f32 1.0, %v13617_v56  ;;  %v10360_v50 = vpop.permute.xlu1 %10359 }
 0xb09   : > { %v13621_v41 = vpop.eup %13620  ;;  %v9717_v1 = vadd.f32 1.0, %v13619_v19 }
 0xb0a   : > { %v13623_v15 = vpop.eup %13622  ;;  %v10613_v20 = vsel %vm10489_vm7, %v13621_v41, %v10352_v25  ;;  %13628 = vrcp.f32 %v9719_v31 }
 0xb0b   : > { %v13625_v46 = vpop.eup %13624  ;;  %10742 = vst.msk [vmem:[%s16243_s23 + $0x3d8] sm:$0xff] %vm10618_vm8, %v10613_v20  ;;  %v10611_v14 = vsel %vm10489_vm7, %v13623_v15, %v10348_v4  ;;  %13630 = vrcp.f32 %v9717_v1 }
 0xb0c   : > { %v13627_v57 = vpop.eup %13626  ;;  %10740 = vst.msk [vmem:[%s16243_s23 + $0x3c8] sm:$0xff] %vm10618_vm8, %v10611_v14  ;;  %v9720_v9 = vadd.f32 1.0, %v13625_v46 }
 0xb0d   : > { %v9718_v48 = vadd.f32 1.0, %v13627_v57 }
 0xb0e   : > { %13632 = vrcp.f32 %v9720_v9 }
 0xb0f   : > { %13634 = vrcp.f32 %v9718_v48 }
 0xb14   : > { %v13629_v3 = vpop.eup %13628 }
 0xb15   : > { %v13631_v28 = vpop.eup %13630  ;;  %v10616_v37 = vsel %vm10489_vm7, %v13629_v3, %v10358_v61 }
 0xb16   : > { %10745 = vst.msk [vmem:[%s16243_s23 + $0x3f0] sm:$0xff] %vm10618_vm8, %v10616_v37  ;;  %v10614_v12 = vsel %vm10489_vm7, %v13631_v28, %v10354_v35 }
 0xb17   : > { %10743 = vst.msk [vmem:[%s16243_s23 + $0x3e0] sm:$0xff] %vm10618_vm8, %v10614_v12 }
 0xb18   : > { %v13633_v8 = vpop.eup %13632 }
 0xb19   : > { %v13635_v40 = vpop.eup %13634  ;;  %v10617_v23 = vsel %vm10489_vm7, %v13633_v8, %v10360_v50 }
 0xb1a   : > { %10746 = vst.msk [vmem:[%s16243_s23 + $0x3f8] sm:$0xff] %vm10618_vm8, %v10617_v23  ;;  %v10615_v0 = vsel %vm10489_vm7, %v13635_v40, %v10356_v22 }
 0xb1b   : > { %10744 = vst.msk [vmem:[%s16243_s23 + $0x3e8] sm:$0xff] %vm10618_vm8, %v10615_v0 }
 0xb1c PF: > { %s30_s1 = sadd.s32 1, %s13719_s1  }
 0xb1d   : > { %p27_p4 = scmp.ge.s32.totalorder %s30_s1, 6  }
 0xb1f   :  { %29 = sbr.rel (!%p27_p4) target bundleno = 6 (0x6), region = 133 }

</bundles_post_ra>
